<compile_context>
chip_gen: v7x
topology: tpu7x:2x2x1
jax: 0.10.0
libtpu: 0.0.40
codegen_flags: <defaults>
</compile_context>

<pallas_src>
import functools

import jax
import jax.numpy as jnp
from jax.experimental import pallas as pl
from jax.experimental.pallas import tpu as pltpu


N_ACTIONS = 6  # env.action_space.n for ALE/SpaceInvaders-v5
LANE = 128

FC_HIDDEN = 512
FC_TN1 = 256        # FC1 column tile (contiguous weight block per grid step)
FC_NCORES = 2       # parallel grid axis for v7x megacore (harmless elsewhere)


def _round_up(x, m):
    return ((x + m - 1) // m) * m


# ---------------------------------------------------------------------------
# Pallas kernel 1: single-K-step matmul + bias (+ fused ReLU)  [used by convs]
# ---------------------------------------------------------------------------
def _matmul_bias_kernel(a_ref, b_ref, bias_ref, o_ref, *, apply_relu):
    r = jnp.dot(a_ref[...], b_ref[...], preferred_element_type=jnp.float32)
    r = r + bias_ref[...]                      # (tm,tn) + (1,tn) broadcast, f32
    if apply_relu:
        r = jnp.maximum(r, 0.0)
    o_ref[...] = r.astype(o_ref.dtype)


def matmul_bias_relu(a, b, bias, *, tm, apply_relu=True, out_dtype=jnp.bfloat16):
    """relu_opt(a @ b + bias), single K step.

    a: (Mp, Kp) bf16 (pre-padded), b: (Kp, Np) bf16, bias: (1, Np) f32.
    Mp % tm == 0, Np % 128 == 0, Kp % 8 == 0.
    """
    Mp, Kp = a.shape
    Kp2, Np = b.shape
    assert Kp == Kp2 and Mp % tm == 0 and Np % LANE == 0 and Kp % 8 == 0
    tn = LANE
    grid = (Mp // tm, Np // tn)

    kernel = functools.partial(_matmul_bias_kernel, apply_relu=apply_relu)
    return pl.pallas_call(
        kernel,
        out_shape=jax.ShapeDtypeStruct((Mp, Np), out_dtype),
        grid_spec=pltpu.PrefetchScalarGridSpec(
            num_scalar_prefetch=0,
            grid=grid,
            in_specs=[
                pl.BlockSpec((tm, Kp), lambda i, j: (i, 0)),
                pl.BlockSpec((Kp, tn), lambda i, j: (0, j)),
                pl.BlockSpec((1, tn), lambda i, j: (0, j)),
            ],
            out_specs=pl.BlockSpec((tm, tn), lambda i, j: (i, j)),
        ),
        compiler_params=pltpu.CompilerParams(
            dimension_semantics=("parallel", "parallel")),
    )(a, b, bias)


# ---------------------------------------------------------------------------
# Pallas kernel 2: fused FC1 (+ReLU) + FC2
#   grid = (FC_NCORES parallel, col-blocks-per-core arbitrary)
#   Each (core, step) consumes one contiguous (K1, tn1) FC1 weight block and
#   accumulates its FC2 partial directly into that core's resident f32 output.
# ---------------------------------------------------------------------------
def _fc_fused_kernel(x_ref, w1_ref, b1_ref, w2_ref, o_ref):
    j = pl.program_id(1)

    @pl.when(j == 0)
    def _():
        o_ref[...] = jnp.zeros_like(o_ref)

    # h_cb = relu(x @ W1[:, cb-block] + b1[cb-block])   (f32 epilogue)
    h = jnp.dot(x_ref[...], w1_ref[...], preferred_element_type=jnp.float32)
    h = jnp.maximum(h + b1_ref[...], 0.0)
    # partial logits: h_cb @ W2[cb-block, :]
    p = jnp.dot(h.astype(w2_ref.dtype), w2_ref[...],
                preferred_element_type=jnp.float32)
    o_ref[...] += p[None, :, :]


def fc_fused(x, w1_blocks, b1, w2):
    """Partial logits per column-half: relu(x @ W1 + b1) @ W2, split over FC_NCORES.

    x: (Mp, K1) bf16; w1_blocks: (H/tn1, K1, tn1) bf16 (column-block-major);
    b1: (1, H) f32; w2: (H, Np2) bf16.  Returns (FC_NCORES, Mp, Np2) f32
    partials; sum over axis 0 (and add fc2 bias) in the caller.
    """
    Mp, K1 = x.shape
    nb, K1b, tn1 = w1_blocks.shape
    Hb, Np2 = w2.shape
    H = nb * tn1
    assert K1 == K1b and H == Hb and tn1 == FC_TN1
    assert Mp % 8 == 0 and Np2 % LANE == 0 and H % (FC_NCORES * tn1) == 0
    inner = H // (FC_NCORES * tn1)   # column blocks per core
    grid = (FC_NCORES, inner)

    return pl.pallas_call(
        _fc_fused_kernel,
        out_shape=jax.ShapeDtypeStruct((FC_NCORES, Mp, Np2), jnp.float32),
        grid_spec=pltpu.PrefetchScalarGridSpec(
            num_scalar_prefetch=0,
            grid=grid,
            in_specs=[
                # x resident (tiny: Mp x 7744 bf16)
                pl.BlockSpec((Mp, K1), lambda c, j: (0, 0)),
                # contiguous FC1 weight block (~4 MB DMA per step)
                pl.BlockSpec((None, K1, tn1), lambda c, j: (c * inner + j, 0, 0)),
                # FC1 bias slab
                pl.BlockSpec((1, tn1), lambda c, j: (0, c * inner + j)),
                # FC2 weight rows for this column block
                pl.BlockSpec((tn1, Np2), lambda c, j: (c * inner + j, 0)),
            ],
            out_specs=pl.BlockSpec((1, Mp, Np2), lambda c, j: (c, 0, 0)),
        ),
        compiler_params=pltpu.CompilerParams(
            dimension_semantics=("parallel", "arbitrary"),
            vmem_limit_bytes=32 * 1024 * 1024),
    )(x, w1_blocks, b1, w2)


# ---------------------------------------------------------------------------
# Conv2d(k=5, stride=2, pad=2) = im2col (glue, fused under jit) + matmul kernel
# ---------------------------------------------------------------------------
def _im2col(x_nhwc, k, stride, pad):
    """x: (N, H, W, C) -> (N, OH, OW, k*k*C), patch order (kh, kw, cin)."""
    n, h, w, c = x_nhwc.shape
    xp = jnp.pad(x_nhwc, ((0, 0), (pad, pad), (pad, pad), (0, 0)))
    oh = (h + 2 * pad - k) // stride + 1
    ow = (w + 2 * pad - k) // stride + 1
    cols = []
    for kh in range(k):
        for kw in range(k):
            cols.append(xp[:, kh:kh + stride * oh:stride,
                           kw:kw + stride * ow:stride, :])
    patches = jnp.stack(cols, axis=3)            # (N, OH, OW, k*k, C)
    return patches.reshape(n, oh, ow, k * k * c), oh, ow


def _pick_tm(m, target_tiles=4, min_tm=128):
    """M tiles aligned to 128 rows; few grid steps but >=2 tiles when M allows."""
    return max(min_tm, _round_up(-(-m // target_tiles), 128))


def conv2d_relu(x_nhwc, w_mat, bias_row, cout, *, stride=2, pad=2, k=5):
    """PyTorch-semantics Conv2d + ReLU using pre-padded bf16 weight matrix.

    w_mat: (Kp, Np) bf16 with rows in (kh, kw, cin) order; bias_row: (1, Np) f32.
    """
    n, _, _, cin = x_nhwc.shape
    patches, oh, ow = _im2col(x_nhwc, k, stride, pad)
    m = n * oh * ow
    kdim = k * k * cin
    kp, np_ = w_mat.shape

    a = patches.reshape(m, kdim)
    tm = _pick_tm(m)
    mp = _round_up(m, tm)
    a = jnp.pad(a, ((0, mp - m), (0, kp - kdim))).astype(jnp.bfloat16)

    y = matmul_bias_relu(a, w_mat, bias_row, tm=tm, apply_relu=True)
    return y[:m, :cout].reshape(n, oh, ow, cout)


# ---------------------------------------------------------------------------
# Parameters: PyTorch-shaped init + one-time kernel-layout preparation
# ---------------------------------------------------------------------------
def init_params(key):
    ks = jax.random.split(key, 10)

    def conv_w(k_, cout, cin, ksz):
        scale = 1.0 / jnp.sqrt(cin * ksz * ksz)
        return scale * jax.random.normal(k_, (cout, cin, ksz, ksz), jnp.float32)

    def lin_w(k_, out_f, in_f):
        scale = 1.0 / jnp.sqrt(in_f)
        return scale * jax.random.normal(k_, (in_f, out_f), jnp.float32)

    return {
        "conv1_w": conv_w(ks[0], 16, 1, 5),
        "conv1_b": 0.01 * jax.random.normal(ks[1], (16,), jnp.float32),
        "conv2_w": conv_w(ks[2], 32, 16, 5),
        "conv2_b": 0.01 * jax.random.normal(ks[3], (32,), jnp.float32),
        "conv3_w": conv_w(ks[4], 64, 32, 5),
        "conv3_b": 0.01 * jax.random.normal(ks[5], (64,), jnp.float32),
        "fc1_w": lin_w(ks[6], FC_HIDDEN, 64 * 11 * 11),  # (in, out), rows (C,H,W) order
        "fc1_b": 0.01 * jax.random.normal(ks[7], (FC_HIDDEN,), jnp.float32),
        "fc2_w": lin_w(ks[8], N_ACTIONS, FC_HIDDEN),     # (in=512, out=6)
        "fc2_b": 0.01 * jax.random.normal(ks[9], (N_ACTIONS,), jnp.float32),
    }


def prepare_params(p):
    """One-time: transpose / pad / permute / block / bf16-cast weights."""
    def prep_conv(w_oihw, b):
        cout, cin, k, _ = w_oihw.shape
        kdim = k * k * cin
        kp, np_ = _round_up(kdim, 8), _round_up(cout, LANE)
        # (kh, kw, cin, cout) to match im2col patch order
        wm = jnp.transpose(w_oihw, (2, 3, 1, 0)).reshape(kdim, cout)
        wm = jnp.pad(wm, ((0, kp - kdim), (0, np_ - cout))).astype(jnp.bfloat16)
        bm = jnp.pad(b, (0, np_ - cout)).astype(jnp.float32).reshape(1, np_)
        return wm, bm

    c1w, c1b = prep_conv(p["conv1_w"], p["conv1_b"])
    c2w, c2b = prep_conv(p["conv2_w"], p["conv2_b"])
    c3w, c3b = prep_conv(p["conv3_w"], p["conv3_b"])

    # fc1 rows are in PyTorch flatten (C,H,W) order; permute to NHWC (H,W,C)
    # order so the forward can flatten the NHWC conv output directly.
    k1 = 64 * 11 * 11
    w1 = p["fc1_w"].reshape(64, 11, 11, FC_HIDDEN)            # (c, h, w, out)
    w1 = jnp.transpose(w1, (1, 2, 0, 3)).reshape(k1, FC_HIDDEN)
    # Column-block-major layout: (H/tn1, K1, tn1) so each FC grid step streams
    # one contiguous ~4 MB block instead of 7744 strided 256-byte bursts.
    nb = FC_HIDDEN // FC_TN1
    w1 = w1.reshape(k1, nb, FC_TN1).transpose(1, 0, 2).astype(jnp.bfloat16)
    b1 = p["fc1_b"].astype(jnp.float32).reshape(1, FC_HIDDEN)

    np2 = _round_up(N_ACTIONS, LANE)
    w2 = jnp.pad(p["fc2_w"], ((0, 0), (0, np2 - N_ACTIONS))).astype(jnp.bfloat16)
    b2 = jnp.pad(p["fc2_b"], (0, np2 - N_ACTIONS)).astype(jnp.float32).reshape(1, np2)

    return {
        "conv1_wm": c1w, "conv1_bm": c1b,
        "conv2_wm": c2w, "conv2_bm": c2b,
        "conv3_wm": c3w, "conv3_bm": c3b,
        "fc1_wm": w1, "fc1_bm": b1,
        "fc2_wm": w2, "fc2_bm": b2,
    }


# ---------------------------------------------------------------------------
# Forward pass (mirrors NeuralNetwork.forward)
# ---------------------------------------------------------------------------
@jax.jit
def neural_network_forward(prepared, x_nchw):
    # NCHW (PyTorch) -> NHWC (kernel layout), bf16 activations
    x = jnp.transpose(x_nchw, (0, 2, 3, 1)).astype(jnp.bfloat16)

    x = conv2d_relu(x, prepared["conv1_wm"], prepared["conv1_bm"], 16)  # (N,42,42,16)
    x = conv2d_relu(x, prepared["conv2_wm"], prepared["conv2_bm"], 32)  # (N,21,21,32)
    x = conv2d_relu(x, prepared["conv3_wm"], prepared["conv3_bm"], 64)  # (N,11,11,64)

    # NHWC flatten (fc1 weight rows were pre-permuted to match this order)
    n = x.shape[0]
    x = x.reshape(n, 11 * 11 * 64)
    mp = _round_up(max(n, 8), 8)
    x = jnp.pad(x, ((0, mp - n), (0, 0)))

    partials = fc_fused(x, prepared["fc1_wm"], prepared["fc1_bm"],
                        prepared["fc2_wm"])                    # (2, Mp, 128) f32
    logits = partials.sum(axis=0) + prepared["fc2_bm"]
    return logits[:n, :N_ACTIONS]


if __name__ == "__main__":
    key = jax.random.PRNGKey(0)
    pkey, xkey = jax.random.split(key)

    params = init_params(pkey)
    prepared = prepare_params(params)           # one-time weight prep (hoisted)

    # batch=2, grayscale 84x84 frames (NCHW, like the PyTorch module expects)
    x = jax.random.uniform(xkey, (2, 1, 84, 84), jnp.float32)

    logits = neural_network_forward(prepared, x)
    logits = jax.block_until_ready(logits)

    assert logits.shape == (2, N_ACTIONS), logits.shape
    assert jnp.all(jnp.isfinite(logits))
    print("KERNEL_OK")
</pallas_src>

<mosaic_0001>
module attributes {stable_mosaic.version = 11 : i64} {
  func.func @_matmul_bias_kernel(%arg0: i32, %arg1: i32, %arg2: memref<896x32xbf16, #tpu.memory_space<vmem>>, %arg3: memref<32x128xbf16, #tpu.memory_space<vmem>>, %arg4: memref<1x128xf32, #tpu.memory_space<vmem>>, %arg5: memref<896x128xbf16, #tpu.memory_space<vmem>>) attributes {dimension_semantics = [#tpu.dimension_semantics<parallel>, #tpu.dimension_semantics<parallel>], iteration_bounds = array<i64: 4, 1>, scalar_prefetch = 0 : i64, scratch_operands = 0 : i64, tpu.core_type = #tpu.core_type<tc>, window_params = [{transform_indices = @transform_0, window_bounds = array<i64: 896, 32>}, {transform_indices = @transform_1, window_bounds = array<i64: 32, 128>}, {transform_indices = @transform_2, window_bounds = array<i64: 1, 128>}, {transform_indices = @transform_3, window_bounds = array<i64: 896, 128>}]} {
    %c0 = arith.constant 0 : index
    %c0_0 = arith.constant 0 : index
    %0 = vector.load %arg2[%c0, %c0_0] : memref<896x32xbf16, #tpu.memory_space<vmem>>, vector<896x32xbf16>
    %c0_1 = arith.constant 0 : index
    %c0_2 = arith.constant 0 : index
    %1 = vector.load %arg3[%c0_1, %c0_2] : memref<32x128xbf16, #tpu.memory_space<vmem>>, vector<32x128xbf16>
    %cst = arith.constant dense<0.000000e+00> : vector<896x128xf32>
    %2 = tpu.matmul %0, %1, %cst {dimension_numbers = #tpu.dot_dimension_numbers<[1], [0], [0], [1], [0, 0, 1, 1], [], []>} : vector<896x32xbf16>, vector<32x128xbf16>, vector<896x128xf32> -> vector<896x128xf32>
    %c0_3 = arith.constant 0 : index
    %c0_4 = arith.constant 0 : index
    %3 = vector.load %arg4[%c0_3, %c0_4] : memref<1x128xf32, #tpu.memory_space<vmem>>, vector<1x128xf32>
    %4 = vector.broadcast %3 : vector<1x128xf32> to vector<896x128xf32>
    %5 = arith.addf %2, %4 : vector<896x128xf32>
    %cst_5 = arith.constant 0.000000e+00 : f32
    %6 = vector.broadcast %cst_5 : f32 to vector<896x128xf32>
    %7 = arith.maximumf %5, %6 : vector<896x128xf32>
    %8 = arith.truncf %7 : vector<896x128xf32> to vector<896x128xbf16>
    %c0_6 = arith.constant 0 : index
    %c0_7 = arith.constant 0 : index
    %9 = vector.load %arg5[%c0_6, %c0_7] : memref<896x128xbf16, #tpu.memory_space<vmem>>, vector<896x128xbf16>
    tpu.vector_store %arg5[%c0_6, %c0_7], %8 {strides = array<i32>} : memref<896x128xbf16, #tpu.memory_space<vmem>>, vector<896x128xbf16>,
    return
  }
  func.func @transform_0(%arg0: i32, %arg1: i32) -> (i32, i32) {
    %c0_i32 = arith.constant 0 : i32
    %c0_i32_0 = arith.constant 0 : i32
    return %arg0, %c0_i32 : i32, i32
  }
  func.func @transform_1(%arg0: i32, %arg1: i32) -> (i32, i32) {
    %c0_i32 = arith.constant 0 : i32
    %c0_i32_0 = arith.constant 0 : i32
    return %c0_i32, %arg1 : i32, i32
  }
  func.func @transform_2(%arg0: i32, %arg1: i32) -> (i32, i32) {
    %c0_i32 = arith.constant 0 : i32
    %c0_i32_0 = arith.constant 0 : i32
    return %c0_i32, %arg1 : i32, i32
  }
  func.func @transform_3(%arg0: i32, %arg1: i32) -> (i32, i32) {
    %c0_i32 = arith.constant 0 : i32
    return %arg0, %arg1 : i32, i32
  }
}

module attributes {stable_mosaic.version = 11 : i64} {
  func.func @_matmul_bias_kernel(%arg0: i32, %arg1: i32, %arg2: memref<256x400xbf16, #tpu.memory_space<vmem>>, %arg3: memref<400x128xbf16, #tpu.memory_space<vmem>>, %arg4: memref<1x128xf32, #tpu.memory_space<vmem>>, %arg5: memref<256x128xbf16, #tpu.memory_space<vmem>>) attributes {dimension_semantics = [#tpu.dimension_semantics<parallel>, #tpu.dimension_semantics<parallel>], iteration_bounds = array<i64: 4, 1>, scalar_prefetch = 0 : i64, scratch_operands = 0 : i64, tpu.core_type = #tpu.core_type<tc>, window_params = [{transform_indices = @transform_0, window_bounds = array<i64: 256, 400>}, {transform_indices = @transform_1, window_bounds = array<i64: 400, 128>}, {transform_indices = @transform_2, window_bounds = array<i64: 1, 128>}, {transform_indices = @transform_3, window_bounds = array<i64: 256, 128>}]} {
    %c0 = arith.constant 0 : index
    %c0_0 = arith.constant 0 : index
    %0 = vector.load %arg2[%c0, %c0_0] : memref<256x400xbf16, #tpu.memory_space<vmem>>, vector<256x400xbf16>
    %c0_1 = arith.constant 0 : index
    %c0_2 = arith.constant 0 : index
    %1 = vector.load %arg3[%c0_1, %c0_2] : memref<400x128xbf16, #tpu.memory_space<vmem>>, vector<400x128xbf16>
    %cst = arith.constant dense<0.000000e+00> : vector<256x128xf32>
    %2 = tpu.matmul %0, %1, %cst {dimension_numbers = #tpu.dot_dimension_numbers<[1], [0], [0], [1], [0, 0, 1, 1], [], []>} : vector<256x400xbf16>, vector<400x128xbf16>, vector<256x128xf32> -> vector<256x128xf32>
    %c0_3 = arith.constant 0 : index
    %c0_4 = arith.constant 0 : index
    %3 = vector.load %arg4[%c0_3, %c0_4] : memref<1x128xf32, #tpu.memory_space<vmem>>, vector<1x128xf32>
    %4 = vector.broadcast %3 : vector<1x128xf32> to vector<256x128xf32>
    %5 = arith.addf %2, %4 : vector<256x128xf32>
    %cst_5 = arith.constant 0.000000e+00 : f32
    %6 = vector.broadcast %cst_5 : f32 to vector<256x128xf32>
    %7 = arith.maximumf %5, %6 : vector<256x128xf32>
    %8 = arith.truncf %7 : vector<256x128xf32> to vector<256x128xbf16>
    %c0_6 = arith.constant 0 : index
    %c0_7 = arith.constant 0 : index
    %9 = vector.load %arg5[%c0_6, %c0_7] : memref<256x128xbf16, #tpu.memory_space<vmem>>, vector<256x128xbf16>
    tpu.vector_store %arg5[%c0_6, %c0_7], %8 {strides = array<i32>} : memref<256x128xbf16, #tpu.memory_space<vmem>>, vector<256x128xbf16>,
    return
  }
  func.func @transform_0(%arg0: i32, %arg1: i32) -> (i32, i32) {
    %c0_i32 = arith.constant 0 : i32
    %c0_i32_0 = arith.constant 0 : i32
    return %arg0, %c0_i32 : i32, i32
  }
  func.func @transform_1(%arg0: i32, %arg1: i32) -> (i32, i32) {
    %c0_i32 = arith.constant 0 : i32
    %c0_i32_0 = arith.constant 0 : i32
    return %c0_i32, %arg1 : i32, i32
  }
  func.func @transform_2(%arg0: i32, %arg1: i32) -> (i32, i32) {
    %c0_i32 = arith.constant 0 : i32
    %c0_i32_0 = arith.constant 0 : i32
    return %c0_i32, %arg1 : i32, i32
  }
  func.func @transform_3(%arg0: i32, %arg1: i32) -> (i32, i32) {
    %c0_i32 = arith.constant 0 : i32
    return %arg0, %arg1 : i32, i32
  }
}

module attributes {stable_mosaic.version = 11 : i64} {
  func.func @_matmul_bias_kernel(%arg0: i32, %arg1: i32, %arg2: memref<128x800xbf16, #tpu.memory_space<vmem>>, %arg3: memref<800x128xbf16, #tpu.memory_space<vmem>>, %arg4: memref<1x128xf32, #tpu.memory_space<vmem>>, %arg5: memref<128x128xbf16, #tpu.memory_space<vmem>>) attributes {dimension_semantics = [#tpu.dimension_semantics<parallel>, #tpu.dimension_semantics<parallel>], iteration_bounds = array<i64: 2, 1>, scalar_prefetch = 0 : i64, scratch_operands = 0 : i64, tpu.core_type = #tpu.core_type<tc>, window_params = [{transform_indices = @transform_0, window_bounds = array<i64: 128, 800>}, {transform_indices = @transform_1, window_bounds = array<i64: 800, 128>}, {transform_indices = @transform_2, window_bounds = array<i64: 1, 128>}, {transform_indices = @transform_3, window_bounds = array<i64: 128, 128>}]} {
    %c0 = arith.constant 0 : index
    %c0_0 = arith.constant 0 : index
    %0 = vector.load %arg2[%c0, %c0_0] : memref<128x800xbf16, #tpu.memory_space<vmem>>, vector<128x800xbf16>
    %c0_1 = arith.constant 0 : index
    %c0_2 = arith.constant 0 : index
    %1 = vector.load %arg3[%c0_1, %c0_2] : memref<800x128xbf16, #tpu.memory_space<vmem>>, vector<800x128xbf16>
    %cst = arith.constant dense<0.000000e+00> : vector<128x128xf32>
    %2 = tpu.matmul %0, %1, %cst {dimension_numbers = #tpu.dot_dimension_numbers<[1], [0], [0], [1], [0, 0, 1, 1], [], []>} : vector<128x800xbf16>, vector<800x128xbf16>, vector<128x128xf32> -> vector<128x128xf32>
    %c0_3 = arith.constant 0 : index
    %c0_4 = arith.constant 0 : index
    %3 = vector.load %arg4[%c0_3, %c0_4] : memref<1x128xf32, #tpu.memory_space<vmem>>, vector<1x128xf32>
    %4 = vector.broadcast %3 : vector<1x128xf32> to vector<128x128xf32>
    %5 = arith.addf %2, %4 : vector<128x128xf32>
    %cst_5 = arith.constant 0.000000e+00 : f32
    %6 = vector.broadcast %cst_5 : f32 to vector<128x128xf32>
    %7 = arith.maximumf %5, %6 : vector<128x128xf32>
    %8 = arith.truncf %7 : vector<128x128xf32> to vector<128x128xbf16>
    %c0_6 = arith.constant 0 : index
    %c0_7 = arith.constant 0 : index
    %9 = vector.load %arg5[%c0_6, %c0_7] : memref<128x128xbf16, #tpu.memory_space<vmem>>, vector<128x128xbf16>
    tpu.vector_store %arg5[%c0_6, %c0_7], %8 {strides = array<i32>} : memref<128x128xbf16, #tpu.memory_space<vmem>>, vector<128x128xbf16>,
    return
  }
  func.func @transform_0(%arg0: i32, %arg1: i32) -> (i32, i32) {
    %c0_i32 = arith.constant 0 : i32
    %c0_i32_0 = arith.constant 0 : i32
    return %arg0, %c0_i32 : i32, i32
  }
  func.func @transform_1(%arg0: i32, %arg1: i32) -> (i32, i32) {
    %c0_i32 = arith.constant 0 : i32
    %c0_i32_0 = arith.constant 0 : i32
    return %c0_i32, %arg1 : i32, i32
  }
  func.func @transform_2(%arg0: i32, %arg1: i32) -> (i32, i32) {
    %c0_i32 = arith.constant 0 : i32
    %c0_i32_0 = arith.constant 0 : i32
    return %c0_i32, %arg1 : i32, i32
  }
  func.func @transform_3(%arg0: i32, %arg1: i32) -> (i32, i32) {
    %c0_i32 = arith.constant 0 : i32
    return %arg0, %arg1 : i32, i32
  }
}

module attributes {stable_mosaic.version = 11 : i64} {
  func.func @_fc_fused_kernel(%arg0: i32, %arg1: i32, %arg2: memref<8x7744xbf16, #tpu.memory_space<vmem>>, %arg3: memref<1x7744x256xbf16, #tpu.memory_space<vmem>>, %arg4: memref<1x256xf32, #tpu.memory_space<vmem>>, %arg5: memref<256x128xbf16, #tpu.memory_space<vmem>>, %arg6: memref<1x8x128xf32, #tpu.memory_space<vmem>>) attributes {dimension_semantics = [#tpu.dimension_semantics<parallel>, #tpu.dimension_semantics<arbitrary>], iteration_bounds = array<i64: 2, 1>, scalar_prefetch = 0 : i64, scratch_operands = 0 : i64, tpu.core_type = #tpu.core_type<tc>, window_params = [{pipeline_mode = #tpu.pipeline_mode<synchronous>, transform_indices = @transform_0, window_bounds = array<i64: 8, 7744>}, {transform_indices = @transform_1, window_bounds = array<i64: 1, 7744, 256>}, {transform_indices = @transform_2, window_bounds = array<i64: 1, 256>}, {transform_indices = @transform_3, window_bounds = array<i64: 256, 128>}, {transform_indices = @transform_4, window_bounds = array<i64: 1, 8, 128>}]} {
    %c0_i32 = arith.constant 0 : i32
    %0 = arith.cmpi eq, %arg1, %c0_i32 : i32
    %1 = arith.extui %0 : i1 to i32
    %c0_i32_0 = arith.constant 0 : i32
    %2 = arith.cmpi ne, %1, %c0_i32_0 : i32
    scf.if %2 {
      %cst_17 = arith.constant 0.000000e+00 : f32
      %19 = vector.broadcast %cst_17 : f32 to vector<1x8x128xf32>
      %c0_18 = arith.constant 0 : index
      %c0_19 = arith.constant 0 : index
      %c0_20 = arith.constant 0 : index
      %20 = vector.load %arg6[%c0_18, %c0_19, %c0_20] : memref<1x8x128xf32, #tpu.memory_space<vmem>>, vector<1x8x128xf32>
      tpu.vector_store %arg6[%c0_18, %c0_19, %c0_20], %19 {strides = array<i32>} : memref<1x8x128xf32, #tpu.memory_space<vmem>>, vector<1x8x128xf32>,
    } else {
    }
    %c0 = arith.constant 0 : index
    %c0_1 = arith.constant 0 : index
    %3 = vector.load %arg2[%c0, %c0_1] : memref<8x7744xbf16, #tpu.memory_space<vmem>>, vector<8x7744xbf16>
    %c0_2 = arith.constant 0 : index
    %c0_3 = arith.constant 0 : index
    %c0_4 = arith.constant 0 : index
    %4 = vector.load %arg3[%c0_2, %c0_3, %c0_4] : memref<1x7744x256xbf16, #tpu.memory_space<vmem>>, vector<1x7744x256xbf16>
    %5 = vector.shape_cast %4 : vector<1x7744x256xbf16> to vector<7744x256xbf16>
    %cst = arith.constant dense<0.000000e+00> : vector<8x256xf32>
    %6 = tpu.matmul %3, %5, %cst {dimension_numbers = #tpu.dot_dimension_numbers<[1], [0], [0], [1], [0, 0, 1, 1], [], []>} : vector<8x7744xbf16>, vector<7744x256xbf16>, vector<8x256xf32> -> vector<8x256xf32>
    %c0_5 = arith.constant 0 : index
    %c0_6 = arith.constant 0 : index
    %7 = vector.load %arg4[%c0_5, %c0_6] : memref<1x256xf32, #tpu.memory_space<vmem>>, vector<1x256xf32>
    %8 = vector.broadcast %7 : vector<1x256xf32> to vector<8x256xf32>
    %9 = arith.addf %6, %8 : vector<8x256xf32>
    %cst_7 = arith.constant 0.000000e+00 : f32
    %10 = vector.broadcast %cst_7 : f32 to vector<8x256xf32>
    %11 = arith.maximumf %9, %10 : vector<8x256xf32>
    %12 = arith.truncf %11 : vector<8x256xf32> to vector<8x256xbf16>
    %c0_8 = arith.constant 0 : index
    %c0_9 = arith.constant 0 : index
    %13 = vector.load %arg5[%c0_8, %c0_9] : memref<256x128xbf16, #tpu.memory_space<vmem>>, vector<256x128xbf16>
    %cst_10 = arith.constant dense<0.000000e+00> : vector<8x128xf32>
    %14 = tpu.matmul %12, %13, %cst_10 {dimension_numbers = #tpu.dot_dimension_numbers<[1], [0], [0], [1], [0, 0, 1, 1], [], []>} : vector<8x256xbf16>, vector<256x128xbf16>, vector<8x128xf32> -> vector<8x128xf32>
    %c0_11 = arith.constant 0 : index
    %c0_12 = arith.constant 0 : index
    %c0_13 = arith.constant 0 : index
    %15 = vector.load %arg6[%c0_11, %c0_12, %c0_13] : memref<1x8x128xf32, #tpu.memory_space<vmem>>, vector<1x8x128xf32>
    %16 = vector.shape_cast %14 : vector<8x128xf32> to vector<1x8x128xf32>
    %17 = arith.addf %15, %16 : vector<1x8x128xf32>
    %c0_14 = arith.constant 0 : index
    %c0_15 = arith.constant 0 : index
    %c0_16 = arith.constant 0 : index
    %18 = vector.load %arg6[%c0_14, %c0_15, %c0_16] : memref<1x8x128xf32, #tpu.memory_space<vmem>>, vector<1x8x128xf32>
    tpu.vector_store %arg6[%c0_14, %c0_15, %c0_16], %17 {strides = array<i32>} : memref<1x8x128xf32, #tpu.memory_space<vmem>>, vector<1x8x128xf32>,
    return
  }
  func.func @transform_0(%arg0: i32, %arg1: i32) -> (i32, i32) {
    %c0_i32 = arith.constant 0 : i32
    %c0_i32_0 = arith.constant 0 : i32
    %c0_i32_1 = arith.constant 0 : i32
    return %c0_i32, %c0_i32_0 : i32, i32
  }
  func.func @transform_1(%arg0: i32, %arg1: i32) -> (i32, i32, i32) {
    %c1_i32 = arith.constant 1 : i32
    %0 = arith.muli %arg0, %c1_i32 : i32
    %1 = arith.addi %0, %arg1 : i32
    %c0_i32 = arith.constant 0 : i32
    %c0_i32_0 = arith.constant 0 : i32
    %c0_i32_1 = arith.constant 0 : i32
    return %1, %c0_i32, %c0_i32_0 : i32, i32, i32
  }
  func.func @transform_2(%arg0: i32, %arg1: i32) -> (i32, i32) {
    %c1_i32 = arith.constant 1 : i32
    %0 = arith.muli %arg0, %c1_i32 : i32
    %1 = arith.addi %0, %arg1 : i32
    %c0_i32 = arith.constant 0 : i32
    %c0_i32_0 = arith.constant 0 : i32
    return %c0_i32, %1 : i32, i32
  }
  func.func @transform_3(%arg0: i32, %arg1: i32) -> (i32, i32) {
    %c1_i32 = arith.constant 1 : i32
    %0 = arith.muli %arg0, %c1_i32 : i32
    %1 = arith.addi %0, %arg1 : i32
    %c0_i32 = arith.constant 0 : i32
    %c0_i32_0 = arith.constant 0 : i32
    return %1, %c0_i32 : i32, i32
  }
  func.func @transform_4(%arg0: i32, %arg1: i32) -> (i32, i32, i32) {
    %c0_i32 = arith.constant 0 : i32
    %c0_i32_0 = arith.constant 0 : i32
    %c0_i32_1 = arith.constant 0 : i32
    return %arg0, %c0_i32, %c0_i32_0 : i32, i32, i32
  }
}

</mosaic_0001>

<bundles_post_ra>
// kernel: neural_network_forward.4
= control target key start
LH: loop header
LB: loop body
LE: loop exit
PB: predicated region body
PF: predicated region fallthrough
CT: control target
= control target key end

     0   :  { %8 = vsyncpa [#allocation3], 0  ;;  %s3563_s0 = inlined_call_operand.vmem [shape: bf16[3584,32], index: 0, kind: input, shape index: {}]   ;;  %s3564_s1 = inlined_call_operand.hbm [shape: bf16[32,128], index: 1, kind: input, shape index: {}]   ;;  %s3565_s2 = inlined_call_operand.hbm [shape: f32[1,128], index: 2, kind: input, shape index: {}]   ;;  %s3566_s3 = inlined_call_operand.vmem [shape: bf16[3584,128], index: 3, kind: output, shape index: {}]  }
   0x1   :  { %9 = vsyncpa [#allocation5], 0  ;;  %s3157_s12 = smov 0   ;;  %s3159_s13 = smov 0  }
   0x2   :  { %s3161_s14 = smov 0  }
   0x3 LB: > { %s2075_s15 = sadd.s32 4294967295, %s3131_s14   ;;  %s27_s16 = sadd.s32 1, %s3127_s13  ;;  %s3131_s14 = sphi %s3161_s14, %s15_s14   ;;  %s3127_s13 = sphi %s3159_s13, %s3576_s13   ;;  %s3123_s12 = sphi %s3157_s12, %s3575_s12  }
   0x4   : > { %p29_p0 = scmp.ge.s32.totalorder %s27_s16, 4  ;;  %p2077_p1 = scmp.ge.s32.totalorder %s3131_s14, 1 }
   0x5   : > { %p138_p2 = scmp.lt.s32.totalorder %s3131_s14, 5  ;;  %p3182_p4 = scmp.eq.s32.totalorder %s2075_s15, 0 }
   0x6   : > { %s3578_s16 = smov (%p29_p0, %s27_s16), 0  ;;  %s3133_s19 = smov [#allocation2]  }
   0x7   : > { %p3178_p3 = pnand %p2077_p1, %p138_p2  ;;  %s152_s20 = sshll.u32 %s3133_s19, 4  ;;  %s153_s20 = int_to_ptr.vmem [resolvable:$true] %s152_s20 }
   0x8   : > { %s3571_s18 = scalar_select %p3182_p4, 1, 0 }
   0x9   : > { %s3570_s17 = scalar_select %p3178_p3, 1, 0 }
   0xa   : > { %p2948_p5 = pneg %p3178_p3  ;;  %s3134_s22 = smov [#allocation4]  }
   0xb   : > { %s168_s23 = sshll.u32 %s3134_s22, 4  ;;  %s3045_s26 = scalar_lea.hbm %s3564_s1, 256  ;;  %s3194_s23 = int_to_ptr.vmem [resolvable:$true] %s168_s23 }
   0xc   : > { %p3190_p6 = pnand %p3182_p4, %p2948_p5  ;;  %p3046_p7 = scmp.ne.s32.totalorder %s3564_s1, %s3045_s26 }
   0xd   : > { %p3052_p11 = scmp.lt.u32.totalorder %s3045_s26, %s3564_s1 }
   0xe   : > { %p3047_p8 = pneg %p3190_p6 }
  0x10   : > { %p3048_p9 = pnand %p3047_p8, %p3046_p7 }
  0x12   : > { %p3049_p10 = pneg %p3048_p9 }
  0x14   : > { %p3054_p12 = pnand %p3052_p11, %p3049_p10 }
  0x16   : > { %3057 = shalt.err (!%p3054_p12)
}
  0x17   : > { %s3058_s4 = scalar_lea.vmem %s153_s20, 256  ;;  %p3066_p2 = scmp.lt.s32.totalorder %s153_s20, %s153_s20 }
  0x18   : > { %p3059_p13 = scmp.ne.s32.totalorder %s153_s20, %s3058_s4  ;;  %p3067_p5 = scmp.lt.s32.totalorder %s3058_s4, %s3058_s4 }
  0x1a   : > { %p3061_p0 = pnand %p3059_p13, %p3047_p8  ;;  %p3068_p4 = por %p3067_p5, %p3066_p2 }
  0x1c   : > { %p3062_p1 = pneg %p3061_p0 }
  0x1e   : > { %p3069_p3 = pnand %p3068_p4, %p3062_p1 }
  0x20   : > { %3072 = shalt.err (!%p3069_p3)
}
  0x21   : > { %s3135_s5 = smov 64   ;;  %s3136_s6 = smov 4  }
  0x22   : > { %2951 = dma.hbm_to_vmem [thread:$0]  (!%p3190_p6), %s3564_s1, 256, %s153_s20, [#allocation3], %s3135_s5, %s3135_s5, %s3136_s6  }
  0x23   : > { %s3073_s11 = scalar_lea.hbm %s3565_s2, 16 }
  0x24   : > { %p3074_p7 = scmp.ne.s32.totalorder %s3565_s2, %s3073_s11  ;;  %p3080_p9 = scmp.lt.u32.totalorder %s3073_s11, %s3565_s2 }
  0x26   : > { %p3076_p3 = pnand %p3074_p7, %p3047_p8 }
  0x28   : > { %p3077_p4 = pneg %p3076_p3 }
  0x2a   : > { %p3082_p10 = pnand %p3080_p9, %p3077_p4 }
  0x2c   : > { %3085 = shalt.err (!%p3082_p10)
}
  0x2d   : > { %s3086_s20 = scalar_lea.vmem %s3194_s23, 16  ;;  %s3093_s25 = scalar_lea.vmem %s3194_s23, 32 }
  0x2e   : > { %p3087_p11 = scmp.ne.s32.totalorder %s3194_s23, %s3086_s20  ;;  %p3094_p0 = scmp.lt.s32.totalorder %s3194_s23, %s3194_s23 }
  0x2f   : > { %p3095_p1 = scmp.lt.s32.totalorder %s3093_s25, %s3086_s20 }
  0x30   : > { %p3089_p12 = pnand %p3087_p11, %p3047_p8 }
  0x31   : > { %p3096_p2 = por %p3095_p1, %p3094_p0 }
  0x32   : > { %p3090_p13 = pneg %p3089_p12 }
  0x34   : > { %p3097_p5 = pnand %p3096_p2, %p3090_p13 }
  0x36   : > { %3100 = shalt.err (!%p3097_p5)
}
  0x37   : > { %2954 = dma.hbm_to_vmem [thread:$0]  (!%p3190_p6), %s3565_s2, 16, %s3194_s23, [#allocation5]  }
  0x38   : > { %p3573_p7 = scmp.ne.s32.totalorder %s3570_s17, 0 }
  0x39   : > { %p3574_p8 = scmp.ne.s32.totalorder (!%p3573_p7), %s3571_s18, 0 }
  0x3a   : > { %190 = sbr.rel (%p3573_p7) target bundleno = 404 (0x194), region = 32 }
  0x41   : > { %3114 = dma.done.wait (%p3574_p8), [#allocation3], 256  }
  0x42   : > { %3116 = vsyncadd (%p3574_p8), [#allocation3], 4294967040 }
  0x43   : > { %3118 = dma.done.wait (%p3574_p8), [#allocation5], 16  }
  0x44   : > { %3120 = vsyncadd (%p3574_p8), [#allocation5], 4294967280  ;;  %s221_s21 = smul.u32 112, %s3123_s12  ;;  %v2987_v0 = vld [vmem:[#allocation2] sm:$0xff]   ;;  %v2988_v1 = vld [vmem:[#allocation2 + $0x8] sm:$0xff]   ;;  %vm652_vm0 = vcmask 261120  }
  0x45   : > { %2820 = vmatprep.subr.bf16.mxu0 %v2987_v0  ;;  %2936 = vmatprep.subr.bf16.mxu1 %v2987_v0  ;;  %v3377_v58 = vld [vmem:[#allocation4] ss:$0 sm:$0xff] }
  0x46   : > { %p222_p3 = scmp.lt.s32.totalorder %s221_s21, 447  ;;  %2821 = vmatpush3.bf16.msra.mxu0 %v2987_v0  ;;  %2938 = vmatpush3.bf16.msra.mxu1 %v2987_v0 }
  0x47   : > { %2822 = vmatprep.subr.bf16.mxu0 %v2988_v1  ;;  %2937 = vmatprep.subr.bf16.mxu1 %v2988_v1 }
  0x48   : > { %s3580_s21 = smov (!%p222_p3, %s221_s21), 447 }
  0x49   : > { %s2084_s17 = sshll.u32 %s3580_s21, 2 }
  0x4a   : > { %s3263_s29 = scalar_lea.vmem %s3563_s0, %s2084_s17  ;;  %2823 = vmatpush3.bf16.msra.mxu0 %v2988_v1  ;;  %2939 = vmatpush3.bf16.msra.mxu1 %v2988_v1  ;;  %s3392_s30 = scalar_lea.vmem %s3566_s3, %s2084_s17 }
  0x4b   : > { %v2989_v2 = vld [vmem:[%s3263_s29] sm:$0xff]   ;;  %v2991_v4 = vld [vmem:[%s3263_s29 + $0x8] sm:$0xff]   ;;  %v2993_v6 = vld [vmem:[%s3263_s29 + $0x10] sm:$0xff]  }
  0x4c   : > { %v2990_v3 = vld [vmem:[%s3263_s29 + $0xe0] sm:$0xff]   ;;  %2824 = vmatprep.mubr.msk.bf16.mxu0 %vm652_vm0, %v2989_v2  ;;  %v2992_v5 = vld [vmem:[%s3263_s29 + $0xe8] sm:$0xff]   ;;  %v2994_v7 = vld [vmem:[%s3263_s29 + $0xf0] sm:$0xff]  }
  0x4d   : > { %2880 = vmatprep.mubr.msk.bf16.mxu1 %vm652_vm0, %v2990_v3  ;;  %2825 = vmatmul.mubr.msk.bf16.vlgmr.msra.gmra.mrb[0].mxu0 %vm652_vm0, %v2991_v4  ;;  %v2995_v8 = vld [vmem:[%s3263_s29 + $0x18] sm:$0xff]   ;;  %v2997_v10 = vld [vmem:[%s3263_s29 + $0x20] sm:$0xff]   ;;  %v2999_v12 = vld [vmem:[%s3263_s29 + $0x28] sm:$0xff]  }
  0x4e   : > { %2881 = vmatmul.mubr.msk.bf16.vlgmr.msra.gmra.mrb[0].mxu1 %vm652_vm0, %v2992_v5  ;;  %2828 = vmatprep.mubr.msk.bf16.mxu0 %vm652_vm0, %v2993_v6  ;;  %v2996_v9 = vld [vmem:[%s3263_s29 + $0xf8] sm:$0xff]   ;;  %v2998_v11 = vld [vmem:[%s3263_s29 + $0x100] sm:$0xff]   ;;  %v3000_v13 = vld [vmem:[%s3263_s29 + $0x108] sm:$0xff]  }
  0x4f   : > { %2884 = vmatprep.mubr.msk.bf16.mxu1 %vm652_vm0, %v2994_v7  ;;  %v3001_v14 = vld [vmem:[%s3263_s29 + $0x30] sm:$0xff]   ;;  %v3003_v16 = vld [vmem:[%s3263_s29 + $0x38] sm:$0xff]   ;;  %v3005_v18 = vld [vmem:[%s3263_s29 + $0x40] sm:$0xff]  }
  0x50   : > { %v3002_v15 = vld [vmem:[%s3263_s29 + $0x110] sm:$0xff]   ;;  %v3004_v17 = vld [vmem:[%s3263_s29 + $0x118] sm:$0xff]   ;;  %v3006_v19 = vld [vmem:[%s3263_s29 + $0x120] sm:$0xff]  }
  0x51   : > { %v3007_v20 = vld [vmem:[%s3263_s29 + $0x48] sm:$0xff]   ;;  %v3009_v22 = vld [vmem:[%s3263_s29 + $0x50] sm:$0xff]   ;;  %v3011_v24 = vld [vmem:[%s3263_s29 + $0x58] sm:$0xff]  }
  0x52   : > { %v3008_v21 = vld [vmem:[%s3263_s29 + $0x128] sm:$0xff]   ;;  %v3010_v23 = vld [vmem:[%s3263_s29 + $0x130] sm:$0xff]   ;;  %v3012_v25 = vld [vmem:[%s3263_s29 + $0x138] sm:$0xff]  }
  0x53   : > { %v3013_v26 = vld [vmem:[%s3263_s29 + $0x60] sm:$0xff]   ;;  %v3015_v28 = vld [vmem:[%s3263_s29 + $0x68] sm:$0xff]   ;;  %v3017_v30 = vld [vmem:[%s3263_s29 + $0x70] sm:$0xff]  }
  0x54   : > { %v3014_v27 = vld [vmem:[%s3263_s29 + $0x140] sm:$0xff]   ;;  %v3016_v29 = vld [vmem:[%s3263_s29 + $0x148] sm:$0xff]   ;;  %v3018_v31 = vld [vmem:[%s3263_s29 + $0x150] sm:$0xff]  }
  0x55   : > { %2829 = vmatmul.mubr.msk.bf16.gmra.mrb[4].mxu0 %vm652_vm0, %v2995_v8  ;;  %v3019_v32 = vld [vmem:[%s3263_s29 + $0x78] sm:$0xff]   ;;  %v3021_v34 = vld [vmem:[%s3263_s29 + $0x80] sm:$0xff]   ;;  %v3023_v36 = vld [vmem:[%s3263_s29 + $0x88] sm:$0xff]  }
  0x56   : > { %2885 = vmatmul.mubr.msk.bf16.gmra.mrb[4].mxu1 %vm652_vm0, %v2996_v9  ;;  %2832 = vmatprep.mubr.msk.bf16.mxu0 %vm652_vm0, %v2997_v10  ;;  %v3020_v33 = vld [vmem:[%s3263_s29 + $0x158] sm:$0xff]   ;;  %v3022_v35 = vld [vmem:[%s3263_s29 + $0x160] sm:$0xff]   ;;  %v3024_v37 = vld [vmem:[%s3263_s29 + $0x168] sm:$0xff]  }
  0x57   : > { %2888 = vmatprep.mubr.msk.bf16.mxu1 %vm652_vm0, %v2998_v11  ;;  %v3025_v38 = vld [vmem:[%s3263_s29 + $0x90] sm:$0xff]   ;;  %v3027_v40 = vld [vmem:[%s3263_s29 + $0x98] sm:$0xff]   ;;  %v3029_v42 = vld [vmem:[%s3263_s29 + $0xa0] sm:$0xff]  }
  0x58   : > { %v3026_v39 = vld [vmem:[%s3263_s29 + $0x170] sm:$0xff]   ;;  %v3028_v41 = vld [vmem:[%s3263_s29 + $0x178] sm:$0xff]   ;;  %v3030_v43 = vld [vmem:[%s3263_s29 + $0x180] sm:$0xff]  }
  0x59   : > { %v3031_v44 = vld [vmem:[%s3263_s29 + $0xa8] sm:$0xff]   ;;  %v3033_v46 = vld [vmem:[%s3263_s29 + $0xb0] sm:$0xff]   ;;  %v3035_v48 = vld [vmem:[%s3263_s29 + $0xb8] sm:$0xff]  }
  0x5a   : > { %v3032_v45 = vld [vmem:[%s3263_s29 + $0x188] sm:$0xff]   ;;  %v3034_v47 = vld [vmem:[%s3263_s29 + $0x190] sm:$0xff]   ;;  %v3036_v49 = vld [vmem:[%s3263_s29 + $0x198] sm:$0xff]  }
  0x5b   : > { %v3037_v50 = vld [vmem:[%s3263_s29 + $0xc0] sm:$0xff]   ;;  %v3039_v52 = vld [vmem:[%s3263_s29 + $0xc8] sm:$0xff]   ;;  %v3041_v54 = vld [vmem:[%s3263_s29 + $0xd0] sm:$0xff]  }
  0x5c   : > { %v3038_v51 = vld [vmem:[%s3263_s29 + $0x1a0] sm:$0xff]   ;;  %v3040_v53 = vld [vmem:[%s3263_s29 + $0x1a8] sm:$0xff]   ;;  %v3042_v55 = vld [vmem:[%s3263_s29 + $0x1b0] sm:$0xff]  }
  0x5d   : > { %2833 = vmatmul.mubr.msk.bf16.gmra.mrb[8].mxu0 %vm652_vm0, %v2999_v12  ;;  %v3043_v56 = vld [vmem:[%s3263_s29 + $0xd8] sm:$0xff]  }
  0x5e   : > { %2889 = vmatmul.mubr.msk.bf16.gmra.mrb[8].mxu1 %vm652_vm0, %v3000_v13  ;;  %2836 = vmatprep.mubr.msk.bf16.mxu0 %vm652_vm0, %v3001_v14  ;;  %v3044_v57 = vld [vmem:[%s3263_s29 + $0x1b8] sm:$0xff]  }
  0x5f   : > { %2892 = vmatprep.mubr.msk.bf16.mxu1 %vm652_vm0, %v3002_v15 }
  0x65   : > { %2837 = vmatmul.mubr.msk.bf16.gmra.mrb[12].mxu0 %vm652_vm0, %v3003_v16 }
  0x66   : > { %2893 = vmatmul.mubr.msk.bf16.gmra.mrb[12].mxu1 %vm652_vm0, %v3004_v17  ;;  %2840 = vmatprep.mubr.msk.bf16.mxu0 %vm652_vm0, %v3005_v18 }
  0x67   : > { %2896 = vmatprep.mubr.msk.bf16.mxu1 %vm652_vm0, %v3006_v19 }
  0x6d   : > { %2841 = vmatmul.mubr.msk.bf16.gmra.mrb[16].mxu0 %vm652_vm0, %v3007_v20 }
  0x6e   : > { %2897 = vmatmul.mubr.msk.bf16.gmra.mrb[16].mxu1 %vm652_vm0, %v3008_v21  ;;  %2844 = vmatprep.mubr.msk.bf16.mxu0 %vm652_vm0, %v3009_v22 }
  0x6f   : > { %2900 = vmatprep.mubr.msk.bf16.mxu1 %vm652_vm0, %v3010_v23 }
  0x75   : > { %2845 = vmatmul.mubr.msk.bf16.gmra.mrb[20].mxu0 %vm652_vm0, %v3011_v24 }
  0x76   : > { %2901 = vmatmul.mubr.msk.bf16.gmra.mrb[20].mxu1 %vm652_vm0, %v3012_v25  ;;  %2848 = vmatprep.mubr.msk.bf16.mxu0 %vm652_vm0, %v3013_v26 }
  0x77   : > { %2904 = vmatprep.mubr.msk.bf16.mxu1 %vm652_vm0, %v3014_v27 }
  0x7d   : > { %2849 = vmatmul.mubr.msk.bf16.gmra.mrb[24].mxu0 %vm652_vm0, %v3015_v28 }
  0x7e   : > { %2905 = vmatmul.mubr.msk.bf16.gmra.mrb[24].mxu1 %vm652_vm0, %v3016_v29  ;;  %2852 = vmatprep.mubr.msk.bf16.mxu0 %vm652_vm0, %v3017_v30 }
  0x7f   : > { %2908 = vmatprep.mubr.msk.bf16.mxu1 %vm652_vm0, %v3018_v31 }
  0x85   : > { %2853 = vmatmul.mubr.msk.bf16.gmra.mrb[28].mxu0 %vm652_vm0, %v3019_v32 }
  0x86   : > { %2909 = vmatmul.mubr.msk.bf16.gmra.mrb[28].mxu1 %vm652_vm0, %v3020_v33  ;;  %2856 = vmatprep.mubr.msk.bf16.mxu0 %vm652_vm0, %v3021_v34 }
  0x87   : > { %2912 = vmatprep.mubr.msk.bf16.mxu1 %vm652_vm0, %v3022_v35 }
  0x8d   : > { %2857 = vmatmul.mubr.msk.bf16.gmra.mrb[32].mxu0 %vm652_vm0, %v3023_v36 }
  0x8e   : > { %2913 = vmatmul.mubr.msk.bf16.gmra.mrb[32].mxu1 %vm652_vm0, %v3024_v37  ;;  %2860 = vmatprep.mubr.msk.bf16.mxu0 %vm652_vm0, %v3025_v38 }
  0x8f   : > { %2916 = vmatprep.mubr.msk.bf16.mxu1 %vm652_vm0, %v3026_v39 }
  0x95   : > { %2861 = vmatmul.mubr.msk.bf16.gmra.mrb[36].mxu0 %vm652_vm0, %v3027_v40 }
  0x96   : > { %2917 = vmatmul.mubr.msk.bf16.gmra.mrb[36].mxu1 %vm652_vm0, %v3028_v41  ;;  %2864 = vmatprep.mubr.msk.bf16.mxu0 %vm652_vm0, %v3029_v42 }
  0x97   : > { %2920 = vmatprep.mubr.msk.bf16.mxu1 %vm652_vm0, %v3030_v43 }
  0x9d   : > { %2865 = vmatmul.mubr.msk.bf16.gmra.mrb[40].mxu0 %vm652_vm0, %v3031_v44 }
  0x9e   : > { %2921 = vmatmul.mubr.msk.bf16.gmra.mrb[40].mxu1 %vm652_vm0, %v3032_v45  ;;  %2868 = vmatprep.mubr.msk.bf16.mxu0 %vm652_vm0, %v3033_v46 }
  0x9f   : > { %2924 = vmatprep.mubr.msk.bf16.mxu1 %vm652_vm0, %v3034_v47 }
  0xa5   : > { %2869 = vmatmul.mubr.msk.bf16.gmra.mrb[44].mxu0 %vm652_vm0, %v3035_v48 }
  0xa6   : > { %2925 = vmatmul.mubr.msk.bf16.gmra.mrb[44].mxu1 %vm652_vm0, %v3036_v49  ;;  %2872 = vmatprep.mubr.msk.bf16.mxu0 %vm652_vm0, %v3037_v50 }
  0xa7   : > { %2928 = vmatprep.mubr.msk.bf16.mxu1 %vm652_vm0, %v3038_v51 }
  0xad   : > { %2873 = vmatmul.mubr.msk.bf16.gmra.mrb[48].mxu0 %vm652_vm0, %v3039_v52 }
  0xae   : > { %2929 = vmatmul.mubr.msk.bf16.gmra.mrb[48].mxu1 %vm652_vm0, %v3040_v53  ;;  %2876 = vmatprep.mubr.msk.bf16.mxu0 %vm652_vm0, %v3041_v54 }
  0xaf   : > { %2932 = vmatprep.mubr.msk.bf16.mxu1 %vm652_vm0, %v3042_v55 }
  0xb5   : > { %2877 = vmatmul.mubr.msk.bf16.gmra.mrb[52].mxu0 %vm652_vm0, %v3043_v56 }
  0xb6   : > { %2933 = vmatmul.mubr.msk.bf16.gmra.mrb[52].mxu1 %vm652_vm0, %v3044_v57 }
 0x120   : > { %v2826_v59 = vpop.f32.mrb[0].mxu0 }
 0x121   : > { %v2882_v60 = vpop.f32.mrb[0].mxu1  ;;  %v864_v61 = vadd.f32 %v2826_v59, %v3377_v58  ;;  %v855_v63 = vpop.f32.mrb[1].mxu0 }
 0x122   : > { %v1088_v62 = vadd.f32 %v2882_v60, %v3377_v58  ;;  %v1079_v0 = vpop.f32.mrb[1].mxu1  ;;  %v856_v1 = vadd.f32 %v3377_v58, %v855_v63  ;;  %v2827_v3 = vpop.f32.mrb[2].mxu0 }
 0x123   : > { %v1080_v2 = vadd.f32 %v3377_v58, %v1079_v0  ;;  %v2883_v4 = vpop.f32.mrb[2].mxu1  ;;  %v867_v5 = vadd.f32 %v2827_v3, %v3377_v58  ;;  %v858_v7 = vpop.f32.mrb[3].mxu0  ;;  %v1304_v11 = vmax.f32 %v864_v61, 0.0 }
 0x124   : > { %v1091_v6 = vadd.f32 %v2883_v4, %v3377_v58  ;;  %v1082_v8 = vpop.f32.mrb[3].mxu1  ;;  %v859_v9 = vadd.f32 %v3377_v58, %v858_v7  ;;  %v1360_v12 = vmax.f32 %v1088_v62, 0.0  ;;  %v1302_v15 = vmax.f32 %v856_v1, 0.0 }
 0x125   : > { %v1083_v10 = vadd.f32 %v3377_v58, %v1082_v8  ;;  %v1305_v13 = vmax.f32 %v867_v5, 0.0  ;;  %v1358_v16 = vmax.f32 %v1080_v2, 0.0 }
 0x126   : > { %v1361_v14 = vmax.f32 %v1091_v6, 0.0  ;;  %v1303_v17 = vmax.f32 %v859_v9, 0.0 }
 0x127   : > { %v1359_v18 = vmax.f32 %v1083_v10, 0.0  ;;  %v2435_v19 = vpack.c.bf16 %v1305_v13, %v1304_v11 }
 0x128   : > { %v2575_v20 = vpack.c.bf16 %v1361_v14, %v1360_v12  ;;  %v2430_v21 = vpack.c.bf16 %v1303_v17, %v1302_v15  ;;  %v2830_v23 = vpop.f32.mrb[4].mxu0 }
 0x129   : > { %v2570_v22 = vpack.c.bf16 %v1359_v18, %v1358_v16  ;;  %v2886_v24 = vpop.f32.mrb[4].mxu1  ;;  %2707 = vst [vmem:[%s3392_s30 + $0x8] sm:$0xff] %v2435_v19   ;;  %v880_v25 = vadd.f32 %v2830_v23, %v3377_v58  ;;  %v871_v27 = vpop.f32.mrb[5].mxu0 }
 0x12a   : > { %2735 = vst [vmem:[%s3392_s30 + $0xe8] sm:$0xff] %v2575_v20   ;;  %v1104_v26 = vadd.f32 %v2886_v24, %v3377_v58  ;;  %v1095_v28 = vpop.f32.mrb[5].mxu1  ;;  %2431 = vst [vmem:[%s3392_s30] sm:$0xff] %v2430_v21   ;;  %v872_v29 = vadd.f32 %v3377_v58, %v871_v27  ;;  %v2831_v31 = vpop.f32.mrb[6].mxu0 }
 0x12b   : > { %2734 = vst [vmem:[%s3392_s30 + $0xe0] sm:$0xff] %v2570_v22   ;;  %v1096_v30 = vadd.f32 %v3377_v58, %v1095_v28  ;;  %v2887_v32 = vpop.f32.mrb[6].mxu1  ;;  %v883_v33 = vadd.f32 %v2831_v31, %v3377_v58  ;;  %v874_v35 = vpop.f32.mrb[7].mxu0  ;;  %v1308_v39 = vmax.f32 %v880_v25, 0.0 }
 0x12c   : > { %v1107_v34 = vadd.f32 %v2887_v32, %v3377_v58  ;;  %v1098_v36 = vpop.f32.mrb[7].mxu1  ;;  %v875_v37 = vadd.f32 %v3377_v58, %v874_v35  ;;  %v1364_v40 = vmax.f32 %v1104_v26, 0.0  ;;  %v1306_v43 = vmax.f32 %v872_v29, 0.0 }
 0x12d   : > { %v1099_v38 = vadd.f32 %v3377_v58, %v1098_v36  ;;  %v1309_v41 = vmax.f32 %v883_v33, 0.0  ;;  %v1362_v44 = vmax.f32 %v1096_v30, 0.0 }
 0x12e   : > { %v1365_v42 = vmax.f32 %v1107_v34, 0.0  ;;  %v1307_v45 = vmax.f32 %v875_v37, 0.0 }
 0x12f   : > { %v1363_v46 = vmax.f32 %v1099_v38, 0.0  ;;  %v2445_v47 = vpack.c.bf16 %v1309_v41, %v1308_v39 }
 0x130   : > { %v2585_v48 = vpack.c.bf16 %v1365_v42, %v1364_v40  ;;  %v2440_v49 = vpack.c.bf16 %v1307_v45, %v1306_v43  ;;  %v2834_v51 = vpop.f32.mrb[8].mxu0 }
 0x131   : > { %v2580_v50 = vpack.c.bf16 %v1363_v46, %v1362_v44  ;;  %v2890_v52 = vpop.f32.mrb[8].mxu1  ;;  %2709 = vst [vmem:[%s3392_s30 + $0x18] sm:$0xff] %v2445_v47   ;;  %v896_v53 = vadd.f32 %v2834_v51, %v3377_v58  ;;  %v887_v55 = vpop.f32.mrb[9].mxu0 }
 0x132   : > { %2737 = vst [vmem:[%s3392_s30 + $0xf8] sm:$0xff] %v2585_v48   ;;  %v1120_v54 = vadd.f32 %v2890_v52, %v3377_v58  ;;  %v1111_v56 = vpop.f32.mrb[9].mxu1  ;;  %2708 = vst [vmem:[%s3392_s30 + $0x10] sm:$0xff] %v2440_v49   ;;  %v888_v57 = vadd.f32 %v3377_v58, %v887_v55  ;;  %v2835_v60 = vpop.f32.mrb[10].mxu0 }
 0x133   : > { %2736 = vst [vmem:[%s3392_s30 + $0xf0] sm:$0xff] %v2580_v50   ;;  %v1112_v59 = vadd.f32 %v3377_v58, %v1111_v56  ;;  %v2891_v61 = vpop.f32.mrb[10].mxu1  ;;  %v899_v62 = vadd.f32 %v2835_v60, %v3377_v58  ;;  %v890_v0 = vpop.f32.mrb[11].mxu0  ;;  %v1312_v4 = vmax.f32 %v896_v53, 0.0 }
 0x134   : > { %v1123_v63 = vadd.f32 %v2891_v61, %v3377_v58  ;;  %v1114_v1 = vpop.f32.mrb[11].mxu1  ;;  %v891_v2 = vadd.f32 %v3377_v58, %v890_v0  ;;  %v1368_v5 = vmax.f32 %v1120_v54, 0.0  ;;  %v1310_v8 = vmax.f32 %v888_v57, 0.0 }
 0x135   : > { %v1115_v3 = vadd.f32 %v3377_v58, %v1114_v1  ;;  %v1313_v6 = vmax.f32 %v899_v62, 0.0  ;;  %v1366_v9 = vmax.f32 %v1112_v59, 0.0 }
 0x136   : > { %v1369_v7 = vmax.f32 %v1123_v63, 0.0  ;;  %v1311_v10 = vmax.f32 %v891_v2, 0.0 }
 0x137   : > { %v1367_v11 = vmax.f32 %v1115_v3, 0.0  ;;  %v2455_v12 = vpack.c.bf16 %v1313_v6, %v1312_v4 }
 0x138   : > { %v2595_v13 = vpack.c.bf16 %v1369_v7, %v1368_v5  ;;  %v2450_v14 = vpack.c.bf16 %v1311_v10, %v1310_v8  ;;  %v2838_v16 = vpop.f32.mrb[12].mxu0 }
 0x139   : > { %v2590_v15 = vpack.c.bf16 %v1367_v11, %v1366_v9  ;;  %v2894_v17 = vpop.f32.mrb[12].mxu1  ;;  %2711 = vst [vmem:[%s3392_s30 + $0x28] sm:$0xff] %v2455_v12   ;;  %v912_v18 = vadd.f32 %v2838_v16, %v3377_v58  ;;  %v903_v20 = vpop.f32.mrb[13].mxu0 }
 0x13a   : > { %2739 = vst [vmem:[%s3392_s30 + $0x108] sm:$0xff] %v2595_v13   ;;  %v1136_v19 = vadd.f32 %v2894_v17, %v3377_v58  ;;  %v1127_v21 = vpop.f32.mrb[13].mxu1  ;;  %2710 = vst [vmem:[%s3392_s30 + $0x20] sm:$0xff] %v2450_v14   ;;  %v904_v22 = vadd.f32 %v3377_v58, %v903_v20  ;;  %v2839_v24 = vpop.f32.mrb[14].mxu0 }
 0x13b   : > { %2738 = vst [vmem:[%s3392_s30 + $0x100] sm:$0xff] %v2590_v15   ;;  %v1128_v23 = vadd.f32 %v3377_v58, %v1127_v21  ;;  %v2895_v25 = vpop.f32.mrb[14].mxu1  ;;  %v915_v26 = vadd.f32 %v2839_v24, %v3377_v58  ;;  %v906_v28 = vpop.f32.mrb[15].mxu0  ;;  %v1316_v32 = vmax.f32 %v912_v18, 0.0 }
 0x13c   : > { %v1139_v27 = vadd.f32 %v2895_v25, %v3377_v58  ;;  %v1130_v29 = vpop.f32.mrb[15].mxu1  ;;  %v907_v30 = vadd.f32 %v3377_v58, %v906_v28  ;;  %v1372_v33 = vmax.f32 %v1136_v19, 0.0  ;;  %v1314_v36 = vmax.f32 %v904_v22, 0.0 }
 0x13d   : > { %v1131_v31 = vadd.f32 %v3377_v58, %v1130_v29  ;;  %v1317_v34 = vmax.f32 %v915_v26, 0.0  ;;  %v1370_v37 = vmax.f32 %v1128_v23, 0.0 }
 0x13e   : > { %v1373_v35 = vmax.f32 %v1139_v27, 0.0  ;;  %v1315_v38 = vmax.f32 %v907_v30, 0.0 }
 0x13f   : > { %v1371_v39 = vmax.f32 %v1131_v31, 0.0  ;;  %v2465_v40 = vpack.c.bf16 %v1317_v34, %v1316_v32 }
 0x140   : > { %v2605_v41 = vpack.c.bf16 %v1373_v35, %v1372_v33  ;;  %v2460_v42 = vpack.c.bf16 %v1315_v38, %v1314_v36  ;;  %v2842_v44 = vpop.f32.mrb[16].mxu0 }
 0x141   : > { %v2600_v43 = vpack.c.bf16 %v1371_v39, %v1370_v37  ;;  %v2898_v45 = vpop.f32.mrb[16].mxu1  ;;  %2713 = vst [vmem:[%s3392_s30 + $0x38] sm:$0xff] %v2465_v40   ;;  %v928_v46 = vadd.f32 %v2842_v44, %v3377_v58  ;;  %v919_v48 = vpop.f32.mrb[17].mxu0 }
 0x142   : > { %2741 = vst [vmem:[%s3392_s30 + $0x118] sm:$0xff] %v2605_v41   ;;  %v1152_v47 = vadd.f32 %v2898_v45, %v3377_v58  ;;  %v1143_v49 = vpop.f32.mrb[17].mxu1  ;;  %2712 = vst [vmem:[%s3392_s30 + $0x30] sm:$0xff] %v2460_v42   ;;  %v920_v50 = vadd.f32 %v3377_v58, %v919_v48  ;;  %v2843_v52 = vpop.f32.mrb[18].mxu0 }
 0x143   : > { %2740 = vst [vmem:[%s3392_s30 + $0x110] sm:$0xff] %v2600_v43   ;;  %v1144_v51 = vadd.f32 %v3377_v58, %v1143_v49  ;;  %v2899_v53 = vpop.f32.mrb[18].mxu1  ;;  %v931_v54 = vadd.f32 %v2843_v52, %v3377_v58  ;;  %v922_v56 = vpop.f32.mrb[19].mxu0  ;;  %v1320_v61 = vmax.f32 %v928_v46, 0.0 }
 0x144   : > { %v1155_v55 = vadd.f32 %v2899_v53, %v3377_v58  ;;  %v1146_v57 = vpop.f32.mrb[19].mxu1  ;;  %v923_v59 = vadd.f32 %v3377_v58, %v922_v56  ;;  %v1376_v62 = vmax.f32 %v1152_v47, 0.0  ;;  %v1318_v1 = vmax.f32 %v920_v50, 0.0 }
 0x145   : > { %v1147_v60 = vadd.f32 %v3377_v58, %v1146_v57  ;;  %v1321_v63 = vmax.f32 %v931_v54, 0.0  ;;  %v1374_v2 = vmax.f32 %v1144_v51, 0.0 }
 0x146   : > { %v1377_v0 = vmax.f32 %v1155_v55, 0.0  ;;  %v1319_v3 = vmax.f32 %v923_v59, 0.0 }
 0x147   : > { %v1375_v4 = vmax.f32 %v1147_v60, 0.0  ;;  %v2475_v5 = vpack.c.bf16 %v1321_v63, %v1320_v61 }
 0x148   : > { %v2615_v6 = vpack.c.bf16 %v1377_v0, %v1376_v62  ;;  %v2470_v7 = vpack.c.bf16 %v1319_v3, %v1318_v1  ;;  %v2846_v9 = vpop.f32.mrb[20].mxu0 }
 0x149   : > { %v2610_v8 = vpack.c.bf16 %v1375_v4, %v1374_v2  ;;  %v2902_v10 = vpop.f32.mrb[20].mxu1  ;;  %2715 = vst [vmem:[%s3392_s30 + $0x48] sm:$0xff] %v2475_v5   ;;  %v944_v11 = vadd.f32 %v2846_v9, %v3377_v58  ;;  %v935_v13 = vpop.f32.mrb[21].mxu0 }
 0x14a   : > { %2743 = vst [vmem:[%s3392_s30 + $0x128] sm:$0xff] %v2615_v6   ;;  %v1168_v12 = vadd.f32 %v2902_v10, %v3377_v58  ;;  %v1159_v14 = vpop.f32.mrb[21].mxu1  ;;  %2714 = vst [vmem:[%s3392_s30 + $0x40] sm:$0xff] %v2470_v7   ;;  %v936_v15 = vadd.f32 %v3377_v58, %v935_v13  ;;  %v2847_v17 = vpop.f32.mrb[22].mxu0 }
 0x14b   : > { %2742 = vst [vmem:[%s3392_s30 + $0x120] sm:$0xff] %v2610_v8   ;;  %v1160_v16 = vadd.f32 %v3377_v58, %v1159_v14  ;;  %v2903_v18 = vpop.f32.mrb[22].mxu1  ;;  %v947_v19 = vadd.f32 %v2847_v17, %v3377_v58  ;;  %v938_v21 = vpop.f32.mrb[23].mxu0  ;;  %v1324_v25 = vmax.f32 %v944_v11, 0.0 }
 0x14c   : > { %v1171_v20 = vadd.f32 %v2903_v18, %v3377_v58  ;;  %v1162_v22 = vpop.f32.mrb[23].mxu1  ;;  %v939_v23 = vadd.f32 %v3377_v58, %v938_v21  ;;  %v1380_v26 = vmax.f32 %v1168_v12, 0.0  ;;  %v1322_v29 = vmax.f32 %v936_v15, 0.0 }
 0x14d   : > { %v1163_v24 = vadd.f32 %v3377_v58, %v1162_v22  ;;  %v1325_v27 = vmax.f32 %v947_v19, 0.0  ;;  %v1378_v30 = vmax.f32 %v1160_v16, 0.0 }
 0x14e   : > { %v1381_v28 = vmax.f32 %v1171_v20, 0.0  ;;  %v1323_v31 = vmax.f32 %v939_v23, 0.0 }
 0x14f   : > { %v1379_v32 = vmax.f32 %v1163_v24, 0.0  ;;  %v2485_v33 = vpack.c.bf16 %v1325_v27, %v1324_v25 }
 0x150   : > { %v2625_v34 = vpack.c.bf16 %v1381_v28, %v1380_v26  ;;  %v2480_v35 = vpack.c.bf16 %v1323_v31, %v1322_v29  ;;  %v2850_v37 = vpop.f32.mrb[24].mxu0 }
 0x151   : > { %v2620_v36 = vpack.c.bf16 %v1379_v32, %v1378_v30  ;;  %v2906_v38 = vpop.f32.mrb[24].mxu1  ;;  %2717 = vst [vmem:[%s3392_s30 + $0x58] sm:$0xff] %v2485_v33   ;;  %v960_v39 = vadd.f32 %v2850_v37, %v3377_v58  ;;  %v951_v41 = vpop.f32.mrb[25].mxu0 }
 0x152   : > { %2745 = vst [vmem:[%s3392_s30 + $0x138] sm:$0xff] %v2625_v34   ;;  %v1184_v40 = vadd.f32 %v2906_v38, %v3377_v58  ;;  %v1175_v42 = vpop.f32.mrb[25].mxu1  ;;  %2716 = vst [vmem:[%s3392_s30 + $0x50] sm:$0xff] %v2480_v35   ;;  %v952_v43 = vadd.f32 %v3377_v58, %v951_v41  ;;  %v2851_v45 = vpop.f32.mrb[26].mxu0 }
 0x153   : > { %2744 = vst [vmem:[%s3392_s30 + $0x130] sm:$0xff] %v2620_v36   ;;  %v1176_v44 = vadd.f32 %v3377_v58, %v1175_v42  ;;  %v2907_v46 = vpop.f32.mrb[26].mxu1  ;;  %v963_v47 = vadd.f32 %v2851_v45, %v3377_v58  ;;  %v954_v49 = vpop.f32.mrb[27].mxu0  ;;  %v1328_v53 = vmax.f32 %v960_v39, 0.0 }
 0x154   : > { %v1187_v48 = vadd.f32 %v2907_v46, %v3377_v58  ;;  %v1178_v50 = vpop.f32.mrb[27].mxu1  ;;  %v955_v51 = vadd.f32 %v3377_v58, %v954_v49  ;;  %v1384_v54 = vmax.f32 %v1184_v40, 0.0  ;;  %v1326_v57 = vmax.f32 %v952_v43, 0.0 }
 0x155   : > { %v1179_v52 = vadd.f32 %v3377_v58, %v1178_v50  ;;  %v1329_v55 = vmax.f32 %v963_v47, 0.0  ;;  %v1382_v59 = vmax.f32 %v1176_v44, 0.0 }
 0x156   : > { %v1385_v56 = vmax.f32 %v1187_v48, 0.0  ;;  %v1327_v60 = vmax.f32 %v955_v51, 0.0 }
 0x157   : > { %v1383_v61 = vmax.f32 %v1179_v52, 0.0  ;;  %v2495_v62 = vpack.c.bf16 %v1329_v55, %v1328_v53 }
 0x158   : > { %v2635_v63 = vpack.c.bf16 %v1385_v56, %v1384_v54  ;;  %v2490_v0 = vpack.c.bf16 %v1327_v60, %v1326_v57  ;;  %v2854_v2 = vpop.f32.mrb[28].mxu0 }
 0x159   : > { %v2630_v1 = vpack.c.bf16 %v1383_v61, %v1382_v59  ;;  %v2910_v3 = vpop.f32.mrb[28].mxu1  ;;  %2719 = vst [vmem:[%s3392_s30 + $0x68] sm:$0xff] %v2495_v62   ;;  %v976_v4 = vadd.f32 %v2854_v2, %v3377_v58  ;;  %v967_v6 = vpop.f32.mrb[29].mxu0 }
 0x15a   : > { %2747 = vst [vmem:[%s3392_s30 + $0x148] sm:$0xff] %v2635_v63   ;;  %v1200_v5 = vadd.f32 %v2910_v3, %v3377_v58  ;;  %v1191_v7 = vpop.f32.mrb[29].mxu1  ;;  %2718 = vst [vmem:[%s3392_s30 + $0x60] sm:$0xff] %v2490_v0   ;;  %v968_v8 = vadd.f32 %v3377_v58, %v967_v6  ;;  %v2855_v10 = vpop.f32.mrb[30].mxu0 }
 0x15b   : > { %2746 = vst [vmem:[%s3392_s30 + $0x140] sm:$0xff] %v2630_v1   ;;  %v1192_v9 = vadd.f32 %v3377_v58, %v1191_v7  ;;  %v2911_v11 = vpop.f32.mrb[30].mxu1  ;;  %v979_v12 = vadd.f32 %v2855_v10, %v3377_v58  ;;  %v970_v14 = vpop.f32.mrb[31].mxu0  ;;  %v1332_v18 = vmax.f32 %v976_v4, 0.0 }
 0x15c   : > { %v1203_v13 = vadd.f32 %v2911_v11, %v3377_v58  ;;  %v1194_v15 = vpop.f32.mrb[31].mxu1  ;;  %v971_v16 = vadd.f32 %v3377_v58, %v970_v14  ;;  %v1388_v19 = vmax.f32 %v1200_v5, 0.0  ;;  %v1330_v22 = vmax.f32 %v968_v8, 0.0 }
 0x15d   : > { %v1195_v17 = vadd.f32 %v3377_v58, %v1194_v15  ;;  %v1333_v20 = vmax.f32 %v979_v12, 0.0  ;;  %v1386_v23 = vmax.f32 %v1192_v9, 0.0 }
 0x15e   : > { %v1389_v21 = vmax.f32 %v1203_v13, 0.0  ;;  %v1331_v24 = vmax.f32 %v971_v16, 0.0 }
 0x15f   : > { %v1387_v25 = vmax.f32 %v1195_v17, 0.0  ;;  %v2505_v26 = vpack.c.bf16 %v1333_v20, %v1332_v18 }
 0x160   : > { %v2645_v27 = vpack.c.bf16 %v1389_v21, %v1388_v19  ;;  %v2500_v28 = vpack.c.bf16 %v1331_v24, %v1330_v22  ;;  %v2858_v30 = vpop.f32.mrb[32].mxu0 }
 0x161   : > { %v2640_v29 = vpack.c.bf16 %v1387_v25, %v1386_v23  ;;  %v2914_v31 = vpop.f32.mrb[32].mxu1  ;;  %2721 = vst [vmem:[%s3392_s30 + $0x78] sm:$0xff] %v2505_v26   ;;  %v992_v32 = vadd.f32 %v2858_v30, %v3377_v58  ;;  %v983_v34 = vpop.f32.mrb[33].mxu0 }
 0x162   : > { %2749 = vst [vmem:[%s3392_s30 + $0x158] sm:$0xff] %v2645_v27   ;;  %v1216_v33 = vadd.f32 %v2914_v31, %v3377_v58  ;;  %v1207_v35 = vpop.f32.mrb[33].mxu1  ;;  %2720 = vst [vmem:[%s3392_s30 + $0x70] sm:$0xff] %v2500_v28   ;;  %v984_v36 = vadd.f32 %v3377_v58, %v983_v34  ;;  %v2859_v38 = vpop.f32.mrb[34].mxu0 }
 0x163   : > { %2748 = vst [vmem:[%s3392_s30 + $0x150] sm:$0xff] %v2640_v29   ;;  %v1208_v37 = vadd.f32 %v3377_v58, %v1207_v35  ;;  %v2915_v39 = vpop.f32.mrb[34].mxu1  ;;  %v995_v40 = vadd.f32 %v2859_v38, %v3377_v58  ;;  %v986_v42 = vpop.f32.mrb[35].mxu0  ;;  %v1336_v46 = vmax.f32 %v992_v32, 0.0 }
 0x164   : > { %v1219_v41 = vadd.f32 %v2915_v39, %v3377_v58  ;;  %v1210_v43 = vpop.f32.mrb[35].mxu1  ;;  %v987_v44 = vadd.f32 %v3377_v58, %v986_v42  ;;  %v1392_v47 = vmax.f32 %v1216_v33, 0.0  ;;  %v1334_v50 = vmax.f32 %v984_v36, 0.0 }
 0x165   : > { %v1211_v45 = vadd.f32 %v3377_v58, %v1210_v43  ;;  %v1337_v48 = vmax.f32 %v995_v40, 0.0  ;;  %v1390_v51 = vmax.f32 %v1208_v37, 0.0 }
 0x166   : > { %v1393_v49 = vmax.f32 %v1219_v41, 0.0  ;;  %v1335_v52 = vmax.f32 %v987_v44, 0.0 }
 0x167   : > { %v1391_v53 = vmax.f32 %v1211_v45, 0.0  ;;  %v2515_v54 = vpack.c.bf16 %v1337_v48, %v1336_v46 }
 0x168   : > { %v2655_v55 = vpack.c.bf16 %v1393_v49, %v1392_v47  ;;  %v2510_v56 = vpack.c.bf16 %v1335_v52, %v1334_v50  ;;  %v2862_v59 = vpop.f32.mrb[36].mxu0 }
 0x169   : > { %v2650_v57 = vpack.c.bf16 %v1391_v53, %v1390_v51  ;;  %v2918_v60 = vpop.f32.mrb[36].mxu1  ;;  %2723 = vst [vmem:[%s3392_s30 + $0x88] sm:$0xff] %v2515_v54   ;;  %v1008_v61 = vadd.f32 %v2862_v59, %v3377_v58  ;;  %v999_v63 = vpop.f32.mrb[37].mxu0 }
 0x16a   : > { %2751 = vst [vmem:[%s3392_s30 + $0x168] sm:$0xff] %v2655_v55   ;;  %v1232_v62 = vadd.f32 %v2918_v60, %v3377_v58  ;;  %v1223_v0 = vpop.f32.mrb[37].mxu1  ;;  %2722 = vst [vmem:[%s3392_s30 + $0x80] sm:$0xff] %v2510_v56   ;;  %v1000_v1 = vadd.f32 %v3377_v58, %v999_v63  ;;  %v2863_v3 = vpop.f32.mrb[38].mxu0 }
 0x16b   : > { %2750 = vst [vmem:[%s3392_s30 + $0x160] sm:$0xff] %v2650_v57   ;;  %v1224_v2 = vadd.f32 %v3377_v58, %v1223_v0  ;;  %v2919_v4 = vpop.f32.mrb[38].mxu1  ;;  %v1011_v5 = vadd.f32 %v2863_v3, %v3377_v58  ;;  %v1002_v7 = vpop.f32.mrb[39].mxu0  ;;  %v1340_v11 = vmax.f32 %v1008_v61, 0.0 }
 0x16c   : > { %v1235_v6 = vadd.f32 %v2919_v4, %v3377_v58  ;;  %v1226_v8 = vpop.f32.mrb[39].mxu1  ;;  %v1003_v9 = vadd.f32 %v3377_v58, %v1002_v7  ;;  %v1396_v12 = vmax.f32 %v1232_v62, 0.0  ;;  %v1338_v15 = vmax.f32 %v1000_v1, 0.0 }
 0x16d   : > { %v1227_v10 = vadd.f32 %v3377_v58, %v1226_v8  ;;  %v1341_v13 = vmax.f32 %v1011_v5, 0.0  ;;  %v1394_v16 = vmax.f32 %v1224_v2, 0.0 }
 0x16e   : > { %v1397_v14 = vmax.f32 %v1235_v6, 0.0  ;;  %v1339_v17 = vmax.f32 %v1003_v9, 0.0 }
 0x16f   : > { %v1395_v18 = vmax.f32 %v1227_v10, 0.0  ;;  %v2525_v19 = vpack.c.bf16 %v1341_v13, %v1340_v11 }
 0x170   : > { %v2665_v20 = vpack.c.bf16 %v1397_v14, %v1396_v12  ;;  %v2520_v21 = vpack.c.bf16 %v1339_v17, %v1338_v15  ;;  %v2866_v23 = vpop.f32.mrb[40].mxu0 }
 0x171   : > { %v2660_v22 = vpack.c.bf16 %v1395_v18, %v1394_v16  ;;  %v2922_v24 = vpop.f32.mrb[40].mxu1  ;;  %2725 = vst [vmem:[%s3392_s30 + $0x98] sm:$0xff] %v2525_v19   ;;  %v1024_v25 = vadd.f32 %v2866_v23, %v3377_v58  ;;  %v1015_v27 = vpop.f32.mrb[41].mxu0 }
 0x172   : > { %2753 = vst [vmem:[%s3392_s30 + $0x178] sm:$0xff] %v2665_v20   ;;  %v1248_v26 = vadd.f32 %v2922_v24, %v3377_v58  ;;  %v1239_v28 = vpop.f32.mrb[41].mxu1  ;;  %2724 = vst [vmem:[%s3392_s30 + $0x90] sm:$0xff] %v2520_v21   ;;  %v1016_v29 = vadd.f32 %v3377_v58, %v1015_v27  ;;  %v2867_v31 = vpop.f32.mrb[42].mxu0 }
 0x173   : > { %2752 = vst [vmem:[%s3392_s30 + $0x170] sm:$0xff] %v2660_v22   ;;  %v1240_v30 = vadd.f32 %v3377_v58, %v1239_v28  ;;  %v2923_v32 = vpop.f32.mrb[42].mxu1  ;;  %v1027_v33 = vadd.f32 %v2867_v31, %v3377_v58  ;;  %v1018_v35 = vpop.f32.mrb[43].mxu0  ;;  %v1344_v39 = vmax.f32 %v1024_v25, 0.0 }
 0x174   : > { %v1251_v34 = vadd.f32 %v2923_v32, %v3377_v58  ;;  %v1242_v36 = vpop.f32.mrb[43].mxu1  ;;  %v1019_v37 = vadd.f32 %v3377_v58, %v1018_v35  ;;  %v1400_v40 = vmax.f32 %v1248_v26, 0.0  ;;  %v1342_v43 = vmax.f32 %v1016_v29, 0.0 }
 0x175   : > { %v1243_v38 = vadd.f32 %v3377_v58, %v1242_v36  ;;  %v1345_v41 = vmax.f32 %v1027_v33, 0.0  ;;  %v1398_v44 = vmax.f32 %v1240_v30, 0.0 }
 0x176   : > { %v1401_v42 = vmax.f32 %v1251_v34, 0.0  ;;  %v1343_v45 = vmax.f32 %v1019_v37, 0.0 }
 0x177   : > { %v1399_v46 = vmax.f32 %v1243_v38, 0.0  ;;  %v2535_v47 = vpack.c.bf16 %v1345_v41, %v1344_v39 }
 0x178   : > { %v2675_v48 = vpack.c.bf16 %v1401_v42, %v1400_v40  ;;  %v2530_v49 = vpack.c.bf16 %v1343_v45, %v1342_v43  ;;  %v2870_v51 = vpop.f32.mrb[44].mxu0 }
 0x179   : > { %v2670_v50 = vpack.c.bf16 %v1399_v46, %v1398_v44  ;;  %v2926_v52 = vpop.f32.mrb[44].mxu1  ;;  %2727 = vst [vmem:[%s3392_s30 + $0xa8] sm:$0xff] %v2535_v47   ;;  %v1040_v53 = vadd.f32 %v2870_v51, %v3377_v58  ;;  %v1031_v55 = vpop.f32.mrb[45].mxu0 }
 0x17a   : > { %2755 = vst [vmem:[%s3392_s30 + $0x188] sm:$0xff] %v2675_v48   ;;  %v1264_v54 = vadd.f32 %v2926_v52, %v3377_v58  ;;  %v1255_v56 = vpop.f32.mrb[45].mxu1  ;;  %2726 = vst [vmem:[%s3392_s30 + $0xa0] sm:$0xff] %v2530_v49   ;;  %v1032_v57 = vadd.f32 %v3377_v58, %v1031_v55  ;;  %v2871_v60 = vpop.f32.mrb[46].mxu0 }
 0x17b   : > { %2754 = vst [vmem:[%s3392_s30 + $0x180] sm:$0xff] %v2670_v50   ;;  %v1256_v59 = vadd.f32 %v3377_v58, %v1255_v56  ;;  %v2927_v61 = vpop.f32.mrb[46].mxu1  ;;  %v1043_v62 = vadd.f32 %v2871_v60, %v3377_v58  ;;  %v1034_v0 = vpop.f32.mrb[47].mxu0  ;;  %v1348_v4 = vmax.f32 %v1040_v53, 0.0 }
 0x17c   : > { %v1267_v63 = vadd.f32 %v2927_v61, %v3377_v58  ;;  %v1258_v1 = vpop.f32.mrb[47].mxu1  ;;  %v1035_v2 = vadd.f32 %v3377_v58, %v1034_v0  ;;  %v1404_v5 = vmax.f32 %v1264_v54, 0.0  ;;  %v1346_v8 = vmax.f32 %v1032_v57, 0.0 }
 0x17d   : > { %v1259_v3 = vadd.f32 %v3377_v58, %v1258_v1  ;;  %v1349_v6 = vmax.f32 %v1043_v62, 0.0  ;;  %v1402_v9 = vmax.f32 %v1256_v59, 0.0 }
 0x17e   : > { %v1405_v7 = vmax.f32 %v1267_v63, 0.0  ;;  %v1347_v10 = vmax.f32 %v1035_v2, 0.0 }
 0x17f   : > { %v1403_v11 = vmax.f32 %v1259_v3, 0.0  ;;  %v2545_v12 = vpack.c.bf16 %v1349_v6, %v1348_v4 }
 0x180   : > { %v2685_v13 = vpack.c.bf16 %v1405_v7, %v1404_v5  ;;  %v2540_v14 = vpack.c.bf16 %v1347_v10, %v1346_v8  ;;  %v2874_v16 = vpop.f32.mrb[48].mxu0 }
 0x181   : > { %v2680_v15 = vpack.c.bf16 %v1403_v11, %v1402_v9  ;;  %v2930_v17 = vpop.f32.mrb[48].mxu1  ;;  %2729 = vst [vmem:[%s3392_s30 + $0xb8] sm:$0xff] %v2545_v12   ;;  %v1056_v18 = vadd.f32 %v2874_v16, %v3377_v58  ;;  %v1047_v20 = vpop.f32.mrb[49].mxu0 }
 0x182   : > { %2757 = vst [vmem:[%s3392_s30 + $0x198] sm:$0xff] %v2685_v13   ;;  %v1280_v19 = vadd.f32 %v2930_v17, %v3377_v58  ;;  %v1271_v21 = vpop.f32.mrb[49].mxu1  ;;  %2728 = vst [vmem:[%s3392_s30 + $0xb0] sm:$0xff] %v2540_v14   ;;  %v1048_v22 = vadd.f32 %v3377_v58, %v1047_v20  ;;  %v2875_v24 = vpop.f32.mrb[50].mxu0 }
 0x183   : > { %2756 = vst [vmem:[%s3392_s30 + $0x190] sm:$0xff] %v2680_v15   ;;  %v1272_v23 = vadd.f32 %v3377_v58, %v1271_v21  ;;  %v2931_v25 = vpop.f32.mrb[50].mxu1  ;;  %v1059_v26 = vadd.f32 %v2875_v24, %v3377_v58  ;;  %v1050_v28 = vpop.f32.mrb[51].mxu0  ;;  %v1352_v32 = vmax.f32 %v1056_v18, 0.0 }
 0x184   : > { %v1283_v27 = vadd.f32 %v2931_v25, %v3377_v58  ;;  %v1274_v29 = vpop.f32.mrb[51].mxu1  ;;  %v1051_v30 = vadd.f32 %v3377_v58, %v1050_v28  ;;  %v1408_v33 = vmax.f32 %v1280_v19, 0.0  ;;  %v1350_v36 = vmax.f32 %v1048_v22, 0.0 }
 0x185   : > { %v1275_v31 = vadd.f32 %v3377_v58, %v1274_v29  ;;  %v1353_v34 = vmax.f32 %v1059_v26, 0.0  ;;  %v1406_v37 = vmax.f32 %v1272_v23, 0.0 }
 0x186   : > { %v1409_v35 = vmax.f32 %v1283_v27, 0.0  ;;  %v1351_v38 = vmax.f32 %v1051_v30, 0.0 }
 0x187   : > { %v1407_v39 = vmax.f32 %v1275_v31, 0.0  ;;  %v2555_v40 = vpack.c.bf16 %v1353_v34, %v1352_v32 }
 0x188   : > { %v2695_v41 = vpack.c.bf16 %v1409_v35, %v1408_v33  ;;  %v2550_v42 = vpack.c.bf16 %v1351_v38, %v1350_v36  ;;  %v2878_v44 = vpop.f32.mrb[52].mxu0 }
 0x189   : > { %v2690_v43 = vpack.c.bf16 %v1407_v39, %v1406_v37  ;;  %v2934_v45 = vpop.f32.mrb[52].mxu1  ;;  %2731 = vst [vmem:[%s3392_s30 + $0xc8] sm:$0xff] %v2555_v40   ;;  %v1072_v46 = vadd.f32 %v2878_v44, %v3377_v58  ;;  %v1063_v48 = vpop.f32.mrb[53].mxu0 }
 0x18a   : > { %2759 = vst [vmem:[%s3392_s30 + $0x1a8] sm:$0xff] %v2695_v41   ;;  %v1296_v47 = vadd.f32 %v2934_v45, %v3377_v58  ;;  %v1287_v49 = vpop.f32.mrb[53].mxu1  ;;  %2730 = vst [vmem:[%s3392_s30 + $0xc0] sm:$0xff] %v2550_v42   ;;  %v1064_v50 = vadd.f32 %v3377_v58, %v1063_v48  ;;  %v2879_v52 = vpop.f32.mrb[54].mxu0 }
 0x18b   : > { %2758 = vst [vmem:[%s3392_s30 + $0x1a0] sm:$0xff] %v2690_v43   ;;  %v1288_v51 = vadd.f32 %v3377_v58, %v1287_v49  ;;  %v2935_v53 = vpop.f32.mrb[54].mxu1  ;;  %v1075_v54 = vadd.f32 %v2879_v52, %v3377_v58  ;;  %v1066_v56 = vpop.f32.mrb[55].mxu0  ;;  %v1356_v61 = vmax.f32 %v1072_v46, 0.0 }
 0x18c   : > { %v1299_v55 = vadd.f32 %v2935_v53, %v3377_v58  ;;  %v1290_v57 = vpop.f32.mrb[55].mxu1  ;;  %v1067_v59 = vadd.f32 %v3377_v58, %v1066_v56  ;;  %v1412_v62 = vmax.f32 %v1296_v47, 0.0  ;;  %v1354_v1 = vmax.f32 %v1064_v50, 0.0 }
 0x18d   : > { %v1291_v60 = vadd.f32 %v3377_v58, %v1290_v57  ;;  %v1357_v63 = vmax.f32 %v1075_v54, 0.0  ;;  %v1410_v2 = vmax.f32 %v1288_v51, 0.0 }
 0x18e   : > { %v1413_v0 = vmax.f32 %v1299_v55, 0.0  ;;  %v1355_v3 = vmax.f32 %v1067_v59, 0.0 }
 0x18f   : > { %v1411_v4 = vmax.f32 %v1291_v60, 0.0  ;;  %v2565_v5 = vpack.c.bf16 %v1357_v63, %v1356_v61 }
 0x190   : > { %v2705_v6 = vpack.c.bf16 %v1413_v0, %v1412_v62  ;;  %v2560_v7 = vpack.c.bf16 %v1355_v3, %v1354_v1 }
 0x191   : > { %v2700_v8 = vpack.c.bf16 %v1411_v4, %v1410_v2  ;;  %2733 = vst [vmem:[%s3392_s30 + $0xd8] sm:$0xff] %v2565_v5  }
 0x192   : > { %2761 = vst [vmem:[%s3392_s30 + $0x1b8] sm:$0xff] %v2705_v6   ;;  %2732 = vst [vmem:[%s3392_s30 + $0xd0] sm:$0xff] %v2560_v7  }
 0x193   : > { %2760 = vst [vmem:[%s3392_s30 + $0x1b0] sm:$0xff] %v2700_v8  }
 0x194 PF: > { %s15_s14 = sadd.s32 1, %s3131_s14   ;;  %s3575_s12 = smov %s3127_s13 }
 0x195   : > { %p12_p6 = scmp.ge.s32.totalorder %s15_s14, 6   ;;  %s3576_s13 = smov %s3578_s16 }
 0x197   :  { %14 = sbr.rel (!%p12_p6) target bundleno = 3 (0x3), region = 73 }
 0x19e   :  { %2002 = vsyncpa [#allocation3], 1 }
 0x19f   :  { %2004 = vsyncpa [#allocation3 + $0x1], 1 }
 0x1a0   :  { %2005 = vsyncpa [#allocation5], 1 }

// kernel: neural_network_forward.5
= control target key start
LH: loop header
LB: loop body
LE: loop exit
PB: predicated region body
PF: predicated region fallthrough
CT: control target
= control target key end

     0   :  { %s2052_s12 = smov 0   ;;  %s2054_s13 = smov 0   ;;  %s2313_s0 = inlined_call_operand.vmem [shape: bf16[1024,400], index: 0, kind: input, shape index: {}]   ;;  %s2314_s1 = inlined_call_operand.vmem [shape: bf16[400,128], index: 1, kind: input, shape index: {}]   ;;  %s2315_s2 = inlined_call_operand.vmem [shape: f32[1,128], index: 2, kind: input, shape index: {}]   ;;  %s2316_s3 = inlined_call_operand.vmem [shape: bf16[1024,128], index: 3, kind: output, shape index: {}]  }
   0x1   :  { %s2056_s14 = smov 0  }
   0x2 LB: > { %s25_s15 = sadd.s32 1, %s2025_s13  ;;  %p1475_p0 = scmp.ge.s32.totalorder %s2029_s14, 1  ;;  %s2029_s14 = sphi %s2056_s14, %s13_s14   ;;  %s2025_s13 = sphi %s2054_s13, %s2318_s13   ;;  %s2021_s12 = sphi %s2052_s12, %s2317_s12  }
   0x3   : > { %p27_p1 = scmp.ge.s32.totalorder %s25_s15, 4  ;;  %p170_p2 = scmp.lt.s32.totalorder %s2029_s14, 5 }
   0x5   : > { %s2320_s15 = smov (%p27_p1, %s25_s15), 0  ;;  %p171_p3 = pnand %p1475_p0, %p170_p2 }
   0x6   : > { %v1886_v0 = vld [vmem:[%s2314_s1 + $0x40] sm:$0xff] (!%p171_p3)   ;;  %v2031_v1 = vmov (!%p171_p3), 0   ;;  %v1889_v4 = vld [vmem:[%s2314_s1 + $0x48] sm:$0xff] (!%p171_p3)   ;;  %v1892_v7 = vld [vmem:[%s2314_s1 + $0x50] sm:$0xff] (!%p171_p3)   ;;  %s1476_s7 = sshll.u32 (!%p171_p3), %s2021_s12, 5  ;;  %vm804_vm0 = vcmask (!%p171_p3), 130048  }
   0x7   : > { %174 = sbr.rel (%p171_p3) target bundleno = 386 (0x182), region = 32  ;;  %1014 = vmatprep.subr.bf16.mxu1 (!%p171_p3), %v2031_v1  ;;  %v1887_v2 = vld [vmem:[%s2314_s1 + $0x80] sm:$0xff] (!%p171_p3)   ;;  %1749 = vmatprep.subr.bf16.mxu0 (!%p171_p3), %v1886_v0  ;;  %v1890_v5 = vld [vmem:[%s2314_s1 + $0x88] sm:$0xff] (!%p171_p3)   ;;  %v1893_v8 = vld [vmem:[%s2314_s1 + $0x90] sm:$0xff] (!%p171_p3)   ;;  %p206_p4 = scmp.lt.s32.totalorder (!%p171_p3), %s1476_s7, 127 }
   0x8   : > { %v1888_v3 = vld [vmem:[%s2314_s1] sm:$0xff] (!%p171_p3)   ;;  %1015 = vmatpush1.bf16.msra.mxu1 (!%p171_p3), %v1887_v2  ;;  %v1891_v6 = vld [vmem:[%s2314_s1 + $0x8] sm:$0xff] (!%p171_p3)   ;;  %v1894_v9 = vld [vmem:[%s2314_s1 + $0x10] sm:$0xff] (!%p171_p3)  }
   0x9   : > { %1750 = vmatpush3.bf16.msra.mxu0 (!%p171_p3), %v1888_v3  ;;  %1016 = vmatprep.subr.bf16.mxu1 (!%p171_p3), %v2031_v1  ;;  %v1895_v10 = vld [vmem:[%s2314_s1 + $0x58] sm:$0xff] (!%p171_p3)   ;;  %v1898_v13 = vld [vmem:[%s2314_s1 + $0x60] sm:$0xff] (!%p171_p3)   ;;  %v1901_v16 = vld [vmem:[%s2314_s1 + $0x68] sm:$0xff] (!%p171_p3)  }
   0xa   : > { %1751 = vmatprep.subr.bf16.mxu0 (!%p171_p3), %v1889_v4  ;;  %v1896_v11 = vld [vmem:[%s2314_s1 + $0x98] sm:$0xff] (!%p171_p3)   ;;  %v1899_v14 = vld [vmem:[%s2314_s1 + $0xa0] sm:$0xff] (!%p171_p3)   ;;  %v1902_v17 = vld [vmem:[%s2314_s1 + $0xa8] sm:$0xff] (!%p171_p3)  }
   0xb   : > { %v1897_v12 = vld [vmem:[%s2314_s1 + $0x18] sm:$0xff] (!%p171_p3)   ;;  %v1900_v15 = vld [vmem:[%s2314_s1 + $0x20] sm:$0xff] (!%p171_p3)   ;;  %v1903_v18 = vld [vmem:[%s2314_s1 + $0x28] sm:$0xff] (!%p171_p3)  }
   0xc   : > { %1017 = vmatpush1.bf16.msra.mxu1 (!%p171_p3), %v1890_v5  ;;  %v1904_v19 = vld [vmem:[%s2314_s1 + $0x70] sm:$0xff] (!%p171_p3)   ;;  %v1907_v22 = vld [vmem:[%s2314_s1 + $0x78] sm:$0xff] (!%p171_p3)   ;;  %v1913_v28 = vld [vmem:[%s2314_s1 + $0xc0] sm:$0xff] (!%p171_p3)  }
   0xd   : > { %1752 = vmatpush3.bf16.msra.mxu0 (!%p171_p3), %v1891_v6  ;;  %1018 = vmatprep.subr.bf16.mxu1 (!%p171_p3), %v2031_v1  ;;  %v1905_v20 = vld [vmem:[%s2314_s1 + $0xb0] sm:$0xff] (!%p171_p3)   ;;  %v1908_v24 = vld [vmem:[%s2314_s1 + $0xb8] sm:$0xff] (!%p171_p3)  }
   0xe   : > { %1753 = vmatprep.subr.bf16.mxu0 %v1892_v7  ;;  %s2322_s7 = smov (!%p206_p4, %s1476_s7), 127  ;;  %v1906_v21 = vld [vmem:[%s2314_s1 + $0x30] sm:$0xff]   ;;  %v1909_v26 = vld [vmem:[%s2314_s1 + $0x38] sm:$0xff]  }
   0xf   : > { %s1621_s27 = sshll.u32 %s2322_s7, 4  ;;  %s1480_s26 = sshll.u32 %s2322_s7, 2 }
  0x10   : > { %1019 = vmatpush1.bf16.msra.mxu1 %v1893_v8  ;;  %s2145_s10 = scalar_lea.vmem %s2313_s0, %s1621_s27  ;;  %s2256_s29 = scalar_lea.vmem %s2316_s3, %s1480_s26 }
  0x11   : > { %1754 = vmatpush3.bf16.msra.mxu0 %v1894_v9  ;;  %1020 = vmatprep.subr.bf16.mxu1 %v2031_v1  ;;  %v1912_v23 = vld [vmem:[%s2145_s10 + $0x4] ss:$16 sps:$4 sm:$0xff]   ;;  %v1916_v25 = vld [vmem:[%s2145_s10 + $0xc] ss:$16 sps:$4 sm:$0xff]   ;;  %v1910_v27 = vld [vmem:[%s2145_s10] ss:$16 sps:$4 sm:$0xff]  }
  0x12   : > { %1755 = vmatprep.subr.bf16.mxu0 %v1895_v10  ;;  %885 = vmatprep.mubr.bf16.mxu0 %v1912_v23  ;;  %v1917_v29 = vld [vmem:[%s2145_s10 + $0x24] ss:$16 sps:$4 sm:$0xff]   ;;  %v1914_v30 = vld [vmem:[%s2145_s10 + $0x8] ss:$16 sps:$4 sm:$0xff]   ;;  %v1920_v31 = vld [vmem:[%s2145_s10 + $0x2c] ss:$16 sps:$4 sm:$0xff]  }
  0x13   : > { %1571 = vmatprep.mubr.msk.bf16.mxu1 %vm804_vm0, %v1916_v25  ;;  %v1919_v32 = vld [vmem:[%s2145_s10 + $0x20] ss:$16 sps:$4 sm:$0xff]   ;;  %v1923_v33 = vld [vmem:[%s2145_s10 + $0x44] ss:$16 sps:$4 sm:$0xff]   ;;  %v1922_v34 = vld [vmem:[%s2145_s10 + $0x28] ss:$16 sps:$4 sm:$0xff]  }
  0x14   : > { %1021 = vmatpush1.bf16.msra.mxu1 %v1896_v11  ;;  %v1926_v35 = vld [vmem:[%s2145_s10 + $0x4c] ss:$16 sps:$4 sm:$0xff]   ;;  %v1925_v36 = vld [vmem:[%s2145_s10 + $0x40] ss:$16 sps:$4 sm:$0xff]   ;;  %v1929_v37 = vld [vmem:[%s2145_s10 + $0x64] ss:$16 sps:$4 sm:$0xff]  }
  0x15   : > { %1756 = vmatpush3.bf16.msra.mxu0 %v1897_v12  ;;  %1022 = vmatprep.subr.bf16.mxu1 %v2031_v1  ;;  %v1928_v38 = vld [vmem:[%s2145_s10 + $0x48] ss:$16 sps:$4 sm:$0xff]   ;;  %v1932_v39 = vld [vmem:[%s2145_s10 + $0x6c] ss:$16 sps:$4 sm:$0xff]   ;;  %v1931_v40 = vld [vmem:[%s2145_s10 + $0x60] ss:$16 sps:$4 sm:$0xff]  }
  0x16   : > { %1757 = vmatprep.subr.bf16.mxu0 %v1898_v13  ;;  %v1935_v41 = vld [vmem:[%s2145_s10 + $0x84] ss:$16 sps:$4 sm:$0xff]   ;;  %v1934_v42 = vld [vmem:[%s2145_s10 + $0x68] ss:$16 sps:$4 sm:$0xff]   ;;  %v1938_v43 = vld [vmem:[%s2145_s10 + $0x8c] ss:$16 sps:$4 sm:$0xff]  }
  0x17   : > { %v1937_v44 = vld [vmem:[%s2145_s10 + $0x80] ss:$16 sps:$4 sm:$0xff]   ;;  %v1941_v45 = vld [vmem:[%s2145_s10 + $0xa4] ss:$16 sps:$4 sm:$0xff]   ;;  %v1940_v46 = vld [vmem:[%s2145_s10 + $0x88] ss:$16 sps:$4 sm:$0xff]  }
  0x18   : > { %1023 = vmatpush1.bf16.msra.mxu1 %v1899_v14  ;;  %v1944_v47 = vld [vmem:[%s2145_s10 + $0xac] ss:$16 sps:$4 sm:$0xff]   ;;  %v1943_v48 = vld [vmem:[%s2145_s10 + $0xa0] ss:$16 sps:$4 sm:$0xff]   ;;  %v1947_v49 = vld [vmem:[%s2145_s10 + $0xc4] ss:$16 sps:$4 sm:$0xff]  }
  0x19   : > { %1758 = vmatpush3.bf16.msra.mxu0 %v1900_v15  ;;  %1024 = vmatprep.subr.bf16.mxu1 %v2031_v1  ;;  %v1946_v50 = vld [vmem:[%s2145_s10 + $0xa8] ss:$16 sps:$4 sm:$0xff]   ;;  %v1950_v51 = vld [vmem:[%s2145_s10 + $0xcc] ss:$16 sps:$4 sm:$0xff]   ;;  %v1949_v52 = vld [vmem:[%s2145_s10 + $0xc0] ss:$16 sps:$4 sm:$0xff]  }
  0x1a   : > { %1759 = vmatprep.subr.bf16.mxu0 %v1901_v16  ;;  %v1953_v53 = vld [vmem:[%s2145_s10 + $0xe4] ss:$16 sps:$4 sm:$0xff]   ;;  %v1952_v54 = vld [vmem:[%s2145_s10 + $0xc8] ss:$16 sps:$4 sm:$0xff]   ;;  %v1956_v55 = vld [vmem:[%s2145_s10 + $0xec] ss:$16 sps:$4 sm:$0xff]  }
  0x1b   : > { %v1955_v56 = vld [vmem:[%s2145_s10 + $0xe0] ss:$16 sps:$4 sm:$0xff]   ;;  %v1959_v57 = vld [vmem:[%s2145_s10 + $0x104] ss:$16 sps:$4 sm:$0xff]   ;;  %v1958_v58 = vld [vmem:[%s2145_s10 + $0xe8] ss:$16 sps:$4 sm:$0xff]  }
  0x1c   : > { %1025 = vmatpush1.bf16.msra.mxu1 %v1902_v17  ;;  %v1962_v59 = vld [vmem:[%s2145_s10 + $0x10c] ss:$16 sps:$4 sm:$0xff]   ;;  %v1961_v60 = vld [vmem:[%s2145_s10 + $0x100] ss:$16 sps:$4 sm:$0xff]   ;;  %v1965_v61 = vld [vmem:[%s2145_s10 + $0x124] ss:$16 sps:$4 sm:$0xff]  }
  0x1d   : > { %1760 = vmatpush3.bf16.msra.mxu0 %v1903_v18  ;;  %1026 = vmatprep.subr.bf16.mxu1 %v2031_v1  ;;  %v1964_v62 = vld [vmem:[%s2145_s10 + $0x108] ss:$16 sps:$4 sm:$0xff]   ;;  %v1968_v63 = vld [vmem:[%s2145_s10 + $0x12c] ss:$16 sps:$4 sm:$0xff]   ;;  %v1967_v0 = vld [vmem:[%s2145_s10 + $0x120] ss:$16 sps:$4 sm:$0xff]  }
  0x1e   : > { %1761 = vmatprep.subr.bf16.mxu0 %v1904_v19  ;;  %v1970_v2 = vld [vmem:[%s2145_s10 + $0x128] ss:$16 sps:$4 sm:$0xff]   ;;  %v1974_v3 = vld [vmem:[%s2145_s10 + $0x14c] ss:$16 sps:$4 sm:$0xff]   ;;  %v1973_v4 = vld [vmem:[%s2145_s10 + $0x140] ss:$16 sps:$4 sm:$0xff]  }
  0x1f   : > { %v1977_v5 = vld [vmem:[%s2145_s10 + $0x164] ss:$16 sps:$4 sm:$0xff]   ;;  %v1976_v6 = vld [vmem:[%s2145_s10 + $0x148] ss:$16 sps:$4 sm:$0xff]   ;;  %v1980_v7 = vld [vmem:[%s2145_s10 + $0x16c] ss:$16 sps:$4 sm:$0xff]  }
  0x20   : > { %1027 = vmatpush1.bf16.msra.mxu1 %v1905_v20  ;;  %v1979_v8 = vld [vmem:[%s2145_s10 + $0x160] ss:$16 sps:$4 sm:$0xff]   ;;  %v1983_v9 = vld [vmem:[%s2145_s10 + $0x184] ss:$16 sps:$4 sm:$0xff]   ;;  %v1982_v10 = vld [vmem:[%s2145_s10 + $0x168] ss:$16 sps:$4 sm:$0xff]  }
  0x21   : > { %1762 = vmatpush3.bf16.msra.mxu0 %v1906_v21  ;;  %1028 = vmatprep.subr.bf16.mxu1 %v2031_v1  ;;  %v1986_v11 = vld [vmem:[%s2145_s10 + $0x18c] ss:$16 sps:$4 sm:$0xff]   ;;  %v1985_v12 = vld [vmem:[%s2145_s10 + $0x180] ss:$16 sps:$4 sm:$0xff]   ;;  %v1989_v13 = vld [vmem:[%s2145_s10 + $0x1a4] ss:$16 sps:$4 sm:$0xff]  }
  0x22   : > { %1763 = vmatprep.subr.bf16.mxu0 %v1907_v22  ;;  %v1988_v14 = vld [vmem:[%s2145_s10 + $0x188] ss:$16 sps:$4 sm:$0xff]   ;;  %v1992_v15 = vld [vmem:[%s2145_s10 + $0x1ac] ss:$16 sps:$4 sm:$0xff]   ;;  %v1991_v16 = vld [vmem:[%s2145_s10 + $0x1a0] ss:$16 sps:$4 sm:$0xff]  }
  0x23   : > { %v1995_v17 = vld [vmem:[%s2145_s10 + $0x1c4] ss:$16 sps:$4 sm:$0xff]   ;;  %v1994_v18 = vld [vmem:[%s2145_s10 + $0x1a8] ss:$16 sps:$4 sm:$0xff]   ;;  %v1998_v19 = vld [vmem:[%s2145_s10 + $0x1cc] ss:$16 sps:$4 sm:$0xff]  }
  0x24   : > { %1029 = vmatpush1.bf16.msra.mxu1 %v1908_v24  ;;  %v1997_v20 = vld [vmem:[%s2145_s10 + $0x1c0] ss:$16 sps:$4 sm:$0xff]   ;;  %v2001_v21 = vld [vmem:[%s2145_s10 + $0x1e4] ss:$16 sps:$4 sm:$0xff]   ;;  %v2000_v22 = vld [vmem:[%s2145_s10 + $0x1c8] ss:$16 sps:$4 sm:$0xff]  }
  0x25   : > { %1764 = vmatpush3.bf16.msra.mxu0 %v1909_v26  ;;  %1030 = vmatprep.subr.bf16.mxu1 %v2031_v1  ;;  %v1971_v1 = vld [vmem:[%s2145_s10 + $0x144] ss:$16 sps:$4 sm:$0xff]   ;;  %v2004_v23 = vld [vmem:[%s2145_s10 + $0x1ec] ss:$16 sps:$4 sm:$0xff]   ;;  %v2003_v24 = vld [vmem:[%s2145_s10 + $0x1e0] ss:$16 sps:$4 sm:$0xff]  }
  0x26   : > { %v2006_v25 = vld [vmem:[%s2145_s10 + $0x1e8] ss:$16 sps:$4 sm:$0xff]  }
  0x28   : > { %886 = vmatmul.mubr.bf16.vlgmr.msra.gmra.mrb[0].mxu0 %v1910_v27  ;;  %1031 = vmatpush1.bf16.msra.mxu1 %v1913_v28  ;;  %v2248_v28 = vld [vmem:[%s2315_s2] ss:$0 sm:$0xff] }
  0x29   : > { %893 = vmatprep.mubr.bf16.mxu0 %v1917_v29 }
  0x2b   : > { %1047 = vmatmul.mubr.bf16.vlgmr.msra.gmra.mrb[0].mxu1 %v1914_v30 }
  0x2c   : > { %1572 = vmatprep.mubr.msk.bf16.mxu1 %vm804_vm0, %v1920_v31 }
  0x30   : > { %894 = vmatmul.mubr.bf16.gmra.mrb[4].mxu0 %v1919_v32 }
  0x31   : > { %901 = vmatprep.mubr.bf16.mxu0 %v1923_v33 }
  0x33   : > { %1055 = vmatmul.mubr.bf16.gmra.mrb[4].mxu1 %v1922_v34 }
  0x34   : > { %1573 = vmatprep.mubr.msk.bf16.mxu1 %vm804_vm0, %v1926_v35 }
  0x38   : > { %902 = vmatmul.mubr.bf16.gmra.mrb[8].mxu0 %v1925_v36 }
  0x39   : > { %909 = vmatprep.mubr.bf16.mxu0 %v1929_v37 }
  0x3b   : > { %1063 = vmatmul.mubr.bf16.gmra.mrb[8].mxu1 %v1928_v38 }
  0x3c   : > { %1574 = vmatprep.mubr.msk.bf16.mxu1 %vm804_vm0, %v1932_v39 }
  0x40   : > { %910 = vmatmul.mubr.bf16.gmra.mrb[12].mxu0 %v1931_v40 }
  0x41   : > { %917 = vmatprep.mubr.bf16.mxu0 %v1935_v41 }
  0x43   : > { %1071 = vmatmul.mubr.bf16.gmra.mrb[12].mxu1 %v1934_v42 }
  0x44   : > { %1575 = vmatprep.mubr.msk.bf16.mxu1 %vm804_vm0, %v1938_v43 }
  0x48   : > { %918 = vmatmul.mubr.bf16.gmra.mrb[16].mxu0 %v1937_v44 }
  0x49   : > { %925 = vmatprep.mubr.bf16.mxu0 %v1941_v45 }
  0x4b   : > { %1079 = vmatmul.mubr.bf16.gmra.mrb[16].mxu1 %v1940_v46 }
  0x4c   : > { %1576 = vmatprep.mubr.msk.bf16.mxu1 %vm804_vm0, %v1944_v47 }
  0x50   : > { %926 = vmatmul.mubr.bf16.gmra.mrb[20].mxu0 %v1943_v48 }
  0x51   : > { %933 = vmatprep.mubr.bf16.mxu0 %v1947_v49 }
  0x53   : > { %1087 = vmatmul.mubr.bf16.gmra.mrb[20].mxu1 %v1946_v50 }
  0x54   : > { %1577 = vmatprep.mubr.msk.bf16.mxu1 %vm804_vm0, %v1950_v51 }
  0x58   : > { %934 = vmatmul.mubr.bf16.gmra.mrb[24].mxu0 %v1949_v52 }
  0x59   : > { %941 = vmatprep.mubr.bf16.mxu0 %v1953_v53 }
  0x5b   : > { %1095 = vmatmul.mubr.bf16.gmra.mrb[24].mxu1 %v1952_v54 }
  0x5c   : > { %1578 = vmatprep.mubr.msk.bf16.mxu1 %vm804_vm0, %v1956_v55 }
  0x60   : > { %942 = vmatmul.mubr.bf16.gmra.mrb[28].mxu0 %v1955_v56 }
  0x61   : > { %949 = vmatprep.mubr.bf16.mxu0 %v1959_v57 }
  0x63   : > { %1103 = vmatmul.mubr.bf16.gmra.mrb[28].mxu1 %v1958_v58 }
  0x64   : > { %1579 = vmatprep.mubr.msk.bf16.mxu1 %vm804_vm0, %v1962_v59 }
  0x68   : > { %950 = vmatmul.mubr.bf16.gmra.mrb[32].mxu0 %v1961_v60 }
  0x69   : > { %957 = vmatprep.mubr.bf16.mxu0 %v1965_v61 }
  0x6b   : > { %1111 = vmatmul.mubr.bf16.gmra.mrb[32].mxu1 %v1964_v62 }
  0x6c   : > { %1580 = vmatprep.mubr.msk.bf16.mxu1 %vm804_vm0, %v1968_v63 }
  0x70   : > { %958 = vmatmul.mubr.bf16.gmra.mrb[36].mxu0 %v1967_v0 }
  0x71   : > { %965 = vmatprep.mubr.bf16.mxu0 %v1971_v1 }
  0x73   : > { %1119 = vmatmul.mubr.bf16.gmra.mrb[36].mxu1 %v1970_v2 }
  0x74   : > { %1581 = vmatprep.mubr.msk.bf16.mxu1 %vm804_vm0, %v1974_v3 }
  0x78   : > { %966 = vmatmul.mubr.bf16.gmra.mrb[40].mxu0 %v1973_v4 }
  0x79   : > { %973 = vmatprep.mubr.bf16.mxu0 %v1977_v5 }
  0x7b   : > { %1127 = vmatmul.mubr.bf16.gmra.mrb[40].mxu1 %v1976_v6 }
  0x7c   : > { %1582 = vmatprep.mubr.msk.bf16.mxu1 %vm804_vm0, %v1980_v7 }
  0x80   : > { %974 = vmatmul.mubr.bf16.gmra.mrb[44].mxu0 %v1979_v8 }
  0x81   : > { %981 = vmatprep.mubr.bf16.mxu0 %v1983_v9 }
  0x83   : > { %1135 = vmatmul.mubr.bf16.gmra.mrb[44].mxu1 %v1982_v10 }
  0x84   : > { %1583 = vmatprep.mubr.msk.bf16.mxu1 %vm804_vm0, %v1986_v11 }
  0x88   : > { %982 = vmatmul.mubr.bf16.gmra.mrb[48].mxu0 %v1985_v12 }
  0x89   : > { %989 = vmatprep.mubr.bf16.mxu0 %v1989_v13 }
  0x8b   : > { %1143 = vmatmul.mubr.bf16.gmra.mrb[48].mxu1 %v1988_v14 }
  0x8c   : > { %1584 = vmatprep.mubr.msk.bf16.mxu1 %vm804_vm0, %v1992_v15 }
  0x90   : > { %990 = vmatmul.mubr.bf16.gmra.mrb[52].mxu0 %v1991_v16 }
  0x91   : > { %997 = vmatprep.mubr.bf16.mxu0 %v1995_v17 }
  0x93   : > { %1151 = vmatmul.mubr.bf16.gmra.mrb[52].mxu1 %v1994_v18 }
  0x94   : > { %1585 = vmatprep.mubr.msk.bf16.mxu1 %vm804_vm0, %v1998_v19 }
  0x98   : > { %998 = vmatmul.mubr.bf16.gmra.mrb[56].mxu0 %v1997_v20 }
  0x99   : > { %1005 = vmatprep.mubr.bf16.mxu0 %v2001_v21 }
  0x9b   : > { %1159 = vmatmul.mubr.bf16.gmra.mrb[56].mxu1 %v2000_v22 }
  0x9c   : > { %1586 = vmatprep.mubr.msk.bf16.mxu1 %vm804_vm0, %v2004_v23 }
  0xa0   : > { %1006 = vmatmul.mubr.bf16.gmra.mrb[60].mxu0 %v2003_v24 }
  0xa3   : > { %1167 = vmatmul.mubr.bf16.gmra.mrb[60].mxu1 %v2006_v25 }
  0xfb   : > { %v1765_v26 = vpop.f32.mrb[0].mxu0 }
  0xfc   : > { %v1766_v27 = vpop.f32.mrb[1].mxu0 }
  0xfd   : > { %v1767_v29 = vadd.f32 %v1766_v27, %v1765_v26  ;;  %v1768_v30 = vpop.f32.mrb[2].mxu0 }
  0xfe   : > { %v1769_v31 = vpop.f32.mrb[3].mxu0  ;;  %v1048_v32 = vpop.f32.mrb[0].mxu1 }
  0xff   : > { %v1770_v33 = vadd.f32 %v1769_v31, %v1768_v30  ;;  %v888_v34 = vadd.f32 %v1767_v29, %v2248_v28  ;;  %v1050_v35 = vpop.f32.mrb[1].mxu1 }
 0x100   : > { %v1051_v36 = vpop.f32.mrb[2].mxu1 }
 0x101   : > { %v1049_v37 = vadd.f32 %v1048_v32, %v888_v34  ;;  %v891_v38 = vadd.f32 %v1770_v33, %v2248_v28  ;;  %v1053_v39 = vpop.f32.mrb[3].mxu1 }
 0x103   : > { %v1052_v40 = vadd.f32 %v1051_v36, %v891_v38  ;;  %v1771_v41 = vpop.f32.mrb[4].mxu0  ;;  %v1175_v43 = vmax.f32 %v1049_v37, 0.0 }
 0x104   : > { %v1772_v42 = vpop.f32.mrb[5].mxu0 }
 0x105   : > { %v1176_v44 = vmax.f32 %v1052_v40, 0.0  ;;  %v1773_v45 = vadd.f32 %v1772_v42, %v1771_v41  ;;  %v1774_v46 = vpop.f32.mrb[6].mxu0 }
 0x106   : > { %v1775_v47 = vpop.f32.mrb[7].mxu0  ;;  %v1056_v48 = vpop.f32.mrb[4].mxu1 }
 0x107   : > { %v1657_v49 = vpack.c.bf16 %v1176_v44, %v1175_v43  ;;  %v1776_v50 = vadd.f32 %v1775_v47, %v1774_v46  ;;  %v896_v51 = vadd.f32 %v1773_v45, %v2248_v28  ;;  %v1058_v52 = vpop.f32.mrb[5].mxu1 }
 0x108   : > { %v1059_v53 = vpop.f32.mrb[6].mxu1 }
 0x109   : > { %1658 = vst [vmem:[%s2256_s29] sm:$0xff] %v1657_v49   ;;  %v1057_v54 = vadd.f32 %v1056_v48, %v896_v51  ;;  %v899_v55 = vadd.f32 %v1776_v50, %v2248_v28  ;;  %v1061_v56 = vpop.f32.mrb[7].mxu1 }
 0x10b   : > { %v1060_v57 = vadd.f32 %v1059_v53, %v899_v55  ;;  %v1777_v58 = vpop.f32.mrb[8].mxu0  ;;  %v1177_v60 = vmax.f32 %v1057_v54, 0.0 }
 0x10c   : > { %v1778_v59 = vpop.f32.mrb[9].mxu0 }
 0x10d   : > { %v1178_v61 = vmax.f32 %v1060_v57, 0.0  ;;  %v1779_v62 = vadd.f32 %v1778_v59, %v1777_v58  ;;  %v1780_v63 = vpop.f32.mrb[10].mxu0 }
 0x10e   : > { %v1781_v0 = vpop.f32.mrb[11].mxu0  ;;  %v1064_v1 = vpop.f32.mrb[8].mxu1 }
 0x10f   : > { %v1662_v2 = vpack.c.bf16 %v1178_v61, %v1177_v60  ;;  %v1782_v3 = vadd.f32 %v1781_v0, %v1780_v63  ;;  %v904_v4 = vadd.f32 %v1779_v62, %v2248_v28  ;;  %v1066_v5 = vpop.f32.mrb[9].mxu1 }
 0x110   : > { %v1067_v6 = vpop.f32.mrb[10].mxu1 }
 0x111   : > { %1734 = vst [vmem:[%s2256_s29 + $0x8] sm:$0xff] %v1662_v2   ;;  %v1065_v7 = vadd.f32 %v1064_v1, %v904_v4  ;;  %v907_v8 = vadd.f32 %v1782_v3, %v2248_v28  ;;  %v1069_v9 = vpop.f32.mrb[11].mxu1 }
 0x113   : > { %v1068_v10 = vadd.f32 %v1067_v6, %v907_v8  ;;  %v1783_v11 = vpop.f32.mrb[12].mxu0  ;;  %v1179_v13 = vmax.f32 %v1065_v7, 0.0 }
 0x114   : > { %v1784_v12 = vpop.f32.mrb[13].mxu0 }
 0x115   : > { %v1180_v14 = vmax.f32 %v1068_v10, 0.0  ;;  %v1785_v15 = vadd.f32 %v1784_v12, %v1783_v11  ;;  %v1786_v16 = vpop.f32.mrb[14].mxu0 }
 0x116   : > { %v1787_v17 = vpop.f32.mrb[15].mxu0  ;;  %v1072_v18 = vpop.f32.mrb[12].mxu1 }
 0x117   : > { %v1667_v19 = vpack.c.bf16 %v1180_v14, %v1179_v13  ;;  %v1788_v20 = vadd.f32 %v1787_v17, %v1786_v16  ;;  %v912_v21 = vadd.f32 %v1785_v15, %v2248_v28  ;;  %v1074_v22 = vpop.f32.mrb[13].mxu1 }
 0x118   : > { %v1075_v23 = vpop.f32.mrb[14].mxu1 }
 0x119   : > { %1735 = vst [vmem:[%s2256_s29 + $0x10] sm:$0xff] %v1667_v19   ;;  %v1073_v24 = vadd.f32 %v1072_v18, %v912_v21  ;;  %v915_v25 = vadd.f32 %v1788_v20, %v2248_v28  ;;  %v1077_v26 = vpop.f32.mrb[15].mxu1 }
 0x11b   : > { %v1076_v27 = vadd.f32 %v1075_v23, %v915_v25  ;;  %v1789_v29 = vpop.f32.mrb[16].mxu0  ;;  %v1181_v31 = vmax.f32 %v1073_v24, 0.0 }
 0x11c   : > { %v1790_v30 = vpop.f32.mrb[17].mxu0 }
 0x11d   : > { %v1182_v32 = vmax.f32 %v1076_v27, 0.0  ;;  %v1791_v33 = vadd.f32 %v1790_v30, %v1789_v29  ;;  %v1792_v34 = vpop.f32.mrb[18].mxu0 }
 0x11e   : > { %v1793_v35 = vpop.f32.mrb[19].mxu0  ;;  %v1080_v36 = vpop.f32.mrb[16].mxu1 }
 0x11f   : > { %v1672_v37 = vpack.c.bf16 %v1182_v32, %v1181_v31  ;;  %v1794_v38 = vadd.f32 %v1793_v35, %v1792_v34  ;;  %v920_v39 = vadd.f32 %v1791_v33, %v2248_v28  ;;  %v1082_v40 = vpop.f32.mrb[17].mxu1 }
 0x120   : > { %v1083_v41 = vpop.f32.mrb[18].mxu1 }
 0x121   : > { %1736 = vst [vmem:[%s2256_s29 + $0x18] sm:$0xff] %v1672_v37   ;;  %v1081_v42 = vadd.f32 %v1080_v36, %v920_v39  ;;  %v923_v43 = vadd.f32 %v1794_v38, %v2248_v28  ;;  %v1085_v44 = vpop.f32.mrb[19].mxu1 }
 0x123   : > { %v1084_v45 = vadd.f32 %v1083_v41, %v923_v43  ;;  %v1795_v46 = vpop.f32.mrb[20].mxu0  ;;  %v1183_v48 = vmax.f32 %v1081_v42, 0.0 }
 0x124   : > { %v1796_v47 = vpop.f32.mrb[21].mxu0 }
 0x125   : > { %v1184_v49 = vmax.f32 %v1084_v45, 0.0  ;;  %v1797_v50 = vadd.f32 %v1796_v47, %v1795_v46  ;;  %v1798_v51 = vpop.f32.mrb[22].mxu0 }
 0x126   : > { %v1799_v52 = vpop.f32.mrb[23].mxu0  ;;  %v1088_v53 = vpop.f32.mrb[20].mxu1 }
 0x127   : > { %v1677_v54 = vpack.c.bf16 %v1184_v49, %v1183_v48  ;;  %v1800_v55 = vadd.f32 %v1799_v52, %v1798_v51  ;;  %v928_v56 = vadd.f32 %v1797_v50, %v2248_v28  ;;  %v1090_v57 = vpop.f32.mrb[21].mxu1 }
 0x128   : > { %v1091_v58 = vpop.f32.mrb[22].mxu1 }
 0x129   : > { %1737 = vst [vmem:[%s2256_s29 + $0x20] sm:$0xff] %v1677_v54   ;;  %v1089_v59 = vadd.f32 %v1088_v53, %v928_v56  ;;  %v931_v60 = vadd.f32 %v1800_v55, %v2248_v28  ;;  %v1093_v61 = vpop.f32.mrb[23].mxu1 }
 0x12b   : > { %v1092_v62 = vadd.f32 %v1091_v58, %v931_v60  ;;  %v1801_v63 = vpop.f32.mrb[24].mxu0  ;;  %v1185_v1 = vmax.f32 %v1089_v59, 0.0 }
 0x12c   : > { %v1802_v0 = vpop.f32.mrb[25].mxu0 }
 0x12d   : > { %v1186_v2 = vmax.f32 %v1092_v62, 0.0  ;;  %v1803_v3 = vadd.f32 %v1802_v0, %v1801_v63  ;;  %v1804_v4 = vpop.f32.mrb[26].mxu0 }
 0x12e   : > { %v1805_v5 = vpop.f32.mrb[27].mxu0  ;;  %v1096_v6 = vpop.f32.mrb[24].mxu1 }
 0x12f   : > { %v1682_v7 = vpack.c.bf16 %v1186_v2, %v1185_v1  ;;  %v1806_v8 = vadd.f32 %v1805_v5, %v1804_v4  ;;  %v936_v9 = vadd.f32 %v1803_v3, %v2248_v28  ;;  %v1098_v10 = vpop.f32.mrb[25].mxu1 }
 0x130   : > { %v1099_v11 = vpop.f32.mrb[26].mxu1 }
 0x131   : > { %1738 = vst [vmem:[%s2256_s29 + $0x28] sm:$0xff] %v1682_v7   ;;  %v1097_v12 = vadd.f32 %v1096_v6, %v936_v9  ;;  %v939_v13 = vadd.f32 %v1806_v8, %v2248_v28  ;;  %v1101_v14 = vpop.f32.mrb[27].mxu1 }
 0x133   : > { %v1100_v15 = vadd.f32 %v1099_v11, %v939_v13  ;;  %v1807_v16 = vpop.f32.mrb[28].mxu0  ;;  %v1187_v18 = vmax.f32 %v1097_v12, 0.0 }
 0x134   : > { %v1808_v17 = vpop.f32.mrb[29].mxu0 }
 0x135   : > { %v1188_v19 = vmax.f32 %v1100_v15, 0.0  ;;  %v1809_v20 = vadd.f32 %v1808_v17, %v1807_v16  ;;  %v1810_v21 = vpop.f32.mrb[30].mxu0 }
 0x136   : > { %v1811_v22 = vpop.f32.mrb[31].mxu0  ;;  %v1104_v23 = vpop.f32.mrb[28].mxu1 }
 0x137   : > { %v1687_v24 = vpack.c.bf16 %v1188_v19, %v1187_v18  ;;  %v1812_v25 = vadd.f32 %v1811_v22, %v1810_v21  ;;  %v944_v26 = vadd.f32 %v1809_v20, %v2248_v28  ;;  %v1106_v27 = vpop.f32.mrb[29].mxu1 }
 0x138   : > { %v1107_v29 = vpop.f32.mrb[30].mxu1 }
 0x139   : > { %1739 = vst [vmem:[%s2256_s29 + $0x30] sm:$0xff] %v1687_v24   ;;  %v1105_v30 = vadd.f32 %v1104_v23, %v944_v26  ;;  %v947_v31 = vadd.f32 %v1812_v25, %v2248_v28  ;;  %v1109_v32 = vpop.f32.mrb[31].mxu1 }
 0x13b   : > { %v1108_v33 = vadd.f32 %v1107_v29, %v947_v31  ;;  %v1813_v34 = vpop.f32.mrb[32].mxu0  ;;  %v1189_v36 = vmax.f32 %v1105_v30, 0.0 }
 0x13c   : > { %v1814_v35 = vpop.f32.mrb[33].mxu0 }
 0x13d   : > { %v1190_v37 = vmax.f32 %v1108_v33, 0.0  ;;  %v1815_v38 = vadd.f32 %v1814_v35, %v1813_v34  ;;  %v1816_v39 = vpop.f32.mrb[34].mxu0 }
 0x13e   : > { %v1817_v40 = vpop.f32.mrb[35].mxu0  ;;  %v1112_v41 = vpop.f32.mrb[32].mxu1 }
 0x13f   : > { %v1692_v42 = vpack.c.bf16 %v1190_v37, %v1189_v36  ;;  %v1818_v43 = vadd.f32 %v1817_v40, %v1816_v39  ;;  %v952_v44 = vadd.f32 %v1815_v38, %v2248_v28  ;;  %v1114_v45 = vpop.f32.mrb[33].mxu1 }
 0x140   : > { %v1115_v46 = vpop.f32.mrb[34].mxu1 }
 0x141   : > { %1740 = vst [vmem:[%s2256_s29 + $0x38] sm:$0xff] %v1692_v42   ;;  %v1113_v47 = vadd.f32 %v1112_v41, %v952_v44  ;;  %v955_v48 = vadd.f32 %v1818_v43, %v2248_v28  ;;  %v1117_v49 = vpop.f32.mrb[35].mxu1 }
 0x143   : > { %v1116_v50 = vadd.f32 %v1115_v46, %v955_v48  ;;  %v1819_v51 = vpop.f32.mrb[36].mxu0  ;;  %v1191_v53 = vmax.f32 %v1113_v47, 0.0 }
 0x144   : > { %v1820_v52 = vpop.f32.mrb[37].mxu0 }
 0x145   : > { %v1192_v54 = vmax.f32 %v1116_v50, 0.0  ;;  %v1821_v55 = vadd.f32 %v1820_v52, %v1819_v51  ;;  %v1822_v56 = vpop.f32.mrb[38].mxu0 }
 0x146   : > { %v1823_v57 = vpop.f32.mrb[39].mxu0  ;;  %v1120_v58 = vpop.f32.mrb[36].mxu1 }
 0x147   : > { %v1697_v59 = vpack.c.bf16 %v1192_v54, %v1191_v53  ;;  %v1824_v60 = vadd.f32 %v1823_v57, %v1822_v56  ;;  %v960_v61 = vadd.f32 %v1821_v55, %v2248_v28  ;;  %v1122_v62 = vpop.f32.mrb[37].mxu1 }
 0x148   : > { %v1123_v63 = vpop.f32.mrb[38].mxu1 }
 0x149   : > { %1741 = vst [vmem:[%s2256_s29 + $0x40] sm:$0xff] %v1697_v59   ;;  %v1121_v0 = vadd.f32 %v1120_v58, %v960_v61  ;;  %v963_v1 = vadd.f32 %v1824_v60, %v2248_v28  ;;  %v1125_v2 = vpop.f32.mrb[39].mxu1 }
 0x14b   : > { %v1124_v3 = vadd.f32 %v1123_v63, %v963_v1  ;;  %v1825_v4 = vpop.f32.mrb[40].mxu0  ;;  %v1193_v6 = vmax.f32 %v1121_v0, 0.0 }
 0x14c   : > { %v1826_v5 = vpop.f32.mrb[41].mxu0 }
 0x14d   : > { %v1194_v7 = vmax.f32 %v1124_v3, 0.0  ;;  %v1827_v8 = vadd.f32 %v1826_v5, %v1825_v4  ;;  %v1828_v9 = vpop.f32.mrb[42].mxu0 }
 0x14e   : > { %v1829_v10 = vpop.f32.mrb[43].mxu0  ;;  %v1128_v11 = vpop.f32.mrb[40].mxu1 }
 0x14f   : > { %v1702_v12 = vpack.c.bf16 %v1194_v7, %v1193_v6  ;;  %v1830_v13 = vadd.f32 %v1829_v10, %v1828_v9  ;;  %v968_v14 = vadd.f32 %v1827_v8, %v2248_v28  ;;  %v1130_v15 = vpop.f32.mrb[41].mxu1 }
 0x150   : > { %v1131_v16 = vpop.f32.mrb[42].mxu1 }
 0x151   : > { %1742 = vst [vmem:[%s2256_s29 + $0x48] sm:$0xff] %v1702_v12   ;;  %v1129_v17 = vadd.f32 %v1128_v11, %v968_v14  ;;  %v971_v18 = vadd.f32 %v1830_v13, %v2248_v28  ;;  %v1133_v19 = vpop.f32.mrb[43].mxu1 }
 0x153   : > { %v1132_v20 = vadd.f32 %v1131_v16, %v971_v18  ;;  %v1831_v21 = vpop.f32.mrb[44].mxu0  ;;  %v1195_v23 = vmax.f32 %v1129_v17, 0.0 }
 0x154   : > { %v1832_v22 = vpop.f32.mrb[45].mxu0 }
 0x155   : > { %v1196_v24 = vmax.f32 %v1132_v20, 0.0  ;;  %v1833_v25 = vadd.f32 %v1832_v22, %v1831_v21  ;;  %v1834_v26 = vpop.f32.mrb[46].mxu0 }
 0x156   : > { %v1835_v27 = vpop.f32.mrb[47].mxu0  ;;  %v1136_v29 = vpop.f32.mrb[44].mxu1 }
 0x157   : > { %v1707_v30 = vpack.c.bf16 %v1196_v24, %v1195_v23  ;;  %v1836_v31 = vadd.f32 %v1835_v27, %v1834_v26  ;;  %v976_v32 = vadd.f32 %v1833_v25, %v2248_v28  ;;  %v1138_v33 = vpop.f32.mrb[45].mxu1 }
 0x158   : > { %v1139_v34 = vpop.f32.mrb[46].mxu1 }
 0x159   : > { %1743 = vst [vmem:[%s2256_s29 + $0x50] sm:$0xff] %v1707_v30   ;;  %v1137_v35 = vadd.f32 %v1136_v29, %v976_v32  ;;  %v979_v36 = vadd.f32 %v1836_v31, %v2248_v28  ;;  %v1141_v37 = vpop.f32.mrb[47].mxu1 }
 0x15b   : > { %v1140_v38 = vadd.f32 %v1139_v34, %v979_v36  ;;  %v1837_v39 = vpop.f32.mrb[48].mxu0  ;;  %v1197_v41 = vmax.f32 %v1137_v35, 0.0 }
 0x15c   : > { %v1838_v40 = vpop.f32.mrb[49].mxu0 }
 0x15d   : > { %v1198_v42 = vmax.f32 %v1140_v38, 0.0  ;;  %v1839_v43 = vadd.f32 %v1838_v40, %v1837_v39  ;;  %v1840_v44 = vpop.f32.mrb[50].mxu0 }
 0x15e   : > { %v1841_v45 = vpop.f32.mrb[51].mxu0  ;;  %v1144_v46 = vpop.f32.mrb[48].mxu1 }
 0x15f   : > { %v1712_v47 = vpack.c.bf16 %v1198_v42, %v1197_v41  ;;  %v1842_v48 = vadd.f32 %v1841_v45, %v1840_v44  ;;  %v984_v49 = vadd.f32 %v1839_v43, %v2248_v28  ;;  %v1146_v50 = vpop.f32.mrb[49].mxu1 }
 0x160   : > { %v1147_v51 = vpop.f32.mrb[50].mxu1 }
 0x161   : > { %1744 = vst [vmem:[%s2256_s29 + $0x58] sm:$0xff] %v1712_v47   ;;  %v1145_v52 = vadd.f32 %v1144_v46, %v984_v49  ;;  %v987_v53 = vadd.f32 %v1842_v48, %v2248_v28  ;;  %v1149_v54 = vpop.f32.mrb[51].mxu1 }
 0x163   : > { %v1148_v55 = vadd.f32 %v1147_v51, %v987_v53  ;;  %v1843_v56 = vpop.f32.mrb[52].mxu0  ;;  %v1199_v58 = vmax.f32 %v1145_v52, 0.0 }
 0x164   : > { %v1844_v57 = vpop.f32.mrb[53].mxu0 }
 0x165   : > { %v1200_v59 = vmax.f32 %v1148_v55, 0.0  ;;  %v1845_v60 = vadd.f32 %v1844_v57, %v1843_v56  ;;  %v1846_v61 = vpop.f32.mrb[54].mxu0 }
 0x166   : > { %v1847_v62 = vpop.f32.mrb[55].mxu0  ;;  %v1152_v63 = vpop.f32.mrb[52].mxu1 }
 0x167   : > { %v1717_v0 = vpack.c.bf16 %v1200_v59, %v1199_v58  ;;  %v1848_v1 = vadd.f32 %v1847_v62, %v1846_v61  ;;  %v992_v2 = vadd.f32 %v1845_v60, %v2248_v28  ;;  %v1154_v3 = vpop.f32.mrb[53].mxu1 }
 0x168   : > { %v1155_v4 = vpop.f32.mrb[54].mxu1 }
 0x169   : > { %1745 = vst [vmem:[%s2256_s29 + $0x60] sm:$0xff] %v1717_v0   ;;  %v1153_v5 = vadd.f32 %v1152_v63, %v992_v2  ;;  %v995_v6 = vadd.f32 %v1848_v1, %v2248_v28  ;;  %v1157_v7 = vpop.f32.mrb[55].mxu1 }
 0x16b   : > { %v1156_v8 = vadd.f32 %v1155_v4, %v995_v6  ;;  %v1849_v9 = vpop.f32.mrb[56].mxu0  ;;  %v1201_v11 = vmax.f32 %v1153_v5, 0.0 }
 0x16c   : > { %v1850_v10 = vpop.f32.mrb[57].mxu0 }
 0x16d   : > { %v1202_v12 = vmax.f32 %v1156_v8, 0.0  ;;  %v1851_v13 = vadd.f32 %v1850_v10, %v1849_v9  ;;  %v1852_v14 = vpop.f32.mrb[58].mxu0 }
 0x16e   : > { %v1853_v15 = vpop.f32.mrb[59].mxu0  ;;  %v1160_v16 = vpop.f32.mrb[56].mxu1 }
 0x16f   : > { %v1722_v17 = vpack.c.bf16 %v1202_v12, %v1201_v11  ;;  %v1854_v18 = vadd.f32 %v1853_v15, %v1852_v14  ;;  %v1000_v19 = vadd.f32 %v1851_v13, %v2248_v28  ;;  %v1162_v20 = vpop.f32.mrb[57].mxu1 }
 0x170   : > { %v1163_v21 = vpop.f32.mrb[58].mxu1 }
 0x171   : > { %1746 = vst [vmem:[%s2256_s29 + $0x68] sm:$0xff] %v1722_v17   ;;  %v1161_v22 = vadd.f32 %v1160_v16, %v1000_v19  ;;  %v1003_v23 = vadd.f32 %v1854_v18, %v2248_v28  ;;  %v1165_v24 = vpop.f32.mrb[59].mxu1 }
 0x173   : > { %v1164_v25 = vadd.f32 %v1163_v21, %v1003_v23  ;;  %v1855_v26 = vpop.f32.mrb[60].mxu0  ;;  %v1203_v29 = vmax.f32 %v1161_v22, 0.0 }
 0x174   : > { %v1856_v27 = vpop.f32.mrb[61].mxu0 }
 0x175   : > { %v1204_v30 = vmax.f32 %v1164_v25, 0.0  ;;  %v1857_v31 = vadd.f32 %v1856_v27, %v1855_v26  ;;  %v1858_v32 = vpop.f32.mrb[62].mxu0 }
 0x176   : > { %v1859_v33 = vpop.f32.mrb[63].mxu0  ;;  %v1168_v34 = vpop.f32.mrb[60].mxu1 }
 0x177   : > { %v1727_v35 = vpack.c.bf16 %v1204_v30, %v1203_v29  ;;  %v1860_v36 = vadd.f32 %v1859_v33, %v1858_v32  ;;  %v1008_v37 = vadd.f32 %v1857_v31, %v2248_v28  ;;  %v1170_v38 = vpop.f32.mrb[61].mxu1 }
 0x178   : > { %v1171_v39 = vpop.f32.mrb[62].mxu1 }
 0x179   : > { %1747 = vst [vmem:[%s2256_s29 + $0x70] sm:$0xff] %v1727_v35   ;;  %v1169_v40 = vadd.f32 %v1168_v34, %v1008_v37  ;;  %v1011_v41 = vadd.f32 %v1860_v36, %v2248_v28  ;;  %v1173_v42 = vpop.f32.mrb[63].mxu1 }
 0x17b   : > { %v1172_v43 = vadd.f32 %v1171_v39, %v1011_v41  ;;  %v1205_v44 = vmax.f32 %v1169_v40, 0.0 }
 0x17d   : > { %v1206_v45 = vmax.f32 %v1172_v43, 0.0 }
 0x17f   : > { %v1732_v46 = vpack.c.bf16 %v1206_v45, %v1205_v44 }
 0x181   : > { %1748 = vst [vmem:[%s2256_s29 + $0x78] sm:$0xff] %v1732_v46  }
 0x182 PF: > { %s13_s14 = sadd.s32 1, %s2029_s14   ;;  %s2317_s12 = smov %s2025_s13 }
 0x183   : > { %p10_p5 = scmp.ge.s32.totalorder %s13_s14, 6   ;;  %s2318_s13 = smov %s2320_s15 }
 0x185   :  { %12 = sbr.rel (!%p10_p5) target bundleno = 2 (0x2), region = 68 }

// kernel: neural_network_forward.6
= control target key start
LH: loop header
LB: loop body
LE: loop exit
PB: predicated region body
PF: predicated region fallthrough
CT: control target
= control target key end

     0   :  { %s2235_s12 = smov 0   ;;  %s2237_s13 = smov 0   ;;  %s2570_s0 = inlined_call_operand.vmem [shape: bf16[256,800], index: 0, kind: input, shape index: {}]   ;;  %s2571_s1 = inlined_call_operand.vmem [shape: bf16[800,128], index: 1, kind: input, shape index: {}]   ;;  %s2572_s2 = inlined_call_operand.vmem [shape: f32[1,128], index: 2, kind: input, shape index: {}]   ;;  %s2573_s3 = inlined_call_operand.vmem [shape: bf16[256,128], index: 3, kind: output, shape index: {}]  }
   0x1   :  { %s2239_s14 = smov 0  }
   0x2 LB: > { %s25_s15 = sadd.s32 1, %s2209_s13  ;;  %p1597_p0 = scmp.ge.s32.totalorder %s2213_s14, 1  ;;  %s2213_s14 = sphi %s2239_s14, %s13_s14   ;;  %s2209_s13 = sphi %s2237_s13, %s2575_s13   ;;  %s2205_s12 = sphi %s2235_s12, %s2574_s12  }
   0x3   : > { %p27_p1 = scmp.ge.s32.totalorder %s25_s15, 2  ;;  %p170_p2 = scmp.lt.s32.totalorder %s2213_s14, 3 }
   0x5   : > { %s2577_s15 = smov (%p27_p1, %s25_s15), 0  ;;  %p171_p3 = pnand %p1597_p0, %p170_p2 }
   0x6   : > { %v2061_v0 = vld [vmem:[%s2571_s1 + $0x40] sm:$0xff] (!%p171_p3)   ;;  %v2065_v4 = vld [vmem:[%s2571_s1 + $0x48] sm:$0xff] (!%p171_p3)   ;;  %v2069_v8 = vld [vmem:[%s2571_s1 + $0x50] sm:$0xff] (!%p171_p3)   ;;  %s1598_s23 = sshll.u32 (!%p171_p3), %s2205_s12, 4  ;;  %vm980_vm0 = vcmask (!%p171_p3), 261120  }
   0x7   : > { %174 = sbr.rel (%p171_p3) target bundleno = 370 (0x172), region = 32  ;;  %v2062_v1 = vld [vmem:[%s2571_s1 + $0xc0] sm:$0xff] (!%p171_p3)   ;;  %1798 = vmatprep.subr.bf16.mxu0 (!%p171_p3), %v2061_v0  ;;  %v2066_v5 = vld [vmem:[%s2571_s1 + $0xc8] sm:$0xff] (!%p171_p3)   ;;  %v2070_v9 = vld [vmem:[%s2571_s1 + $0xd0] sm:$0xff] (!%p171_p3)   ;;  %p206_p4 = scmp.lt.s32.totalorder (!%p171_p3), %s1598_s23, 31 }
   0x8   : > { %v2063_v2 = vld [vmem:[%s2571_s1] sm:$0xff] (!%p171_p3)   ;;  %1862 = vmatprep.subr.bf16.mxu1 (!%p171_p3), %v2062_v1  ;;  %v2067_v6 = vld [vmem:[%s2571_s1 + $0x8] sm:$0xff] (!%p171_p3)   ;;  %v2071_v10 = vld [vmem:[%s2571_s1 + $0x10] sm:$0xff] (!%p171_p3)  }
   0x9   : > { %v2064_v3 = vld [vmem:[%s2571_s1 + $0x80] sm:$0xff] (!%p171_p3)   ;;  %1799 = vmatpush3.bf16.msra.mxu0 (!%p171_p3), %v2063_v2  ;;  %v2068_v7 = vld [vmem:[%s2571_s1 + $0x88] sm:$0xff] (!%p171_p3)   ;;  %v2072_v11 = vld [vmem:[%s2571_s1 + $0x90] sm:$0xff] (!%p171_p3)  }
   0xa   : > { %1863 = vmatpush3.bf16.msra.mxu1 (!%p171_p3), %v2064_v3  ;;  %1800 = vmatprep.subr.bf16.mxu0 (!%p171_p3), %v2065_v4  ;;  %v2073_v12 = vld [vmem:[%s2571_s1 + $0x58] sm:$0xff] (!%p171_p3)   ;;  %v2077_v16 = vld [vmem:[%s2571_s1 + $0x60] sm:$0xff] (!%p171_p3)   ;;  %v2081_v20 = vld [vmem:[%s2571_s1 + $0x68] sm:$0xff] (!%p171_p3)  }
   0xb   : > { %1864 = vmatprep.subr.bf16.mxu1 (!%p171_p3), %v2066_v5  ;;  %v2074_v13 = vld [vmem:[%s2571_s1 + $0xd8] sm:$0xff] (!%p171_p3)   ;;  %v2078_v17 = vld [vmem:[%s2571_s1 + $0xe0] sm:$0xff] (!%p171_p3)   ;;  %v2082_v21 = vld [vmem:[%s2571_s1 + $0xe8] sm:$0xff] (!%p171_p3)  }
   0xc   : > { %v2075_v14 = vld [vmem:[%s2571_s1 + $0x18] sm:$0xff] (!%p171_p3)   ;;  %v2079_v18 = vld [vmem:[%s2571_s1 + $0x20] sm:$0xff] (!%p171_p3)   ;;  %v2083_v22 = vld [vmem:[%s2571_s1 + $0x28] sm:$0xff] (!%p171_p3)  }
   0xd   : > { %1801 = vmatpush3.bf16.msra.mxu0 (!%p171_p3), %v2067_v6  ;;  %v2076_v15 = vld [vmem:[%s2571_s1 + $0x98] sm:$0xff] (!%p171_p3)   ;;  %v2080_v19 = vld [vmem:[%s2571_s1 + $0xa0] sm:$0xff] (!%p171_p3)   ;;  %v2084_v23 = vld [vmem:[%s2571_s1 + $0xa8] sm:$0xff] (!%p171_p3)  }
   0xe   : > { %1865 = vmatpush3.bf16.msra.mxu1 %v2068_v7  ;;  %1802 = vmatprep.subr.bf16.mxu0 %v2069_v8  ;;  %s2579_s23 = smov (!%p206_p4, %s1598_s23), 31  ;;  %v2085_v24 = vld [vmem:[%s2571_s1 + $0x70] sm:$0xff]   ;;  %v2089_v28 = vld [vmem:[%s2571_s1 + $0x78] sm:$0xff]   ;;  %v2099_v36 = vld [vmem:[%s2571_s1 + $0x140] sm:$0xff]  }
   0xf   : > { %1866 = vmatprep.subr.bf16.mxu1 %v2070_v9  ;;  %v2086_v25 = vld [vmem:[%s2571_s1 + $0xf0] sm:$0xff]   ;;  %s2036_s22 = smul.u32 28, %s2579_s23  ;;  %v2090_v29 = vld [vmem:[%s2571_s1 + $0xf8] sm:$0xff]   ;;  %v2100_v37 = vld [vmem:[%s2571_s1 + $0x100] sm:$0xff]  }
  0x10   : > { %v2087_v26 = vld [vmem:[%s2571_s1 + $0x30] sm:$0xff]   ;;  %v2091_v30 = vld [vmem:[%s2571_s1 + $0x38] sm:$0xff]   ;;  %v2107_v42 = vld [vmem:[%s2571_s1 + $0x148] sm:$0xff]  }
  0x11   : > { %1803 = vmatpush3.bf16.msra.mxu0 %v2071_v10  ;;  %v2088_v27 = vld [vmem:[%s2571_s1 + $0xb0] sm:$0xff]   ;;  %s2352_s6 = scalar_lea.vmem %s2570_s0, %s2036_s22  ;;  %v2092_v31 = vld [vmem:[%s2571_s1 + $0xb8] sm:$0xff]   ;;  %v2108_v43 = vld [vmem:[%s2571_s1 + $0x108] sm:$0xff]  }
  0x12   : > { %1867 = vmatpush3.bf16.msra.mxu1 %v2072_v11  ;;  %1804 = vmatprep.subr.bf16.mxu0 %v2073_v12  ;;  %v2093_v32 = vld [vmem:[%s2352_s6] ss:$28 sps:$4 sm:$0xff]   ;;  %v2096_v34 = vld [vmem:[%s2352_s6 + $0x8] ss:$28 sps:$4 sm:$0xff]   ;;  %v2105_v40 = vld [vmem:[%s2352_s6 + $0x38] ss:$28 sps:$4 sm:$0xff]  }
  0x13   : > { %1868 = vmatprep.subr.bf16.mxu1 %v2074_v13  ;;  %v2095_v33 = vld [vmem:[%s2352_s6 + $0x4] ss:$28 sps:$4 sm:$0xff]   ;;  %v2098_v35 = vld [vmem:[%s2352_s6 + $0xc] ss:$28 sps:$4 sm:$0xff]   ;;  %v2101_v38 = vld [vmem:[%s2352_s6 + $0x3c] ss:$28 sps:$4 sm:$0xff]  }
  0x14   : > { %1037 = vmatprep.mubr.bf16.mxu0 %v2095_v33  ;;  %1134 = vmatprep.mubr.bf16.mxu1 %v2098_v35  ;;  %v2103_v39 = vld [vmem:[%s2352_s6 + $0x44] ss:$28 sps:$4 sm:$0xff]   ;;  %v2109_v44 = vld [vmem:[%s2352_s6 + $0x74] ss:$28 sps:$4 sm:$0xff]   ;;  %v2111_v45 = vld [vmem:[%s2352_s6 + $0x7c] ss:$28 sps:$4 sm:$0xff]  }
  0x15   : > { %1805 = vmatpush3.bf16.msra.mxu0 %v2075_v14  ;;  %v2106_v41 = vld [vmem:[%s2352_s6 + $0x40] ss:$28 sps:$4 sm:$0xff]   ;;  %v2115_v46 = vld [vmem:[%s2571_s1 + $0x150] sm:$0xff]   ;;  %v2117_v50 = vld [vmem:[%s2352_s6 + $0xac] ss:$28 sps:$4 sm:$0xff]  }
  0x16   : > { %1869 = vmatpush3.bf16.msra.mxu1 %v2076_v15  ;;  %1806 = vmatprep.subr.bf16.mxu0 %v2077_v16  ;;  %v2116_v47 = vld [vmem:[%s2571_s1 + $0x110] sm:$0xff]   ;;  %v2123_v52 = vld [vmem:[%s2571_s1 + $0x158] sm:$0xff]   ;;  %v2131_v54 = vld [vmem:[%s2571_s1 + $0x160] sm:$0xff]  }
  0x17   : > { %1870 = vmatprep.subr.bf16.mxu1 %v2078_v17  ;;  %v2113_v48 = vld [vmem:[%s2352_s6 + $0x70] ss:$28 sps:$4 sm:$0xff]   ;;  %v2114_v49 = vld [vmem:[%s2352_s6 + $0x78] ss:$28 sps:$4 sm:$0xff]   ;;  %v2132_v55 = vld [vmem:[%s2571_s1 + $0x120] sm:$0xff]  }
  0x18   : > { %v2119_v51 = vld [vmem:[%s2352_s6 + $0xb4] ss:$28 sps:$4 sm:$0xff]   ;;  %v2124_v53 = vld [vmem:[%s2571_s1 + $0x118] sm:$0xff]   ;;  %v2121_v56 = vld [vmem:[%s2352_s6 + $0xa8] ss:$28 sps:$4 sm:$0xff]  }
  0x19   : > { %1807 = vmatpush3.bf16.msra.mxu0 %v2079_v18  ;;  %v2122_v57 = vld [vmem:[%s2352_s6 + $0xb0] ss:$28 sps:$4 sm:$0xff]   ;;  %v2125_v58 = vld [vmem:[%s2352_s6 + $0xe4] ss:$28 sps:$4 sm:$0xff]   ;;  %v2133_v2 = vld [vmem:[%s2352_s6 + $0x11c] ss:$28 sps:$4 sm:$0xff]  }
  0x1a   : > { %1871 = vmatpush3.bf16.msra.mxu1 %v2080_v19  ;;  %1808 = vmatprep.subr.bf16.mxu0 %v2081_v20  ;;  %v2127_v59 = vld [vmem:[%s2352_s6 + $0xec] ss:$28 sps:$4 sm:$0xff]   ;;  %v2129_v62 = vld [vmem:[%s2352_s6 + $0xe0] ss:$28 sps:$4 sm:$0xff]   ;;  %v2147_v0 = vld [vmem:[%s2571_s1 + $0x170] sm:$0xff]  }
  0x1b   : > { %1872 = vmatprep.subr.bf16.mxu1 %v2082_v21  ;;  %v2139_v60 = vld [vmem:[%s2571_s1 + $0x168] sm:$0xff]   ;;  %v2148_v1 = vld [vmem:[%s2571_s1 + $0x130] sm:$0xff]   ;;  %v2135_v3 = vld [vmem:[%s2352_s6 + $0x124] ss:$28 sps:$4 sm:$0xff]  }
  0x1c   : > { %v2140_v61 = vld [vmem:[%s2571_s1 + $0x128] sm:$0xff]   ;;  %v2155_v4 = vld [vmem:[%s2571_s1 + $0x178] sm:$0xff]   ;;  %v2163_v8 = vld [vmem:[%s2571_s1 + $0x180] sm:$0xff]  }
  0x1d   : > { %1809 = vmatpush3.bf16.msra.mxu0 %v2083_v22  ;;  %v2130_v63 = vld [vmem:[%s2352_s6 + $0xe8] ss:$28 sps:$4 sm:$0xff]   ;;  %v2156_v5 = vld [vmem:[%s2571_s1 + $0x138] sm:$0xff]   ;;  %v2141_v9 = vld [vmem:[%s2352_s6 + $0x154] ss:$28 sps:$4 sm:$0xff]  }
  0x1e   : > { %1873 = vmatpush3.bf16.msra.mxu1 %v2084_v23  ;;  %1810 = vmatprep.subr.bf16.mxu0 %v2085_v24  ;;  %v2137_v6 = vld [vmem:[%s2352_s6 + $0x118] ss:$28 sps:$4 sm:$0xff]   ;;  %v2138_v7 = vld [vmem:[%s2352_s6 + $0x120] ss:$28 sps:$4 sm:$0xff]   ;;  %v2145_v11 = vld [vmem:[%s2352_s6 + $0x150] ss:$28 sps:$4 sm:$0xff]  }
  0x1f   : > { %1874 = vmatprep.subr.bf16.mxu1 %v2086_v25  ;;  %v2143_v10 = vld [vmem:[%s2352_s6 + $0x15c] ss:$28 sps:$4 sm:$0xff]   ;;  %v2149_v13 = vld [vmem:[%s2352_s6 + $0x18c] ss:$28 sps:$4 sm:$0xff]   ;;  %v2151_v14 = vld [vmem:[%s2352_s6 + $0x194] ss:$28 sps:$4 sm:$0xff]  }
  0x20   : > { %v2146_v12 = vld [vmem:[%s2352_s6 + $0x158] ss:$28 sps:$4 sm:$0xff]   ;;  %v2153_v15 = vld [vmem:[%s2352_s6 + $0x188] ss:$28 sps:$4 sm:$0xff]   ;;  %v2154_v16 = vld [vmem:[%s2352_s6 + $0x190] ss:$28 sps:$4 sm:$0xff]  }
  0x21   : > { %1811 = vmatpush3.bf16.msra.mxu0 %v2087_v26  ;;  %v2159_v17 = vld [vmem:[%s2352_s6 + $0x14] ss:$28 sps:$4 sm:$0xff]   ;;  %v2162_v18 = vld [vmem:[%s2352_s6 + $0x164] ss:$28 sps:$4 sm:$0xff]   ;;  %v2164_v21 = vld [vmem:[%s2352_s6 + $0x4c] ss:$28 sps:$4 sm:$0xff]  }
  0x22   : > { %1875 = vmatpush3.bf16.msra.mxu1 %v2088_v27  ;;  %1812 = vmatprep.subr.bf16.mxu0 %v2089_v28  ;;  %v2157_v19 = vld [vmem:[%s2352_s6 + $0x10] ss:$28 sps:$4 sm:$0xff]   ;;  %v2160_v20 = vld [vmem:[%s2352_s6 + $0x160] ss:$28 sps:$4 sm:$0xff]   ;;  %v2168_v24 = vld [vmem:[%s2352_s6 + $0x48] ss:$28 sps:$4 sm:$0xff]  }
  0x23   : > { %1876 = vmatprep.subr.bf16.mxu1 %v2090_v29  ;;  %v2166_v22 = vld [vmem:[%s2352_s6 + $0x19c] ss:$28 sps:$4 sm:$0xff]   ;;  %v2170_v23 = vld [vmem:[%s2571_s1 + $0x188] sm:$0xff]   ;;  %v2171_v26 = vld [vmem:[%s2352_s6 + $0x84] ss:$28 sps:$4 sm:$0xff]  }
  0x24   : > { %v2169_v25 = vld [vmem:[%s2352_s6 + $0x198] ss:$28 sps:$4 sm:$0xff]   ;;  %v2174_v28 = vld [vmem:[%s2352_s6 + $0x80] ss:$28 sps:$4 sm:$0xff]   ;;  %v2175_v29 = vld [vmem:[%s2352_s6 + $0x50] ss:$28 sps:$4 sm:$0xff]  }
  0x25   : > { %1813 = vmatpush3.bf16.msra.mxu0 %v2091_v30  ;;  %v2173_v27 = vld [vmem:[%s2352_s6 + $0x18] ss:$28 sps:$4 sm:$0xff]   ;;  %v2180_v33 = vld [vmem:[%s2352_s6 + $0xc0] ss:$28 sps:$4 sm:$0xff]  }
  0x26   : > { %1877 = vmatpush3.bf16.msra.mxu1 %v2092_v31  ;;  %1926 = vmatprep.subr.bf16.mxu0 %v2099_v36  ;;  %v2176_v30 = vld [vmem:[%s2352_s6 + $0xbc] ss:$28 sps:$4 sm:$0xff]   ;;  %v2178_v31 = vld [vmem:[%s2352_s6 + $0x88] ss:$28 sps:$4 sm:$0xff]  }
  0x27   : > { %2020 = vmatprep.subr.bf16.mxu1 %v2099_v36  ;;  %v2183_v35 = vld [vmem:[%s2352_s6 + $0xf8] ss:$28 sps:$4 sm:$0xff]   ;;  %v2184_v36 = vld [vmem:[%s2352_s6 + $0xf0] ss:$28 sps:$4 sm:$0xff]  }
  0x28   : > { %1038 = vmatmul.mubr.bf16.vlgmr.msra.gmra.mrb[0].mxu0 %v2093_v32  ;;  %v2179_v32 = vld [vmem:[%s2352_s6 + $0xb8] ss:$28 sps:$4 sm:$0xff]  }
  0x29   : > { %1135 = vmatmul.mubr.bf16.vlgmr.msra.gmra.mrb[0].mxu1 %v2096_v34  ;;  %1927 = vmatpush3.bf16.msra.mxu0 %v2100_v37  ;;  %v2181_v34 = vld [vmem:[%s2352_s6 + $0xf4] ss:$28 sps:$4 sm:$0xff]  }
  0x2a   : > { %2028 = vmatpush3.bf16.msra.mxu1 %v2100_v37  ;;  %1045 = vmatprep.mubr.bf16.mxu0 %v2101_v38  ;;  %v2185_v37 = vld [vmem:[%s2352_s6 + $0x130] ss:$28 sps:$4 sm:$0xff]  }
  0x2b   : > { %1142 = vmatprep.mubr.bf16.mxu1 %v2103_v39  ;;  %1928 = vmatprep.subr.bf16.mxu0 %v2107_v42  ;;  %v2186_v38 = vld [vmem:[%s2352_s6 + $0x12c] ss:$28 sps:$4 sm:$0xff]  }
  0x2c   : > { %2021 = vmatprep.subr.bf16.mxu1 %v2107_v42  ;;  %v2188_v39 = vld [vmem:[%s2352_s6 + $0x168] ss:$28 sps:$4 sm:$0xff]  }
  0x2d   : > { %1929 = vmatpush3.bf16.msra.mxu0 %v2108_v43 }
  0x2e   : > { %2029 = vmatpush3.bf16.msra.mxu1 %v2108_v43  ;;  %1930 = vmatprep.subr.bf16.mxu0 %v2115_v46  ;;  %v2481_v43 = vld [vmem:[%s2572_s2] ss:$0 sm:$0xff] }
  0x2f   : > { %2022 = vmatprep.subr.bf16.mxu1 %v2115_v46 }
  0x30   : > { %1046 = vmatmul.mubr.bf16.gmra.mrb[4].mxu0 %v2105_v40  ;;  %v2189_v40 = vld [vmem:[%s2352_s6 + $0x128] ss:$28 sps:$4 sm:$0xff]  }
  0x31   : > { %1143 = vmatmul.mubr.bf16.gmra.mrb[4].mxu1 %v2106_v41  ;;  %1053 = vmatprep.mubr.bf16.mxu0 %v2109_v44  ;;  %v2190_v41 = vld [vmem:[%s2352_s6 + $0x1a0] ss:$28 sps:$4 sm:$0xff]   ;;  %s1601_s6 = sshll.u32 %s2579_s23, 2 }
  0x32   : > { %1150 = vmatprep.mubr.bf16.mxu1 %v2111_v45  ;;  %1931 = vmatpush3.bf16.msra.mxu0 %v2116_v47  ;;  %s2541_s7 = scalar_lea.vmem %s2573_s3, %s1601_s6 }
  0x33   : > { %2030 = vmatpush3.bf16.msra.mxu1 %v2116_v47  ;;  %1932 = vmatprep.subr.bf16.mxu0 %v2123_v52 }
  0x34   : > { %2023 = vmatprep.subr.bf16.mxu1 %v2123_v52 }
  0x36   : > { %1933 = vmatpush3.bf16.msra.mxu0 %v2124_v53 }
  0x37   : > { %2031 = vmatpush3.bf16.msra.mxu1 %v2124_v53  ;;  %1934 = vmatprep.subr.bf16.mxu0 %v2131_v54 }
  0x38   : > { %1054 = vmatmul.mubr.bf16.gmra.mrb[8].mxu0 %v2113_v48  ;;  %2024 = vmatprep.subr.bf16.mxu1 %v2131_v54 }
  0x39   : > { %1151 = vmatmul.mubr.bf16.gmra.mrb[8].mxu1 %v2114_v49  ;;  %1061 = vmatprep.mubr.bf16.mxu0 %v2117_v50 }
  0x3a   : > { %1158 = vmatprep.mubr.bf16.mxu1 %v2119_v51  ;;  %1935 = vmatpush3.bf16.msra.mxu0 %v2132_v55 }
  0x3b   : > { %2032 = vmatpush3.bf16.msra.mxu1 %v2132_v55  ;;  %1936 = vmatprep.subr.bf16.mxu0 %v2139_v60 }
  0x3c   : > { %2025 = vmatprep.subr.bf16.mxu1 %v2139_v60 }
  0x3e   : > { %1937 = vmatpush3.bf16.msra.mxu0 %v2140_v61 }
  0x3f   : > { %2033 = vmatpush3.bf16.msra.mxu1 %v2140_v61  ;;  %1938 = vmatprep.subr.bf16.mxu0 %v2147_v0 }
  0x40   : > { %1062 = vmatmul.mubr.bf16.gmra.mrb[12].mxu0 %v2121_v56  ;;  %2026 = vmatprep.subr.bf16.mxu1 %v2147_v0 }
  0x41   : > { %1159 = vmatmul.mubr.bf16.gmra.mrb[12].mxu1 %v2122_v57  ;;  %1069 = vmatprep.mubr.bf16.mxu0 %v2125_v58 }
  0x42   : > { %1166 = vmatprep.mubr.bf16.mxu1 %v2127_v59  ;;  %1939 = vmatpush3.bf16.msra.mxu0 %v2148_v1 }
  0x43   : > { %2034 = vmatpush3.bf16.msra.mxu1 %v2148_v1  ;;  %1940 = vmatprep.subr.bf16.mxu0 %v2155_v4 }
  0x44   : > { %2027 = vmatprep.subr.bf16.mxu1 %v2155_v4 }
  0x46   : > { %1941 = vmatpush3.bf16.msra.mxu0 %v2156_v5 }
  0x47   : > { %2035 = vmatpush3.bf16.msra.mxu1 %v2156_v5 }
  0x48   : > { %1070 = vmatmul.mubr.bf16.gmra.mrb[16].mxu0 %v2129_v62  ;;  %2000 = vmatprep.subr.bf16.mxu1 %v2163_v8 }
  0x49   : > { %1167 = vmatmul.mubr.bf16.gmra.mrb[16].mxu1 %v2130_v63  ;;  %1077 = vmatprep.mubr.bf16.mxu0 %v2133_v2 }
  0x4a   : > { %1174 = vmatprep.mubr.bf16.mxu1 %v2135_v3 }
  0x50   : > { %1078 = vmatmul.mubr.bf16.gmra.mrb[20].mxu0 %v2137_v6 }
  0x51   : > { %1175 = vmatmul.mubr.bf16.gmra.mrb[20].mxu1 %v2138_v7  ;;  %1085 = vmatprep.mubr.bf16.mxu0 %v2141_v9 }
  0x52   : > { %1182 = vmatprep.mubr.bf16.mxu1 %v2143_v10 }
  0x58   : > { %1086 = vmatmul.mubr.bf16.gmra.mrb[24].mxu0 %v2145_v11 }
  0x59   : > { %1183 = vmatmul.mubr.bf16.gmra.mrb[24].mxu1 %v2146_v12  ;;  %1093 = vmatprep.mubr.bf16.mxu0 %v2149_v13 }
  0x5a   : > { %1190 = vmatprep.mubr.bf16.mxu1 %v2151_v14 }
  0x60   : > { %1094 = vmatmul.mubr.bf16.gmra.mrb[28].mxu0 %v2153_v15 }
  0x61   : > { %1191 = vmatmul.mubr.bf16.gmra.mrb[28].mxu1 %v2154_v16  ;;  %1231 = vmatprep.mubr.bf16.mxu0 %v2159_v17 }
  0x62   : > { %1279 = vmatprep.mubr.bf16.mxu1 %v2162_v18 }
  0x68   : > { %1232 = vmatmul.mubr.bf16.vlgmr.msra.gmra.mrb[32].mxu0 %v2157_v19 }
  0x69   : > { %1280 = vmatmul.mubr.bf16.vlgmr.msra.gmra.mrb[32].mxu1 %v2160_v20  ;;  %1239 = vmatprep.mubr.bf16.mxu0 %v2164_v21 }
  0x6a   : > { %2001 = vmatpush3.bf16.msra.mxu1 %v2163_v8  ;;  %1287 = vmatprep.mubr.bf16.mxu1 %v2166_v22 }
  0x6b   : > { %2002 = vmatprep.subr.bf16.mxu1 %v2170_v23 }
  0x6e   : > { %2003 = vmatpush3.bf16.msra.mxu1 %v2170_v23 }
  0x70   : > { %1240 = vmatmul.mubr.bf16.gmra.mrb[36].mxu0 %v2168_v24 }
  0x71   : > { %1288 = vmatmul.mubr.bf16.gmra.mrb[36].mxu1 %v2169_v25  ;;  %1247 = vmatprep.mubr.bf16.mxu0 %v2171_v26 }
  0x72   : > { %2004 = vmatprep.mubr.msk.bf16.mxu1 %vm980_vm0, %v2173_v27 }
  0x78   : > { %1248 = vmatmul.mubr.bf16.gmra.mrb[40].mxu0 %v2174_v28 }
  0x79   : > { %2005 = vmatmul.mubr.msk.bf16.vlgmr.msra.gmra.mrb[40].mxu1 %vm980_vm0, %v2175_v29  ;;  %1255 = vmatprep.mubr.bf16.mxu0 %v2176_v30 }
  0x7a   : > { %2008 = vmatprep.mubr.msk.bf16.mxu1 %vm980_vm0, %v2178_v31 }
  0x80   : > { %1256 = vmatmul.mubr.bf16.gmra.mrb[44].mxu0 %v2179_v32 }
  0x81   : > { %2009 = vmatmul.mubr.msk.bf16.gmra.mrb[44].mxu1 %vm980_vm0, %v2180_v33  ;;  %1263 = vmatprep.mubr.bf16.mxu0 %v2181_v34 }
  0x82   : > { %2012 = vmatprep.mubr.msk.bf16.mxu1 %vm980_vm0, %v2183_v35 }
  0x88   : > { %1264 = vmatmul.mubr.bf16.gmra.mrb[48].mxu0 %v2184_v36 }
  0x89   : > { %2013 = vmatmul.mubr.msk.bf16.gmra.mrb[48].mxu1 %vm980_vm0, %v2185_v37  ;;  %1271 = vmatprep.mubr.bf16.mxu0 %v2186_v38 }
  0x8a   : > { %2016 = vmatprep.mubr.msk.bf16.mxu1 %vm980_vm0, %v2188_v39 }
  0x90   : > { %1272 = vmatmul.mubr.bf16.gmra.mrb[52].mxu0 %v2189_v40 }
  0x91   : > { %2017 = vmatmul.mubr.msk.bf16.gmra.mrb[52].mxu1 %vm980_vm0, %v2190_v41 }
  0xfb   : > { %v1814_v42 = vpop.f32.mrb[0].mxu0 }
  0xfc   : > { %v1815_v44 = vpop.f32.mrb[1].mxu0  ;;  %v1878_v45 = vpop.f32.mrb[0].mxu1 }
  0xfd   : > { %v1816_v46 = vadd.f32 %v1815_v44, %v1814_v42  ;;  %v1817_v47 = vpop.f32.mrb[2].mxu0  ;;  %v1879_v48 = vpop.f32.mrb[1].mxu1 }
  0xfe   : > { %v1818_v49 = vpop.f32.mrb[3].mxu0  ;;  %v1880_v50 = vadd.f32 %v1879_v48, %v1878_v45  ;;  %v1881_v51 = vpop.f32.mrb[2].mxu1 }
  0xff   : > { %v1040_v52 = vadd.f32 %v1816_v46, %v2481_v43  ;;  %v1819_v53 = vadd.f32 %v1818_v49, %v1817_v47  ;;  %v1882_v54 = vpop.f32.mrb[3].mxu1 }
 0x100   : > { %v1883_v55 = vadd.f32 %v1882_v54, %v1881_v51 }
 0x101   : > { %v1043_v56 = vadd.f32 %v1819_v53, %v2481_v43  ;;  %v2485_v57 = vadd.f32 %v1880_v50, %v1040_v52 }
 0x103   : > { %v2487_v58 = vadd.f32 %v1883_v55, %v1043_v56  ;;  %v1820_v59 = vpop.f32.mrb[4].mxu0 }
 0x104   : > { %v1821_v60 = vpop.f32.mrb[5].mxu0  ;;  %v1884_v61 = vpop.f32.mrb[4].mxu1 }
 0x105   : > { %v1822_v62 = vadd.f32 %v1821_v60, %v1820_v59  ;;  %v1823_v63 = vpop.f32.mrb[6].mxu0  ;;  %v1885_v0 = vpop.f32.mrb[5].mxu1 }
 0x106   : > { %v1824_v1 = vpop.f32.mrb[7].mxu0  ;;  %v1886_v2 = vadd.f32 %v1885_v0, %v1884_v61  ;;  %v1887_v3 = vpop.f32.mrb[6].mxu1 }
 0x107   : > { %v1048_v4 = vadd.f32 %v1822_v62, %v2481_v43  ;;  %v1825_v5 = vadd.f32 %v1824_v1, %v1823_v63  ;;  %v1888_v6 = vpop.f32.mrb[7].mxu1 }
 0x108   : > { %v1889_v7 = vadd.f32 %v1888_v6, %v1887_v3 }
 0x109   : > { %v1051_v8 = vadd.f32 %v1825_v5, %v2481_v43  ;;  %v2491_v9 = vadd.f32 %v1886_v2, %v1048_v4 }
 0x10b   : > { %v2493_v10 = vadd.f32 %v1889_v7, %v1051_v8  ;;  %v1826_v11 = vpop.f32.mrb[8].mxu0 }
 0x10c   : > { %v1827_v12 = vpop.f32.mrb[9].mxu0  ;;  %v1890_v13 = vpop.f32.mrb[8].mxu1 }
 0x10d   : > { %v1828_v14 = vadd.f32 %v1827_v12, %v1826_v11  ;;  %v1829_v15 = vpop.f32.mrb[10].mxu0  ;;  %v1891_v16 = vpop.f32.mrb[9].mxu1 }
 0x10e   : > { %v1830_v17 = vpop.f32.mrb[11].mxu0  ;;  %v1892_v18 = vadd.f32 %v1891_v16, %v1890_v13  ;;  %v1893_v19 = vpop.f32.mrb[10].mxu1 }
 0x10f   : > { %v1056_v20 = vadd.f32 %v1828_v14, %v2481_v43  ;;  %v1831_v21 = vadd.f32 %v1830_v17, %v1829_v15  ;;  %v1894_v22 = vpop.f32.mrb[11].mxu1 }
 0x110   : > { %v1895_v23 = vadd.f32 %v1894_v22, %v1893_v19 }
 0x111   : > { %v1059_v24 = vadd.f32 %v1831_v21, %v2481_v43  ;;  %v2497_v25 = vadd.f32 %v1892_v18, %v1056_v20 }
 0x113   : > { %v2499_v26 = vadd.f32 %v1895_v23, %v1059_v24  ;;  %v1832_v27 = vpop.f32.mrb[12].mxu0 }
 0x114   : > { %v1833_v28 = vpop.f32.mrb[13].mxu0  ;;  %v1896_v29 = vpop.f32.mrb[12].mxu1 }
 0x115   : > { %v1834_v30 = vadd.f32 %v1833_v28, %v1832_v27  ;;  %v1835_v31 = vpop.f32.mrb[14].mxu0  ;;  %v1897_v32 = vpop.f32.mrb[13].mxu1 }
 0x116   : > { %v1836_v33 = vpop.f32.mrb[15].mxu0  ;;  %v1898_v34 = vadd.f32 %v1897_v32, %v1896_v29  ;;  %v1899_v35 = vpop.f32.mrb[14].mxu1 }
 0x117   : > { %v1064_v36 = vadd.f32 %v1834_v30, %v2481_v43  ;;  %v1837_v37 = vadd.f32 %v1836_v33, %v1835_v31  ;;  %v1900_v38 = vpop.f32.mrb[15].mxu1 }
 0x118   : > { %v1901_v39 = vadd.f32 %v1900_v38, %v1899_v35 }
 0x119   : > { %v1067_v40 = vadd.f32 %v1837_v37, %v2481_v43  ;;  %v2503_v41 = vadd.f32 %v1898_v34, %v1064_v36 }
 0x11b   : > { %v2505_v42 = vadd.f32 %v1901_v39, %v1067_v40  ;;  %v1838_v44 = vpop.f32.mrb[16].mxu0 }
 0x11c   : > { %v1839_v45 = vpop.f32.mrb[17].mxu0  ;;  %v1902_v46 = vpop.f32.mrb[16].mxu1 }
 0x11d   : > { %v1840_v47 = vadd.f32 %v1839_v45, %v1838_v44  ;;  %v1841_v48 = vpop.f32.mrb[18].mxu0  ;;  %v1903_v49 = vpop.f32.mrb[17].mxu1 }
 0x11e   : > { %v1842_v50 = vpop.f32.mrb[19].mxu0  ;;  %v1904_v51 = vadd.f32 %v1903_v49, %v1902_v46  ;;  %v1905_v52 = vpop.f32.mrb[18].mxu1 }
 0x11f   : > { %v1072_v53 = vadd.f32 %v1840_v47, %v2481_v43  ;;  %v1843_v54 = vadd.f32 %v1842_v50, %v1841_v48  ;;  %v1906_v55 = vpop.f32.mrb[19].mxu1 }
 0x120   : > { %v1907_v56 = vadd.f32 %v1906_v55, %v1905_v52 }
 0x121   : > { %v1075_v59 = vadd.f32 %v1843_v54, %v2481_v43  ;;  %v2509_v60 = vadd.f32 %v1904_v51, %v1072_v53 }
 0x123   : > { %v2511_v61 = vadd.f32 %v1907_v56, %v1075_v59  ;;  %v1844_v62 = vpop.f32.mrb[20].mxu0 }
 0x124   : > { %v1845_v63 = vpop.f32.mrb[21].mxu0  ;;  %v1908_v0 = vpop.f32.mrb[20].mxu1 }
 0x125   : > { %v1846_v1 = vadd.f32 %v1845_v63, %v1844_v62  ;;  %v1847_v2 = vpop.f32.mrb[22].mxu0  ;;  %v1909_v3 = vpop.f32.mrb[21].mxu1 }
 0x126   : > { %v1848_v4 = vpop.f32.mrb[23].mxu0  ;;  %v1910_v5 = vadd.f32 %v1909_v3, %v1908_v0  ;;  %v1911_v6 = vpop.f32.mrb[22].mxu1 }
 0x127   : > { %v1080_v7 = vadd.f32 %v1846_v1, %v2481_v43  ;;  %v1849_v8 = vadd.f32 %v1848_v4, %v1847_v2  ;;  %v1912_v11 = vpop.f32.mrb[23].mxu1 }
 0x128   : > { %v1913_v12 = vadd.f32 %v1912_v11, %v1911_v6 }
 0x129   : > { %v1083_v13 = vadd.f32 %v1849_v8, %v2481_v43  ;;  %v2515_v14 = vadd.f32 %v1910_v5, %v1080_v7 }
 0x12b   : > { %v2517_v15 = vadd.f32 %v1913_v12, %v1083_v13  ;;  %v1850_v16 = vpop.f32.mrb[24].mxu0 }
 0x12c   : > { %v1851_v17 = vpop.f32.mrb[25].mxu0  ;;  %v1914_v18 = vpop.f32.mrb[24].mxu1 }
 0x12d   : > { %v1852_v19 = vadd.f32 %v1851_v17, %v1850_v16  ;;  %v1853_v20 = vpop.f32.mrb[26].mxu0  ;;  %v1915_v21 = vpop.f32.mrb[25].mxu1 }
 0x12e   : > { %v1854_v22 = vpop.f32.mrb[27].mxu0  ;;  %v1916_v23 = vadd.f32 %v1915_v21, %v1914_v18  ;;  %v1917_v24 = vpop.f32.mrb[26].mxu1 }
 0x12f   : > { %v1088_v27 = vadd.f32 %v1852_v19, %v2481_v43  ;;  %v1855_v28 = vadd.f32 %v1854_v22, %v1853_v20  ;;  %v1918_v29 = vpop.f32.mrb[27].mxu1 }
 0x130   : > { %v1919_v30 = vadd.f32 %v1918_v29, %v1917_v24 }
 0x131   : > { %v1091_v31 = vadd.f32 %v1855_v28, %v2481_v43  ;;  %v1185_v32 = vadd.f32 %v1916_v23, %v1088_v27 }
 0x133   : > { %v1188_v33 = vadd.f32 %v1919_v30, %v1091_v31  ;;  %v1856_v34 = vpop.f32.mrb[28].mxu0 }
 0x134   : > { %v1857_v35 = vpop.f32.mrb[29].mxu0  ;;  %v1920_v36 = vpop.f32.mrb[28].mxu1 }
 0x135   : > { %v1858_v37 = vadd.f32 %v1857_v35, %v1856_v34  ;;  %v1859_v38 = vpop.f32.mrb[30].mxu0  ;;  %v1921_v39 = vpop.f32.mrb[29].mxu1 }
 0x136   : > { %v1860_v40 = vpop.f32.mrb[31].mxu0  ;;  %v1922_v44 = vadd.f32 %v1921_v39, %v1920_v36  ;;  %v1923_v45 = vpop.f32.mrb[30].mxu1 }
 0x137   : > { %v1096_v46 = vadd.f32 %v1858_v37, %v2481_v43  ;;  %v1861_v47 = vadd.f32 %v1860_v40, %v1859_v38  ;;  %v1924_v48 = vpop.f32.mrb[31].mxu1 }
 0x138   : > { %v1925_v49 = vadd.f32 %v1924_v48, %v1923_v45 }
 0x139   : > { %v1099_v50 = vadd.f32 %v1861_v47, %v2481_v43  ;;  %v1193_v51 = vadd.f32 %v1922_v44, %v1096_v46 }
 0x13b   : > { %v1196_v52 = vadd.f32 %v1925_v49, %v1099_v50  ;;  %v1942_v53 = vpop.f32.mrb[32].mxu0 }
 0x13c   : > { %v1978_v54 = vpop.f32.mrb[32].mxu1  ;;  %v1943_v55 = vpop.f32.mrb[33].mxu0 }
 0x13d   : > { %v1944_v56 = vadd.f32 %v1943_v55, %v1942_v53  ;;  %v1979_v59 = vpop.f32.mrb[33].mxu1  ;;  %v1945_v62 = vpop.f32.mrb[34].mxu0 }
 0x13e   : > { %v1980_v63 = vadd.f32 %v1979_v59, %v1978_v54  ;;  %v1981_v0 = vpop.f32.mrb[34].mxu1  ;;  %v1946_v1 = vpop.f32.mrb[35].mxu0 }
 0x13f   : > { %v1947_v2 = vadd.f32 %v1946_v1, %v1945_v62  ;;  %v1982_v3 = vpop.f32.mrb[35].mxu1  ;;  %v1234_v4 = vadd.f32 %v1944_v56, %v2485_v57 }
 0x140   : > { %v1983_v5 = vadd.f32 %v1982_v3, %v1981_v0  ;;  %v2524_v6 = vadd.f32 %v1980_v63, %v1185_v32 }
 0x141   : > { %v1237_v43 = vadd.f32 %v1947_v2, %v2487_v58 }
 0x142   : > { %v2527_v7 = vadd.f32 %v1983_v5, %v1188_v33 }
 0x143   : > { %v1948_v8 = vpop.f32.mrb[36].mxu0 }
 0x144   : > { %v1984_v11 = vpop.f32.mrb[36].mxu1  ;;  %v1949_v12 = vpop.f32.mrb[37].mxu0 }
 0x145   : > { %v1950_v13 = vadd.f32 %v1949_v12, %v1948_v8  ;;  %v1985_v16 = vpop.f32.mrb[37].mxu1  ;;  %v1951_v17 = vpop.f32.mrb[38].mxu0 }
 0x146   : > { %v1986_v18 = vadd.f32 %v1985_v16, %v1984_v11  ;;  %v1987_v19 = vpop.f32.mrb[38].mxu1  ;;  %v1952_v20 = vpop.f32.mrb[39].mxu0 }
 0x147   : > { %v1953_v21 = vadd.f32 %v1952_v20, %v1951_v17  ;;  %v1988_v22 = vpop.f32.mrb[39].mxu1  ;;  %v1242_v57 = vadd.f32 %v1950_v13, %v2491_v9 }
 0x148   : > { %v1989_v23 = vadd.f32 %v1988_v22, %v1987_v19  ;;  %v2530_v24 = vadd.f32 %v1986_v18, %v1193_v51 }
 0x149   : > { %v1245_v58 = vadd.f32 %v1953_v21, %v2493_v10 }
 0x14a   : > { %v2533_v27 = vadd.f32 %v1989_v23, %v1196_v52 }
 0x14b   : > { %v1954_v28 = vpop.f32.mrb[40].mxu0 }
 0x14c   : > { %v2006_v29 = vpop.f32.mrb[40].mxu1  ;;  %v1955_v30 = vpop.f32.mrb[41].mxu0 }
 0x14d   : > { %v1339_v31 = vadd.f32 %v2006_v29, %v1242_v57  ;;  %v1956_v32 = vadd.f32 %v1955_v30, %v1954_v28  ;;  %v1330_v33 = vpop.f32.mrb[41].mxu1  ;;  %v1957_v34 = vpop.f32.mrb[42].mxu0 }
 0x14e   : > { %v1331_v35 = vadd.f32 %v1330_v33, %v1234_v4  ;;  %v2007_v36 = vpop.f32.mrb[42].mxu1  ;;  %v1958_v37 = vpop.f32.mrb[43].mxu0 }
 0x14f   : > { %v1342_v38 = vadd.f32 %v2007_v36, %v1245_v58  ;;  %v1959_v9 = vadd.f32 %v1958_v37, %v1957_v34  ;;  %v1333_v39 = vpop.f32.mrb[43].mxu1  ;;  %v1250_v40 = vadd.f32 %v1956_v32, %v2497_v25  ;;  %v1395_v10 = vmax.f32 %v1339_v31, 0.0 }
 0x150   : > { %v1334_v44 = vadd.f32 %v1333_v39, %v1237_v43  ;;  %v1393_v47 = vmax.f32 %v1331_v35, 0.0 }
 0x151   : > { %v1396_v45 = vmax.f32 %v1342_v38, 0.0  ;;  %v1253_v46 = vadd.f32 %v1959_v9, %v2499_v26 }
 0x152   : > { %v1394_v48 = vmax.f32 %v1334_v44, 0.0 }
 0x153   : > { %v1759_v49 = vpack.c.bf16 %v1396_v45, %v1395_v10  ;;  %v1960_v50 = vpop.f32.mrb[44].mxu0 }
 0x154   : > { %v1754_v51 = vpack.c.bf16 %v1394_v48, %v1393_v47  ;;  %v2010_v52 = vpop.f32.mrb[44].mxu1  ;;  %v1961_v53 = vpop.f32.mrb[45].mxu0 }
 0x155   : > { %1791 = vst [vmem:[%s2541_s7 + $0x8] sm:$0xff] %v1759_v49   ;;  %v1962_v25 = vadd.f32 %v1961_v53, %v1960_v50  ;;  %v1346_v54 = vpop.f32.mrb[45].mxu1  ;;  %v1963_v55 = vpop.f32.mrb[46].mxu0 }
 0x156   : > { %1755 = vst [vmem:[%s2541_s7] sm:$0xff] %v1754_v51   ;;  %v1347_v26 = vadd.f32 %v1346_v54, %v1250_v40  ;;  %v2011_v56 = vpop.f32.mrb[46].mxu1  ;;  %v1964_v59 = vpop.f32.mrb[47].mxu0 }
 0x157   : > { %v1258_v62 = vadd.f32 %v1962_v25, %v2503_v41  ;;  %v1965_v63 = vadd.f32 %v1964_v59, %v1963_v55  ;;  %v1349_v0 = vpop.f32.mrb[47].mxu1 }
 0x158   : > { %v1350_v1 = vadd.f32 %v1349_v0, %v1253_v46  ;;  %v1397_v4 = vmax.f32 %v1347_v26, 0.0 }
 0x159   : > { %v1355_v2 = vadd.f32 %v2010_v52, %v1258_v62  ;;  %v1261_v3 = vadd.f32 %v1965_v63, %v2505_v42 }
 0x15a   : > { %v1398_v5 = vmax.f32 %v1350_v1, 0.0 }
 0x15b   : > { %v1358_v43 = vadd.f32 %v2011_v56, %v1261_v3  ;;  %v1966_v8 = vpop.f32.mrb[48].mxu0  ;;  %v1399_v16 = vmax.f32 %v1355_v2, 0.0 }
 0x15c   : > { %v1764_v11 = vpack.c.bf16 %v1398_v5, %v1397_v4  ;;  %v1967_v12 = vpop.f32.mrb[49].mxu0  ;;  %v2014_v13 = vpop.f32.mrb[48].mxu1 }
 0x15d   : > { %v1400_v17 = vmax.f32 %v1358_v43, 0.0  ;;  %v1968_v18 = vadd.f32 %v1967_v12, %v1966_v8  ;;  %v1969_v19 = vpop.f32.mrb[50].mxu0  ;;  %v1362_v41 = vpop.f32.mrb[49].mxu1 }
 0x15e   : > { %1792 = vst [vmem:[%s2541_s7 + $0x10] sm:$0xff] %v1764_v11   ;;  %v1970_v20 = vpop.f32.mrb[51].mxu0  ;;  %v2015_v21 = vpop.f32.mrb[50].mxu1 }
 0x15f   : > { %v1769_v22 = vpack.c.bf16 %v1400_v17, %v1399_v16  ;;  %v1971_v57 = vadd.f32 %v1970_v20, %v1969_v19  ;;  %v1266_v42 = vadd.f32 %v1968_v18, %v2509_v60  ;;  %v1365_v23 = vpop.f32.mrb[51].mxu1 }
 0x161   : > { %1793 = vst [vmem:[%s2541_s7 + $0x18] sm:$0xff] %v1769_v22   ;;  %v1363_v58 = vadd.f32 %v1362_v41, %v1266_v42  ;;  %v1269_v28 = vadd.f32 %v1971_v57, %v2511_v61 }
 0x163   : > { %v1366_v29 = vadd.f32 %v1365_v23, %v1269_v28  ;;  %v1972_v30 = vpop.f32.mrb[52].mxu0  ;;  %v1401_v33 = vmax.f32 %v1363_v58, 0.0 }
 0x164   : > { %v2018_v31 = vpop.f32.mrb[52].mxu1  ;;  %v1973_v32 = vpop.f32.mrb[53].mxu0 }
 0x165   : > { %v1402_v34 = vmax.f32 %v1366_v29, 0.0  ;;  %v1387_v35 = vadd.f32 %v2018_v31, %v2530_v24  ;;  %v1974_v36 = vadd.f32 %v1973_v32, %v1972_v30  ;;  %v1378_v37 = vpop.f32.mrb[53].mxu1  ;;  %v1975_v38 = vpop.f32.mrb[54].mxu0 }
 0x166   : > { %v1379_v9 = vadd.f32 %v1378_v37, %v2524_v6  ;;  %v2019_v60 = vpop.f32.mrb[54].mxu1  ;;  %v1976_v39 = vpop.f32.mrb[55].mxu0 }
 0x167   : > { %v1774_v40 = vpack.c.bf16 %v1402_v34, %v1401_v33  ;;  %v1274_v61 = vadd.f32 %v1974_v36, %v2515_v14  ;;  %v1390_v44 = vadd.f32 %v2019_v60, %v2533_v27  ;;  %v1381_v10 = vpop.f32.mrb[55].mxu1  ;;  %v1977_v45 = vadd.f32 %v1976_v39, %v1975_v38 }
 0x168   : > { %v1382_v46 = vadd.f32 %v1381_v10, %v2527_v7  ;;  %v1407_v24 = vmax.f32 %v1387_v35, 0.0  ;;  %v1405_v49 = vmax.f32 %v1379_v9, 0.0 }
 0x169   : > { %1794 = vst [vmem:[%s2541_s7 + $0x20] sm:$0xff] %v1774_v40   ;;  %v1371_v47 = vadd.f32 %v2014_v13, %v1274_v61  ;;  %v1408_v48 = vmax.f32 %v1390_v44, 0.0  ;;  %v1277_v6 = vadd.f32 %v1977_v45, %v2517_v15 }
 0x16a   : > { %v1406_v50 = vmax.f32 %v1382_v46, 0.0 }
 0x16b   : > { %v1789_v51 = vpack.c.bf16 %v1408_v48, %v1407_v24  ;;  %v1374_v52 = vadd.f32 %v2015_v21, %v1277_v6  ;;  %v1403_v14 = vmax.f32 %v1371_v47, 0.0 }
 0x16c   : > { %v1784_v53 = vpack.c.bf16 %v1406_v50, %v1405_v49 }
 0x16d   : > { %1797 = vst [vmem:[%s2541_s7 + $0x38] sm:$0xff] %v1789_v51   ;;  %v1404_v27 = vmax.f32 %v1374_v52, 0.0 }
 0x16e   : > { %1796 = vst [vmem:[%s2541_s7 + $0x30] sm:$0xff] %v1784_v53  }
 0x16f   : > { %v1779_v25 = vpack.c.bf16 %v1404_v27, %v1403_v14 }
 0x171   : > { %1795 = vst [vmem:[%s2541_s7 + $0x28] sm:$0xff] %v1779_v25  }
 0x172 PF: > { %s13_s14 = sadd.s32 1, %s2213_s14   ;;  %s2574_s12 = smov %s2209_s13 }
 0x173   : > { %p10_p5 = scmp.ge.s32.totalorder %s13_s14, 4   ;;  %s2575_s13 = smov %s2577_s15 }
 0x175   :  { %12 = sbr.rel (!%p10_p5) target bundleno = 2 (0x2), region = 68 }

// kernel: neural_network_forward.7
= control target key start
LH: loop header
LB: loop body
LE: loop exit
PB: predicated region body
PF: predicated region fallthrough
CT: control target
= control target key end

     0   :  { %s10678_s15 = smov 0   ;;  %s10680_s16 = smov 0   ;;  %s11988_s0 = inlined_call_operand.vmem [shape: bf16[8,7744], index: 0, kind: input, shape index: {}]   ;;  %s11989_s1 = inlined_call_operand.vmem [shape: bf16[2,7744,256], index: 1, kind: input, shape index: {}]   ;;  %s11990_s2 = inlined_call_operand.vmem [shape: f32[1,512], index: 2, kind: input, shape index: {}]   ;;  %s11991_s3 = inlined_call_operand.vmem [shape: bf16[512,128], index: 3, kind: input, shape index: {}]   ;;  %s11992_s4 = inlined_call_operand.vmem [shape: f32[2,8,128], index: 4, kind: output, shape index: {}]  }
   0x1   :  { %s10682_s17 = smov 0  }
   0x2 LB: > { %s26_s18 = sadd.s32 1, %s10646_s16  ;;  %p7876_p0 = scmp.ge.s32.totalorder %s10650_s17, 1  ;;  %s10650_s17 = sphi %s10682_s17, %s14_s17   ;;  %s10646_s16 = sphi %s10680_s16, %s11994_s16   ;;  %s10642_s15 = sphi %s10678_s15, %s11993_s15  }
   0x3   : > { %p28_p1 = scmp.ge.s32.totalorder %s26_s18, 2  ;;  %p207_p2 = scmp.lt.s32.totalorder %s10650_s17, 3 }
   0x5   : > { %s11996_s18 = smov (%p28_p1, %s26_s18), 0  ;;  %p208_p3 = pnand %p7876_p0, %p207_p2 }
   0x6   : > { %p245_p4 = scmp.lt.s32.totalorder (!%p208_p3), %s10642_s15, 1  ;;  %v10702_v0 = vld [vmem:[%s11988_s0] sm:$0xff] (!%p208_p3)  ;;  %v10707_v1 = vld [vmem:[%s11988_s0 + $0x78] sm:$0xff] (!%p208_p3)  ;;  %s7879_s14 = sshll.u32 (!%p208_p3), %s10642_s15, 5  ;;  %vm6340_vm0 = vcmask (!%p208_p3), 523264  }
   0x7   : > { %211 = sbr.rel (%p208_p3) target bundleno = 1433 (0x599), region = 36  ;;  %v7883_v2 = vcombine.high (!%p208_p3), %v10702_v0, %v10702_v0  ;;  %v7913_v3 = vcombine.high (!%p208_p3), %v10707_v1, %v10707_v1  ;;  %p260_p5 = scmp.lt.s32.totalorder (!%p208_p3), %s7879_s14, 63 }
   0x9   : > { %6376 = vmatprep.mubr.bf16.mxu1 (!%p208_p3), %v7883_v2  ;;  %6991 = vmatprep.mubr.bf16.mxu0 (!%p208_p3), %v7913_v3 }
   0xe   : > { %s10714_s23 = scalar_select %p245_p4, %s10642_s15, 1 }
   0xf   : > { %s11998_s14 = smov (!%p260_p5, %s7879_s14), 63 }
  0x10   : > { %s9072_s24 = smul.u32 7744, %s10714_s23  ;;  %s7880_s19 = sshll.u32 %s11998_s14, 2 }
  0x11   : > { %s11822_s22 = scalar_lea.vmem %s11991_s3, %s7880_s19 }
  0x12   : > { %s10720_s27 = scalar_lea.vmem %s11989_s1, %s9072_s24 }
  0x13   : > { %v9099_v4 = vld [vmem:[%s10720_s27 + $0x4] ss:$8 sps:$4 sm:$0xff]   ;;  %v9103_v6 = vld [vmem:[%s10720_s27] ss:$8 sps:$4 sm:$0xff]   ;;  %v9105_v8 = vld [vmem:[%s10720_s27 + $0x14] ss:$8 sps:$4 sm:$0xff]  }
  0x14   : > { %v9101_v5 = vld [vmem:[%s10720_s27 + $0xf04] ss:$8 sps:$4 sm:$0xff]   ;;  %6344 = vmatprep.subr.bf16.mxu1 %v9099_v4  ;;  %v9104_v7 = vld [vmem:[%s10720_s27 + $0xf00] ss:$8 sps:$4 sm:$0xff]   ;;  %v9107_v9 = vld [vmem:[%s10720_s27 + $0xf14] ss:$8 sps:$4 sm:$0xff]  }
  0x15   : > { %6959 = vmatprep.subr.bf16.mxu0 %v9101_v5  ;;  %6345 = vmatpush1.bf16.msra.mxu1 %v9103_v6  ;;  %v9109_v10 = vld [vmem:[%s10720_s27 + $0x10] ss:$8 sps:$4 sm:$0xff]   ;;  %v9111_v12 = vld [vmem:[%s10720_s27 + $0x24] ss:$8 sps:$4 sm:$0xff]   ;;  %v9115_v14 = vld [vmem:[%s10720_s27 + $0x20] ss:$8 sps:$4 sm:$0xff]  }
  0x16   : > { %6960 = vmatpush1.bf16.msra.mxu0 %v9104_v7  ;;  %6346 = vmatprep.subr.bf16.mxu1 %v9105_v8  ;;  %v9110_v11 = vld [vmem:[%s10720_s27 + $0xf10] ss:$8 sps:$4 sm:$0xff]   ;;  %v9113_v13 = vld [vmem:[%s10720_s27 + $0xf24] ss:$8 sps:$4 sm:$0xff]   ;;  %v9116_v15 = vld [vmem:[%s10720_s27 + $0xf20] ss:$8 sps:$4 sm:$0xff]   ;;  %v7882_v8 = vcombine.low %v10702_v0, %v10702_v0 }
  0x17   : > { %6961 = vmatprep.subr.bf16.mxu0 %v9107_v9  ;;  %v9117_v16 = vld [vmem:[%s10720_s27 + $0x34] ss:$8 sps:$4 sm:$0xff]   ;;  %v9121_v18 = vld [vmem:[%s10720_s27 + $0x30] ss:$8 sps:$4 sm:$0xff]   ;;  %v9123_v20 = vld [vmem:[%s10720_s27 + $0x44] ss:$8 sps:$4 sm:$0xff]  }
  0x18   : > { %v9119_v17 = vld [vmem:[%s10720_s27 + $0xf34] ss:$8 sps:$4 sm:$0xff]   ;;  %v9122_v19 = vld [vmem:[%s10720_s27 + $0xf30] ss:$8 sps:$4 sm:$0xff]   ;;  %v9125_v21 = vld [vmem:[%s10720_s27 + $0xf44] ss:$8 sps:$4 sm:$0xff]  }
  0x19   : > { %6347 = vmatpush1.bf16.msra.mxu1 %v9109_v10  ;;  %v9127_v22 = vld [vmem:[%s10720_s27 + $0x40] ss:$8 sps:$4 sm:$0xff]   ;;  %v9129_v24 = vld [vmem:[%s10720_s27 + $0x54] ss:$8 sps:$4 sm:$0xff]   ;;  %v9133_v26 = vld [vmem:[%s10720_s27 + $0x50] ss:$8 sps:$4 sm:$0xff]   ;;  %v7912_v10 = vcombine.low %v10707_v1, %v10707_v1 }
  0x1a   : > { %6962 = vmatpush1.bf16.msra.mxu0 %v9110_v11  ;;  %6348 = vmatprep.subr.bf16.mxu1 %v9111_v12  ;;  %v9128_v23 = vld [vmem:[%s10720_s27 + $0xf40] ss:$8 sps:$4 sm:$0xff]   ;;  %v9131_v25 = vld [vmem:[%s10720_s27 + $0xf54] ss:$8 sps:$4 sm:$0xff]   ;;  %v9134_v27 = vld [vmem:[%s10720_s27 + $0xf50] ss:$8 sps:$4 sm:$0xff]  }
  0x1b   : > { %6963 = vmatprep.subr.bf16.mxu0 %v9113_v13  ;;  %v9135_v28 = vld [vmem:[%s10720_s27 + $0x64] ss:$8 sps:$4 sm:$0xff]   ;;  %v9139_v30 = vld [vmem:[%s10720_s27 + $0x60] ss:$8 sps:$4 sm:$0xff]   ;;  %v9141_v32 = vld [vmem:[%s10720_s27 + $0x74] ss:$8 sps:$4 sm:$0xff]  }
  0x1c   : > { %v9137_v29 = vld [vmem:[%s10720_s27 + $0xf64] ss:$8 sps:$4 sm:$0xff]   ;;  %v9140_v31 = vld [vmem:[%s10720_s27 + $0xf60] ss:$8 sps:$4 sm:$0xff]   ;;  %v9143_v33 = vld [vmem:[%s10720_s27 + $0xf74] ss:$8 sps:$4 sm:$0xff]  }
  0x1d   : > { %6349 = vmatpush1.bf16.msra.mxu1 %v9115_v14  ;;  %v9145_v34 = vld [vmem:[%s10720_s27 + $0x70] ss:$8 sps:$4 sm:$0xff]   ;;  %v9147_v36 = vld [vmem:[%s10720_s27 + $0x84] ss:$8 sps:$4 sm:$0xff]   ;;  %v9151_v38 = vld [vmem:[%s10720_s27 + $0x80] ss:$8 sps:$4 sm:$0xff]  }
  0x1e   : > { %6964 = vmatpush1.bf16.msra.mxu0 %v9116_v15  ;;  %6350 = vmatprep.subr.bf16.mxu1 %v9117_v16  ;;  %v9146_v35 = vld [vmem:[%s10720_s27 + $0xf70] ss:$8 sps:$4 sm:$0xff]   ;;  %v9149_v37 = vld [vmem:[%s10720_s27 + $0xf84] ss:$8 sps:$4 sm:$0xff]   ;;  %v9152_v39 = vld [vmem:[%s10720_s27 + $0xf80] ss:$8 sps:$4 sm:$0xff]  }
  0x1f   : > { %6965 = vmatprep.subr.bf16.mxu0 %v9119_v17  ;;  %v9153_v40 = vld [vmem:[%s10720_s27 + $0x94] ss:$8 sps:$4 sm:$0xff]   ;;  %v9157_v42 = vld [vmem:[%s10720_s27 + $0x90] ss:$8 sps:$4 sm:$0xff]   ;;  %v9159_v44 = vld [vmem:[%s10720_s27 + $0xa4] ss:$8 sps:$4 sm:$0xff]  }
  0x20   : > { %v9155_v41 = vld [vmem:[%s10720_s27 + $0xf94] ss:$8 sps:$4 sm:$0xff]   ;;  %v9158_v43 = vld [vmem:[%s10720_s27 + $0xf90] ss:$8 sps:$4 sm:$0xff]   ;;  %v9161_v45 = vld [vmem:[%s10720_s27 + $0xfa4] ss:$8 sps:$4 sm:$0xff]  }
  0x21   : > { %6351 = vmatpush1.bf16.msra.mxu1 %v9121_v18  ;;  %v9163_v46 = vld [vmem:[%s10720_s27 + $0xa0] ss:$8 sps:$4 sm:$0xff]   ;;  %v9165_v48 = vld [vmem:[%s10720_s27 + $0xb4] ss:$8 sps:$4 sm:$0xff]   ;;  %v9169_v50 = vld [vmem:[%s10720_s27 + $0xb0] ss:$8 sps:$4 sm:$0xff]  }
  0x22   : > { %6966 = vmatpush1.bf16.msra.mxu0 %v9122_v19  ;;  %6352 = vmatprep.subr.bf16.mxu1 %v9123_v20  ;;  %v9164_v47 = vld [vmem:[%s10720_s27 + $0xfa0] ss:$8 sps:$4 sm:$0xff]   ;;  %v9167_v49 = vld [vmem:[%s10720_s27 + $0xfb4] ss:$8 sps:$4 sm:$0xff]   ;;  %v9170_v51 = vld [vmem:[%s10720_s27 + $0xfb0] ss:$8 sps:$4 sm:$0xff]  }
  0x23   : > { %6967 = vmatprep.subr.bf16.mxu0 %v9125_v21  ;;  %v9171_v52 = vld [vmem:[%s10720_s27 + $0xc4] ss:$8 sps:$4 sm:$0xff]   ;;  %v9175_v54 = vld [vmem:[%s10720_s27 + $0xc0] ss:$8 sps:$4 sm:$0xff]   ;;  %v9177_v56 = vld [vmem:[%s10720_s27 + $0xd4] ss:$8 sps:$4 sm:$0xff]  }
  0x24   : > { %v9173_v53 = vld [vmem:[%s10720_s27 + $0xfc4] ss:$8 sps:$4 sm:$0xff]   ;;  %v9176_v55 = vld [vmem:[%s10720_s27 + $0xfc0] ss:$8 sps:$4 sm:$0xff]   ;;  %v9179_v57 = vld [vmem:[%s10720_s27 + $0xfd4] ss:$8 sps:$4 sm:$0xff]  }
  0x25   : > { %6353 = vmatpush1.bf16.msra.mxu1 %v9127_v22  ;;  %v9181_v58 = vld [vmem:[%s10720_s27 + $0xd0] ss:$8 sps:$4 sm:$0xff]   ;;  %v9183_v60 = vld [vmem:[%s10720_s27 + $0xe4] ss:$8 sps:$4 sm:$0xff]   ;;  %v9187_v62 = vld [vmem:[%s10720_s27 + $0xe0] ss:$8 sps:$4 sm:$0xff]  }
  0x26   : > { %6968 = vmatpush1.bf16.msra.mxu0 %v9128_v23  ;;  %6354 = vmatprep.subr.bf16.mxu1 %v9129_v24  ;;  %v9182_v59 = vld [vmem:[%s10720_s27 + $0xfd0] ss:$8 sps:$4 sm:$0xff]   ;;  %v9185_v61 = vld [vmem:[%s10720_s27 + $0xfe4] ss:$8 sps:$4 sm:$0xff]   ;;  %v9188_v63 = vld [vmem:[%s10720_s27 + $0xfe0] ss:$8 sps:$4 sm:$0xff]  }
  0x27   : > { %6969 = vmatprep.subr.bf16.mxu0 %v9131_v25  ;;  %v9189_v2 = vld [vmem:[%s10720_s27 + $0xf4] ss:$8 sps:$4 sm:$0xff]   ;;  %v9193_v4 = vld [vmem:[%s10720_s27 + $0xf0] ss:$8 sps:$4 sm:$0xff]   ;;  %v9199_v6 = vld [vmem:[%s10720_s27 + $0x104] ss:$8 sps:$4 sm:$0xff]  }
  0x28   : > { %v9191_v3 = vld [vmem:[%s10720_s27 + $0xff4] ss:$8 sps:$4 sm:$0xff]   ;;  %v9194_v5 = vld [vmem:[%s10720_s27 + $0xff0] ss:$8 sps:$4 sm:$0xff]   ;;  %v9204_v7 = vld [vmem:[%s10720_s27 + $0x1004] ss:$8 sps:$4 sm:$0xff]  }
  0x29   : > { %6355 = vmatpush1.bf16.msra.mxu1 %v9133_v26  ;;  %v9197_v9 = vld [vmem:[%s10720_s27 + $0x100] ss:$8 sps:$4 sm:$0xff]   ;;  %v9207_v12 = vld [vmem:[%s10720_s27 + $0x114] ss:$8 sps:$4 sm:$0xff]   ;;  %v9205_v0 = vld [vmem:[%s10720_s27 + $0x110] ss:$8 sps:$4 sm:$0xff]  }
  0x2a   : > { %6970 = vmatpush1.bf16.msra.mxu0 %v9134_v27  ;;  %6356 = vmatprep.subr.bf16.mxu1 %v9135_v28  ;;  %v9202_v11 = vld [vmem:[%s10720_s27 + $0x1000] ss:$8 sps:$4 sm:$0xff]   ;;  %v9210_v13 = vld [vmem:[%s10720_s27 + $0x1014] ss:$8 sps:$4 sm:$0xff]   ;;  %v9208_v14 = vld [vmem:[%s10720_s27 + $0x1010] ss:$8 sps:$4 sm:$0xff]  }
  0x2b   : > { %6971 = vmatprep.subr.bf16.mxu0 %v9137_v29  ;;  %v9213_v1 = vld [vmem:[%s10720_s27 + $0x124] ss:$8 sps:$4 sm:$0xff]   ;;  %v9211_v16 = vld [vmem:[%s10720_s27 + $0x120] ss:$8 sps:$4 sm:$0xff]   ;;  %v9219_v18 = vld [vmem:[%s10720_s27 + $0x134] ss:$8 sps:$4 sm:$0xff]  }
  0x2c   : > { %v9216_v15 = vld [vmem:[%s10720_s27 + $0x1024] ss:$8 sps:$4 sm:$0xff]   ;;  %v9214_v17 = vld [vmem:[%s10720_s27 + $0x1020] ss:$8 sps:$4 sm:$0xff]   ;;  %v9222_v19 = vld [vmem:[%s10720_s27 + $0x1034] ss:$8 sps:$4 sm:$0xff]  }
  0x2d   : > { %6357 = vmatpush1.bf16.msra.mxu1 %v9139_v30  ;;  %v9217_v20 = vld [vmem:[%s10720_s27 + $0x130] ss:$8 sps:$4 sm:$0xff]   ;;  %v9225_v22 = vld [vmem:[%s10720_s27 + $0x144] ss:$8 sps:$4 sm:$0xff]   ;;  %v9223_v24 = vld [vmem:[%s10720_s27 + $0x140] ss:$8 sps:$4 sm:$0xff]  }
  0x2e   : > { %6972 = vmatpush1.bf16.msra.mxu0 %v9140_v31  ;;  %6358 = vmatprep.subr.bf16.mxu1 %v9141_v32  ;;  %v9220_v21 = vld [vmem:[%s10720_s27 + $0x1030] ss:$8 sps:$4 sm:$0xff]   ;;  %v9228_v23 = vld [vmem:[%s10720_s27 + $0x1044] ss:$8 sps:$4 sm:$0xff]   ;;  %v9226_v25 = vld [vmem:[%s10720_s27 + $0x1040] ss:$8 sps:$4 sm:$0xff]  }
  0x2f   : > { %6973 = vmatprep.subr.bf16.mxu0 %v9143_v33  ;;  %v9231_v26 = vld [vmem:[%s10720_s27 + $0x154] ss:$8 sps:$4 sm:$0xff]   ;;  %v9229_v28 = vld [vmem:[%s10720_s27 + $0x150] ss:$8 sps:$4 sm:$0xff]   ;;  %v9237_v30 = vld [vmem:[%s10720_s27 + $0x164] ss:$8 sps:$4 sm:$0xff]  }
  0x30   : > { %v9234_v27 = vld [vmem:[%s10720_s27 + $0x1054] ss:$8 sps:$4 sm:$0xff]   ;;  %v9232_v29 = vld [vmem:[%s10720_s27 + $0x1050] ss:$8 sps:$4 sm:$0xff]   ;;  %v9240_v31 = vld [vmem:[%s10720_s27 + $0x1064] ss:$8 sps:$4 sm:$0xff]  }
  0x31   : > { %6359 = vmatpush1.bf16.msra.mxu1 %v9145_v34  ;;  %v10819_v32 = vld [vmem:[%s11988_s0 + $0x8] sm:$0xff]  ;;  %v10826_v34 = vld [vmem:[%s11988_s0 + $0x80] sm:$0xff] }
  0x32   : > { %6974 = vmatpush1.bf16.msra.mxu0 %v9146_v35  ;;  %6360 = vmatprep.subr.bf16.mxu1 %v9147_v36  ;;  %v7885_v33 = vcombine.high %v10819_v32, %v10819_v32  ;;  %v9235_v35 = vld [vmem:[%s10720_s27 + $0x160] ss:$8 sps:$4 sm:$0xff]  }
  0x33   : > { %6975 = vmatprep.subr.bf16.mxu0 %v9149_v37  ;;  %v9238_v36 = vld [vmem:[%s10720_s27 + $0x1060] ss:$8 sps:$4 sm:$0xff]   ;;  %v7915_v37 = vcombine.high %v10826_v34, %v10826_v34 }
  0x35   : > { %6361 = vmatpush1.bf16.msra.mxu1 %v9151_v38  ;;  %v9243_v38 = vld [vmem:[%s10720_s27 + $0x174] ss:$8 sps:$4 sm:$0xff]  }
  0x36   : > { %6976 = vmatpush1.bf16.msra.mxu0 %v9152_v39  ;;  %6362 = vmatprep.subr.bf16.mxu1 %v9153_v40  ;;  %v9246_v39 = vld [vmem:[%s10720_s27 + $0x1074] ss:$8 sps:$4 sm:$0xff]   ;;  %v9241_v40 = vld [vmem:[%s10720_s27 + $0x170] ss:$8 sps:$4 sm:$0xff]  }
  0x37   : > { %6977 = vmatprep.subr.bf16.mxu0 %v9155_v41  ;;  %v9244_v41 = vld [vmem:[%s10720_s27 + $0x1070] ss:$8 sps:$4 sm:$0xff]  }
  0x39   : > { %6363 = vmatpush1.bf16.msra.mxu1 %v9157_v42  ;;  %v9249_v42 = vld [vmem:[%s10720_s27 + $0x184] ss:$8 sps:$4 sm:$0xff]  }
  0x3a   : > { %6978 = vmatpush1.bf16.msra.mxu0 %v9158_v43  ;;  %6364 = vmatprep.subr.bf16.mxu1 %v9159_v44  ;;  %v9252_v43 = vld [vmem:[%s10720_s27 + $0x1084] ss:$8 sps:$4 sm:$0xff]   ;;  %v9247_v44 = vld [vmem:[%s10720_s27 + $0x180] ss:$8 sps:$4 sm:$0xff]  }
  0x3b   : > { %6979 = vmatprep.subr.bf16.mxu0 %v9161_v45  ;;  %v9250_v45 = vld [vmem:[%s10720_s27 + $0x1080] ss:$8 sps:$4 sm:$0xff]  }
  0x3d   : > { %6365 = vmatpush1.bf16.msra.mxu1 %v9163_v46  ;;  %v9255_v46 = vld [vmem:[%s10720_s27 + $0x194] ss:$8 sps:$4 sm:$0xff]  }
  0x3e   : > { %6980 = vmatpush1.bf16.msra.mxu0 %v9164_v47  ;;  %6366 = vmatprep.subr.bf16.mxu1 %v9165_v48  ;;  %v9258_v47 = vld [vmem:[%s10720_s27 + $0x1094] ss:$8 sps:$4 sm:$0xff]   ;;  %v9253_v48 = vld [vmem:[%s10720_s27 + $0x190] ss:$8 sps:$4 sm:$0xff]  }
  0x3f   : > { %6981 = vmatprep.subr.bf16.mxu0 %v9167_v49  ;;  %v9256_v49 = vld [vmem:[%s10720_s27 + $0x1090] ss:$8 sps:$4 sm:$0xff]  }
  0x41   : > { %6367 = vmatpush1.bf16.msra.mxu1 %v9169_v50  ;;  %v9261_v50 = vld [vmem:[%s10720_s27 + $0x1a4] ss:$8 sps:$4 sm:$0xff]  }
  0x42   : > { %6982 = vmatpush1.bf16.msra.mxu0 %v9170_v51  ;;  %6368 = vmatprep.subr.bf16.mxu1 %v9171_v52  ;;  %v9264_v51 = vld [vmem:[%s10720_s27 + $0x10a4] ss:$8 sps:$4 sm:$0xff]   ;;  %v9259_v52 = vld [vmem:[%s10720_s27 + $0x1a0] ss:$8 sps:$4 sm:$0xff]  }
  0x43   : > { %6983 = vmatprep.subr.bf16.mxu0 %v9173_v53  ;;  %v9262_v53 = vld [vmem:[%s10720_s27 + $0x10a0] ss:$8 sps:$4 sm:$0xff]  }
  0x45   : > { %6369 = vmatpush1.bf16.msra.mxu1 %v9175_v54  ;;  %v9267_v54 = vld [vmem:[%s10720_s27 + $0x1b4] ss:$8 sps:$4 sm:$0xff]  }
  0x46   : > { %6984 = vmatpush1.bf16.msra.mxu0 %v9176_v55  ;;  %6370 = vmatprep.subr.bf16.mxu1 %v9177_v56  ;;  %v9270_v55 = vld [vmem:[%s10720_s27 + $0x10b4] ss:$8 sps:$4 sm:$0xff]   ;;  %v9265_v56 = vld [vmem:[%s10720_s27 + $0x1b0] ss:$8 sps:$4 sm:$0xff]  }
  0x47   : > { %6985 = vmatprep.subr.bf16.mxu0 %v9179_v57  ;;  %v9268_v57 = vld [vmem:[%s10720_s27 + $0x10b0] ss:$8 sps:$4 sm:$0xff]  }
  0x49   : > { %6371 = vmatpush1.bf16.msra.mxu1 %v9181_v58  ;;  %v9273_v58 = vld [vmem:[%s10720_s27 + $0x1c4] ss:$8 sps:$4 sm:$0xff]  }
  0x4a   : > { %6986 = vmatpush1.bf16.msra.mxu0 %v9182_v59  ;;  %6372 = vmatprep.subr.bf16.mxu1 %v9183_v60  ;;  %v9276_v59 = vld [vmem:[%s10720_s27 + $0x10c4] ss:$8 sps:$4 sm:$0xff]   ;;  %v9271_v60 = vld [vmem:[%s10720_s27 + $0x1c0] ss:$8 sps:$4 sm:$0xff]  }
  0x4b   : > { %6987 = vmatprep.subr.bf16.mxu0 %v9185_v61  ;;  %v9274_v61 = vld [vmem:[%s10720_s27 + $0x10c0] ss:$8 sps:$4 sm:$0xff]  }
  0x4d   : > { %6373 = vmatpush1.bf16.msra.mxu1 %v9187_v62  ;;  %v9279_v62 = vld [vmem:[%s10720_s27 + $0x1d4] ss:$8 sps:$4 sm:$0xff]  }
  0x4e   : > { %6988 = vmatpush1.bf16.msra.mxu0 %v9188_v63  ;;  %6374 = vmatprep.subr.bf16.mxu1 %v9189_v2  ;;  %v9282_v63 = vld [vmem:[%s10720_s27 + $0x10d4] ss:$8 sps:$4 sm:$0xff]   ;;  %v9277_v2 = vld [vmem:[%s10720_s27 + $0x1d0] ss:$8 sps:$4 sm:$0xff]  }
  0x4f   : > { %6989 = vmatprep.subr.bf16.mxu0 %v9191_v3  ;;  %v9280_v3 = vld [vmem:[%s10720_s27 + $0x10d0] ss:$8 sps:$4 sm:$0xff]  }
  0x51   : > { %6375 = vmatpush1.bf16.msra.mxu1 %v9193_v4  ;;  %v9285_v4 = vld [vmem:[%s10720_s27 + $0x1e4] ss:$8 sps:$4 sm:$0xff]  }
  0x52   : > { %6990 = vmatpush1.bf16.msra.mxu0 %v9194_v5  ;;  %6385 = vmatprep.subr.bf16.mxu1 %v9199_v6  ;;  %v9288_v5 = vld [vmem:[%s10720_s27 + $0x10e4] ss:$8 sps:$4 sm:$0xff]   ;;  %v9283_v6 = vld [vmem:[%s10720_s27 + $0x1e0] ss:$8 sps:$4 sm:$0xff]  }
  0x53   : > { %7000 = vmatprep.subr.bf16.mxu0 %v9204_v7  ;;  %v9286_v7 = vld [vmem:[%s10720_s27 + $0x10e0] ss:$8 sps:$4 sm:$0xff]  }
  0x54   : > { %6377 = vmatmul.mubr.bf16.vlgmr.msra.gmra.mrb[0].mxu1 %v7882_v8  ;;  %v9291_v8 = vld [vmem:[%s10720_s27 + $0x1f4] ss:$8 sps:$4 sm:$0xff]  }
  0x55   : > { %6992 = vmatmul.mubr.bf16.vlgmr.msra.gmra.mrb[0].mxu0 %v7912_v10  ;;  %6386 = vmatpush1.bf16.msra.mxu1 %v9197_v9  ;;  %v9294_v9 = vld [vmem:[%s10720_s27 + $0x10f4] ss:$8 sps:$4 sm:$0xff]   ;;  %v9289_v10 = vld [vmem:[%s10720_s27 + $0x1f0] ss:$8 sps:$4 sm:$0xff]  }
  0x56   : > { %7001 = vmatpush1.bf16.msra.mxu0 %v9202_v11  ;;  %6387 = vmatprep.subr.bf16.mxu1 %v9207_v12  ;;  %v9292_v11 = vld [vmem:[%s10720_s27 + $0x10f0] ss:$8 sps:$4 sm:$0xff]   ;;  %v9299_v12 = vld [vmem:[%s10720_s27 + $0x204] ss:$8 sps:$4 sm:$0xff]  }
  0x57   : > { %7002 = vmatprep.subr.bf16.mxu0 %v9210_v13  ;;  %6417 = vmatprep.mubr.bf16.mxu1 %v7885_v33  ;;  %v9304_v13 = vld [vmem:[%s10720_s27 + $0x1104] ss:$8 sps:$4 sm:$0xff]  }
  0x58   : > { %7032 = vmatprep.mubr.bf16.mxu0 %v7915_v37  ;;  %v9328_v33 = vld [vmem:[%s10720_s27 + $0x1144] ss:$8 sps:$4 sm:$0xff]   ;;  %v9334_v37 = vld [vmem:[%s10720_s27 + $0x1154] ss:$8 sps:$4 sm:$0xff]  }
  0x59   : > { %6388 = vmatpush1.bf16.msra.mxu1 %v9205_v0  ;;  %v7884_v0 = vcombine.low %v10819_v32, %v10819_v32  ;;  %v9325_v32 = vld [vmem:[%s10720_s27 + $0x244] ss:$8 sps:$4 sm:$0xff]  }
  0x5a   : > { %7003 = vmatpush1.bf16.msra.mxu0 %v9208_v14  ;;  %6389 = vmatprep.subr.bf16.mxu1 %v9213_v1  ;;  %v9297_v14 = vld [vmem:[%s10720_s27 + $0x200] ss:$8 sps:$4 sm:$0xff]   ;;  %v7914_v1 = vcombine.low %v10826_v34, %v10826_v34 }
  0x5b   : > { %7004 = vmatprep.subr.bf16.mxu0 %v9216_v15  ;;  %v9302_v15 = vld [vmem:[%s10720_s27 + $0x1100] ss:$8 sps:$4 sm:$0xff]  }
  0x5c   : > { %v9323_v34 = vld [vmem:[%s10720_s27 + $0x240] ss:$8 sps:$4 sm:$0xff]  }
  0x5d   : > { %6390 = vmatpush1.bf16.msra.mxu1 %v9211_v16  ;;  %v9307_v16 = vld [vmem:[%s10720_s27 + $0x214] ss:$8 sps:$4 sm:$0xff]  }
  0x5e   : > { %7005 = vmatpush1.bf16.msra.mxu0 %v9214_v17  ;;  %6391 = vmatprep.subr.bf16.mxu1 %v9219_v18  ;;  %v10880_v17 = vld [vmem:[%s11988_s0 + $0x10] sm:$0xff] }
  0x5f   : > { %7006 = vmatprep.subr.bf16.mxu0 %v9222_v19  ;;  %v9310_v18 = vld [vmem:[%s10720_s27 + $0x1114] ss:$8 sps:$4 sm:$0xff]   ;;  %v7887_v19 = vcombine.high %v10880_v17, %v10880_v17 }
  0x61   : > { %6392 = vmatpush1.bf16.msra.mxu1 %v9217_v20  ;;  %v10888_v20 = vld [vmem:[%s11988_s0 + $0x88] sm:$0xff] }
  0x62   : > { %7007 = vmatpush1.bf16.msra.mxu0 %v9220_v21  ;;  %6393 = vmatprep.subr.bf16.mxu1 %v9225_v22  ;;  %v9305_v21 = vld [vmem:[%s10720_s27 + $0x210] ss:$8 sps:$4 sm:$0xff]  }
  0x63   : > { %7008 = vmatprep.subr.bf16.mxu0 %v9228_v23  ;;  %v9308_v22 = vld [vmem:[%s10720_s27 + $0x1110] ss:$8 sps:$4 sm:$0xff]   ;;  %v7917_v23 = vcombine.high %v10888_v20, %v10888_v20 }
  0x65   : > { %6394 = vmatpush1.bf16.msra.mxu1 %v9223_v24  ;;  %v9313_v24 = vld [vmem:[%s10720_s27 + $0x224] ss:$8 sps:$4 sm:$0xff]  }
  0x66   : > { %7009 = vmatpush1.bf16.msra.mxu0 %v9226_v25  ;;  %6395 = vmatprep.subr.bf16.mxu1 %v9231_v26  ;;  %v9316_v25 = vld [vmem:[%s10720_s27 + $0x1124] ss:$8 sps:$4 sm:$0xff]   ;;  %v9311_v26 = vld [vmem:[%s10720_s27 + $0x220] ss:$8 sps:$4 sm:$0xff]  }
  0x67   : > { %7010 = vmatprep.subr.bf16.mxu0 %v9234_v27  ;;  %v9314_v27 = vld [vmem:[%s10720_s27 + $0x1120] ss:$8 sps:$4 sm:$0xff]  }
  0x69   : > { %6396 = vmatpush1.bf16.msra.mxu1 %v9229_v28  ;;  %v9319_v28 = vld [vmem:[%s10720_s27 + $0x234] ss:$8 sps:$4 sm:$0xff]  }
  0x6a   : > { %7011 = vmatpush1.bf16.msra.mxu0 %v9232_v29  ;;  %6397 = vmatprep.subr.bf16.mxu1 %v9237_v30  ;;  %v9322_v29 = vld [vmem:[%s10720_s27 + $0x1134] ss:$8 sps:$4 sm:$0xff]   ;;  %v9317_v30 = vld [vmem:[%s10720_s27 + $0x230] ss:$8 sps:$4 sm:$0xff]  }
  0x6b   : > { %7012 = vmatprep.subr.bf16.mxu0 %v9240_v31  ;;  %v9320_v31 = vld [vmem:[%s10720_s27 + $0x1130] ss:$8 sps:$4 sm:$0xff]  }
  0x6d   : > { %6398 = vmatpush1.bf16.msra.mxu1 %v9235_v35  ;;  %v9326_v35 = vld [vmem:[%s10720_s27 + $0x1140] ss:$8 sps:$4 sm:$0xff]  }
  0x6e   : > { %7013 = vmatpush1.bf16.msra.mxu0 %v9238_v36  ;;  %6399 = vmatprep.subr.bf16.mxu1 %v9243_v38  ;;  %v9331_v36 = vld [vmem:[%s10720_s27 + $0x254] ss:$8 sps:$4 sm:$0xff]   ;;  %v9329_v38 = vld [vmem:[%s10720_s27 + $0x250] ss:$8 sps:$4 sm:$0xff]  }
  0x6f   : > { %7014 = vmatprep.subr.bf16.mxu0 %v9246_v39  ;;  %v9332_v39 = vld [vmem:[%s10720_s27 + $0x1150] ss:$8 sps:$4 sm:$0xff]  }
  0x71   : > { %6400 = vmatpush1.bf16.msra.mxu1 %v9241_v40  ;;  %v9337_v40 = vld [vmem:[%s10720_s27 + $0x264] ss:$8 sps:$4 sm:$0xff]  }
  0x72   : > { %7015 = vmatpush1.bf16.msra.mxu0 %v9244_v41  ;;  %6401 = vmatprep.subr.bf16.mxu1 %v9249_v42  ;;  %v9340_v41 = vld [vmem:[%s10720_s27 + $0x1164] ss:$8 sps:$4 sm:$0xff]   ;;  %v9335_v42 = vld [vmem:[%s10720_s27 + $0x260] ss:$8 sps:$4 sm:$0xff]  }
  0x73   : > { %7016 = vmatprep.subr.bf16.mxu0 %v9252_v43  ;;  %v9338_v43 = vld [vmem:[%s10720_s27 + $0x1160] ss:$8 sps:$4 sm:$0xff]  }
  0x75   : > { %6402 = vmatpush1.bf16.msra.mxu1 %v9247_v44  ;;  %v9343_v44 = vld [vmem:[%s10720_s27 + $0x274] ss:$8 sps:$4 sm:$0xff]  }
  0x76   : > { %7017 = vmatpush1.bf16.msra.mxu0 %v9250_v45  ;;  %6403 = vmatprep.subr.bf16.mxu1 %v9255_v46  ;;  %v9346_v45 = vld [vmem:[%s10720_s27 + $0x1174] ss:$8 sps:$4 sm:$0xff]   ;;  %v9341_v46 = vld [vmem:[%s10720_s27 + $0x270] ss:$8 sps:$4 sm:$0xff]  }
  0x77   : > { %7018 = vmatprep.subr.bf16.mxu0 %v9258_v47  ;;  %v9344_v47 = vld [vmem:[%s10720_s27 + $0x1170] ss:$8 sps:$4 sm:$0xff]  }
  0x79   : > { %6404 = vmatpush1.bf16.msra.mxu1 %v9253_v48  ;;  %v9349_v48 = vld [vmem:[%s10720_s27 + $0x284] ss:$8 sps:$4 sm:$0xff]  }
  0x7a   : > { %7019 = vmatpush1.bf16.msra.mxu0 %v9256_v49  ;;  %6405 = vmatprep.subr.bf16.mxu1 %v9261_v50  ;;  %v9352_v49 = vld [vmem:[%s10720_s27 + $0x1184] ss:$8 sps:$4 sm:$0xff]   ;;  %v9347_v50 = vld [vmem:[%s10720_s27 + $0x280] ss:$8 sps:$4 sm:$0xff]  }
  0x7b   : > { %7020 = vmatprep.subr.bf16.mxu0 %v9264_v51  ;;  %v9350_v51 = vld [vmem:[%s10720_s27 + $0x1180] ss:$8 sps:$4 sm:$0xff]  }
  0x7d   : > { %6406 = vmatpush1.bf16.msra.mxu1 %v9259_v52  ;;  %v9355_v52 = vld [vmem:[%s10720_s27 + $0x294] ss:$8 sps:$4 sm:$0xff]  }
  0x7e   : > { %7021 = vmatpush1.bf16.msra.mxu0 %v9262_v53  ;;  %6407 = vmatprep.subr.bf16.mxu1 %v9267_v54  ;;  %v9358_v53 = vld [vmem:[%s10720_s27 + $0x1194] ss:$8 sps:$4 sm:$0xff]   ;;  %v9353_v54 = vld [vmem:[%s10720_s27 + $0x290] ss:$8 sps:$4 sm:$0xff]  }
  0x7f   : > { %7022 = vmatprep.subr.bf16.mxu0 %v9270_v55  ;;  %v9356_v55 = vld [vmem:[%s10720_s27 + $0x1190] ss:$8 sps:$4 sm:$0xff]  }
  0x81   : > { %6408 = vmatpush1.bf16.msra.mxu1 %v9265_v56  ;;  %v9361_v56 = vld [vmem:[%s10720_s27 + $0x2a4] ss:$8 sps:$4 sm:$0xff]  }
  0x82   : > { %7023 = vmatpush1.bf16.msra.mxu0 %v9268_v57  ;;  %6409 = vmatprep.subr.bf16.mxu1 %v9273_v58  ;;  %v9364_v57 = vld [vmem:[%s10720_s27 + $0x11a4] ss:$8 sps:$4 sm:$0xff]   ;;  %v9359_v58 = vld [vmem:[%s10720_s27 + $0x2a0] ss:$8 sps:$4 sm:$0xff]  }
  0x83   : > { %7024 = vmatprep.subr.bf16.mxu0 %v9276_v59  ;;  %v9362_v59 = vld [vmem:[%s10720_s27 + $0x11a0] ss:$8 sps:$4 sm:$0xff]  }
  0x85   : > { %6410 = vmatpush1.bf16.msra.mxu1 %v9271_v60  ;;  %v9367_v60 = vld [vmem:[%s10720_s27 + $0x2b4] ss:$8 sps:$4 sm:$0xff]  }
  0x86   : > { %7025 = vmatpush1.bf16.msra.mxu0 %v9274_v61  ;;  %6411 = vmatprep.subr.bf16.mxu1 %v9279_v62  ;;  %v9370_v61 = vld [vmem:[%s10720_s27 + $0x11b4] ss:$8 sps:$4 sm:$0xff]   ;;  %v9365_v62 = vld [vmem:[%s10720_s27 + $0x2b0] ss:$8 sps:$4 sm:$0xff]  }
  0x87   : > { %7026 = vmatprep.subr.bf16.mxu0 %v9282_v63  ;;  %v9368_v63 = vld [vmem:[%s10720_s27 + $0x11b0] ss:$8 sps:$4 sm:$0xff]  }
  0x89   : > { %6412 = vmatpush1.bf16.msra.mxu1 %v9277_v2  ;;  %v9373_v2 = vld [vmem:[%s10720_s27 + $0x2c4] ss:$8 sps:$4 sm:$0xff]  }
  0x8a   : > { %7027 = vmatpush1.bf16.msra.mxu0 %v9280_v3  ;;  %6413 = vmatprep.subr.bf16.mxu1 %v9285_v4  ;;  %v9376_v3 = vld [vmem:[%s10720_s27 + $0x11c4] ss:$8 sps:$4 sm:$0xff]   ;;  %v9371_v4 = vld [vmem:[%s10720_s27 + $0x2c0] ss:$8 sps:$4 sm:$0xff]  }
  0x8b   : > { %7028 = vmatprep.subr.bf16.mxu0 %v9288_v5  ;;  %v9374_v5 = vld [vmem:[%s10720_s27 + $0x11c0] ss:$8 sps:$4 sm:$0xff]  }
  0x8d   : > { %6414 = vmatpush1.bf16.msra.mxu1 %v9283_v6  ;;  %v9379_v6 = vld [vmem:[%s10720_s27 + $0x2d4] ss:$8 sps:$4 sm:$0xff]  }
  0x8e   : > { %7029 = vmatpush1.bf16.msra.mxu0 %v9286_v7  ;;  %6415 = vmatprep.subr.bf16.mxu1 %v9291_v8  ;;  %v9382_v7 = vld [vmem:[%s10720_s27 + $0x11d4] ss:$8 sps:$4 sm:$0xff]   ;;  %v9377_v8 = vld [vmem:[%s10720_s27 + $0x2d0] ss:$8 sps:$4 sm:$0xff]  }
  0x8f   : > { %7030 = vmatprep.subr.bf16.mxu0 %v9294_v9  ;;  %v9380_v9 = vld [vmem:[%s10720_s27 + $0x11d0] ss:$8 sps:$4 sm:$0xff]  }
  0x91   : > { %6416 = vmatpush1.bf16.msra.mxu1 %v9289_v10  ;;  %v9385_v10 = vld [vmem:[%s10720_s27 + $0x2e4] ss:$8 sps:$4 sm:$0xff]  }
  0x92   : > { %7031 = vmatpush1.bf16.msra.mxu0 %v9292_v11  ;;  %6426 = vmatprep.subr.bf16.mxu1 %v9299_v12  ;;  %v9388_v11 = vld [vmem:[%s10720_s27 + $0x11e4] ss:$8 sps:$4 sm:$0xff]   ;;  %v9383_v12 = vld [vmem:[%s10720_s27 + $0x2e0] ss:$8 sps:$4 sm:$0xff]  }
  0x93   : > { %7041 = vmatprep.subr.bf16.mxu0 %v9304_v13  ;;  %v9386_v13 = vld [vmem:[%s10720_s27 + $0x11e0] ss:$8 sps:$4 sm:$0xff]  }
  0x94   : > { %6418 = vmatmul.mubr.bf16.vlgmr.msra.gmra.mrb[0].mxu1 %v7884_v0  ;;  %v9391_v0 = vld [vmem:[%s10720_s27 + $0x2f4] ss:$8 sps:$4 sm:$0xff]  }
  0x95   : > { %7033 = vmatmul.mubr.bf16.vlgmr.msra.gmra.mrb[0].mxu0 %v7914_v1  ;;  %6427 = vmatpush1.bf16.msra.mxu1 %v9297_v14  ;;  %v9394_v14 = vld [vmem:[%s10720_s27 + $0x11f4] ss:$8 sps:$4 sm:$0xff]   ;;  %v9389_v1 = vld [vmem:[%s10720_s27 + $0x2f0] ss:$8 sps:$4 sm:$0xff]  }
  0x96   : > { %7042 = vmatpush1.bf16.msra.mxu0 %v9302_v15  ;;  %6428 = vmatprep.subr.bf16.mxu1 %v9307_v16  ;;  %v9392_v15 = vld [vmem:[%s10720_s27 + $0x11f0] ss:$8 sps:$4 sm:$0xff]   ;;  %v9399_v16 = vld [vmem:[%s10720_s27 + $0x304] ss:$8 sps:$4 sm:$0xff]  }
  0x97   : > { %7043 = vmatprep.subr.bf16.mxu0 %v9310_v18  ;;  %6458 = vmatprep.mubr.bf16.mxu1 %v7887_v19  ;;  %v9404_v18 = vld [vmem:[%s10720_s27 + $0x1204] ss:$8 sps:$4 sm:$0xff]   ;;  %v10955_v19 = vld [vmem:[%s11988_s0 + $0x18] sm:$0xff] }
  0x98   : > { %7073 = vmatprep.mubr.bf16.mxu0 %v7917_v23  ;;  %v10964_v23 = vld [vmem:[%s11988_s0 + $0x90] sm:$0xff] }
  0x99   : > { %6429 = vmatpush1.bf16.msra.mxu1 %v9305_v21  ;;  %v7886_v21 = vcombine.low %v10880_v17, %v10880_v17  ;;  %v9410_v17 = vld [vmem:[%s10720_s27 + $0x1214] ss:$8 sps:$4 sm:$0xff]  }
  0x9a   : > { %7044 = vmatpush1.bf16.msra.mxu0 %v9308_v22  ;;  %6430 = vmatprep.subr.bf16.mxu1 %v9313_v24  ;;  %v7916_v22 = vcombine.low %v10888_v20, %v10888_v20  ;;  %v9397_v24 = vld [vmem:[%s10720_s27 + $0x300] ss:$8 sps:$4 sm:$0xff]   ;;  %v7889_v20 = vcombine.high %v10955_v19, %v10955_v19 }
  0x9b   : > { %7045 = vmatprep.subr.bf16.mxu0 %v9316_v25  ;;  %v9402_v25 = vld [vmem:[%s10720_s27 + $0x1200] ss:$8 sps:$4 sm:$0xff]  }
  0x9d   : > { %6431 = vmatpush1.bf16.msra.mxu1 %v9311_v26  ;;  %v9407_v26 = vld [vmem:[%s10720_s27 + $0x314] ss:$8 sps:$4 sm:$0xff]  }
  0x9e   : > { %7046 = vmatpush1.bf16.msra.mxu0 %v9314_v27  ;;  %6432 = vmatprep.subr.bf16.mxu1 %v9319_v28  ;;  %v7919_v27 = vcombine.high %v10964_v23, %v10964_v23  ;;  %v9405_v28 = vld [vmem:[%s10720_s27 + $0x310] ss:$8 sps:$4 sm:$0xff]  }
  0x9f   : > { %7047 = vmatprep.subr.bf16.mxu0 %v9322_v29  ;;  %v9408_v29 = vld [vmem:[%s10720_s27 + $0x1210] ss:$8 sps:$4 sm:$0xff]  }
  0xa1   : > { %6433 = vmatpush1.bf16.msra.mxu1 %v9317_v30  ;;  %v9413_v30 = vld [vmem:[%s10720_s27 + $0x324] ss:$8 sps:$4 sm:$0xff]  }
  0xa2   : > { %7048 = vmatpush1.bf16.msra.mxu0 %v9320_v31  ;;  %6434 = vmatprep.subr.bf16.mxu1 %v9325_v32  ;;  %v9416_v31 = vld [vmem:[%s10720_s27 + $0x1224] ss:$8 sps:$4 sm:$0xff]   ;;  %v9411_v32 = vld [vmem:[%s10720_s27 + $0x320] ss:$8 sps:$4 sm:$0xff]  }
  0xa3   : > { %7049 = vmatprep.subr.bf16.mxu0 %v9328_v33  ;;  %v9414_v33 = vld [vmem:[%s10720_s27 + $0x1220] ss:$8 sps:$4 sm:$0xff]  }
  0xa5   : > { %6435 = vmatpush1.bf16.msra.mxu1 %v9323_v34  ;;  %v9419_v34 = vld [vmem:[%s10720_s27 + $0x334] ss:$8 sps:$4 sm:$0xff]  }
  0xa6   : > { %7050 = vmatpush1.bf16.msra.mxu0 %v9326_v35  ;;  %6436 = vmatprep.subr.bf16.mxu1 %v9331_v36  ;;  %v9422_v35 = vld [vmem:[%s10720_s27 + $0x1234] ss:$8 sps:$4 sm:$0xff]   ;;  %v9417_v36 = vld [vmem:[%s10720_s27 + $0x330] ss:$8 sps:$4 sm:$0xff]  }
  0xa7   : > { %7051 = vmatprep.subr.bf16.mxu0 %v9334_v37  ;;  %v9420_v37 = vld [vmem:[%s10720_s27 + $0x1230] ss:$8 sps:$4 sm:$0xff]  }
  0xa9   : > { %6437 = vmatpush1.bf16.msra.mxu1 %v9329_v38  ;;  %v9425_v38 = vld [vmem:[%s10720_s27 + $0x344] ss:$8 sps:$4 sm:$0xff]  }
  0xaa   : > { %7052 = vmatpush1.bf16.msra.mxu0 %v9332_v39  ;;  %6438 = vmatprep.subr.bf16.mxu1 %v9337_v40  ;;  %v9428_v39 = vld [vmem:[%s10720_s27 + $0x1244] ss:$8 sps:$4 sm:$0xff]   ;;  %v9423_v40 = vld [vmem:[%s10720_s27 + $0x340] ss:$8 sps:$4 sm:$0xff]  }
  0xab   : > { %7053 = vmatprep.subr.bf16.mxu0 %v9340_v41  ;;  %v9426_v41 = vld [vmem:[%s10720_s27 + $0x1240] ss:$8 sps:$4 sm:$0xff]  }
  0xad   : > { %6439 = vmatpush1.bf16.msra.mxu1 %v9335_v42  ;;  %v9431_v42 = vld [vmem:[%s10720_s27 + $0x354] ss:$8 sps:$4 sm:$0xff]  }
  0xae   : > { %7054 = vmatpush1.bf16.msra.mxu0 %v9338_v43  ;;  %6440 = vmatprep.subr.bf16.mxu1 %v9343_v44  ;;  %v9434_v43 = vld [vmem:[%s10720_s27 + $0x1254] ss:$8 sps:$4 sm:$0xff]   ;;  %v9429_v44 = vld [vmem:[%s10720_s27 + $0x350] ss:$8 sps:$4 sm:$0xff]  }
  0xaf   : > { %7055 = vmatprep.subr.bf16.mxu0 %v9346_v45  ;;  %v9432_v45 = vld [vmem:[%s10720_s27 + $0x1250] ss:$8 sps:$4 sm:$0xff]  }
  0xb1   : > { %6441 = vmatpush1.bf16.msra.mxu1 %v9341_v46  ;;  %v9437_v46 = vld [vmem:[%s10720_s27 + $0x364] ss:$8 sps:$4 sm:$0xff]  }
  0xb2   : > { %7056 = vmatpush1.bf16.msra.mxu0 %v9344_v47  ;;  %6442 = vmatprep.subr.bf16.mxu1 %v9349_v48  ;;  %v9440_v47 = vld [vmem:[%s10720_s27 + $0x1264] ss:$8 sps:$4 sm:$0xff]   ;;  %v9435_v48 = vld [vmem:[%s10720_s27 + $0x360] ss:$8 sps:$4 sm:$0xff]  }
  0xb3   : > { %7057 = vmatprep.subr.bf16.mxu0 %v9352_v49  ;;  %v9438_v49 = vld [vmem:[%s10720_s27 + $0x1260] ss:$8 sps:$4 sm:$0xff]  }
  0xb5   : > { %6443 = vmatpush1.bf16.msra.mxu1 %v9347_v50  ;;  %v9443_v50 = vld [vmem:[%s10720_s27 + $0x374] ss:$8 sps:$4 sm:$0xff]  }
  0xb6   : > { %7058 = vmatpush1.bf16.msra.mxu0 %v9350_v51  ;;  %6444 = vmatprep.subr.bf16.mxu1 %v9355_v52  ;;  %v9446_v51 = vld [vmem:[%s10720_s27 + $0x1274] ss:$8 sps:$4 sm:$0xff]   ;;  %v9441_v52 = vld [vmem:[%s10720_s27 + $0x370] ss:$8 sps:$4 sm:$0xff]  }
  0xb7   : > { %7059 = vmatprep.subr.bf16.mxu0 %v9358_v53  ;;  %v9444_v53 = vld [vmem:[%s10720_s27 + $0x1270] ss:$8 sps:$4 sm:$0xff]  }
  0xb9   : > { %6445 = vmatpush1.bf16.msra.mxu1 %v9353_v54  ;;  %v9449_v54 = vld [vmem:[%s10720_s27 + $0x384] ss:$8 sps:$4 sm:$0xff]  }
  0xba   : > { %7060 = vmatpush1.bf16.msra.mxu0 %v9356_v55  ;;  %6446 = vmatprep.subr.bf16.mxu1 %v9361_v56  ;;  %v9452_v55 = vld [vmem:[%s10720_s27 + $0x1284] ss:$8 sps:$4 sm:$0xff]   ;;  %v9447_v56 = vld [vmem:[%s10720_s27 + $0x380] ss:$8 sps:$4 sm:$0xff]  }
  0xbb   : > { %7061 = vmatprep.subr.bf16.mxu0 %v9364_v57  ;;  %v9450_v57 = vld [vmem:[%s10720_s27 + $0x1280] ss:$8 sps:$4 sm:$0xff]  }
  0xbd   : > { %6447 = vmatpush1.bf16.msra.mxu1 %v9359_v58  ;;  %v9455_v58 = vld [vmem:[%s10720_s27 + $0x394] ss:$8 sps:$4 sm:$0xff]  }
  0xbe   : > { %7062 = vmatpush1.bf16.msra.mxu0 %v9362_v59  ;;  %6448 = vmatprep.subr.bf16.mxu1 %v9367_v60  ;;  %v9458_v59 = vld [vmem:[%s10720_s27 + $0x1294] ss:$8 sps:$4 sm:$0xff]   ;;  %v9453_v60 = vld [vmem:[%s10720_s27 + $0x390] ss:$8 sps:$4 sm:$0xff]  }
  0xbf   : > { %7063 = vmatprep.subr.bf16.mxu0 %v9370_v61  ;;  %v9456_v61 = vld [vmem:[%s10720_s27 + $0x1290] ss:$8 sps:$4 sm:$0xff]  }
  0xc1   : > { %6449 = vmatpush1.bf16.msra.mxu1 %v9365_v62  ;;  %v9461_v62 = vld [vmem:[%s10720_s27 + $0x3a4] ss:$8 sps:$4 sm:$0xff]  }
  0xc2   : > { %7064 = vmatpush1.bf16.msra.mxu0 %v9368_v63  ;;  %6450 = vmatprep.subr.bf16.mxu1 %v9373_v2  ;;  %v9464_v63 = vld [vmem:[%s10720_s27 + $0x12a4] ss:$8 sps:$4 sm:$0xff]   ;;  %v9459_v2 = vld [vmem:[%s10720_s27 + $0x3a0] ss:$8 sps:$4 sm:$0xff]  }
  0xc3   : > { %7065 = vmatprep.subr.bf16.mxu0 %v9376_v3  ;;  %v9462_v3 = vld [vmem:[%s10720_s27 + $0x12a0] ss:$8 sps:$4 sm:$0xff]  }
  0xc5   : > { %6451 = vmatpush1.bf16.msra.mxu1 %v9371_v4  ;;  %v9467_v4 = vld [vmem:[%s10720_s27 + $0x3b4] ss:$8 sps:$4 sm:$0xff]  }
  0xc6   : > { %7066 = vmatpush1.bf16.msra.mxu0 %v9374_v5  ;;  %6452 = vmatprep.subr.bf16.mxu1 %v9379_v6  ;;  %v9470_v5 = vld [vmem:[%s10720_s27 + $0x12b4] ss:$8 sps:$4 sm:$0xff]   ;;  %v9465_v6 = vld [vmem:[%s10720_s27 + $0x3b0] ss:$8 sps:$4 sm:$0xff]  }
  0xc7   : > { %7067 = vmatprep.subr.bf16.mxu0 %v9382_v7  ;;  %v9468_v7 = vld [vmem:[%s10720_s27 + $0x12b0] ss:$8 sps:$4 sm:$0xff]  }
  0xc9   : > { %6453 = vmatpush1.bf16.msra.mxu1 %v9377_v8  ;;  %v9473_v8 = vld [vmem:[%s10720_s27 + $0x3c4] ss:$8 sps:$4 sm:$0xff]  }
  0xca   : > { %7068 = vmatpush1.bf16.msra.mxu0 %v9380_v9  ;;  %6454 = vmatprep.subr.bf16.mxu1 %v9385_v10  ;;  %v9476_v9 = vld [vmem:[%s10720_s27 + $0x12c4] ss:$8 sps:$4 sm:$0xff]   ;;  %v9471_v10 = vld [vmem:[%s10720_s27 + $0x3c0] ss:$8 sps:$4 sm:$0xff]  }
  0xcb   : > { %7069 = vmatprep.subr.bf16.mxu0 %v9388_v11  ;;  %v9474_v11 = vld [vmem:[%s10720_s27 + $0x12c0] ss:$8 sps:$4 sm:$0xff]  }
  0xcd   : > { %6455 = vmatpush1.bf16.msra.mxu1 %v9383_v12  ;;  %v9479_v12 = vld [vmem:[%s10720_s27 + $0x3d4] ss:$8 sps:$4 sm:$0xff]  }
  0xce   : > { %7070 = vmatpush1.bf16.msra.mxu0 %v9386_v13  ;;  %6456 = vmatprep.subr.bf16.mxu1 %v9391_v0  ;;  %v9482_v13 = vld [vmem:[%s10720_s27 + $0x12d4] ss:$8 sps:$4 sm:$0xff]   ;;  %v9477_v0 = vld [vmem:[%s10720_s27 + $0x3d0] ss:$8 sps:$4 sm:$0xff]  }
  0xcf   : > { %7071 = vmatprep.subr.bf16.mxu0 %v9394_v14  ;;  %v9480_v14 = vld [vmem:[%s10720_s27 + $0x12d0] ss:$8 sps:$4 sm:$0xff]  }
  0xd1   : > { %6457 = vmatpush1.bf16.msra.mxu1 %v9389_v1  ;;  %v9485_v1 = vld [vmem:[%s10720_s27 + $0x3e4] ss:$8 sps:$4 sm:$0xff]  }
  0xd2   : > { %7072 = vmatpush1.bf16.msra.mxu0 %v9392_v15  ;;  %6467 = vmatprep.subr.bf16.mxu1 %v9399_v16  ;;  %v9488_v15 = vld [vmem:[%s10720_s27 + $0x12e4] ss:$8 sps:$4 sm:$0xff]   ;;  %v9483_v16 = vld [vmem:[%s10720_s27 + $0x3e0] ss:$8 sps:$4 sm:$0xff]  }
  0xd3   : > { %7082 = vmatprep.subr.bf16.mxu0 %v9404_v18  ;;  %v9486_v18 = vld [vmem:[%s10720_s27 + $0x12e0] ss:$8 sps:$4 sm:$0xff]  }
  0xd4   : > { %6459 = vmatmul.mubr.bf16.vlgmr.msra.gmra.mrb[0].mxu1 %v7886_v21  ;;  %v9491_v21 = vld [vmem:[%s10720_s27 + $0x3f4] ss:$8 sps:$4 sm:$0xff]  }
  0xd5   : > { %7074 = vmatmul.mubr.bf16.vlgmr.msra.gmra.mrb[0].mxu0 %v7916_v22  ;;  %6468 = vmatpush1.bf16.msra.mxu1 %v9397_v24  ;;  %v9494_v22 = vld [vmem:[%s10720_s27 + $0x12f4] ss:$8 sps:$4 sm:$0xff]   ;;  %v9489_v24 = vld [vmem:[%s10720_s27 + $0x3f0] ss:$8 sps:$4 sm:$0xff]  }
  0xd6   : > { %7083 = vmatpush1.bf16.msra.mxu0 %v9402_v25  ;;  %6469 = vmatprep.subr.bf16.mxu1 %v9407_v26  ;;  %v9492_v25 = vld [vmem:[%s10720_s27 + $0x12f0] ss:$8 sps:$4 sm:$0xff]   ;;  %v9499_v26 = vld [vmem:[%s10720_s27 + $0x404] ss:$8 sps:$4 sm:$0xff]  }
  0xd7   : > { %7084 = vmatprep.subr.bf16.mxu0 %v9410_v17  ;;  %6499 = vmatprep.mubr.bf16.mxu1 %v7889_v20  ;;  %v9504_v17 = vld [vmem:[%s10720_s27 + $0x1304] ss:$8 sps:$4 sm:$0xff]   ;;  %v9497_v20 = vld [vmem:[%s10720_s27 + $0x400] ss:$8 sps:$4 sm:$0xff]  }
  0xd8   : > { %7114 = vmatprep.mubr.bf16.mxu0 %v7919_v27  ;;  %v9502_v27 = vld [vmem:[%s10720_s27 + $0x1300] ss:$8 sps:$4 sm:$0xff]  }
  0xd9   : > { %6470 = vmatpush1.bf16.msra.mxu1 %v9405_v28  ;;  %v7888_v28 = vcombine.low %v10955_v19, %v10955_v19  ;;  %v9507_v19 = vld [vmem:[%s10720_s27 + $0x414] ss:$8 sps:$4 sm:$0xff]  }
  0xda   : > { %7085 = vmatpush1.bf16.msra.mxu0 %v9408_v29  ;;  %6471 = vmatprep.subr.bf16.mxu1 %v9413_v30  ;;  %v7918_v29 = vcombine.low %v10964_v23, %v10964_v23  ;;  %v11043_v30 = vld [vmem:[%s11988_s0 + $0x20] sm:$0xff] }
  0xdb   : > { %7086 = vmatprep.subr.bf16.mxu0 %v9416_v31  ;;  %v11048_v31 = vld [vmem:[%s11988_s0 + $0x98] sm:$0xff]  ;;  %v7891_v23 = vcombine.high %v11043_v30, %v11043_v30 }
  0xdd   : > { %6472 = vmatpush1.bf16.msra.mxu1 %v9411_v32  ;;  %v9510_v32 = vld [vmem:[%s10720_s27 + $0x1314] ss:$8 sps:$4 sm:$0xff]  }
  0xde   : > { %7087 = vmatpush1.bf16.msra.mxu0 %v9414_v33  ;;  %6473 = vmatprep.subr.bf16.mxu1 %v9419_v34  ;;  %v7921_v33 = vcombine.high %v11048_v31, %v11048_v31  ;;  %v9505_v34 = vld [vmem:[%s10720_s27 + $0x410] ss:$8 sps:$4 sm:$0xff]  }
  0xdf   : > { %7088 = vmatprep.subr.bf16.mxu0 %v9422_v35  ;;  %v9508_v35 = vld [vmem:[%s10720_s27 + $0x1310] ss:$8 sps:$4 sm:$0xff]  }
  0xe1   : > { %6474 = vmatpush1.bf16.msra.mxu1 %v9417_v36  ;;  %v9513_v36 = vld [vmem:[%s10720_s27 + $0x424] ss:$8 sps:$4 sm:$0xff]  }
  0xe2   : > { %7089 = vmatpush1.bf16.msra.mxu0 %v9420_v37  ;;  %6475 = vmatprep.subr.bf16.mxu1 %v9425_v38  ;;  %v9516_v37 = vld [vmem:[%s10720_s27 + $0x1324] ss:$8 sps:$4 sm:$0xff]   ;;  %v9511_v38 = vld [vmem:[%s10720_s27 + $0x420] ss:$8 sps:$4 sm:$0xff]  }
  0xe3   : > { %7090 = vmatprep.subr.bf16.mxu0 %v9428_v39  ;;  %v9514_v39 = vld [vmem:[%s10720_s27 + $0x1320] ss:$8 sps:$4 sm:$0xff]  }
  0xe5   : > { %6476 = vmatpush1.bf16.msra.mxu1 %v9423_v40  ;;  %v9519_v40 = vld [vmem:[%s10720_s27 + $0x434] ss:$8 sps:$4 sm:$0xff]  }
  0xe6   : > { %7091 = vmatpush1.bf16.msra.mxu0 %v9426_v41  ;;  %6477 = vmatprep.subr.bf16.mxu1 %v9431_v42  ;;  %v9522_v41 = vld [vmem:[%s10720_s27 + $0x1334] ss:$8 sps:$4 sm:$0xff]   ;;  %v9517_v42 = vld [vmem:[%s10720_s27 + $0x430] ss:$8 sps:$4 sm:$0xff]  }
  0xe7   : > { %7092 = vmatprep.subr.bf16.mxu0 %v9434_v43  ;;  %v9520_v43 = vld [vmem:[%s10720_s27 + $0x1330] ss:$8 sps:$4 sm:$0xff]  }
  0xe9   : > { %6478 = vmatpush1.bf16.msra.mxu1 %v9429_v44  ;;  %v9525_v44 = vld [vmem:[%s10720_s27 + $0x444] ss:$8 sps:$4 sm:$0xff]  }
  0xea   : > { %7093 = vmatpush1.bf16.msra.mxu0 %v9432_v45  ;;  %6479 = vmatprep.subr.bf16.mxu1 %v9437_v46  ;;  %v9528_v45 = vld [vmem:[%s10720_s27 + $0x1344] ss:$8 sps:$4 sm:$0xff]   ;;  %v9523_v46 = vld [vmem:[%s10720_s27 + $0x440] ss:$8 sps:$4 sm:$0xff]  }
  0xeb   : > { %7094 = vmatprep.subr.bf16.mxu0 %v9440_v47  ;;  %v9526_v47 = vld [vmem:[%s10720_s27 + $0x1340] ss:$8 sps:$4 sm:$0xff]  }
  0xed   : > { %6480 = vmatpush1.bf16.msra.mxu1 %v9435_v48  ;;  %v9531_v48 = vld [vmem:[%s10720_s27 + $0x454] ss:$8 sps:$4 sm:$0xff]  }
  0xee   : > { %7095 = vmatpush1.bf16.msra.mxu0 %v9438_v49  ;;  %6481 = vmatprep.subr.bf16.mxu1 %v9443_v50  ;;  %v9534_v49 = vld [vmem:[%s10720_s27 + $0x1354] ss:$8 sps:$4 sm:$0xff]   ;;  %v9529_v50 = vld [vmem:[%s10720_s27 + $0x450] ss:$8 sps:$4 sm:$0xff]  }
  0xef   : > { %7096 = vmatprep.subr.bf16.mxu0 %v9446_v51  ;;  %v9532_v51 = vld [vmem:[%s10720_s27 + $0x1350] ss:$8 sps:$4 sm:$0xff]  }
  0xf1   : > { %6482 = vmatpush1.bf16.msra.mxu1 %v9441_v52  ;;  %v9537_v52 = vld [vmem:[%s10720_s27 + $0x464] ss:$8 sps:$4 sm:$0xff]  }
  0xf2   : > { %7097 = vmatpush1.bf16.msra.mxu0 %v9444_v53  ;;  %6483 = vmatprep.subr.bf16.mxu1 %v9449_v54  ;;  %v9540_v53 = vld [vmem:[%s10720_s27 + $0x1364] ss:$8 sps:$4 sm:$0xff]   ;;  %v9535_v54 = vld [vmem:[%s10720_s27 + $0x460] ss:$8 sps:$4 sm:$0xff]  }
  0xf3   : > { %7098 = vmatprep.subr.bf16.mxu0 %v9452_v55  ;;  %v9538_v55 = vld [vmem:[%s10720_s27 + $0x1360] ss:$8 sps:$4 sm:$0xff]  }
  0xf5   : > { %6484 = vmatpush1.bf16.msra.mxu1 %v9447_v56  ;;  %v9543_v56 = vld [vmem:[%s10720_s27 + $0x474] ss:$8 sps:$4 sm:$0xff]  }
  0xf6   : > { %7099 = vmatpush1.bf16.msra.mxu0 %v9450_v57  ;;  %6485 = vmatprep.subr.bf16.mxu1 %v9455_v58  ;;  %v9546_v57 = vld [vmem:[%s10720_s27 + $0x1374] ss:$8 sps:$4 sm:$0xff]   ;;  %v9541_v58 = vld [vmem:[%s10720_s27 + $0x470] ss:$8 sps:$4 sm:$0xff]  }
  0xf7   : > { %7100 = vmatprep.subr.bf16.mxu0 %v9458_v59  ;;  %v9544_v59 = vld [vmem:[%s10720_s27 + $0x1370] ss:$8 sps:$4 sm:$0xff]  }
  0xf9   : > { %6486 = vmatpush1.bf16.msra.mxu1 %v9453_v60  ;;  %v9549_v60 = vld [vmem:[%s10720_s27 + $0x484] ss:$8 sps:$4 sm:$0xff]  }
  0xfa   : > { %7101 = vmatpush1.bf16.msra.mxu0 %v9456_v61  ;;  %6487 = vmatprep.subr.bf16.mxu1 %v9461_v62  ;;  %v9552_v61 = vld [vmem:[%s10720_s27 + $0x1384] ss:$8 sps:$4 sm:$0xff]   ;;  %v9547_v62 = vld [vmem:[%s10720_s27 + $0x480] ss:$8 sps:$4 sm:$0xff]  }
  0xfb   : > { %7102 = vmatprep.subr.bf16.mxu0 %v9464_v63  ;;  %v9550_v63 = vld [vmem:[%s10720_s27 + $0x1380] ss:$8 sps:$4 sm:$0xff]  }
  0xfd   : > { %6488 = vmatpush1.bf16.msra.mxu1 %v9459_v2  ;;  %v9555_v2 = vld [vmem:[%s10720_s27 + $0x494] ss:$8 sps:$4 sm:$0xff]  }
  0xfe   : > { %7103 = vmatpush1.bf16.msra.mxu0 %v9462_v3  ;;  %6489 = vmatprep.subr.bf16.mxu1 %v9467_v4  ;;  %v9558_v3 = vld [vmem:[%s10720_s27 + $0x1394] ss:$8 sps:$4 sm:$0xff]   ;;  %v9553_v4 = vld [vmem:[%s10720_s27 + $0x490] ss:$8 sps:$4 sm:$0xff]  }
  0xff   : > { %7104 = vmatprep.subr.bf16.mxu0 %v9470_v5  ;;  %v9556_v5 = vld [vmem:[%s10720_s27 + $0x1390] ss:$8 sps:$4 sm:$0xff]  }
 0x101   : > { %6490 = vmatpush1.bf16.msra.mxu1 %v9465_v6  ;;  %v9561_v6 = vld [vmem:[%s10720_s27 + $0x4a4] ss:$8 sps:$4 sm:$0xff]  }
 0x102   : > { %7105 = vmatpush1.bf16.msra.mxu0 %v9468_v7  ;;  %6491 = vmatprep.subr.bf16.mxu1 %v9473_v8  ;;  %v9564_v7 = vld [vmem:[%s10720_s27 + $0x13a4] ss:$8 sps:$4 sm:$0xff]   ;;  %v9559_v8 = vld [vmem:[%s10720_s27 + $0x4a0] ss:$8 sps:$4 sm:$0xff]  }
 0x103   : > { %7106 = vmatprep.subr.bf16.mxu0 %v9476_v9  ;;  %v9562_v9 = vld [vmem:[%s10720_s27 + $0x13a0] ss:$8 sps:$4 sm:$0xff]  }
 0x105   : > { %6492 = vmatpush1.bf16.msra.mxu1 %v9471_v10  ;;  %v9567_v10 = vld [vmem:[%s10720_s27 + $0x4b4] ss:$8 sps:$4 sm:$0xff]  }
 0x106   : > { %7107 = vmatpush1.bf16.msra.mxu0 %v9474_v11  ;;  %6493 = vmatprep.subr.bf16.mxu1 %v9479_v12  ;;  %v9570_v11 = vld [vmem:[%s10720_s27 + $0x13b4] ss:$8 sps:$4 sm:$0xff]   ;;  %v9565_v12 = vld [vmem:[%s10720_s27 + $0x4b0] ss:$8 sps:$4 sm:$0xff]  }
 0x107   : > { %7108 = vmatprep.subr.bf16.mxu0 %v9482_v13  ;;  %v9568_v13 = vld [vmem:[%s10720_s27 + $0x13b0] ss:$8 sps:$4 sm:$0xff]  }
 0x109   : > { %6494 = vmatpush1.bf16.msra.mxu1 %v9477_v0  ;;  %v9573_v0 = vld [vmem:[%s10720_s27 + $0x4c4] ss:$8 sps:$4 sm:$0xff]  }
 0x10a   : > { %7109 = vmatpush1.bf16.msra.mxu0 %v9480_v14  ;;  %6495 = vmatprep.subr.bf16.mxu1 %v9485_v1  ;;  %v9576_v14 = vld [vmem:[%s10720_s27 + $0x13c4] ss:$8 sps:$4 sm:$0xff]   ;;  %v9571_v1 = vld [vmem:[%s10720_s27 + $0x4c0] ss:$8 sps:$4 sm:$0xff]  }
 0x10b   : > { %7110 = vmatprep.subr.bf16.mxu0 %v9488_v15  ;;  %v9574_v15 = vld [vmem:[%s10720_s27 + $0x13c0] ss:$8 sps:$4 sm:$0xff]  }
 0x10d   : > { %6496 = vmatpush1.bf16.msra.mxu1 %v9483_v16  ;;  %v9579_v16 = vld [vmem:[%s10720_s27 + $0x4d4] ss:$8 sps:$4 sm:$0xff]  }
 0x10e   : > { %7111 = vmatpush1.bf16.msra.mxu0 %v9486_v18  ;;  %6497 = vmatprep.subr.bf16.mxu1 %v9491_v21  ;;  %v9582_v18 = vld [vmem:[%s10720_s27 + $0x13d4] ss:$8 sps:$4 sm:$0xff]   ;;  %v9577_v21 = vld [vmem:[%s10720_s27 + $0x4d0] ss:$8 sps:$4 sm:$0xff]  }
 0x10f   : > { %7112 = vmatprep.subr.bf16.mxu0 %v9494_v22  ;;  %v9580_v22 = vld [vmem:[%s10720_s27 + $0x13d0] ss:$8 sps:$4 sm:$0xff]  }
 0x111   : > { %6498 = vmatpush1.bf16.msra.mxu1 %v9489_v24  ;;  %v9585_v24 = vld [vmem:[%s10720_s27 + $0x4e4] ss:$8 sps:$4 sm:$0xff]  }
 0x112   : > { %7113 = vmatpush1.bf16.msra.mxu0 %v9492_v25  ;;  %6508 = vmatprep.subr.bf16.mxu1 %v9499_v26  ;;  %v9588_v25 = vld [vmem:[%s10720_s27 + $0x13e4] ss:$8 sps:$4 sm:$0xff]   ;;  %v9583_v26 = vld [vmem:[%s10720_s27 + $0x4e0] ss:$8 sps:$4 sm:$0xff]  }
 0x113   : > { %7123 = vmatprep.subr.bf16.mxu0 %v9504_v17  ;;  %v9586_v17 = vld [vmem:[%s10720_s27 + $0x13e0] ss:$8 sps:$4 sm:$0xff]  }
 0x114   : > { %6500 = vmatmul.mubr.bf16.vlgmr.msra.gmra.mrb[0].mxu1 %v7888_v28  ;;  %v9589_v28 = vld [vmem:[%s10720_s27 + $0x4f0] ss:$8 sps:$4 sm:$0xff]  }
 0x115   : > { %7115 = vmatmul.mubr.bf16.vlgmr.msra.gmra.mrb[0].mxu0 %v7918_v29  ;;  %6509 = vmatpush1.bf16.msra.mxu1 %v9497_v20  ;;  %v9591_v20 = vld [vmem:[%s10720_s27 + $0x4f4] ss:$8 sps:$4 sm:$0xff]   ;;  %v9592_v29 = vld [vmem:[%s10720_s27 + $0x13f0] ss:$8 sps:$4 sm:$0xff]  }
 0x116   : > { %7124 = vmatpush1.bf16.msra.mxu0 %v9502_v27  ;;  %6510 = vmatprep.subr.bf16.mxu1 %v9507_v19  ;;  %v9594_v27 = vld [vmem:[%s10720_s27 + $0x13f4] ss:$8 sps:$4 sm:$0xff]   ;;  %v9599_v19 = vld [vmem:[%s10720_s27 + $0x504] ss:$8 sps:$4 sm:$0xff]  }
 0x117   : > { %7125 = vmatprep.subr.bf16.mxu0 %v9510_v32  ;;  %6540 = vmatprep.mubr.bf16.mxu1 %v7891_v23  ;;  %v9604_v32 = vld [vmem:[%s10720_s27 + $0x1404] ss:$8 sps:$4 sm:$0xff]  }
 0x118   : > { %7155 = vmatprep.mubr.bf16.mxu0 %v7921_v33  ;;  %v11119_v23 = vld [vmem:[%s11988_s0 + $0x28] sm:$0xff]  ;;  %v11124_v33 = vld [vmem:[%s11988_s0 + $0xa0] sm:$0xff] }
 0x119   : > { %6511 = vmatpush1.bf16.msra.mxu1 %v9505_v34  ;;  %v7890_v34 = vcombine.low %v11043_v30, %v11043_v30  ;;  %v7923_v30 = vcombine.high %v11124_v33, %v11124_v33 }
 0x11a   : > { %7126 = vmatpush1.bf16.msra.mxu0 %v9508_v35  ;;  %6512 = vmatprep.subr.bf16.mxu1 %v9513_v36  ;;  %v7920_v35 = vcombine.low %v11048_v31, %v11048_v31  ;;  %v9597_v36 = vld [vmem:[%s10720_s27 + $0x500] ss:$8 sps:$4 sm:$0xff]   ;;  %v9605_v31 = vld [vmem:[%s10720_s27 + $0x510] ss:$8 sps:$4 sm:$0xff]  }
 0x11b   : > { %7127 = vmatprep.subr.bf16.mxu0 %v9516_v37  ;;  %v9602_v37 = vld [vmem:[%s10720_s27 + $0x1400] ss:$8 sps:$4 sm:$0xff]  }
 0x11d   : > { %6513 = vmatpush1.bf16.msra.mxu1 %v9511_v38  ;;  %v9607_v38 = vld [vmem:[%s10720_s27 + $0x514] ss:$8 sps:$4 sm:$0xff]  }
 0x11e   : > { %7128 = vmatpush1.bf16.msra.mxu0 %v9514_v39  ;;  %6514 = vmatprep.subr.bf16.mxu1 %v9519_v40  ;;  %v9610_v39 = vld [vmem:[%s10720_s27 + $0x1414] ss:$8 sps:$4 sm:$0xff]   ;;  %v7893_v40 = vcombine.high %v11119_v23, %v11119_v23 }
 0x11f   : > { %7129 = vmatprep.subr.bf16.mxu0 %v9522_v41  ;;  %v9608_v41 = vld [vmem:[%s10720_s27 + $0x1410] ss:$8 sps:$4 sm:$0xff]  }
 0x121   : > { %6515 = vmatpush1.bf16.msra.mxu1 %v9517_v42  ;;  %v9613_v42 = vld [vmem:[%s10720_s27 + $0x524] ss:$8 sps:$4 sm:$0xff]  }
 0x122   : > { %7130 = vmatpush1.bf16.msra.mxu0 %v9520_v43  ;;  %6516 = vmatprep.subr.bf16.mxu1 %v9525_v44  ;;  %v9616_v43 = vld [vmem:[%s10720_s27 + $0x1424] ss:$8 sps:$4 sm:$0xff]   ;;  %v9611_v44 = vld [vmem:[%s10720_s27 + $0x520] ss:$8 sps:$4 sm:$0xff]  }
 0x123   : > { %7131 = vmatprep.subr.bf16.mxu0 %v9528_v45  ;;  %v9614_v45 = vld [vmem:[%s10720_s27 + $0x1420] ss:$8 sps:$4 sm:$0xff]  }
 0x125   : > { %6517 = vmatpush1.bf16.msra.mxu1 %v9523_v46  ;;  %v9619_v46 = vld [vmem:[%s10720_s27 + $0x534] ss:$8 sps:$4 sm:$0xff]  }
 0x126   : > { %7132 = vmatpush1.bf16.msra.mxu0 %v9526_v47  ;;  %6518 = vmatprep.subr.bf16.mxu1 %v9531_v48  ;;  %v9622_v47 = vld [vmem:[%s10720_s27 + $0x1434] ss:$8 sps:$4 sm:$0xff]   ;;  %v9617_v48 = vld [vmem:[%s10720_s27 + $0x530] ss:$8 sps:$4 sm:$0xff]  }
 0x127   : > { %7133 = vmatprep.subr.bf16.mxu0 %v9534_v49  ;;  %v9620_v49 = vld [vmem:[%s10720_s27 + $0x1430] ss:$8 sps:$4 sm:$0xff]  }
 0x129   : > { %6519 = vmatpush1.bf16.msra.mxu1 %v9529_v50  ;;  %v9625_v50 = vld [vmem:[%s10720_s27 + $0x544] ss:$8 sps:$4 sm:$0xff]  }
 0x12a   : > { %7134 = vmatpush1.bf16.msra.mxu0 %v9532_v51  ;;  %6520 = vmatprep.subr.bf16.mxu1 %v9537_v52  ;;  %v9628_v51 = vld [vmem:[%s10720_s27 + $0x1444] ss:$8 sps:$4 sm:$0xff]   ;;  %v9623_v52 = vld [vmem:[%s10720_s27 + $0x540] ss:$8 sps:$4 sm:$0xff]  }
 0x12b   : > { %7135 = vmatprep.subr.bf16.mxu0 %v9540_v53  ;;  %v9626_v53 = vld [vmem:[%s10720_s27 + $0x1440] ss:$8 sps:$4 sm:$0xff]  }
 0x12d   : > { %6521 = vmatpush1.bf16.msra.mxu1 %v9535_v54  ;;  %v9631_v54 = vld [vmem:[%s10720_s27 + $0x554] ss:$8 sps:$4 sm:$0xff]  }
 0x12e   : > { %7136 = vmatpush1.bf16.msra.mxu0 %v9538_v55  ;;  %6522 = vmatprep.subr.bf16.mxu1 %v9543_v56  ;;  %v9634_v55 = vld [vmem:[%s10720_s27 + $0x1454] ss:$8 sps:$4 sm:$0xff]   ;;  %v9629_v56 = vld [vmem:[%s10720_s27 + $0x550] ss:$8 sps:$4 sm:$0xff]  }
 0x12f   : > { %7137 = vmatprep.subr.bf16.mxu0 %v9546_v57  ;;  %v9632_v57 = vld [vmem:[%s10720_s27 + $0x1450] ss:$8 sps:$4 sm:$0xff]  }
 0x131   : > { %6523 = vmatpush1.bf16.msra.mxu1 %v9541_v58  ;;  %v9637_v58 = vld [vmem:[%s10720_s27 + $0x564] ss:$8 sps:$4 sm:$0xff]  }
 0x132   : > { %7138 = vmatpush1.bf16.msra.mxu0 %v9544_v59  ;;  %6524 = vmatprep.subr.bf16.mxu1 %v9549_v60  ;;  %v9640_v59 = vld [vmem:[%s10720_s27 + $0x1464] ss:$8 sps:$4 sm:$0xff]   ;;  %v9635_v60 = vld [vmem:[%s10720_s27 + $0x560] ss:$8 sps:$4 sm:$0xff]  }
 0x133   : > { %7139 = vmatprep.subr.bf16.mxu0 %v9552_v61  ;;  %v9638_v61 = vld [vmem:[%s10720_s27 + $0x1460] ss:$8 sps:$4 sm:$0xff]  }
 0x135   : > { %6525 = vmatpush1.bf16.msra.mxu1 %v9547_v62  ;;  %v9643_v62 = vld [vmem:[%s10720_s27 + $0x574] ss:$8 sps:$4 sm:$0xff]  }
 0x136   : > { %7140 = vmatpush1.bf16.msra.mxu0 %v9550_v63  ;;  %6526 = vmatprep.subr.bf16.mxu1 %v9555_v2  ;;  %v9646_v63 = vld [vmem:[%s10720_s27 + $0x1474] ss:$8 sps:$4 sm:$0xff]   ;;  %v9641_v2 = vld [vmem:[%s10720_s27 + $0x570] ss:$8 sps:$4 sm:$0xff]  }
 0x137   : > { %7141 = vmatprep.subr.bf16.mxu0 %v9558_v3  ;;  %v9644_v3 = vld [vmem:[%s10720_s27 + $0x1470] ss:$8 sps:$4 sm:$0xff]  }
 0x139   : > { %6527 = vmatpush1.bf16.msra.mxu1 %v9553_v4  ;;  %v9649_v4 = vld [vmem:[%s10720_s27 + $0x584] ss:$8 sps:$4 sm:$0xff]  }
 0x13a   : > { %7142 = vmatpush1.bf16.msra.mxu0 %v9556_v5  ;;  %6528 = vmatprep.subr.bf16.mxu1 %v9561_v6  ;;  %v9652_v5 = vld [vmem:[%s10720_s27 + $0x1484] ss:$8 sps:$4 sm:$0xff]   ;;  %v9647_v6 = vld [vmem:[%s10720_s27 + $0x580] ss:$8 sps:$4 sm:$0xff]  }
 0x13b   : > { %7143 = vmatprep.subr.bf16.mxu0 %v9564_v7  ;;  %v9650_v7 = vld [vmem:[%s10720_s27 + $0x1480] ss:$8 sps:$4 sm:$0xff]  }
 0x13d   : > { %6529 = vmatpush1.bf16.msra.mxu1 %v9559_v8  ;;  %v9655_v8 = vld [vmem:[%s10720_s27 + $0x594] ss:$8 sps:$4 sm:$0xff]  }
 0x13e   : > { %7144 = vmatpush1.bf16.msra.mxu0 %v9562_v9  ;;  %6530 = vmatprep.subr.bf16.mxu1 %v9567_v10  ;;  %v9658_v9 = vld [vmem:[%s10720_s27 + $0x1494] ss:$8 sps:$4 sm:$0xff]   ;;  %v9653_v10 = vld [vmem:[%s10720_s27 + $0x590] ss:$8 sps:$4 sm:$0xff]  }
 0x13f   : > { %7145 = vmatprep.subr.bf16.mxu0 %v9570_v11  ;;  %v9656_v11 = vld [vmem:[%s10720_s27 + $0x1490] ss:$8 sps:$4 sm:$0xff]  }
 0x141   : > { %6531 = vmatpush1.bf16.msra.mxu1 %v9565_v12  ;;  %v9661_v12 = vld [vmem:[%s10720_s27 + $0x5a4] ss:$8 sps:$4 sm:$0xff]  }
 0x142   : > { %7146 = vmatpush1.bf16.msra.mxu0 %v9568_v13  ;;  %6532 = vmatprep.subr.bf16.mxu1 %v9573_v0  ;;  %v9664_v13 = vld [vmem:[%s10720_s27 + $0x14a4] ss:$8 sps:$4 sm:$0xff]   ;;  %v9659_v0 = vld [vmem:[%s10720_s27 + $0x5a0] ss:$8 sps:$4 sm:$0xff]  }
 0x143   : > { %7147 = vmatprep.subr.bf16.mxu0 %v9576_v14  ;;  %v9662_v14 = vld [vmem:[%s10720_s27 + $0x14a0] ss:$8 sps:$4 sm:$0xff]  }
 0x145   : > { %6533 = vmatpush1.bf16.msra.mxu1 %v9571_v1  ;;  %v9667_v1 = vld [vmem:[%s10720_s27 + $0x5b4] ss:$8 sps:$4 sm:$0xff]  }
 0x146   : > { %7148 = vmatpush1.bf16.msra.mxu0 %v9574_v15  ;;  %6534 = vmatprep.subr.bf16.mxu1 %v9579_v16  ;;  %v9670_v15 = vld [vmem:[%s10720_s27 + $0x14b4] ss:$8 sps:$4 sm:$0xff]   ;;  %v9665_v16 = vld [vmem:[%s10720_s27 + $0x5b0] ss:$8 sps:$4 sm:$0xff]  }
 0x147   : > { %7149 = vmatprep.subr.bf16.mxu0 %v9582_v18  ;;  %v9668_v18 = vld [vmem:[%s10720_s27 + $0x14b0] ss:$8 sps:$4 sm:$0xff]  }
 0x149   : > { %6535 = vmatpush1.bf16.msra.mxu1 %v9577_v21  ;;  %v9673_v21 = vld [vmem:[%s10720_s27 + $0x5c4] ss:$8 sps:$4 sm:$0xff]  }
 0x14a   : > { %7150 = vmatpush1.bf16.msra.mxu0 %v9580_v22  ;;  %6536 = vmatprep.subr.bf16.mxu1 %v9585_v24  ;;  %v9676_v22 = vld [vmem:[%s10720_s27 + $0x14c4] ss:$8 sps:$4 sm:$0xff]   ;;  %v9671_v24 = vld [vmem:[%s10720_s27 + $0x5c0] ss:$8 sps:$4 sm:$0xff]  }
 0x14b   : > { %7151 = vmatprep.subr.bf16.mxu0 %v9588_v25  ;;  %v9674_v25 = vld [vmem:[%s10720_s27 + $0x14c0] ss:$8 sps:$4 sm:$0xff]  }
 0x14d   : > { %6537 = vmatpush1.bf16.msra.mxu1 %v9583_v26  ;;  %v9679_v26 = vld [vmem:[%s10720_s27 + $0x5d4] ss:$8 sps:$4 sm:$0xff]  }
 0x14e   : > { %7152 = vmatpush1.bf16.msra.mxu0 %v9586_v17  ;;  %6538 = vmatprep.subr.bf16.mxu1 %v9591_v20  ;;  %v9682_v17 = vld [vmem:[%s10720_s27 + $0x14d4] ss:$8 sps:$4 sm:$0xff]   ;;  %v9677_v20 = vld [vmem:[%s10720_s27 + $0x5d0] ss:$8 sps:$4 sm:$0xff]  }
 0x14f   : > { %7153 = vmatprep.subr.bf16.mxu0 %v9594_v27  ;;  %v9680_v27 = vld [vmem:[%s10720_s27 + $0x14d0] ss:$8 sps:$4 sm:$0xff]  }
 0x151   : > { %6539 = vmatpush1.bf16.msra.mxu1 %v9589_v28  ;;  %v9685_v28 = vld [vmem:[%s10720_s27 + $0x5e4] ss:$8 sps:$4 sm:$0xff]  }
 0x152   : > { %7154 = vmatpush1.bf16.msra.mxu0 %v9592_v29  ;;  %6549 = vmatprep.subr.bf16.mxu1 %v9599_v19  ;;  %v9688_v29 = vld [vmem:[%s10720_s27 + $0x14e4] ss:$8 sps:$4 sm:$0xff]   ;;  %v9683_v19 = vld [vmem:[%s10720_s27 + $0x5e0] ss:$8 sps:$4 sm:$0xff]  }
 0x153   : > { %7164 = vmatprep.subr.bf16.mxu0 %v9604_v32  ;;  %v9686_v32 = vld [vmem:[%s10720_s27 + $0x14e0] ss:$8 sps:$4 sm:$0xff]  }
 0x154   : > { %6541 = vmatmul.mubr.bf16.vlgmr.msra.gmra.mrb[0].mxu1 %v7890_v34  ;;  %v9691_v34 = vld [vmem:[%s10720_s27 + $0x5f4] ss:$8 sps:$4 sm:$0xff]  }
 0x155   : > { %7156 = vmatmul.mubr.bf16.vlgmr.msra.gmra.mrb[0].mxu0 %v7920_v35  ;;  %6550 = vmatpush1.bf16.msra.mxu1 %v9597_v36  ;;  %v9694_v35 = vld [vmem:[%s10720_s27 + $0x14f4] ss:$8 sps:$4 sm:$0xff]   ;;  %v9689_v36 = vld [vmem:[%s10720_s27 + $0x5f0] ss:$8 sps:$4 sm:$0xff]  }
 0x156   : > { %7165 = vmatpush1.bf16.msra.mxu0 %v9602_v37  ;;  %6551 = vmatprep.subr.bf16.mxu1 %v9607_v38  ;;  %v9692_v37 = vld [vmem:[%s10720_s27 + $0x14f0] ss:$8 sps:$4 sm:$0xff]   ;;  %v9699_v38 = vld [vmem:[%s10720_s27 + $0x604] ss:$8 sps:$4 sm:$0xff]  }
 0x157   : > { %7166 = vmatprep.subr.bf16.mxu0 %v9610_v39  ;;  %6581 = vmatprep.mubr.bf16.mxu1 %v7893_v40  ;;  %v9704_v39 = vld [vmem:[%s10720_s27 + $0x1504] ss:$8 sps:$4 sm:$0xff]   ;;  %v11201_v40 = vld [vmem:[%s11988_s0 + $0x30] sm:$0xff] }
 0x158   : > { %7196 = vmatprep.mubr.bf16.mxu0 %v7923_v30  ;;  %v11206_v30 = vld [vmem:[%s11988_s0 + $0xa8] sm:$0xff] }
 0x159   : > { %6552 = vmatpush1.bf16.msra.mxu1 %v9605_v31  ;;  %v7892_v31 = vcombine.low %v11119_v23, %v11119_v23  ;;  %v7925_v23 = vcombine.high %v11206_v30, %v11206_v30 }
 0x15a   : > { %7167 = vmatpush1.bf16.msra.mxu0 %v9608_v41  ;;  %6553 = vmatprep.subr.bf16.mxu1 %v9613_v42  ;;  %v7922_v41 = vcombine.low %v11124_v33, %v11124_v33  ;;  %v9697_v42 = vld [vmem:[%s10720_s27 + $0x600] ss:$8 sps:$4 sm:$0xff]   ;;  %v9705_v33 = vld [vmem:[%s10720_s27 + $0x610] ss:$8 sps:$4 sm:$0xff]  }
 0x15b   : > { %7168 = vmatprep.subr.bf16.mxu0 %v9616_v43  ;;  %v9702_v43 = vld [vmem:[%s10720_s27 + $0x1500] ss:$8 sps:$4 sm:$0xff]  }
 0x15d   : > { %6554 = vmatpush1.bf16.msra.mxu1 %v9611_v44  ;;  %v9707_v44 = vld [vmem:[%s10720_s27 + $0x614] ss:$8 sps:$4 sm:$0xff]  }
 0x15e   : > { %7169 = vmatpush1.bf16.msra.mxu0 %v9614_v45  ;;  %6555 = vmatprep.subr.bf16.mxu1 %v9619_v46  ;;  %v9710_v45 = vld [vmem:[%s10720_s27 + $0x1514] ss:$8 sps:$4 sm:$0xff]   ;;  %v7895_v46 = vcombine.high %v11201_v40, %v11201_v40 }
 0x15f   : > { %7170 = vmatprep.subr.bf16.mxu0 %v9622_v47  ;;  %v9708_v47 = vld [vmem:[%s10720_s27 + $0x1510] ss:$8 sps:$4 sm:$0xff]  }
 0x161   : > { %6556 = vmatpush1.bf16.msra.mxu1 %v9617_v48  ;;  %v9713_v48 = vld [vmem:[%s10720_s27 + $0x624] ss:$8 sps:$4 sm:$0xff]  }
 0x162   : > { %7171 = vmatpush1.bf16.msra.mxu0 %v9620_v49  ;;  %6557 = vmatprep.subr.bf16.mxu1 %v9625_v50  ;;  %v9716_v49 = vld [vmem:[%s10720_s27 + $0x1524] ss:$8 sps:$4 sm:$0xff]   ;;  %v9711_v50 = vld [vmem:[%s10720_s27 + $0x620] ss:$8 sps:$4 sm:$0xff]  }
 0x163   : > { %7172 = vmatprep.subr.bf16.mxu0 %v9628_v51  ;;  %v9714_v51 = vld [vmem:[%s10720_s27 + $0x1520] ss:$8 sps:$4 sm:$0xff]  }
 0x165   : > { %6558 = vmatpush1.bf16.msra.mxu1 %v9623_v52  ;;  %v9719_v52 = vld [vmem:[%s10720_s27 + $0x634] ss:$8 sps:$4 sm:$0xff]  }
 0x166   : > { %7173 = vmatpush1.bf16.msra.mxu0 %v9626_v53  ;;  %6559 = vmatprep.subr.bf16.mxu1 %v9631_v54  ;;  %v9722_v53 = vld [vmem:[%s10720_s27 + $0x1534] ss:$8 sps:$4 sm:$0xff]   ;;  %v9717_v54 = vld [vmem:[%s10720_s27 + $0x630] ss:$8 sps:$4 sm:$0xff]  }
 0x167   : > { %7174 = vmatprep.subr.bf16.mxu0 %v9634_v55  ;;  %v9720_v55 = vld [vmem:[%s10720_s27 + $0x1530] ss:$8 sps:$4 sm:$0xff]  }
 0x169   : > { %6560 = vmatpush1.bf16.msra.mxu1 %v9629_v56  ;;  %v9725_v56 = vld [vmem:[%s10720_s27 + $0x644] ss:$8 sps:$4 sm:$0xff]  }
 0x16a   : > { %7175 = vmatpush1.bf16.msra.mxu0 %v9632_v57  ;;  %6561 = vmatprep.subr.bf16.mxu1 %v9637_v58  ;;  %v9728_v57 = vld [vmem:[%s10720_s27 + $0x1544] ss:$8 sps:$4 sm:$0xff]   ;;  %v9723_v58 = vld [vmem:[%s10720_s27 + $0x640] ss:$8 sps:$4 sm:$0xff]  }
 0x16b   : > { %7176 = vmatprep.subr.bf16.mxu0 %v9640_v59  ;;  %v9726_v59 = vld [vmem:[%s10720_s27 + $0x1540] ss:$8 sps:$4 sm:$0xff]  }
 0x16d   : > { %6562 = vmatpush1.bf16.msra.mxu1 %v9635_v60  ;;  %v9731_v60 = vld [vmem:[%s10720_s27 + $0x654] ss:$8 sps:$4 sm:$0xff]  }
 0x16e   : > { %7177 = vmatpush1.bf16.msra.mxu0 %v9638_v61  ;;  %6563 = vmatprep.subr.bf16.mxu1 %v9643_v62  ;;  %v9734_v61 = vld [vmem:[%s10720_s27 + $0x1554] ss:$8 sps:$4 sm:$0xff]   ;;  %v9729_v62 = vld [vmem:[%s10720_s27 + $0x650] ss:$8 sps:$4 sm:$0xff]  }
 0x16f   : > { %7178 = vmatprep.subr.bf16.mxu0 %v9646_v63  ;;  %v9732_v63 = vld [vmem:[%s10720_s27 + $0x1550] ss:$8 sps:$4 sm:$0xff]  }
 0x171   : > { %6564 = vmatpush1.bf16.msra.mxu1 %v9641_v2  ;;  %v9737_v2 = vld [vmem:[%s10720_s27 + $0x664] ss:$8 sps:$4 sm:$0xff]  }
 0x172   : > { %7179 = vmatpush1.bf16.msra.mxu0 %v9644_v3  ;;  %6565 = vmatprep.subr.bf16.mxu1 %v9649_v4  ;;  %v9740_v3 = vld [vmem:[%s10720_s27 + $0x1564] ss:$8 sps:$4 sm:$0xff]   ;;  %v9735_v4 = vld [vmem:[%s10720_s27 + $0x660] ss:$8 sps:$4 sm:$0xff]  }
 0x173   : > { %7180 = vmatprep.subr.bf16.mxu0 %v9652_v5  ;;  %v9738_v5 = vld [vmem:[%s10720_s27 + $0x1560] ss:$8 sps:$4 sm:$0xff]  }
 0x175   : > { %6566 = vmatpush1.bf16.msra.mxu1 %v9647_v6  ;;  %v9743_v6 = vld [vmem:[%s10720_s27 + $0x674] ss:$8 sps:$4 sm:$0xff]  }
 0x176   : > { %7181 = vmatpush1.bf16.msra.mxu0 %v9650_v7  ;;  %6567 = vmatprep.subr.bf16.mxu1 %v9655_v8  ;;  %v9746_v7 = vld [vmem:[%s10720_s27 + $0x1574] ss:$8 sps:$4 sm:$0xff]   ;;  %v9741_v8 = vld [vmem:[%s10720_s27 + $0x670] ss:$8 sps:$4 sm:$0xff]  }
 0x177   : > { %7182 = vmatprep.subr.bf16.mxu0 %v9658_v9  ;;  %v9744_v9 = vld [vmem:[%s10720_s27 + $0x1570] ss:$8 sps:$4 sm:$0xff]  }
 0x179   : > { %6568 = vmatpush1.bf16.msra.mxu1 %v9653_v10  ;;  %v9749_v10 = vld [vmem:[%s10720_s27 + $0x684] ss:$8 sps:$4 sm:$0xff]  }
 0x17a   : > { %7183 = vmatpush1.bf16.msra.mxu0 %v9656_v11  ;;  %6569 = vmatprep.subr.bf16.mxu1 %v9661_v12  ;;  %v9752_v11 = vld [vmem:[%s10720_s27 + $0x1584] ss:$8 sps:$4 sm:$0xff]   ;;  %v9747_v12 = vld [vmem:[%s10720_s27 + $0x680] ss:$8 sps:$4 sm:$0xff]  }
 0x17b   : > { %7184 = vmatprep.subr.bf16.mxu0 %v9664_v13  ;;  %v9750_v13 = vld [vmem:[%s10720_s27 + $0x1580] ss:$8 sps:$4 sm:$0xff]  }
 0x17d   : > { %6570 = vmatpush1.bf16.msra.mxu1 %v9659_v0  ;;  %v9755_v0 = vld [vmem:[%s10720_s27 + $0x694] ss:$8 sps:$4 sm:$0xff]  }
 0x17e   : > { %7185 = vmatpush1.bf16.msra.mxu0 %v9662_v14  ;;  %6571 = vmatprep.subr.bf16.mxu1 %v9667_v1  ;;  %v9758_v14 = vld [vmem:[%s10720_s27 + $0x1594] ss:$8 sps:$4 sm:$0xff]   ;;  %v9753_v1 = vld [vmem:[%s10720_s27 + $0x690] ss:$8 sps:$4 sm:$0xff]  }
 0x17f   : > { %7186 = vmatprep.subr.bf16.mxu0 %v9670_v15  ;;  %v9756_v15 = vld [vmem:[%s10720_s27 + $0x1590] ss:$8 sps:$4 sm:$0xff]  }
 0x181   : > { %6572 = vmatpush1.bf16.msra.mxu1 %v9665_v16  ;;  %v9761_v16 = vld [vmem:[%s10720_s27 + $0x6a4] ss:$8 sps:$4 sm:$0xff]  }
 0x182   : > { %7187 = vmatpush1.bf16.msra.mxu0 %v9668_v18  ;;  %6573 = vmatprep.subr.bf16.mxu1 %v9673_v21  ;;  %v9764_v18 = vld [vmem:[%s10720_s27 + $0x15a4] ss:$8 sps:$4 sm:$0xff]   ;;  %v9759_v21 = vld [vmem:[%s10720_s27 + $0x6a0] ss:$8 sps:$4 sm:$0xff]  }
 0x183   : > { %7188 = vmatprep.subr.bf16.mxu0 %v9676_v22  ;;  %v9762_v22 = vld [vmem:[%s10720_s27 + $0x15a0] ss:$8 sps:$4 sm:$0xff]  }
 0x185   : > { %6574 = vmatpush1.bf16.msra.mxu1 %v9671_v24  ;;  %v9767_v24 = vld [vmem:[%s10720_s27 + $0x6b4] ss:$8 sps:$4 sm:$0xff]  }
 0x186   : > { %7189 = vmatpush1.bf16.msra.mxu0 %v9674_v25  ;;  %6575 = vmatprep.subr.bf16.mxu1 %v9679_v26  ;;  %v9770_v25 = vld [vmem:[%s10720_s27 + $0x15b4] ss:$8 sps:$4 sm:$0xff]   ;;  %v9765_v26 = vld [vmem:[%s10720_s27 + $0x6b0] ss:$8 sps:$4 sm:$0xff]  }
 0x187   : > { %7190 = vmatprep.subr.bf16.mxu0 %v9682_v17  ;;  %v9768_v17 = vld [vmem:[%s10720_s27 + $0x15b0] ss:$8 sps:$4 sm:$0xff]  }
 0x189   : > { %6576 = vmatpush1.bf16.msra.mxu1 %v9677_v20  ;;  %v9773_v20 = vld [vmem:[%s10720_s27 + $0x6c4] ss:$8 sps:$4 sm:$0xff]  }
 0x18a   : > { %7191 = vmatpush1.bf16.msra.mxu0 %v9680_v27  ;;  %6577 = vmatprep.subr.bf16.mxu1 %v9685_v28  ;;  %v9776_v27 = vld [vmem:[%s10720_s27 + $0x15c4] ss:$8 sps:$4 sm:$0xff]   ;;  %v9771_v28 = vld [vmem:[%s10720_s27 + $0x6c0] ss:$8 sps:$4 sm:$0xff]  }
 0x18b   : > { %7192 = vmatprep.subr.bf16.mxu0 %v9688_v29  ;;  %v9774_v29 = vld [vmem:[%s10720_s27 + $0x15c0] ss:$8 sps:$4 sm:$0xff]  }
 0x18d   : > { %6578 = vmatpush1.bf16.msra.mxu1 %v9683_v19  ;;  %v9779_v19 = vld [vmem:[%s10720_s27 + $0x6d4] ss:$8 sps:$4 sm:$0xff]  }
 0x18e   : > { %7193 = vmatpush1.bf16.msra.mxu0 %v9686_v32  ;;  %6579 = vmatprep.subr.bf16.mxu1 %v9691_v34  ;;  %v9782_v32 = vld [vmem:[%s10720_s27 + $0x15d4] ss:$8 sps:$4 sm:$0xff]   ;;  %v9777_v34 = vld [vmem:[%s10720_s27 + $0x6d0] ss:$8 sps:$4 sm:$0xff]  }
 0x18f   : > { %7194 = vmatprep.subr.bf16.mxu0 %v9694_v35  ;;  %v9780_v35 = vld [vmem:[%s10720_s27 + $0x15d0] ss:$8 sps:$4 sm:$0xff]  }
 0x191   : > { %6580 = vmatpush1.bf16.msra.mxu1 %v9689_v36  ;;  %v9785_v36 = vld [vmem:[%s10720_s27 + $0x6e4] ss:$8 sps:$4 sm:$0xff]  }
 0x192   : > { %7195 = vmatpush1.bf16.msra.mxu0 %v9692_v37  ;;  %6590 = vmatprep.subr.bf16.mxu1 %v9699_v38  ;;  %v9788_v37 = vld [vmem:[%s10720_s27 + $0x15e4] ss:$8 sps:$4 sm:$0xff]   ;;  %v9783_v38 = vld [vmem:[%s10720_s27 + $0x6e0] ss:$8 sps:$4 sm:$0xff]  }
 0x193   : > { %7205 = vmatprep.subr.bf16.mxu0 %v9704_v39  ;;  %v9786_v39 = vld [vmem:[%s10720_s27 + $0x15e0] ss:$8 sps:$4 sm:$0xff]  }
 0x194   : > { %6582 = vmatmul.mubr.bf16.vlgmr.msra.gmra.mrb[0].mxu1 %v7892_v31  ;;  %v9791_v31 = vld [vmem:[%s10720_s27 + $0x6f4] ss:$8 sps:$4 sm:$0xff]  }
 0x195   : > { %7197 = vmatmul.mubr.bf16.vlgmr.msra.gmra.mrb[0].mxu0 %v7922_v41  ;;  %6591 = vmatpush1.bf16.msra.mxu1 %v9697_v42  ;;  %v9794_v41 = vld [vmem:[%s10720_s27 + $0x15f4] ss:$8 sps:$4 sm:$0xff]   ;;  %v9789_v42 = vld [vmem:[%s10720_s27 + $0x6f0] ss:$8 sps:$4 sm:$0xff]  }
 0x196   : > { %7206 = vmatpush1.bf16.msra.mxu0 %v9702_v43  ;;  %6592 = vmatprep.subr.bf16.mxu1 %v9707_v44  ;;  %v9792_v43 = vld [vmem:[%s10720_s27 + $0x15f0] ss:$8 sps:$4 sm:$0xff]   ;;  %v9799_v44 = vld [vmem:[%s10720_s27 + $0x704] ss:$8 sps:$4 sm:$0xff]  }
 0x197   : > { %7207 = vmatprep.subr.bf16.mxu0 %v9710_v45  ;;  %6622 = vmatprep.mubr.bf16.mxu1 %v7895_v46  ;;  %v9804_v45 = vld [vmem:[%s10720_s27 + $0x1604] ss:$8 sps:$4 sm:$0xff]   ;;  %v11283_v46 = vld [vmem:[%s11988_s0 + $0x38] sm:$0xff] }
 0x198   : > { %7237 = vmatprep.mubr.bf16.mxu0 %v7925_v23  ;;  %v11288_v23 = vld [vmem:[%s11988_s0 + $0xb0] sm:$0xff] }
 0x199   : > { %6593 = vmatpush1.bf16.msra.mxu1 %v9705_v33  ;;  %v7894_v33 = vcombine.low %v11201_v40, %v11201_v40  ;;  %v7927_v40 = vcombine.high %v11288_v23, %v11288_v23 }
 0x19a   : > { %7208 = vmatpush1.bf16.msra.mxu0 %v9708_v47  ;;  %6594 = vmatprep.subr.bf16.mxu1 %v9713_v48  ;;  %v7924_v47 = vcombine.low %v11206_v30, %v11206_v30  ;;  %v9797_v48 = vld [vmem:[%s10720_s27 + $0x700] ss:$8 sps:$4 sm:$0xff]   ;;  %v9805_v30 = vld [vmem:[%s10720_s27 + $0x710] ss:$8 sps:$4 sm:$0xff]  }
 0x19b   : > { %7209 = vmatprep.subr.bf16.mxu0 %v9716_v49  ;;  %v9802_v49 = vld [vmem:[%s10720_s27 + $0x1600] ss:$8 sps:$4 sm:$0xff]  }
 0x19d   : > { %6595 = vmatpush1.bf16.msra.mxu1 %v9711_v50  ;;  %v9807_v50 = vld [vmem:[%s10720_s27 + $0x714] ss:$8 sps:$4 sm:$0xff]  }
 0x19e   : > { %7210 = vmatpush1.bf16.msra.mxu0 %v9714_v51  ;;  %6596 = vmatprep.subr.bf16.mxu1 %v9719_v52  ;;  %v9810_v51 = vld [vmem:[%s10720_s27 + $0x1614] ss:$8 sps:$4 sm:$0xff]   ;;  %v7897_v52 = vcombine.high %v11283_v46, %v11283_v46 }
 0x19f   : > { %7211 = vmatprep.subr.bf16.mxu0 %v9722_v53  ;;  %v9808_v53 = vld [vmem:[%s10720_s27 + $0x1610] ss:$8 sps:$4 sm:$0xff]  }
 0x1a1   : > { %6597 = vmatpush1.bf16.msra.mxu1 %v9717_v54  ;;  %v9813_v54 = vld [vmem:[%s10720_s27 + $0x724] ss:$8 sps:$4 sm:$0xff]  }
 0x1a2   : > { %7212 = vmatpush1.bf16.msra.mxu0 %v9720_v55  ;;  %6598 = vmatprep.subr.bf16.mxu1 %v9725_v56  ;;  %v9816_v55 = vld [vmem:[%s10720_s27 + $0x1624] ss:$8 sps:$4 sm:$0xff]   ;;  %v9811_v56 = vld [vmem:[%s10720_s27 + $0x720] ss:$8 sps:$4 sm:$0xff]  }
 0x1a3   : > { %7213 = vmatprep.subr.bf16.mxu0 %v9728_v57  ;;  %v9814_v57 = vld [vmem:[%s10720_s27 + $0x1620] ss:$8 sps:$4 sm:$0xff]  }
 0x1a5   : > { %6599 = vmatpush1.bf16.msra.mxu1 %v9723_v58  ;;  %v9819_v58 = vld [vmem:[%s10720_s27 + $0x734] ss:$8 sps:$4 sm:$0xff]  }
 0x1a6   : > { %7214 = vmatpush1.bf16.msra.mxu0 %v9726_v59  ;;  %6600 = vmatprep.subr.bf16.mxu1 %v9731_v60  ;;  %v9822_v59 = vld [vmem:[%s10720_s27 + $0x1634] ss:$8 sps:$4 sm:$0xff]   ;;  %v9817_v60 = vld [vmem:[%s10720_s27 + $0x730] ss:$8 sps:$4 sm:$0xff]  }
 0x1a7   : > { %7215 = vmatprep.subr.bf16.mxu0 %v9734_v61  ;;  %v9820_v61 = vld [vmem:[%s10720_s27 + $0x1630] ss:$8 sps:$4 sm:$0xff]  }
 0x1a9   : > { %6601 = vmatpush1.bf16.msra.mxu1 %v9729_v62  ;;  %v9825_v62 = vld [vmem:[%s10720_s27 + $0x744] ss:$8 sps:$4 sm:$0xff]  }
 0x1aa   : > { %7216 = vmatpush1.bf16.msra.mxu0 %v9732_v63  ;;  %6602 = vmatprep.subr.bf16.mxu1 %v9737_v2  ;;  %v9828_v63 = vld [vmem:[%s10720_s27 + $0x1644] ss:$8 sps:$4 sm:$0xff]   ;;  %v9823_v2 = vld [vmem:[%s10720_s27 + $0x740] ss:$8 sps:$4 sm:$0xff]  }
 0x1ab   : > { %7217 = vmatprep.subr.bf16.mxu0 %v9740_v3  ;;  %v9826_v3 = vld [vmem:[%s10720_s27 + $0x1640] ss:$8 sps:$4 sm:$0xff]  }
 0x1ad   : > { %6603 = vmatpush1.bf16.msra.mxu1 %v9735_v4  ;;  %v9831_v4 = vld [vmem:[%s10720_s27 + $0x754] ss:$8 sps:$4 sm:$0xff]  }
 0x1ae   : > { %7218 = vmatpush1.bf16.msra.mxu0 %v9738_v5  ;;  %6604 = vmatprep.subr.bf16.mxu1 %v9743_v6  ;;  %v9834_v5 = vld [vmem:[%s10720_s27 + $0x1654] ss:$8 sps:$4 sm:$0xff]   ;;  %v9829_v6 = vld [vmem:[%s10720_s27 + $0x750] ss:$8 sps:$4 sm:$0xff]  }
 0x1af   : > { %7219 = vmatprep.subr.bf16.mxu0 %v9746_v7  ;;  %v9832_v7 = vld [vmem:[%s10720_s27 + $0x1650] ss:$8 sps:$4 sm:$0xff]  }
 0x1b1   : > { %6605 = vmatpush1.bf16.msra.mxu1 %v9741_v8  ;;  %v9837_v8 = vld [vmem:[%s10720_s27 + $0x764] ss:$8 sps:$4 sm:$0xff]  }
 0x1b2   : > { %7220 = vmatpush1.bf16.msra.mxu0 %v9744_v9  ;;  %6606 = vmatprep.subr.bf16.mxu1 %v9749_v10  ;;  %v9840_v9 = vld [vmem:[%s10720_s27 + $0x1664] ss:$8 sps:$4 sm:$0xff]   ;;  %v9835_v10 = vld [vmem:[%s10720_s27 + $0x760] ss:$8 sps:$4 sm:$0xff]  }
 0x1b3   : > { %7221 = vmatprep.subr.bf16.mxu0 %v9752_v11  ;;  %v9838_v11 = vld [vmem:[%s10720_s27 + $0x1660] ss:$8 sps:$4 sm:$0xff]  }
 0x1b5   : > { %6607 = vmatpush1.bf16.msra.mxu1 %v9747_v12  ;;  %v9843_v12 = vld [vmem:[%s10720_s27 + $0x774] ss:$8 sps:$4 sm:$0xff]  }
 0x1b6   : > { %7222 = vmatpush1.bf16.msra.mxu0 %v9750_v13  ;;  %6608 = vmatprep.subr.bf16.mxu1 %v9755_v0  ;;  %v9846_v13 = vld [vmem:[%s10720_s27 + $0x1674] ss:$8 sps:$4 sm:$0xff]   ;;  %v9841_v0 = vld [vmem:[%s10720_s27 + $0x770] ss:$8 sps:$4 sm:$0xff]  }
 0x1b7   : > { %7223 = vmatprep.subr.bf16.mxu0 %v9758_v14  ;;  %v9844_v14 = vld [vmem:[%s10720_s27 + $0x1670] ss:$8 sps:$4 sm:$0xff]  }
 0x1b9   : > { %6609 = vmatpush1.bf16.msra.mxu1 %v9753_v1  ;;  %v9849_v1 = vld [vmem:[%s10720_s27 + $0x784] ss:$8 sps:$4 sm:$0xff]  }
 0x1ba   : > { %7224 = vmatpush1.bf16.msra.mxu0 %v9756_v15  ;;  %6610 = vmatprep.subr.bf16.mxu1 %v9761_v16  ;;  %v9852_v15 = vld [vmem:[%s10720_s27 + $0x1684] ss:$8 sps:$4 sm:$0xff]   ;;  %v9847_v16 = vld [vmem:[%s10720_s27 + $0x780] ss:$8 sps:$4 sm:$0xff]  }
 0x1bb   : > { %7225 = vmatprep.subr.bf16.mxu0 %v9764_v18  ;;  %v9850_v18 = vld [vmem:[%s10720_s27 + $0x1680] ss:$8 sps:$4 sm:$0xff]  }
 0x1bd   : > { %6611 = vmatpush1.bf16.msra.mxu1 %v9759_v21  ;;  %v9855_v21 = vld [vmem:[%s10720_s27 + $0x794] ss:$8 sps:$4 sm:$0xff]  }
 0x1be   : > { %7226 = vmatpush1.bf16.msra.mxu0 %v9762_v22  ;;  %6612 = vmatprep.subr.bf16.mxu1 %v9767_v24  ;;  %v9858_v22 = vld [vmem:[%s10720_s27 + $0x1694] ss:$8 sps:$4 sm:$0xff]   ;;  %v9853_v24 = vld [vmem:[%s10720_s27 + $0x790] ss:$8 sps:$4 sm:$0xff]  }
 0x1bf   : > { %7227 = vmatprep.subr.bf16.mxu0 %v9770_v25  ;;  %v9856_v25 = vld [vmem:[%s10720_s27 + $0x1690] ss:$8 sps:$4 sm:$0xff]  }
 0x1c1   : > { %6613 = vmatpush1.bf16.msra.mxu1 %v9765_v26  ;;  %v9861_v26 = vld [vmem:[%s10720_s27 + $0x7a4] ss:$8 sps:$4 sm:$0xff]  }
 0x1c2   : > { %7228 = vmatpush1.bf16.msra.mxu0 %v9768_v17  ;;  %6614 = vmatprep.subr.bf16.mxu1 %v9773_v20  ;;  %v9864_v17 = vld [vmem:[%s10720_s27 + $0x16a4] ss:$8 sps:$4 sm:$0xff]   ;;  %v9859_v20 = vld [vmem:[%s10720_s27 + $0x7a0] ss:$8 sps:$4 sm:$0xff]  }
 0x1c3   : > { %7229 = vmatprep.subr.bf16.mxu0 %v9776_v27  ;;  %v9862_v27 = vld [vmem:[%s10720_s27 + $0x16a0] ss:$8 sps:$4 sm:$0xff]  }
 0x1c5   : > { %6615 = vmatpush1.bf16.msra.mxu1 %v9771_v28  ;;  %v9867_v28 = vld [vmem:[%s10720_s27 + $0x7b4] ss:$8 sps:$4 sm:$0xff]  }
 0x1c6   : > { %7230 = vmatpush1.bf16.msra.mxu0 %v9774_v29  ;;  %6616 = vmatprep.subr.bf16.mxu1 %v9779_v19  ;;  %v9870_v29 = vld [vmem:[%s10720_s27 + $0x16b4] ss:$8 sps:$4 sm:$0xff]   ;;  %v9865_v19 = vld [vmem:[%s10720_s27 + $0x7b0] ss:$8 sps:$4 sm:$0xff]  }
 0x1c7   : > { %7231 = vmatprep.subr.bf16.mxu0 %v9782_v32  ;;  %v9868_v32 = vld [vmem:[%s10720_s27 + $0x16b0] ss:$8 sps:$4 sm:$0xff]  }
 0x1c9   : > { %6617 = vmatpush1.bf16.msra.mxu1 %v9777_v34  ;;  %v9873_v34 = vld [vmem:[%s10720_s27 + $0x7c4] ss:$8 sps:$4 sm:$0xff]  }
 0x1ca   : > { %7232 = vmatpush1.bf16.msra.mxu0 %v9780_v35  ;;  %6618 = vmatprep.subr.bf16.mxu1 %v9785_v36  ;;  %v9876_v35 = vld [vmem:[%s10720_s27 + $0x16c4] ss:$8 sps:$4 sm:$0xff]   ;;  %v9871_v36 = vld [vmem:[%s10720_s27 + $0x7c0] ss:$8 sps:$4 sm:$0xff]  }
 0x1cb   : > { %7233 = vmatprep.subr.bf16.mxu0 %v9788_v37  ;;  %v9874_v37 = vld [vmem:[%s10720_s27 + $0x16c0] ss:$8 sps:$4 sm:$0xff]  }
 0x1cd   : > { %6619 = vmatpush1.bf16.msra.mxu1 %v9783_v38  ;;  %v9879_v38 = vld [vmem:[%s10720_s27 + $0x7d4] ss:$8 sps:$4 sm:$0xff]  }
 0x1ce   : > { %7234 = vmatpush1.bf16.msra.mxu0 %v9786_v39  ;;  %6620 = vmatprep.subr.bf16.mxu1 %v9791_v31  ;;  %v9882_v39 = vld [vmem:[%s10720_s27 + $0x16d4] ss:$8 sps:$4 sm:$0xff]   ;;  %v9877_v31 = vld [vmem:[%s10720_s27 + $0x7d0] ss:$8 sps:$4 sm:$0xff]  }
 0x1cf   : > { %7235 = vmatprep.subr.bf16.mxu0 %v9794_v41  ;;  %v9880_v41 = vld [vmem:[%s10720_s27 + $0x16d0] ss:$8 sps:$4 sm:$0xff]  }
 0x1d1   : > { %6621 = vmatpush1.bf16.msra.mxu1 %v9789_v42  ;;  %v9885_v42 = vld [vmem:[%s10720_s27 + $0x7e4] ss:$8 sps:$4 sm:$0xff]  }
 0x1d2   : > { %7236 = vmatpush1.bf16.msra.mxu0 %v9792_v43  ;;  %6631 = vmatprep.subr.bf16.mxu1 %v9799_v44  ;;  %v9888_v43 = vld [vmem:[%s10720_s27 + $0x16e4] ss:$8 sps:$4 sm:$0xff]   ;;  %v9883_v44 = vld [vmem:[%s10720_s27 + $0x7e0] ss:$8 sps:$4 sm:$0xff]  }
 0x1d3   : > { %7246 = vmatprep.subr.bf16.mxu0 %v9804_v45  ;;  %v9886_v45 = vld [vmem:[%s10720_s27 + $0x16e0] ss:$8 sps:$4 sm:$0xff]  }
 0x1d4   : > { %6623 = vmatmul.mubr.bf16.vlgmr.msra.gmra.mrb[0].mxu1 %v7894_v33  ;;  %v9891_v33 = vld [vmem:[%s10720_s27 + $0x7f4] ss:$8 sps:$4 sm:$0xff]  }
 0x1d5   : > { %7238 = vmatmul.mubr.bf16.vlgmr.msra.gmra.mrb[0].mxu0 %v7924_v47  ;;  %6632 = vmatpush1.bf16.msra.mxu1 %v9797_v48  ;;  %v9894_v47 = vld [vmem:[%s10720_s27 + $0x16f4] ss:$8 sps:$4 sm:$0xff]   ;;  %v9889_v48 = vld [vmem:[%s10720_s27 + $0x7f0] ss:$8 sps:$4 sm:$0xff]  }
 0x1d6   : > { %7247 = vmatpush1.bf16.msra.mxu0 %v9802_v49  ;;  %6633 = vmatprep.subr.bf16.mxu1 %v9807_v50  ;;  %v9892_v49 = vld [vmem:[%s10720_s27 + $0x16f0] ss:$8 sps:$4 sm:$0xff]   ;;  %v9899_v50 = vld [vmem:[%s10720_s27 + $0x804] ss:$8 sps:$4 sm:$0xff]  }
 0x1d7   : > { %7248 = vmatprep.subr.bf16.mxu0 %v9810_v51  ;;  %6663 = vmatprep.mubr.bf16.mxu1 %v7897_v52  ;;  %v9904_v51 = vld [vmem:[%s10720_s27 + $0x1704] ss:$8 sps:$4 sm:$0xff]  }
 0x1d8   : > { %7278 = vmatprep.mubr.bf16.mxu0 %v7927_v40  ;;  %v11365_v52 = vld [vmem:[%s11988_s0 + $0x40] sm:$0xff]  ;;  %v11370_v40 = vld [vmem:[%s11988_s0 + $0xb8] sm:$0xff] }
 0x1d9   : > { %6634 = vmatpush1.bf16.msra.mxu1 %v9805_v30  ;;  %v7896_v30 = vcombine.low %v11283_v46, %v11283_v46  ;;  %v7929_v46 = vcombine.high %v11370_v40, %v11370_v40 }
 0x1da   : > { %7249 = vmatpush1.bf16.msra.mxu0 %v9808_v53  ;;  %6635 = vmatprep.subr.bf16.mxu1 %v9813_v54  ;;  %v7926_v53 = vcombine.low %v11288_v23, %v11288_v23  ;;  %v9897_v54 = vld [vmem:[%s10720_s27 + $0x800] ss:$8 sps:$4 sm:$0xff]   ;;  %v9905_v23 = vld [vmem:[%s10720_s27 + $0x810] ss:$8 sps:$4 sm:$0xff]  }
 0x1db   : > { %7250 = vmatprep.subr.bf16.mxu0 %v9816_v55  ;;  %v9902_v55 = vld [vmem:[%s10720_s27 + $0x1700] ss:$8 sps:$4 sm:$0xff]  }
 0x1dd   : > { %6636 = vmatpush1.bf16.msra.mxu1 %v9811_v56  ;;  %v9907_v56 = vld [vmem:[%s10720_s27 + $0x814] ss:$8 sps:$4 sm:$0xff]  }
 0x1de   : > { %7251 = vmatpush1.bf16.msra.mxu0 %v9814_v57  ;;  %6637 = vmatprep.subr.bf16.mxu1 %v9819_v58  ;;  %v9910_v57 = vld [vmem:[%s10720_s27 + $0x1714] ss:$8 sps:$4 sm:$0xff]   ;;  %v7899_v58 = vcombine.high %v11365_v52, %v11365_v52 }
 0x1df   : > { %7252 = vmatprep.subr.bf16.mxu0 %v9822_v59  ;;  %v9908_v59 = vld [vmem:[%s10720_s27 + $0x1710] ss:$8 sps:$4 sm:$0xff]  }
 0x1e1   : > { %6638 = vmatpush1.bf16.msra.mxu1 %v9817_v60  ;;  %v9913_v60 = vld [vmem:[%s10720_s27 + $0x824] ss:$8 sps:$4 sm:$0xff]  }
 0x1e2   : > { %7253 = vmatpush1.bf16.msra.mxu0 %v9820_v61  ;;  %6639 = vmatprep.subr.bf16.mxu1 %v9825_v62  ;;  %v9916_v61 = vld [vmem:[%s10720_s27 + $0x1724] ss:$8 sps:$4 sm:$0xff]   ;;  %v9911_v62 = vld [vmem:[%s10720_s27 + $0x820] ss:$8 sps:$4 sm:$0xff]  }
 0x1e3   : > { %7254 = vmatprep.subr.bf16.mxu0 %v9828_v63  ;;  %v9914_v63 = vld [vmem:[%s10720_s27 + $0x1720] ss:$8 sps:$4 sm:$0xff]  }
 0x1e5   : > { %6640 = vmatpush1.bf16.msra.mxu1 %v9823_v2  ;;  %v9919_v2 = vld [vmem:[%s10720_s27 + $0x834] ss:$8 sps:$4 sm:$0xff]  }
 0x1e6   : > { %7255 = vmatpush1.bf16.msra.mxu0 %v9826_v3  ;;  %6641 = vmatprep.subr.bf16.mxu1 %v9831_v4  ;;  %v9922_v3 = vld [vmem:[%s10720_s27 + $0x1734] ss:$8 sps:$4 sm:$0xff]   ;;  %v9917_v4 = vld [vmem:[%s10720_s27 + $0x830] ss:$8 sps:$4 sm:$0xff]  }
 0x1e7   : > { %7256 = vmatprep.subr.bf16.mxu0 %v9834_v5  ;;  %v9920_v5 = vld [vmem:[%s10720_s27 + $0x1730] ss:$8 sps:$4 sm:$0xff]  }
 0x1e9   : > { %6642 = vmatpush1.bf16.msra.mxu1 %v9829_v6  ;;  %v9925_v6 = vld [vmem:[%s10720_s27 + $0x844] ss:$8 sps:$4 sm:$0xff]  }
 0x1ea   : > { %7257 = vmatpush1.bf16.msra.mxu0 %v9832_v7  ;;  %6643 = vmatprep.subr.bf16.mxu1 %v9837_v8  ;;  %v9928_v7 = vld [vmem:[%s10720_s27 + $0x1744] ss:$8 sps:$4 sm:$0xff]   ;;  %v9923_v8 = vld [vmem:[%s10720_s27 + $0x840] ss:$8 sps:$4 sm:$0xff]  }
 0x1eb   : > { %7258 = vmatprep.subr.bf16.mxu0 %v9840_v9  ;;  %v9926_v9 = vld [vmem:[%s10720_s27 + $0x1740] ss:$8 sps:$4 sm:$0xff]  }
 0x1ed   : > { %6644 = vmatpush1.bf16.msra.mxu1 %v9835_v10  ;;  %v9931_v10 = vld [vmem:[%s10720_s27 + $0x854] ss:$8 sps:$4 sm:$0xff]  }
 0x1ee   : > { %7259 = vmatpush1.bf16.msra.mxu0 %v9838_v11  ;;  %6645 = vmatprep.subr.bf16.mxu1 %v9843_v12  ;;  %v9934_v11 = vld [vmem:[%s10720_s27 + $0x1754] ss:$8 sps:$4 sm:$0xff]   ;;  %v9929_v12 = vld [vmem:[%s10720_s27 + $0x850] ss:$8 sps:$4 sm:$0xff]  }
 0x1ef   : > { %7260 = vmatprep.subr.bf16.mxu0 %v9846_v13  ;;  %v9932_v13 = vld [vmem:[%s10720_s27 + $0x1750] ss:$8 sps:$4 sm:$0xff]  }
 0x1f1   : > { %6646 = vmatpush1.bf16.msra.mxu1 %v9841_v0  ;;  %v9937_v0 = vld [vmem:[%s10720_s27 + $0x864] ss:$8 sps:$4 sm:$0xff]  }
 0x1f2   : > { %7261 = vmatpush1.bf16.msra.mxu0 %v9844_v14  ;;  %6647 = vmatprep.subr.bf16.mxu1 %v9849_v1  ;;  %v9940_v14 = vld [vmem:[%s10720_s27 + $0x1764] ss:$8 sps:$4 sm:$0xff]   ;;  %v9935_v1 = vld [vmem:[%s10720_s27 + $0x860] ss:$8 sps:$4 sm:$0xff]  }
 0x1f3   : > { %7262 = vmatprep.subr.bf16.mxu0 %v9852_v15  ;;  %v9938_v15 = vld [vmem:[%s10720_s27 + $0x1760] ss:$8 sps:$4 sm:$0xff]  }
 0x1f5   : > { %6648 = vmatpush1.bf16.msra.mxu1 %v9847_v16  ;;  %v9943_v16 = vld [vmem:[%s10720_s27 + $0x874] ss:$8 sps:$4 sm:$0xff]  }
 0x1f6   : > { %7263 = vmatpush1.bf16.msra.mxu0 %v9850_v18  ;;  %6649 = vmatprep.subr.bf16.mxu1 %v9855_v21  ;;  %v9946_v18 = vld [vmem:[%s10720_s27 + $0x1774] ss:$8 sps:$4 sm:$0xff]   ;;  %v9941_v21 = vld [vmem:[%s10720_s27 + $0x870] ss:$8 sps:$4 sm:$0xff]  }
 0x1f7   : > { %7264 = vmatprep.subr.bf16.mxu0 %v9858_v22  ;;  %v9944_v22 = vld [vmem:[%s10720_s27 + $0x1770] ss:$8 sps:$4 sm:$0xff]  }
 0x1f9   : > { %6650 = vmatpush1.bf16.msra.mxu1 %v9853_v24  ;;  %v9949_v24 = vld [vmem:[%s10720_s27 + $0x884] ss:$8 sps:$4 sm:$0xff]  }
 0x1fa   : > { %7265 = vmatpush1.bf16.msra.mxu0 %v9856_v25  ;;  %6651 = vmatprep.subr.bf16.mxu1 %v9861_v26  ;;  %v9952_v25 = vld [vmem:[%s10720_s27 + $0x1784] ss:$8 sps:$4 sm:$0xff]   ;;  %v9947_v26 = vld [vmem:[%s10720_s27 + $0x880] ss:$8 sps:$4 sm:$0xff]  }
 0x1fb   : > { %7266 = vmatprep.subr.bf16.mxu0 %v9864_v17  ;;  %v9950_v17 = vld [vmem:[%s10720_s27 + $0x1780] ss:$8 sps:$4 sm:$0xff]  }
 0x1fd   : > { %6652 = vmatpush1.bf16.msra.mxu1 %v9859_v20  ;;  %v9955_v20 = vld [vmem:[%s10720_s27 + $0x894] ss:$8 sps:$4 sm:$0xff]  }
 0x1fe   : > { %7267 = vmatpush1.bf16.msra.mxu0 %v9862_v27  ;;  %6653 = vmatprep.subr.bf16.mxu1 %v9867_v28  ;;  %v9958_v27 = vld [vmem:[%s10720_s27 + $0x1794] ss:$8 sps:$4 sm:$0xff]   ;;  %v9953_v28 = vld [vmem:[%s10720_s27 + $0x890] ss:$8 sps:$4 sm:$0xff]  }
 0x1ff   : > { %7268 = vmatprep.subr.bf16.mxu0 %v9870_v29  ;;  %v9956_v29 = vld [vmem:[%s10720_s27 + $0x1790] ss:$8 sps:$4 sm:$0xff]  }
 0x201   : > { %6654 = vmatpush1.bf16.msra.mxu1 %v9865_v19  ;;  %v9961_v19 = vld [vmem:[%s10720_s27 + $0x8a4] ss:$8 sps:$4 sm:$0xff]  }
 0x202   : > { %7269 = vmatpush1.bf16.msra.mxu0 %v9868_v32  ;;  %6655 = vmatprep.subr.bf16.mxu1 %v9873_v34  ;;  %v9964_v32 = vld [vmem:[%s10720_s27 + $0x17a4] ss:$8 sps:$4 sm:$0xff]   ;;  %v9959_v34 = vld [vmem:[%s10720_s27 + $0x8a0] ss:$8 sps:$4 sm:$0xff]  }
 0x203   : > { %7270 = vmatprep.subr.bf16.mxu0 %v9876_v35  ;;  %v9962_v35 = vld [vmem:[%s10720_s27 + $0x17a0] ss:$8 sps:$4 sm:$0xff]  }
 0x205   : > { %6656 = vmatpush1.bf16.msra.mxu1 %v9871_v36  ;;  %v9967_v36 = vld [vmem:[%s10720_s27 + $0x8b4] ss:$8 sps:$4 sm:$0xff]  }
 0x206   : > { %7271 = vmatpush1.bf16.msra.mxu0 %v9874_v37  ;;  %6657 = vmatprep.subr.bf16.mxu1 %v9879_v38  ;;  %v9970_v37 = vld [vmem:[%s10720_s27 + $0x17b4] ss:$8 sps:$4 sm:$0xff]   ;;  %v9965_v38 = vld [vmem:[%s10720_s27 + $0x8b0] ss:$8 sps:$4 sm:$0xff]  }
 0x207   : > { %7272 = vmatprep.subr.bf16.mxu0 %v9882_v39  ;;  %v9968_v39 = vld [vmem:[%s10720_s27 + $0x17b0] ss:$8 sps:$4 sm:$0xff]  }
 0x209   : > { %6658 = vmatpush1.bf16.msra.mxu1 %v9877_v31  ;;  %v9973_v31 = vld [vmem:[%s10720_s27 + $0x8c4] ss:$8 sps:$4 sm:$0xff]  }
 0x20a   : > { %7273 = vmatpush1.bf16.msra.mxu0 %v9880_v41  ;;  %6659 = vmatprep.subr.bf16.mxu1 %v9885_v42  ;;  %v9976_v41 = vld [vmem:[%s10720_s27 + $0x17c4] ss:$8 sps:$4 sm:$0xff]   ;;  %v9971_v42 = vld [vmem:[%s10720_s27 + $0x8c0] ss:$8 sps:$4 sm:$0xff]  }
 0x20b   : > { %7274 = vmatprep.subr.bf16.mxu0 %v9888_v43  ;;  %v9974_v43 = vld [vmem:[%s10720_s27 + $0x17c0] ss:$8 sps:$4 sm:$0xff]  }
 0x20d   : > { %6660 = vmatpush1.bf16.msra.mxu1 %v9883_v44  ;;  %v9979_v44 = vld [vmem:[%s10720_s27 + $0x8d4] ss:$8 sps:$4 sm:$0xff]  }
 0x20e   : > { %7275 = vmatpush1.bf16.msra.mxu0 %v9886_v45  ;;  %6661 = vmatprep.subr.bf16.mxu1 %v9891_v33  ;;  %v9982_v45 = vld [vmem:[%s10720_s27 + $0x17d4] ss:$8 sps:$4 sm:$0xff]   ;;  %v9977_v33 = vld [vmem:[%s10720_s27 + $0x8d0] ss:$8 sps:$4 sm:$0xff]  }
 0x20f   : > { %7276 = vmatprep.subr.bf16.mxu0 %v9894_v47  ;;  %v9980_v47 = vld [vmem:[%s10720_s27 + $0x17d0] ss:$8 sps:$4 sm:$0xff]  }
 0x211   : > { %6662 = vmatpush1.bf16.msra.mxu1 %v9889_v48  ;;  %v9985_v48 = vld [vmem:[%s10720_s27 + $0x8e4] ss:$8 sps:$4 sm:$0xff]  }
 0x212   : > { %7277 = vmatpush1.bf16.msra.mxu0 %v9892_v49  ;;  %6672 = vmatprep.subr.bf16.mxu1 %v9899_v50  ;;  %v9988_v49 = vld [vmem:[%s10720_s27 + $0x17e4] ss:$8 sps:$4 sm:$0xff]   ;;  %v9983_v50 = vld [vmem:[%s10720_s27 + $0x8e0] ss:$8 sps:$4 sm:$0xff]  }
 0x213   : > { %7287 = vmatprep.subr.bf16.mxu0 %v9904_v51  ;;  %v9986_v51 = vld [vmem:[%s10720_s27 + $0x17e0] ss:$8 sps:$4 sm:$0xff]  }
 0x214   : > { %6664 = vmatmul.mubr.bf16.vlgmr.msra.gmra.mrb[0].mxu1 %v7896_v30  ;;  %v9991_v30 = vld [vmem:[%s10720_s27 + $0x8f4] ss:$8 sps:$4 sm:$0xff]  }
 0x215   : > { %7279 = vmatmul.mubr.bf16.vlgmr.msra.gmra.mrb[0].mxu0 %v7926_v53  ;;  %6673 = vmatpush1.bf16.msra.mxu1 %v9897_v54  ;;  %v9994_v53 = vld [vmem:[%s10720_s27 + $0x17f4] ss:$8 sps:$4 sm:$0xff]   ;;  %v9989_v54 = vld [vmem:[%s10720_s27 + $0x8f0] ss:$8 sps:$4 sm:$0xff]  }
 0x216   : > { %7288 = vmatpush1.bf16.msra.mxu0 %v9902_v55  ;;  %6674 = vmatprep.subr.bf16.mxu1 %v9907_v56  ;;  %v9992_v55 = vld [vmem:[%s10720_s27 + $0x17f0] ss:$8 sps:$4 sm:$0xff]   ;;  %v9999_v56 = vld [vmem:[%s10720_s27 + $0x904] ss:$8 sps:$4 sm:$0xff]  }
 0x217   : > { %7289 = vmatprep.subr.bf16.mxu0 %v9910_v57  ;;  %6704 = vmatprep.mubr.bf16.mxu1 %v7899_v58  ;;  %v10004_v57 = vld [vmem:[%s10720_s27 + $0x1804] ss:$8 sps:$4 sm:$0xff]   ;;  %v7898_v58 = vcombine.low %v11365_v52, %v11365_v52  ;;  %v10002_v52 = vld [vmem:[%s10720_s27 + $0x1800] ss:$8 sps:$4 sm:$0xff]  }
 0x218   : > { %7319 = vmatprep.mubr.bf16.mxu0 %v7929_v46  ;;  %v7928_v46 = vcombine.low %v11370_v40, %v11370_v40  ;;  %v10007_v40 = vld [vmem:[%s10720_s27 + $0x914] ss:$8 sps:$4 sm:$0xff]  }
 0x219   : > { %6675 = vmatpush1.bf16.msra.mxu1 %v9905_v23  ;;  %v11451_v23 = vld [vmem:[%s11988_s0 + $0x48] sm:$0xff] }
 0x21a   : > { %7290 = vmatpush1.bf16.msra.mxu0 %v9908_v59  ;;  %6676 = vmatprep.subr.bf16.mxu1 %v9913_v60  ;;  %v11456_v59 = vld [vmem:[%s11988_s0 + $0xc0] sm:$0xff] }
 0x21b   : > { %7291 = vmatprep.subr.bf16.mxu0 %v9916_v61  ;;  %v9997_v60 = vld [vmem:[%s10720_s27 + $0x900] ss:$8 sps:$4 sm:$0xff]   ;;  %v10010_v61 = vld [vmem:[%s10720_s27 + $0x1814] ss:$8 sps:$4 sm:$0xff]  }
 0x21d   : > { %6677 = vmatpush1.bf16.msra.mxu1 %v9911_v62  ;;  %v7901_v62 = vcombine.high %v11451_v23, %v11451_v23 }
 0x21e   : > { %7292 = vmatpush1.bf16.msra.mxu0 %v9914_v63  ;;  %6678 = vmatprep.subr.bf16.mxu1 %v9919_v2  ;;  %v7931_v63 = vcombine.high %v11456_v59, %v11456_v59  ;;  %v10005_v2 = vld [vmem:[%s10720_s27 + $0x910] ss:$8 sps:$4 sm:$0xff]  }
 0x21f   : > { %7293 = vmatprep.subr.bf16.mxu0 %v9922_v3  ;;  %v10008_v3 = vld [vmem:[%s10720_s27 + $0x1810] ss:$8 sps:$4 sm:$0xff]  }
 0x221   : > { %6679 = vmatpush1.bf16.msra.mxu1 %v9917_v4  ;;  %v10013_v4 = vld [vmem:[%s10720_s27 + $0x924] ss:$8 sps:$4 sm:$0xff]  }
 0x222   : > { %7294 = vmatpush1.bf16.msra.mxu0 %v9920_v5  ;;  %6680 = vmatprep.subr.bf16.mxu1 %v9925_v6  ;;  %v10016_v5 = vld [vmem:[%s10720_s27 + $0x1824] ss:$8 sps:$4 sm:$0xff]   ;;  %v10011_v6 = vld [vmem:[%s10720_s27 + $0x920] ss:$8 sps:$4 sm:$0xff]  }
 0x223   : > { %7295 = vmatprep.subr.bf16.mxu0 %v9928_v7  ;;  %v10014_v7 = vld [vmem:[%s10720_s27 + $0x1820] ss:$8 sps:$4 sm:$0xff]  }
 0x225   : > { %6681 = vmatpush1.bf16.msra.mxu1 %v9923_v8  ;;  %v10019_v8 = vld [vmem:[%s10720_s27 + $0x934] ss:$8 sps:$4 sm:$0xff]  }
 0x226   : > { %7296 = vmatpush1.bf16.msra.mxu0 %v9926_v9  ;;  %6682 = vmatprep.subr.bf16.mxu1 %v9931_v10  ;;  %v10022_v9 = vld [vmem:[%s10720_s27 + $0x1834] ss:$8 sps:$4 sm:$0xff]   ;;  %v10017_v10 = vld [vmem:[%s10720_s27 + $0x930] ss:$8 sps:$4 sm:$0xff]  }
 0x227   : > { %7297 = vmatprep.subr.bf16.mxu0 %v9934_v11  ;;  %v10020_v11 = vld [vmem:[%s10720_s27 + $0x1830] ss:$8 sps:$4 sm:$0xff]  }
 0x229   : > { %6683 = vmatpush1.bf16.msra.mxu1 %v9929_v12  ;;  %v10025_v12 = vld [vmem:[%s10720_s27 + $0x944] ss:$8 sps:$4 sm:$0xff]  }
 0x22a   : > { %7298 = vmatpush1.bf16.msra.mxu0 %v9932_v13  ;;  %6684 = vmatprep.subr.bf16.mxu1 %v9937_v0  ;;  %v10028_v13 = vld [vmem:[%s10720_s27 + $0x1844] ss:$8 sps:$4 sm:$0xff]   ;;  %v10023_v0 = vld [vmem:[%s10720_s27 + $0x940] ss:$8 sps:$4 sm:$0xff]  }
 0x22b   : > { %7299 = vmatprep.subr.bf16.mxu0 %v9940_v14  ;;  %v10026_v14 = vld [vmem:[%s10720_s27 + $0x1840] ss:$8 sps:$4 sm:$0xff]  }
 0x22d   : > { %6685 = vmatpush1.bf16.msra.mxu1 %v9935_v1  ;;  %v10031_v1 = vld [vmem:[%s10720_s27 + $0x954] ss:$8 sps:$4 sm:$0xff]  }
 0x22e   : > { %7300 = vmatpush1.bf16.msra.mxu0 %v9938_v15  ;;  %6686 = vmatprep.subr.bf16.mxu1 %v9943_v16  ;;  %v10034_v15 = vld [vmem:[%s10720_s27 + $0x1854] ss:$8 sps:$4 sm:$0xff]   ;;  %v10029_v16 = vld [vmem:[%s10720_s27 + $0x950] ss:$8 sps:$4 sm:$0xff]  }
 0x22f   : > { %7301 = vmatprep.subr.bf16.mxu0 %v9946_v18  ;;  %v10032_v18 = vld [vmem:[%s10720_s27 + $0x1850] ss:$8 sps:$4 sm:$0xff]  }
 0x231   : > { %6687 = vmatpush1.bf16.msra.mxu1 %v9941_v21  ;;  %v10037_v21 = vld [vmem:[%s10720_s27 + $0x964] ss:$8 sps:$4 sm:$0xff]  }
 0x232   : > { %7302 = vmatpush1.bf16.msra.mxu0 %v9944_v22  ;;  %6688 = vmatprep.subr.bf16.mxu1 %v9949_v24  ;;  %v10040_v22 = vld [vmem:[%s10720_s27 + $0x1864] ss:$8 sps:$4 sm:$0xff]   ;;  %v10035_v24 = vld [vmem:[%s10720_s27 + $0x960] ss:$8 sps:$4 sm:$0xff]  }
 0x233   : > { %7303 = vmatprep.subr.bf16.mxu0 %v9952_v25  ;;  %v10038_v25 = vld [vmem:[%s10720_s27 + $0x1860] ss:$8 sps:$4 sm:$0xff]  }
 0x235   : > { %6689 = vmatpush1.bf16.msra.mxu1 %v9947_v26  ;;  %v10043_v26 = vld [vmem:[%s10720_s27 + $0x974] ss:$8 sps:$4 sm:$0xff]  }
 0x236   : > { %7304 = vmatpush1.bf16.msra.mxu0 %v9950_v17  ;;  %6690 = vmatprep.subr.bf16.mxu1 %v9955_v20  ;;  %v10046_v17 = vld [vmem:[%s10720_s27 + $0x1874] ss:$8 sps:$4 sm:$0xff]   ;;  %v10041_v20 = vld [vmem:[%s10720_s27 + $0x970] ss:$8 sps:$4 sm:$0xff]  }
 0x237   : > { %7305 = vmatprep.subr.bf16.mxu0 %v9958_v27  ;;  %v10044_v27 = vld [vmem:[%s10720_s27 + $0x1870] ss:$8 sps:$4 sm:$0xff]  }
 0x239   : > { %6691 = vmatpush1.bf16.msra.mxu1 %v9953_v28  ;;  %v10049_v28 = vld [vmem:[%s10720_s27 + $0x984] ss:$8 sps:$4 sm:$0xff]  }
 0x23a   : > { %7306 = vmatpush1.bf16.msra.mxu0 %v9956_v29  ;;  %6692 = vmatprep.subr.bf16.mxu1 %v9961_v19  ;;  %v10052_v29 = vld [vmem:[%s10720_s27 + $0x1884] ss:$8 sps:$4 sm:$0xff]   ;;  %v10047_v19 = vld [vmem:[%s10720_s27 + $0x980] ss:$8 sps:$4 sm:$0xff]  }
 0x23b   : > { %7307 = vmatprep.subr.bf16.mxu0 %v9964_v32  ;;  %v10050_v32 = vld [vmem:[%s10720_s27 + $0x1880] ss:$8 sps:$4 sm:$0xff]  }
 0x23d   : > { %6693 = vmatpush1.bf16.msra.mxu1 %v9959_v34  ;;  %v10055_v34 = vld [vmem:[%s10720_s27 + $0x994] ss:$8 sps:$4 sm:$0xff]  }
 0x23e   : > { %7308 = vmatpush1.bf16.msra.mxu0 %v9962_v35  ;;  %6694 = vmatprep.subr.bf16.mxu1 %v9967_v36  ;;  %v10058_v35 = vld [vmem:[%s10720_s27 + $0x1894] ss:$8 sps:$4 sm:$0xff]   ;;  %v10053_v36 = vld [vmem:[%s10720_s27 + $0x990] ss:$8 sps:$4 sm:$0xff]  }
 0x23f   : > { %7309 = vmatprep.subr.bf16.mxu0 %v9970_v37  ;;  %v10056_v37 = vld [vmem:[%s10720_s27 + $0x1890] ss:$8 sps:$4 sm:$0xff]  }
 0x241   : > { %6695 = vmatpush1.bf16.msra.mxu1 %v9965_v38  ;;  %v10061_v38 = vld [vmem:[%s10720_s27 + $0x9a4] ss:$8 sps:$4 sm:$0xff]  }
 0x242   : > { %7310 = vmatpush1.bf16.msra.mxu0 %v9968_v39  ;;  %6696 = vmatprep.subr.bf16.mxu1 %v9973_v31  ;;  %v10064_v39 = vld [vmem:[%s10720_s27 + $0x18a4] ss:$8 sps:$4 sm:$0xff]   ;;  %v10059_v31 = vld [vmem:[%s10720_s27 + $0x9a0] ss:$8 sps:$4 sm:$0xff]  }
 0x243   : > { %7311 = vmatprep.subr.bf16.mxu0 %v9976_v41  ;;  %v10062_v41 = vld [vmem:[%s10720_s27 + $0x18a0] ss:$8 sps:$4 sm:$0xff]  }
 0x245   : > { %6697 = vmatpush1.bf16.msra.mxu1 %v9971_v42  ;;  %v10067_v42 = vld [vmem:[%s10720_s27 + $0x9b4] ss:$8 sps:$4 sm:$0xff]  }
 0x246   : > { %7312 = vmatpush1.bf16.msra.mxu0 %v9974_v43  ;;  %6698 = vmatprep.subr.bf16.mxu1 %v9979_v44  ;;  %v10070_v43 = vld [vmem:[%s10720_s27 + $0x18b4] ss:$8 sps:$4 sm:$0xff]   ;;  %v10065_v44 = vld [vmem:[%s10720_s27 + $0x9b0] ss:$8 sps:$4 sm:$0xff]  }
 0x247   : > { %7313 = vmatprep.subr.bf16.mxu0 %v9982_v45  ;;  %v10068_v45 = vld [vmem:[%s10720_s27 + $0x18b0] ss:$8 sps:$4 sm:$0xff]  }
 0x249   : > { %6699 = vmatpush1.bf16.msra.mxu1 %v9977_v33  ;;  %v10073_v33 = vld [vmem:[%s10720_s27 + $0x9c4] ss:$8 sps:$4 sm:$0xff]  }
 0x24a   : > { %7314 = vmatpush1.bf16.msra.mxu0 %v9980_v47  ;;  %6700 = vmatprep.subr.bf16.mxu1 %v9985_v48  ;;  %v10076_v47 = vld [vmem:[%s10720_s27 + $0x18c4] ss:$8 sps:$4 sm:$0xff]   ;;  %v10071_v48 = vld [vmem:[%s10720_s27 + $0x9c0] ss:$8 sps:$4 sm:$0xff]  }
 0x24b   : > { %7315 = vmatprep.subr.bf16.mxu0 %v9988_v49  ;;  %v10074_v49 = vld [vmem:[%s10720_s27 + $0x18c0] ss:$8 sps:$4 sm:$0xff]  }
 0x24d   : > { %6701 = vmatpush1.bf16.msra.mxu1 %v9983_v50  ;;  %v10079_v50 = vld [vmem:[%s10720_s27 + $0x9d4] ss:$8 sps:$4 sm:$0xff]  }
 0x24e   : > { %7316 = vmatpush1.bf16.msra.mxu0 %v9986_v51  ;;  %6702 = vmatprep.subr.bf16.mxu1 %v9991_v30  ;;  %v10082_v51 = vld [vmem:[%s10720_s27 + $0x18d4] ss:$8 sps:$4 sm:$0xff]   ;;  %v10077_v30 = vld [vmem:[%s10720_s27 + $0x9d0] ss:$8 sps:$4 sm:$0xff]  }
 0x24f   : > { %7317 = vmatprep.subr.bf16.mxu0 %v9994_v53  ;;  %v10080_v53 = vld [vmem:[%s10720_s27 + $0x18d0] ss:$8 sps:$4 sm:$0xff]  }
 0x251   : > { %6703 = vmatpush1.bf16.msra.mxu1 %v9989_v54  ;;  %v10085_v54 = vld [vmem:[%s10720_s27 + $0x9e4] ss:$8 sps:$4 sm:$0xff]  }
 0x252   : > { %7318 = vmatpush1.bf16.msra.mxu0 %v9992_v55  ;;  %6713 = vmatprep.subr.bf16.mxu1 %v9999_v56  ;;  %v10088_v55 = vld [vmem:[%s10720_s27 + $0x18e4] ss:$8 sps:$4 sm:$0xff]   ;;  %v10083_v56 = vld [vmem:[%s10720_s27 + $0x9e0] ss:$8 sps:$4 sm:$0xff]  }
 0x253   : > { %7328 = vmatprep.subr.bf16.mxu0 %v10004_v57  ;;  %v10086_v57 = vld [vmem:[%s10720_s27 + $0x18e0] ss:$8 sps:$4 sm:$0xff]  }
 0x254   : > { %6705 = vmatmul.mubr.bf16.vlgmr.msra.gmra.mrb[0].mxu1 %v7898_v58  ;;  %v10091_v58 = vld [vmem:[%s10720_s27 + $0x9f4] ss:$8 sps:$4 sm:$0xff]  }
 0x255   : > { %7320 = vmatmul.mubr.bf16.vlgmr.msra.gmra.mrb[0].mxu0 %v7928_v46  ;;  %6714 = vmatpush1.bf16.msra.mxu1 %v9997_v60  ;;  %v10094_v46 = vld [vmem:[%s10720_s27 + $0x18f4] ss:$8 sps:$4 sm:$0xff]   ;;  %v10089_v60 = vld [vmem:[%s10720_s27 + $0x9f0] ss:$8 sps:$4 sm:$0xff]  }
 0x256   : > { %7329 = vmatpush1.bf16.msra.mxu0 %v10002_v52  ;;  %6715 = vmatprep.subr.bf16.mxu1 %v10007_v40  ;;  %v10092_v52 = vld [vmem:[%s10720_s27 + $0x18f0] ss:$8 sps:$4 sm:$0xff]   ;;  %v10099_v40 = vld [vmem:[%s10720_s27 + $0xa04] ss:$8 sps:$4 sm:$0xff]  }
 0x257   : > { %7330 = vmatprep.subr.bf16.mxu0 %v10010_v61  ;;  %6745 = vmatprep.mubr.bf16.mxu1 %v7901_v62  ;;  %v10104_v61 = vld [vmem:[%s10720_s27 + $0x1904] ss:$8 sps:$4 sm:$0xff]   ;;  %v7900_v62 = vcombine.low %v11451_v23, %v11451_v23  ;;  %v10102_v23 = vld [vmem:[%s10720_s27 + $0x1900] ss:$8 sps:$4 sm:$0xff]  }
 0x258   : > { %7360 = vmatprep.mubr.bf16.mxu0 %v7931_v63  ;;  %v7930_v63 = vcombine.low %v11456_v59, %v11456_v59  ;;  %v10107_v59 = vld [vmem:[%s10720_s27 + $0xa14] ss:$8 sps:$4 sm:$0xff]  }
 0x259   : > { %6716 = vmatpush1.bf16.msra.mxu1 %v10005_v2  ;;  %v11533_v2 = vld [vmem:[%s11988_s0 + $0x50] sm:$0xff] }
 0x25a   : > { %7331 = vmatpush1.bf16.msra.mxu0 %v10008_v3  ;;  %6717 = vmatprep.subr.bf16.mxu1 %v10013_v4  ;;  %v11538_v3 = vld [vmem:[%s11988_s0 + $0xc8] sm:$0xff] }
 0x25b   : > { %7332 = vmatprep.subr.bf16.mxu0 %v10016_v5  ;;  %v10097_v4 = vld [vmem:[%s10720_s27 + $0xa00] ss:$8 sps:$4 sm:$0xff]   ;;  %v10110_v5 = vld [vmem:[%s10720_s27 + $0x1914] ss:$8 sps:$4 sm:$0xff]  }
 0x25d   : > { %6718 = vmatpush1.bf16.msra.mxu1 %v10011_v6  ;;  %v7903_v6 = vcombine.high %v11533_v2, %v11533_v2 }
 0x25e   : > { %7333 = vmatpush1.bf16.msra.mxu0 %v10014_v7  ;;  %6719 = vmatprep.subr.bf16.mxu1 %v10019_v8  ;;  %v7933_v7 = vcombine.high %v11538_v3, %v11538_v3  ;;  %v10105_v8 = vld [vmem:[%s10720_s27 + $0xa10] ss:$8 sps:$4 sm:$0xff]  }
 0x25f   : > { %7334 = vmatprep.subr.bf16.mxu0 %v10022_v9  ;;  %v10108_v9 = vld [vmem:[%s10720_s27 + $0x1910] ss:$8 sps:$4 sm:$0xff]  }
 0x261   : > { %6720 = vmatpush1.bf16.msra.mxu1 %v10017_v10  ;;  %v10113_v10 = vld [vmem:[%s10720_s27 + $0xa24] ss:$8 sps:$4 sm:$0xff]  }
 0x262   : > { %7335 = vmatpush1.bf16.msra.mxu0 %v10020_v11  ;;  %6721 = vmatprep.subr.bf16.mxu1 %v10025_v12  ;;  %v10116_v11 = vld [vmem:[%s10720_s27 + $0x1924] ss:$8 sps:$4 sm:$0xff]   ;;  %v10111_v12 = vld [vmem:[%s10720_s27 + $0xa20] ss:$8 sps:$4 sm:$0xff]  }
 0x263   : > { %7336 = vmatprep.subr.bf16.mxu0 %v10028_v13  ;;  %v10114_v13 = vld [vmem:[%s10720_s27 + $0x1920] ss:$8 sps:$4 sm:$0xff]  }
 0x265   : > { %6722 = vmatpush1.bf16.msra.mxu1 %v10023_v0  ;;  %v10119_v0 = vld [vmem:[%s10720_s27 + $0xa34] ss:$8 sps:$4 sm:$0xff]  }
 0x266   : > { %7337 = vmatpush1.bf16.msra.mxu0 %v10026_v14  ;;  %6723 = vmatprep.subr.bf16.mxu1 %v10031_v1  ;;  %v10122_v14 = vld [vmem:[%s10720_s27 + $0x1934] ss:$8 sps:$4 sm:$0xff]   ;;  %v10117_v1 = vld [vmem:[%s10720_s27 + $0xa30] ss:$8 sps:$4 sm:$0xff]  }
 0x267   : > { %7338 = vmatprep.subr.bf16.mxu0 %v10034_v15  ;;  %v10120_v15 = vld [vmem:[%s10720_s27 + $0x1930] ss:$8 sps:$4 sm:$0xff]  }
 0x269   : > { %6724 = vmatpush1.bf16.msra.mxu1 %v10029_v16  ;;  %v10125_v16 = vld [vmem:[%s10720_s27 + $0xa44] ss:$8 sps:$4 sm:$0xff]  }
 0x26a   : > { %7339 = vmatpush1.bf16.msra.mxu0 %v10032_v18  ;;  %6725 = vmatprep.subr.bf16.mxu1 %v10037_v21  ;;  %v10128_v18 = vld [vmem:[%s10720_s27 + $0x1944] ss:$8 sps:$4 sm:$0xff]   ;;  %v10123_v21 = vld [vmem:[%s10720_s27 + $0xa40] ss:$8 sps:$4 sm:$0xff]  }
 0x26b   : > { %7340 = vmatprep.subr.bf16.mxu0 %v10040_v22  ;;  %v10126_v22 = vld [vmem:[%s10720_s27 + $0x1940] ss:$8 sps:$4 sm:$0xff]  }
 0x26d   : > { %6726 = vmatpush1.bf16.msra.mxu1 %v10035_v24  ;;  %v10131_v24 = vld [vmem:[%s10720_s27 + $0xa54] ss:$8 sps:$4 sm:$0xff]  }
 0x26e   : > { %7341 = vmatpush1.bf16.msra.mxu0 %v10038_v25  ;;  %6727 = vmatprep.subr.bf16.mxu1 %v10043_v26  ;;  %v10134_v25 = vld [vmem:[%s10720_s27 + $0x1954] ss:$8 sps:$4 sm:$0xff]   ;;  %v10129_v26 = vld [vmem:[%s10720_s27 + $0xa50] ss:$8 sps:$4 sm:$0xff]  }
 0x26f   : > { %7342 = vmatprep.subr.bf16.mxu0 %v10046_v17  ;;  %v10132_v17 = vld [vmem:[%s10720_s27 + $0x1950] ss:$8 sps:$4 sm:$0xff]  }
 0x271   : > { %6728 = vmatpush1.bf16.msra.mxu1 %v10041_v20  ;;  %v10137_v20 = vld [vmem:[%s10720_s27 + $0xa64] ss:$8 sps:$4 sm:$0xff]  }
 0x272   : > { %7343 = vmatpush1.bf16.msra.mxu0 %v10044_v27  ;;  %6729 = vmatprep.subr.bf16.mxu1 %v10049_v28  ;;  %v10140_v27 = vld [vmem:[%s10720_s27 + $0x1964] ss:$8 sps:$4 sm:$0xff]   ;;  %v10135_v28 = vld [vmem:[%s10720_s27 + $0xa60] ss:$8 sps:$4 sm:$0xff]  }
 0x273   : > { %7344 = vmatprep.subr.bf16.mxu0 %v10052_v29  ;;  %v10138_v29 = vld [vmem:[%s10720_s27 + $0x1960] ss:$8 sps:$4 sm:$0xff]  }
 0x275   : > { %6730 = vmatpush1.bf16.msra.mxu1 %v10047_v19  ;;  %v10143_v19 = vld [vmem:[%s10720_s27 + $0xa74] ss:$8 sps:$4 sm:$0xff]  }
 0x276   : > { %7345 = vmatpush1.bf16.msra.mxu0 %v10050_v32  ;;  %6731 = vmatprep.subr.bf16.mxu1 %v10055_v34  ;;  %v10146_v32 = vld [vmem:[%s10720_s27 + $0x1974] ss:$8 sps:$4 sm:$0xff]   ;;  %v10141_v34 = vld [vmem:[%s10720_s27 + $0xa70] ss:$8 sps:$4 sm:$0xff]  }
 0x277   : > { %7346 = vmatprep.subr.bf16.mxu0 %v10058_v35  ;;  %v10144_v35 = vld [vmem:[%s10720_s27 + $0x1970] ss:$8 sps:$4 sm:$0xff]  }
 0x279   : > { %6732 = vmatpush1.bf16.msra.mxu1 %v10053_v36  ;;  %v10149_v36 = vld [vmem:[%s10720_s27 + $0xa84] ss:$8 sps:$4 sm:$0xff]  }
 0x27a   : > { %7347 = vmatpush1.bf16.msra.mxu0 %v10056_v37  ;;  %6733 = vmatprep.subr.bf16.mxu1 %v10061_v38  ;;  %v10152_v37 = vld [vmem:[%s10720_s27 + $0x1984] ss:$8 sps:$4 sm:$0xff]   ;;  %v10147_v38 = vld [vmem:[%s10720_s27 + $0xa80] ss:$8 sps:$4 sm:$0xff]  }
 0x27b   : > { %7348 = vmatprep.subr.bf16.mxu0 %v10064_v39  ;;  %v10150_v39 = vld [vmem:[%s10720_s27 + $0x1980] ss:$8 sps:$4 sm:$0xff]  }
 0x27d   : > { %6734 = vmatpush1.bf16.msra.mxu1 %v10059_v31  ;;  %v10155_v31 = vld [vmem:[%s10720_s27 + $0xa94] ss:$8 sps:$4 sm:$0xff]  }
 0x27e   : > { %7349 = vmatpush1.bf16.msra.mxu0 %v10062_v41  ;;  %6735 = vmatprep.subr.bf16.mxu1 %v10067_v42  ;;  %v10158_v41 = vld [vmem:[%s10720_s27 + $0x1994] ss:$8 sps:$4 sm:$0xff]   ;;  %v10153_v42 = vld [vmem:[%s10720_s27 + $0xa90] ss:$8 sps:$4 sm:$0xff]  }
 0x27f   : > { %7350 = vmatprep.subr.bf16.mxu0 %v10070_v43  ;;  %v10156_v43 = vld [vmem:[%s10720_s27 + $0x1990] ss:$8 sps:$4 sm:$0xff]  }
 0x281   : > { %6736 = vmatpush1.bf16.msra.mxu1 %v10065_v44  ;;  %v10161_v44 = vld [vmem:[%s10720_s27 + $0xaa4] ss:$8 sps:$4 sm:$0xff]  }
 0x282   : > { %7351 = vmatpush1.bf16.msra.mxu0 %v10068_v45  ;;  %6737 = vmatprep.subr.bf16.mxu1 %v10073_v33  ;;  %v10164_v45 = vld [vmem:[%s10720_s27 + $0x19a4] ss:$8 sps:$4 sm:$0xff]   ;;  %v10159_v33 = vld [vmem:[%s10720_s27 + $0xaa0] ss:$8 sps:$4 sm:$0xff]  }
 0x283   : > { %7352 = vmatprep.subr.bf16.mxu0 %v10076_v47  ;;  %v10162_v47 = vld [vmem:[%s10720_s27 + $0x19a0] ss:$8 sps:$4 sm:$0xff]  }
 0x285   : > { %6738 = vmatpush1.bf16.msra.mxu1 %v10071_v48  ;;  %v10167_v48 = vld [vmem:[%s10720_s27 + $0xab4] ss:$8 sps:$4 sm:$0xff]  }
 0x286   : > { %7353 = vmatpush1.bf16.msra.mxu0 %v10074_v49  ;;  %6739 = vmatprep.subr.bf16.mxu1 %v10079_v50  ;;  %v10170_v49 = vld [vmem:[%s10720_s27 + $0x19b4] ss:$8 sps:$4 sm:$0xff]   ;;  %v10165_v50 = vld [vmem:[%s10720_s27 + $0xab0] ss:$8 sps:$4 sm:$0xff]  }
 0x287   : > { %7354 = vmatprep.subr.bf16.mxu0 %v10082_v51  ;;  %v10168_v51 = vld [vmem:[%s10720_s27 + $0x19b0] ss:$8 sps:$4 sm:$0xff]  }
 0x289   : > { %6740 = vmatpush1.bf16.msra.mxu1 %v10077_v30  ;;  %v10173_v30 = vld [vmem:[%s10720_s27 + $0xac4] ss:$8 sps:$4 sm:$0xff]  }
 0x28a   : > { %7355 = vmatpush1.bf16.msra.mxu0 %v10080_v53  ;;  %6741 = vmatprep.subr.bf16.mxu1 %v10085_v54  ;;  %v10176_v53 = vld [vmem:[%s10720_s27 + $0x19c4] ss:$8 sps:$4 sm:$0xff]   ;;  %v10171_v54 = vld [vmem:[%s10720_s27 + $0xac0] ss:$8 sps:$4 sm:$0xff]  }
 0x28b   : > { %7356 = vmatprep.subr.bf16.mxu0 %v10088_v55  ;;  %v10174_v55 = vld [vmem:[%s10720_s27 + $0x19c0] ss:$8 sps:$4 sm:$0xff]  }
 0x28d   : > { %6742 = vmatpush1.bf16.msra.mxu1 %v10083_v56  ;;  %v10179_v56 = vld [vmem:[%s10720_s27 + $0xad4] ss:$8 sps:$4 sm:$0xff]  }
 0x28e   : > { %7357 = vmatpush1.bf16.msra.mxu0 %v10086_v57  ;;  %6743 = vmatprep.subr.bf16.mxu1 %v10091_v58  ;;  %v10182_v57 = vld [vmem:[%s10720_s27 + $0x19d4] ss:$8 sps:$4 sm:$0xff]   ;;  %v10177_v58 = vld [vmem:[%s10720_s27 + $0xad0] ss:$8 sps:$4 sm:$0xff]  }
 0x28f   : > { %7358 = vmatprep.subr.bf16.mxu0 %v10094_v46  ;;  %v10180_v46 = vld [vmem:[%s10720_s27 + $0x19d0] ss:$8 sps:$4 sm:$0xff]  }
 0x291   : > { %6744 = vmatpush1.bf16.msra.mxu1 %v10089_v60  ;;  %v10185_v60 = vld [vmem:[%s10720_s27 + $0xae4] ss:$8 sps:$4 sm:$0xff]  }
 0x292   : > { %7359 = vmatpush1.bf16.msra.mxu0 %v10092_v52  ;;  %6754 = vmatprep.subr.bf16.mxu1 %v10099_v40  ;;  %v10188_v52 = vld [vmem:[%s10720_s27 + $0x19e4] ss:$8 sps:$4 sm:$0xff]   ;;  %v10183_v40 = vld [vmem:[%s10720_s27 + $0xae0] ss:$8 sps:$4 sm:$0xff]  }
 0x293   : > { %7369 = vmatprep.subr.bf16.mxu0 %v10104_v61  ;;  %v10186_v61 = vld [vmem:[%s10720_s27 + $0x19e0] ss:$8 sps:$4 sm:$0xff]  }
 0x294   : > { %6746 = vmatmul.mubr.bf16.vlgmr.msra.gmra.mrb[0].mxu1 %v7900_v62  ;;  %v10191_v62 = vld [vmem:[%s10720_s27 + $0xaf4] ss:$8 sps:$4 sm:$0xff]  }
 0x295   : > { %7361 = vmatmul.mubr.bf16.vlgmr.msra.gmra.mrb[0].mxu0 %v7930_v63  ;;  %6755 = vmatpush1.bf16.msra.mxu1 %v10097_v4  ;;  %v10194_v63 = vld [vmem:[%s10720_s27 + $0x19f4] ss:$8 sps:$4 sm:$0xff]   ;;  %v10189_v4 = vld [vmem:[%s10720_s27 + $0xaf0] ss:$8 sps:$4 sm:$0xff]  }
 0x296   : > { %7370 = vmatpush1.bf16.msra.mxu0 %v10102_v23  ;;  %6756 = vmatprep.subr.bf16.mxu1 %v10107_v59  ;;  %v10192_v23 = vld [vmem:[%s10720_s27 + $0x19f0] ss:$8 sps:$4 sm:$0xff]   ;;  %v10199_v59 = vld [vmem:[%s10720_s27 + $0xb04] ss:$8 sps:$4 sm:$0xff]  }
 0x297   : > { %7371 = vmatprep.subr.bf16.mxu0 %v10110_v5  ;;  %6786 = vmatprep.mubr.bf16.mxu1 %v7903_v6  ;;  %v10204_v5 = vld [vmem:[%s10720_s27 + $0x1a04] ss:$8 sps:$4 sm:$0xff]   ;;  %v7902_v6 = vcombine.low %v11533_v2, %v11533_v2  ;;  %v10202_v2 = vld [vmem:[%s10720_s27 + $0x1a00] ss:$8 sps:$4 sm:$0xff]  }
 0x298   : > { %7401 = vmatprep.mubr.bf16.mxu0 %v7933_v7  ;;  %v7932_v7 = vcombine.low %v11538_v3, %v11538_v3  ;;  %v10207_v3 = vld [vmem:[%s10720_s27 + $0xb14] ss:$8 sps:$4 sm:$0xff]  }
 0x299   : > { %6757 = vmatpush1.bf16.msra.mxu1 %v10105_v8  ;;  %v11615_v8 = vld [vmem:[%s11988_s0 + $0x58] sm:$0xff] }
 0x29a   : > { %7372 = vmatpush1.bf16.msra.mxu0 %v10108_v9  ;;  %6758 = vmatprep.subr.bf16.mxu1 %v10113_v10  ;;  %v11620_v9 = vld [vmem:[%s11988_s0 + $0xd0] sm:$0xff]  ;;  %v10197_v10 = vld [vmem:[%s10720_s27 + $0xb00] ss:$8 sps:$4 sm:$0xff]  }
 0x29b   : > { %7373 = vmatprep.subr.bf16.mxu0 %v10116_v11  ;;  %v10210_v11 = vld [vmem:[%s10720_s27 + $0x1a14] ss:$8 sps:$4 sm:$0xff]  }
 0x29d   : > { %6759 = vmatpush1.bf16.msra.mxu1 %v10111_v12  ;;  %v7905_v12 = vcombine.high %v11615_v8, %v11615_v8 }
 0x29e   : > { %7374 = vmatpush1.bf16.msra.mxu0 %v10114_v13  ;;  %6760 = vmatprep.subr.bf16.mxu1 %v10119_v0  ;;  %v7935_v13 = vcombine.high %v11620_v9, %v11620_v9  ;;  %v10205_v0 = vld [vmem:[%s10720_s27 + $0xb10] ss:$8 sps:$4 sm:$0xff]  }
 0x29f   : > { %7375 = vmatprep.subr.bf16.mxu0 %v10122_v14  ;;  %v10208_v14 = vld [vmem:[%s10720_s27 + $0x1a10] ss:$8 sps:$4 sm:$0xff]  }
 0x2a1   : > { %6761 = vmatpush1.bf16.msra.mxu1 %v10117_v1  ;;  %v10213_v1 = vld [vmem:[%s10720_s27 + $0xb24] ss:$8 sps:$4 sm:$0xff]  }
 0x2a2   : > { %7376 = vmatpush1.bf16.msra.mxu0 %v10120_v15  ;;  %6762 = vmatprep.subr.bf16.mxu1 %v10125_v16  ;;  %v10216_v15 = vld [vmem:[%s10720_s27 + $0x1a24] ss:$8 sps:$4 sm:$0xff]   ;;  %v10211_v16 = vld [vmem:[%s10720_s27 + $0xb20] ss:$8 sps:$4 sm:$0xff]  }
 0x2a3   : > { %7377 = vmatprep.subr.bf16.mxu0 %v10128_v18  ;;  %v10214_v18 = vld [vmem:[%s10720_s27 + $0x1a20] ss:$8 sps:$4 sm:$0xff]  }
 0x2a5   : > { %6763 = vmatpush1.bf16.msra.mxu1 %v10123_v21  ;;  %v10219_v21 = vld [vmem:[%s10720_s27 + $0xb34] ss:$8 sps:$4 sm:$0xff]  }
 0x2a6   : > { %7378 = vmatpush1.bf16.msra.mxu0 %v10126_v22  ;;  %6764 = vmatprep.subr.bf16.mxu1 %v10131_v24  ;;  %v10222_v22 = vld [vmem:[%s10720_s27 + $0x1a34] ss:$8 sps:$4 sm:$0xff]   ;;  %v10217_v24 = vld [vmem:[%s10720_s27 + $0xb30] ss:$8 sps:$4 sm:$0xff]  }
 0x2a7   : > { %7379 = vmatprep.subr.bf16.mxu0 %v10134_v25  ;;  %v10220_v25 = vld [vmem:[%s10720_s27 + $0x1a30] ss:$8 sps:$4 sm:$0xff]  }
 0x2a9   : > { %6765 = vmatpush1.bf16.msra.mxu1 %v10129_v26  ;;  %v10225_v26 = vld [vmem:[%s10720_s27 + $0xb44] ss:$8 sps:$4 sm:$0xff]  }
 0x2aa   : > { %7380 = vmatpush1.bf16.msra.mxu0 %v10132_v17  ;;  %6766 = vmatprep.subr.bf16.mxu1 %v10137_v20  ;;  %v10228_v17 = vld [vmem:[%s10720_s27 + $0x1a44] ss:$8 sps:$4 sm:$0xff]   ;;  %v10223_v20 = vld [vmem:[%s10720_s27 + $0xb40] ss:$8 sps:$4 sm:$0xff]  }
 0x2ab   : > { %7381 = vmatprep.subr.bf16.mxu0 %v10140_v27  ;;  %v10226_v27 = vld [vmem:[%s10720_s27 + $0x1a40] ss:$8 sps:$4 sm:$0xff]  }
 0x2ad   : > { %6767 = vmatpush1.bf16.msra.mxu1 %v10135_v28  ;;  %v10231_v28 = vld [vmem:[%s10720_s27 + $0xb54] ss:$8 sps:$4 sm:$0xff]  }
 0x2ae   : > { %7382 = vmatpush1.bf16.msra.mxu0 %v10138_v29  ;;  %6768 = vmatprep.subr.bf16.mxu1 %v10143_v19  ;;  %v10234_v29 = vld [vmem:[%s10720_s27 + $0x1a54] ss:$8 sps:$4 sm:$0xff]   ;;  %v10229_v19 = vld [vmem:[%s10720_s27 + $0xb50] ss:$8 sps:$4 sm:$0xff]  }
 0x2af   : > { %7383 = vmatprep.subr.bf16.mxu0 %v10146_v32  ;;  %v10232_v32 = vld [vmem:[%s10720_s27 + $0x1a50] ss:$8 sps:$4 sm:$0xff]  }
 0x2b1   : > { %6769 = vmatpush1.bf16.msra.mxu1 %v10141_v34  ;;  %v10237_v34 = vld [vmem:[%s10720_s27 + $0xb64] ss:$8 sps:$4 sm:$0xff]  }
 0x2b2   : > { %7384 = vmatpush1.bf16.msra.mxu0 %v10144_v35  ;;  %6770 = vmatprep.subr.bf16.mxu1 %v10149_v36  ;;  %v10240_v35 = vld [vmem:[%s10720_s27 + $0x1a64] ss:$8 sps:$4 sm:$0xff]   ;;  %v10235_v36 = vld [vmem:[%s10720_s27 + $0xb60] ss:$8 sps:$4 sm:$0xff]  }
 0x2b3   : > { %7385 = vmatprep.subr.bf16.mxu0 %v10152_v37  ;;  %v10238_v37 = vld [vmem:[%s10720_s27 + $0x1a60] ss:$8 sps:$4 sm:$0xff]  }
 0x2b5   : > { %6771 = vmatpush1.bf16.msra.mxu1 %v10147_v38  ;;  %v10243_v38 = vld [vmem:[%s10720_s27 + $0xb74] ss:$8 sps:$4 sm:$0xff]  }
 0x2b6   : > { %7386 = vmatpush1.bf16.msra.mxu0 %v10150_v39  ;;  %6772 = vmatprep.subr.bf16.mxu1 %v10155_v31  ;;  %v10246_v39 = vld [vmem:[%s10720_s27 + $0x1a74] ss:$8 sps:$4 sm:$0xff]   ;;  %v10241_v31 = vld [vmem:[%s10720_s27 + $0xb70] ss:$8 sps:$4 sm:$0xff]  }
 0x2b7   : > { %7387 = vmatprep.subr.bf16.mxu0 %v10158_v41  ;;  %v10244_v41 = vld [vmem:[%s10720_s27 + $0x1a70] ss:$8 sps:$4 sm:$0xff]  }
 0x2b9   : > { %6773 = vmatpush1.bf16.msra.mxu1 %v10153_v42  ;;  %v10249_v42 = vld [vmem:[%s10720_s27 + $0xb84] ss:$8 sps:$4 sm:$0xff]  }
 0x2ba   : > { %7388 = vmatpush1.bf16.msra.mxu0 %v10156_v43  ;;  %6774 = vmatprep.subr.bf16.mxu1 %v10161_v44  ;;  %v10252_v43 = vld [vmem:[%s10720_s27 + $0x1a84] ss:$8 sps:$4 sm:$0xff]   ;;  %v10247_v44 = vld [vmem:[%s10720_s27 + $0xb80] ss:$8 sps:$4 sm:$0xff]  }
 0x2bb   : > { %7389 = vmatprep.subr.bf16.mxu0 %v10164_v45  ;;  %v10250_v45 = vld [vmem:[%s10720_s27 + $0x1a80] ss:$8 sps:$4 sm:$0xff]  }
 0x2bd   : > { %6775 = vmatpush1.bf16.msra.mxu1 %v10159_v33  ;;  %v10255_v33 = vld [vmem:[%s10720_s27 + $0xb94] ss:$8 sps:$4 sm:$0xff]  }
 0x2be   : > { %7390 = vmatpush1.bf16.msra.mxu0 %v10162_v47  ;;  %6776 = vmatprep.subr.bf16.mxu1 %v10167_v48  ;;  %v10258_v47 = vld [vmem:[%s10720_s27 + $0x1a94] ss:$8 sps:$4 sm:$0xff]   ;;  %v10253_v48 = vld [vmem:[%s10720_s27 + $0xb90] ss:$8 sps:$4 sm:$0xff]  }
 0x2bf   : > { %7391 = vmatprep.subr.bf16.mxu0 %v10170_v49  ;;  %v10256_v49 = vld [vmem:[%s10720_s27 + $0x1a90] ss:$8 sps:$4 sm:$0xff]  }
 0x2c1   : > { %6777 = vmatpush1.bf16.msra.mxu1 %v10165_v50  ;;  %v10261_v50 = vld [vmem:[%s10720_s27 + $0xba4] ss:$8 sps:$4 sm:$0xff]  }
 0x2c2   : > { %7392 = vmatpush1.bf16.msra.mxu0 %v10168_v51  ;;  %6778 = vmatprep.subr.bf16.mxu1 %v10173_v30  ;;  %v10264_v51 = vld [vmem:[%s10720_s27 + $0x1aa4] ss:$8 sps:$4 sm:$0xff]   ;;  %v10259_v30 = vld [vmem:[%s10720_s27 + $0xba0] ss:$8 sps:$4 sm:$0xff]  }
 0x2c3   : > { %7393 = vmatprep.subr.bf16.mxu0 %v10176_v53  ;;  %v10262_v53 = vld [vmem:[%s10720_s27 + $0x1aa0] ss:$8 sps:$4 sm:$0xff]  }
 0x2c5   : > { %6779 = vmatpush1.bf16.msra.mxu1 %v10171_v54  ;;  %v10267_v54 = vld [vmem:[%s10720_s27 + $0xbb4] ss:$8 sps:$4 sm:$0xff]  }
 0x2c6   : > { %7394 = vmatpush1.bf16.msra.mxu0 %v10174_v55  ;;  %6780 = vmatprep.subr.bf16.mxu1 %v10179_v56  ;;  %v10270_v55 = vld [vmem:[%s10720_s27 + $0x1ab4] ss:$8 sps:$4 sm:$0xff]   ;;  %v10265_v56 = vld [vmem:[%s10720_s27 + $0xbb0] ss:$8 sps:$4 sm:$0xff]  }
 0x2c7   : > { %7395 = vmatprep.subr.bf16.mxu0 %v10182_v57  ;;  %v10268_v57 = vld [vmem:[%s10720_s27 + $0x1ab0] ss:$8 sps:$4 sm:$0xff]  }
 0x2c9   : > { %6781 = vmatpush1.bf16.msra.mxu1 %v10177_v58  ;;  %v10273_v58 = vld [vmem:[%s10720_s27 + $0xbc4] ss:$8 sps:$4 sm:$0xff]  }
 0x2ca   : > { %7396 = vmatpush1.bf16.msra.mxu0 %v10180_v46  ;;  %6782 = vmatprep.subr.bf16.mxu1 %v10185_v60  ;;  %v10276_v46 = vld [vmem:[%s10720_s27 + $0x1ac4] ss:$8 sps:$4 sm:$0xff]   ;;  %v10271_v60 = vld [vmem:[%s10720_s27 + $0xbc0] ss:$8 sps:$4 sm:$0xff]  }
 0x2cb   : > { %7397 = vmatprep.subr.bf16.mxu0 %v10188_v52  ;;  %v10274_v52 = vld [vmem:[%s10720_s27 + $0x1ac0] ss:$8 sps:$4 sm:$0xff]  }
 0x2cd   : > { %6783 = vmatpush1.bf16.msra.mxu1 %v10183_v40  ;;  %v10279_v40 = vld [vmem:[%s10720_s27 + $0xbd4] ss:$8 sps:$4 sm:$0xff]  }
 0x2ce   : > { %7398 = vmatpush1.bf16.msra.mxu0 %v10186_v61  ;;  %6784 = vmatprep.subr.bf16.mxu1 %v10191_v62  ;;  %v10282_v61 = vld [vmem:[%s10720_s27 + $0x1ad4] ss:$8 sps:$4 sm:$0xff]   ;;  %v10277_v62 = vld [vmem:[%s10720_s27 + $0xbd0] ss:$8 sps:$4 sm:$0xff]  }
 0x2cf   : > { %7399 = vmatprep.subr.bf16.mxu0 %v10194_v63  ;;  %v10280_v63 = vld [vmem:[%s10720_s27 + $0x1ad0] ss:$8 sps:$4 sm:$0xff]  }
 0x2d1   : > { %6785 = vmatpush1.bf16.msra.mxu1 %v10189_v4  ;;  %v10285_v4 = vld [vmem:[%s10720_s27 + $0xbe4] ss:$8 sps:$4 sm:$0xff]  }
 0x2d2   : > { %7400 = vmatpush1.bf16.msra.mxu0 %v10192_v23  ;;  %6795 = vmatprep.subr.bf16.mxu1 %v10199_v59  ;;  %v10288_v23 = vld [vmem:[%s10720_s27 + $0x1ae4] ss:$8 sps:$4 sm:$0xff]   ;;  %v10283_v59 = vld [vmem:[%s10720_s27 + $0xbe0] ss:$8 sps:$4 sm:$0xff]  }
 0x2d3   : > { %7410 = vmatprep.subr.bf16.mxu0 %v10204_v5  ;;  %v10286_v5 = vld [vmem:[%s10720_s27 + $0x1ae0] ss:$8 sps:$4 sm:$0xff]  }
 0x2d4   : > { %6787 = vmatmul.mubr.bf16.vlgmr.msra.gmra.mrb[0].mxu1 %v7902_v6  ;;  %v10291_v6 = vld [vmem:[%s10720_s27 + $0xbf4] ss:$8 sps:$4 sm:$0xff]  }
 0x2d5   : > { %7402 = vmatmul.mubr.bf16.vlgmr.msra.gmra.mrb[0].mxu0 %v7932_v7  ;;  %6796 = vmatpush1.bf16.msra.mxu1 %v10197_v10  ;;  %v10294_v7 = vld [vmem:[%s10720_s27 + $0x1af4] ss:$8 sps:$4 sm:$0xff]   ;;  %v10289_v10 = vld [vmem:[%s10720_s27 + $0xbf0] ss:$8 sps:$4 sm:$0xff]  }
 0x2d6   : > { %7411 = vmatpush1.bf16.msra.mxu0 %v10202_v2  ;;  %6797 = vmatprep.subr.bf16.mxu1 %v10207_v3  ;;  %v10292_v2 = vld [vmem:[%s10720_s27 + $0x1af0] ss:$8 sps:$4 sm:$0xff]   ;;  %v10299_v3 = vld [vmem:[%s10720_s27 + $0xc04] ss:$8 sps:$4 sm:$0xff]  }
 0x2d7   : > { %7412 = vmatprep.subr.bf16.mxu0 %v10210_v11  ;;  %6827 = vmatprep.mubr.bf16.mxu1 %v7905_v12  ;;  %v10304_v11 = vld [vmem:[%s10720_s27 + $0x1b04] ss:$8 sps:$4 sm:$0xff]   ;;  %v7904_v12 = vcombine.low %v11615_v8, %v11615_v8  ;;  %v10302_v8 = vld [vmem:[%s10720_s27 + $0x1b00] ss:$8 sps:$4 sm:$0xff]  }
 0x2d8   : > { %7442 = vmatprep.mubr.bf16.mxu0 %v7935_v13  ;;  %v7934_v13 = vcombine.low %v11620_v9, %v11620_v9  ;;  %v10307_v9 = vld [vmem:[%s10720_s27 + $0xc14] ss:$8 sps:$4 sm:$0xff]  }
 0x2d9   : > { %6798 = vmatpush1.bf16.msra.mxu1 %v10205_v0  ;;  %v11697_v0 = vld [vmem:[%s11988_s0 + $0x60] sm:$0xff] }
 0x2da   : > { %7413 = vmatpush1.bf16.msra.mxu0 %v10208_v14  ;;  %6799 = vmatprep.subr.bf16.mxu1 %v10213_v1  ;;  %v11702_v14 = vld [vmem:[%s11988_s0 + $0xd8] sm:$0xff]  ;;  %v10297_v1 = vld [vmem:[%s10720_s27 + $0xc00] ss:$8 sps:$4 sm:$0xff]  }
 0x2db   : > { %7414 = vmatprep.subr.bf16.mxu0 %v10216_v15  ;;  %v10310_v15 = vld [vmem:[%s10720_s27 + $0x1b14] ss:$8 sps:$4 sm:$0xff]  }
 0x2dd   : > { %6800 = vmatpush1.bf16.msra.mxu1 %v10211_v16  ;;  %v7907_v16 = vcombine.high %v11697_v0, %v11697_v0 }
 0x2de   : > { %7415 = vmatpush1.bf16.msra.mxu0 %v10214_v18  ;;  %6801 = vmatprep.subr.bf16.mxu1 %v10219_v21  ;;  %v7937_v18 = vcombine.high %v11702_v14, %v11702_v14  ;;  %v10305_v21 = vld [vmem:[%s10720_s27 + $0xc10] ss:$8 sps:$4 sm:$0xff]  }
 0x2df   : > { %7416 = vmatprep.subr.bf16.mxu0 %v10222_v22  ;;  %v10308_v22 = vld [vmem:[%s10720_s27 + $0x1b10] ss:$8 sps:$4 sm:$0xff]  }
 0x2e1   : > { %6802 = vmatpush1.bf16.msra.mxu1 %v10217_v24  ;;  %v10313_v24 = vld [vmem:[%s10720_s27 + $0xc24] ss:$8 sps:$4 sm:$0xff]  }
 0x2e2   : > { %7417 = vmatpush1.bf16.msra.mxu0 %v10220_v25  ;;  %6803 = vmatprep.subr.bf16.mxu1 %v10225_v26  ;;  %v10316_v25 = vld [vmem:[%s10720_s27 + $0x1b24] ss:$8 sps:$4 sm:$0xff]   ;;  %v10311_v26 = vld [vmem:[%s10720_s27 + $0xc20] ss:$8 sps:$4 sm:$0xff]  }
 0x2e3   : > { %7418 = vmatprep.subr.bf16.mxu0 %v10228_v17  ;;  %v10314_v17 = vld [vmem:[%s10720_s27 + $0x1b20] ss:$8 sps:$4 sm:$0xff]  }
 0x2e5   : > { %6804 = vmatpush1.bf16.msra.mxu1 %v10223_v20  ;;  %v10319_v20 = vld [vmem:[%s10720_s27 + $0xc34] ss:$8 sps:$4 sm:$0xff]  }
 0x2e6   : > { %7419 = vmatpush1.bf16.msra.mxu0 %v10226_v27  ;;  %6805 = vmatprep.subr.bf16.mxu1 %v10231_v28  ;;  %v10322_v27 = vld [vmem:[%s10720_s27 + $0x1b34] ss:$8 sps:$4 sm:$0xff]   ;;  %v10317_v28 = vld [vmem:[%s10720_s27 + $0xc30] ss:$8 sps:$4 sm:$0xff]  }
 0x2e7   : > { %7420 = vmatprep.subr.bf16.mxu0 %v10234_v29  ;;  %v10320_v29 = vld [vmem:[%s10720_s27 + $0x1b30] ss:$8 sps:$4 sm:$0xff]  }
 0x2e9   : > { %6806 = vmatpush1.bf16.msra.mxu1 %v10229_v19  ;;  %v10325_v19 = vld [vmem:[%s10720_s27 + $0xc44] ss:$8 sps:$4 sm:$0xff]  }
 0x2ea   : > { %7421 = vmatpush1.bf16.msra.mxu0 %v10232_v32  ;;  %6807 = vmatprep.subr.bf16.mxu1 %v10237_v34  ;;  %v10328_v32 = vld [vmem:[%s10720_s27 + $0x1b44] ss:$8 sps:$4 sm:$0xff]   ;;  %v10323_v34 = vld [vmem:[%s10720_s27 + $0xc40] ss:$8 sps:$4 sm:$0xff]  }
 0x2eb   : > { %7422 = vmatprep.subr.bf16.mxu0 %v10240_v35  ;;  %v10326_v35 = vld [vmem:[%s10720_s27 + $0x1b40] ss:$8 sps:$4 sm:$0xff]  }
 0x2ed   : > { %6808 = vmatpush1.bf16.msra.mxu1 %v10235_v36  ;;  %v10331_v36 = vld [vmem:[%s10720_s27 + $0xc54] ss:$8 sps:$4 sm:$0xff]  }
 0x2ee   : > { %7423 = vmatpush1.bf16.msra.mxu0 %v10238_v37  ;;  %6809 = vmatprep.subr.bf16.mxu1 %v10243_v38  ;;  %v10334_v37 = vld [vmem:[%s10720_s27 + $0x1b54] ss:$8 sps:$4 sm:$0xff]   ;;  %v10329_v38 = vld [vmem:[%s10720_s27 + $0xc50] ss:$8 sps:$4 sm:$0xff]  }
 0x2ef   : > { %7424 = vmatprep.subr.bf16.mxu0 %v10246_v39  ;;  %v10332_v39 = vld [vmem:[%s10720_s27 + $0x1b50] ss:$8 sps:$4 sm:$0xff]  }
 0x2f1   : > { %6810 = vmatpush1.bf16.msra.mxu1 %v10241_v31  ;;  %v10337_v31 = vld [vmem:[%s10720_s27 + $0xc64] ss:$8 sps:$4 sm:$0xff]  }
 0x2f2   : > { %7425 = vmatpush1.bf16.msra.mxu0 %v10244_v41  ;;  %6811 = vmatprep.subr.bf16.mxu1 %v10249_v42  ;;  %v10340_v41 = vld [vmem:[%s10720_s27 + $0x1b64] ss:$8 sps:$4 sm:$0xff]   ;;  %v10335_v42 = vld [vmem:[%s10720_s27 + $0xc60] ss:$8 sps:$4 sm:$0xff]  }
 0x2f3   : > { %7426 = vmatprep.subr.bf16.mxu0 %v10252_v43  ;;  %v10338_v43 = vld [vmem:[%s10720_s27 + $0x1b60] ss:$8 sps:$4 sm:$0xff]  }
 0x2f5   : > { %6812 = vmatpush1.bf16.msra.mxu1 %v10247_v44  ;;  %v10343_v44 = vld [vmem:[%s10720_s27 + $0xc74] ss:$8 sps:$4 sm:$0xff]  }
 0x2f6   : > { %7427 = vmatpush1.bf16.msra.mxu0 %v10250_v45  ;;  %6813 = vmatprep.subr.bf16.mxu1 %v10255_v33  ;;  %v10346_v45 = vld [vmem:[%s10720_s27 + $0x1b74] ss:$8 sps:$4 sm:$0xff]   ;;  %v10341_v33 = vld [vmem:[%s10720_s27 + $0xc70] ss:$8 sps:$4 sm:$0xff]  }
 0x2f7   : > { %7428 = vmatprep.subr.bf16.mxu0 %v10258_v47  ;;  %v10344_v47 = vld [vmem:[%s10720_s27 + $0x1b70] ss:$8 sps:$4 sm:$0xff]  }
 0x2f9   : > { %6814 = vmatpush1.bf16.msra.mxu1 %v10253_v48  ;;  %v10349_v48 = vld [vmem:[%s10720_s27 + $0xc84] ss:$8 sps:$4 sm:$0xff]  }
 0x2fa   : > { %7429 = vmatpush1.bf16.msra.mxu0 %v10256_v49  ;;  %6815 = vmatprep.subr.bf16.mxu1 %v10261_v50  ;;  %v10352_v49 = vld [vmem:[%s10720_s27 + $0x1b84] ss:$8 sps:$4 sm:$0xff]   ;;  %v10347_v50 = vld [vmem:[%s10720_s27 + $0xc80] ss:$8 sps:$4 sm:$0xff]  }
 0x2fb   : > { %7430 = vmatprep.subr.bf16.mxu0 %v10264_v51  ;;  %v10350_v51 = vld [vmem:[%s10720_s27 + $0x1b80] ss:$8 sps:$4 sm:$0xff]  }
 0x2fd   : > { %6816 = vmatpush1.bf16.msra.mxu1 %v10259_v30  ;;  %v10355_v30 = vld [vmem:[%s10720_s27 + $0xc94] ss:$8 sps:$4 sm:$0xff]  }
 0x2fe   : > { %7431 = vmatpush1.bf16.msra.mxu0 %v10262_v53  ;;  %6817 = vmatprep.subr.bf16.mxu1 %v10267_v54  ;;  %v10358_v53 = vld [vmem:[%s10720_s27 + $0x1b94] ss:$8 sps:$4 sm:$0xff]   ;;  %v10353_v54 = vld [vmem:[%s10720_s27 + $0xc90] ss:$8 sps:$4 sm:$0xff]  }
 0x2ff   : > { %7432 = vmatprep.subr.bf16.mxu0 %v10270_v55  ;;  %v10356_v55 = vld [vmem:[%s10720_s27 + $0x1b90] ss:$8 sps:$4 sm:$0xff]  }
 0x301   : > { %6818 = vmatpush1.bf16.msra.mxu1 %v10265_v56  ;;  %v10361_v56 = vld [vmem:[%s10720_s27 + $0xca4] ss:$8 sps:$4 sm:$0xff]  }
 0x302   : > { %7433 = vmatpush1.bf16.msra.mxu0 %v10268_v57  ;;  %6819 = vmatprep.subr.bf16.mxu1 %v10273_v58  ;;  %v10364_v57 = vld [vmem:[%s10720_s27 + $0x1ba4] ss:$8 sps:$4 sm:$0xff]   ;;  %v10359_v58 = vld [vmem:[%s10720_s27 + $0xca0] ss:$8 sps:$4 sm:$0xff]  }
 0x303   : > { %7434 = vmatprep.subr.bf16.mxu0 %v10276_v46  ;;  %v10362_v46 = vld [vmem:[%s10720_s27 + $0x1ba0] ss:$8 sps:$4 sm:$0xff]  }
 0x305   : > { %6820 = vmatpush1.bf16.msra.mxu1 %v10271_v60  ;;  %v10367_v60 = vld [vmem:[%s10720_s27 + $0xcb4] ss:$8 sps:$4 sm:$0xff]  }
 0x306   : > { %7435 = vmatpush1.bf16.msra.mxu0 %v10274_v52  ;;  %6821 = vmatprep.subr.bf16.mxu1 %v10279_v40  ;;  %v10370_v52 = vld [vmem:[%s10720_s27 + $0x1bb4] ss:$8 sps:$4 sm:$0xff]   ;;  %v10365_v40 = vld [vmem:[%s10720_s27 + $0xcb0] ss:$8 sps:$4 sm:$0xff]  }
 0x307   : > { %7436 = vmatprep.subr.bf16.mxu0 %v10282_v61  ;;  %v10368_v61 = vld [vmem:[%s10720_s27 + $0x1bb0] ss:$8 sps:$4 sm:$0xff]  }
 0x309   : > { %6822 = vmatpush1.bf16.msra.mxu1 %v10277_v62  ;;  %v10373_v62 = vld [vmem:[%s10720_s27 + $0xcc4] ss:$8 sps:$4 sm:$0xff]  }
 0x30a   : > { %7437 = vmatpush1.bf16.msra.mxu0 %v10280_v63  ;;  %6823 = vmatprep.subr.bf16.mxu1 %v10285_v4  ;;  %v10376_v63 = vld [vmem:[%s10720_s27 + $0x1bc4] ss:$8 sps:$4 sm:$0xff]   ;;  %v10371_v4 = vld [vmem:[%s10720_s27 + $0xcc0] ss:$8 sps:$4 sm:$0xff]  }
 0x30b   : > { %7438 = vmatprep.subr.bf16.mxu0 %v10288_v23  ;;  %v10374_v23 = vld [vmem:[%s10720_s27 + $0x1bc0] ss:$8 sps:$4 sm:$0xff]  }
 0x30d   : > { %6824 = vmatpush1.bf16.msra.mxu1 %v10283_v59  ;;  %v10379_v59 = vld [vmem:[%s10720_s27 + $0xcd4] ss:$8 sps:$4 sm:$0xff]  }
 0x30e   : > { %7439 = vmatpush1.bf16.msra.mxu0 %v10286_v5  ;;  %6825 = vmatprep.subr.bf16.mxu1 %v10291_v6  ;;  %v10382_v5 = vld [vmem:[%s10720_s27 + $0x1bd4] ss:$8 sps:$4 sm:$0xff]   ;;  %v10377_v6 = vld [vmem:[%s10720_s27 + $0xcd0] ss:$8 sps:$4 sm:$0xff]  }
 0x30f   : > { %7440 = vmatprep.subr.bf16.mxu0 %v10294_v7  ;;  %v10380_v7 = vld [vmem:[%s10720_s27 + $0x1bd0] ss:$8 sps:$4 sm:$0xff]  }
 0x311   : > { %6826 = vmatpush1.bf16.msra.mxu1 %v10289_v10  ;;  %v10385_v10 = vld [vmem:[%s10720_s27 + $0xce4] ss:$8 sps:$4 sm:$0xff]  }
 0x312   : > { %7441 = vmatpush1.bf16.msra.mxu0 %v10292_v2  ;;  %6836 = vmatprep.subr.bf16.mxu1 %v10299_v3  ;;  %v10388_v2 = vld [vmem:[%s10720_s27 + $0x1be4] ss:$8 sps:$4 sm:$0xff]   ;;  %v10383_v3 = vld [vmem:[%s10720_s27 + $0xce0] ss:$8 sps:$4 sm:$0xff]  }
 0x313   : > { %7451 = vmatprep.subr.bf16.mxu0 %v10304_v11  ;;  %v10386_v11 = vld [vmem:[%s10720_s27 + $0x1be0] ss:$8 sps:$4 sm:$0xff]  }
 0x314   : > { %6828 = vmatmul.mubr.bf16.vlgmr.msra.gmra.mrb[0].mxu1 %v7904_v12  ;;  %v10391_v12 = vld [vmem:[%s10720_s27 + $0xcf4] ss:$8 sps:$4 sm:$0xff]  }
 0x315   : > { %7443 = vmatmul.mubr.bf16.vlgmr.msra.gmra.mrb[0].mxu0 %v7934_v13  ;;  %6837 = vmatpush1.bf16.msra.mxu1 %v10297_v1  ;;  %v10394_v13 = vld [vmem:[%s10720_s27 + $0x1bf4] ss:$8 sps:$4 sm:$0xff]   ;;  %v10389_v1 = vld [vmem:[%s10720_s27 + $0xcf0] ss:$8 sps:$4 sm:$0xff]  }
 0x316   : > { %7452 = vmatpush1.bf16.msra.mxu0 %v10302_v8  ;;  %6838 = vmatprep.subr.bf16.mxu1 %v10307_v9  ;;  %v10392_v8 = vld [vmem:[%s10720_s27 + $0x1bf0] ss:$8 sps:$4 sm:$0xff]   ;;  %v10399_v9 = vld [vmem:[%s10720_s27 + $0xd04] ss:$8 sps:$4 sm:$0xff]  }
 0x317   : > { %7453 = vmatprep.subr.bf16.mxu0 %v10310_v15  ;;  %6868 = vmatprep.mubr.bf16.mxu1 %v7907_v16  ;;  %v10404_v15 = vld [vmem:[%s10720_s27 + $0x1c04] ss:$8 sps:$4 sm:$0xff]   ;;  %v7906_v16 = vcombine.low %v11697_v0, %v11697_v0  ;;  %v10402_v0 = vld [vmem:[%s10720_s27 + $0x1c00] ss:$8 sps:$4 sm:$0xff]  }
 0x318   : > { %7483 = vmatprep.mubr.bf16.mxu0 %v7937_v18  ;;  %v7936_v18 = vcombine.low %v11702_v14, %v11702_v14  ;;  %v10407_v14 = vld [vmem:[%s10720_s27 + $0xd14] ss:$8 sps:$4 sm:$0xff]  }
 0x319   : > { %6839 = vmatpush1.bf16.msra.mxu1 %v10305_v21  ;;  %v11779_v21 = vld [vmem:[%s11988_s0 + $0x68] sm:$0xff] }
 0x31a   : > { %7454 = vmatpush1.bf16.msra.mxu0 %v10308_v22  ;;  %6840 = vmatprep.subr.bf16.mxu1 %v10313_v24  ;;  %v11784_v22 = vld [vmem:[%s11988_s0 + $0xe0] sm:$0xff] }
 0x31b   : > { %7455 = vmatprep.subr.bf16.mxu0 %v10316_v25  ;;  %v10397_v24 = vld [vmem:[%s10720_s27 + $0xd00] ss:$8 sps:$4 sm:$0xff]   ;;  %v10410_v25 = vld [vmem:[%s10720_s27 + $0x1c14] ss:$8 sps:$4 sm:$0xff]  }
 0x31d   : > { %6841 = vmatpush1.bf16.msra.mxu1 %v10311_v26  ;;  %v7909_v26 = vcombine.high %v11779_v21, %v11779_v21 }
 0x31e   : > { %7456 = vmatpush1.bf16.msra.mxu0 %v10314_v17  ;;  %6842 = vmatprep.subr.bf16.mxu1 %v10319_v20  ;;  %v7939_v17 = vcombine.high %v11784_v22, %v11784_v22  ;;  %v10405_v20 = vld [vmem:[%s10720_s27 + $0xd10] ss:$8 sps:$4 sm:$0xff]  }
 0x31f   : > { %7457 = vmatprep.subr.bf16.mxu0 %v10322_v27  ;;  %v10408_v27 = vld [vmem:[%s10720_s27 + $0x1c10] ss:$8 sps:$4 sm:$0xff]  }
 0x321   : > { %6843 = vmatpush1.bf16.msra.mxu1 %v10317_v28  ;;  %v10413_v28 = vld [vmem:[%s10720_s27 + $0xd24] ss:$8 sps:$4 sm:$0xff]  }
 0x322   : > { %7458 = vmatpush1.bf16.msra.mxu0 %v10320_v29  ;;  %6844 = vmatprep.subr.bf16.mxu1 %v10325_v19  ;;  %v10416_v29 = vld [vmem:[%s10720_s27 + $0x1c24] ss:$8 sps:$4 sm:$0xff]   ;;  %v10411_v19 = vld [vmem:[%s10720_s27 + $0xd20] ss:$8 sps:$4 sm:$0xff]  }
 0x323   : > { %7459 = vmatprep.subr.bf16.mxu0 %v10328_v32  ;;  %v10414_v32 = vld [vmem:[%s10720_s27 + $0x1c20] ss:$8 sps:$4 sm:$0xff]  }
 0x325   : > { %6845 = vmatpush1.bf16.msra.mxu1 %v10323_v34  ;;  %v10419_v34 = vld [vmem:[%s10720_s27 + $0xd34] ss:$8 sps:$4 sm:$0xff]  }
 0x326   : > { %7460 = vmatpush1.bf16.msra.mxu0 %v10326_v35  ;;  %6846 = vmatprep.subr.bf16.mxu1 %v10331_v36  ;;  %v10422_v35 = vld [vmem:[%s10720_s27 + $0x1c34] ss:$8 sps:$4 sm:$0xff]   ;;  %v10417_v36 = vld [vmem:[%s10720_s27 + $0xd30] ss:$8 sps:$4 sm:$0xff]  }
 0x327   : > { %7461 = vmatprep.subr.bf16.mxu0 %v10334_v37  ;;  %v10420_v37 = vld [vmem:[%s10720_s27 + $0x1c30] ss:$8 sps:$4 sm:$0xff]  }
 0x329   : > { %6847 = vmatpush1.bf16.msra.mxu1 %v10329_v38  ;;  %v10425_v38 = vld [vmem:[%s10720_s27 + $0xd44] ss:$8 sps:$4 sm:$0xff]  }
 0x32a   : > { %7462 = vmatpush1.bf16.msra.mxu0 %v10332_v39  ;;  %6848 = vmatprep.subr.bf16.mxu1 %v10337_v31  ;;  %v10428_v39 = vld [vmem:[%s10720_s27 + $0x1c44] ss:$8 sps:$4 sm:$0xff]   ;;  %v10423_v31 = vld [vmem:[%s10720_s27 + $0xd40] ss:$8 sps:$4 sm:$0xff]  }
 0x32b   : > { %7463 = vmatprep.subr.bf16.mxu0 %v10340_v41  ;;  %v10426_v41 = vld [vmem:[%s10720_s27 + $0x1c40] ss:$8 sps:$4 sm:$0xff]  }
 0x32d   : > { %6849 = vmatpush1.bf16.msra.mxu1 %v10335_v42  ;;  %v10431_v42 = vld [vmem:[%s10720_s27 + $0xd54] ss:$8 sps:$4 sm:$0xff]  }
 0x32e   : > { %7464 = vmatpush1.bf16.msra.mxu0 %v10338_v43  ;;  %6850 = vmatprep.subr.bf16.mxu1 %v10343_v44  ;;  %v10434_v43 = vld [vmem:[%s10720_s27 + $0x1c54] ss:$8 sps:$4 sm:$0xff]   ;;  %v10429_v44 = vld [vmem:[%s10720_s27 + $0xd50] ss:$8 sps:$4 sm:$0xff]  }
 0x32f   : > { %7465 = vmatprep.subr.bf16.mxu0 %v10346_v45  ;;  %v10432_v45 = vld [vmem:[%s10720_s27 + $0x1c50] ss:$8 sps:$4 sm:$0xff]  }
 0x331   : > { %6851 = vmatpush1.bf16.msra.mxu1 %v10341_v33  ;;  %v10437_v33 = vld [vmem:[%s10720_s27 + $0xd64] ss:$8 sps:$4 sm:$0xff]  }
 0x332   : > { %7466 = vmatpush1.bf16.msra.mxu0 %v10344_v47  ;;  %6852 = vmatprep.subr.bf16.mxu1 %v10349_v48  ;;  %v10440_v47 = vld [vmem:[%s10720_s27 + $0x1c64] ss:$8 sps:$4 sm:$0xff]   ;;  %v10435_v48 = vld [vmem:[%s10720_s27 + $0xd60] ss:$8 sps:$4 sm:$0xff]  }
 0x333   : > { %7467 = vmatprep.subr.bf16.mxu0 %v10352_v49  ;;  %v10438_v49 = vld [vmem:[%s10720_s27 + $0x1c60] ss:$8 sps:$4 sm:$0xff]  }
 0x335   : > { %6853 = vmatpush1.bf16.msra.mxu1 %v10347_v50  ;;  %v10443_v50 = vld [vmem:[%s10720_s27 + $0xd74] ss:$8 sps:$4 sm:$0xff]  }
 0x336   : > { %7468 = vmatpush1.bf16.msra.mxu0 %v10350_v51  ;;  %6854 = vmatprep.subr.bf16.mxu1 %v10355_v30  ;;  %v10446_v51 = vld [vmem:[%s10720_s27 + $0x1c74] ss:$8 sps:$4 sm:$0xff]   ;;  %v10441_v30 = vld [vmem:[%s10720_s27 + $0xd70] ss:$8 sps:$4 sm:$0xff]  }
 0x337   : > { %7469 = vmatprep.subr.bf16.mxu0 %v10358_v53  ;;  %v10444_v53 = vld [vmem:[%s10720_s27 + $0x1c70] ss:$8 sps:$4 sm:$0xff]  }
 0x339   : > { %6855 = vmatpush1.bf16.msra.mxu1 %v10353_v54  ;;  %v10449_v54 = vld [vmem:[%s10720_s27 + $0xd84] ss:$8 sps:$4 sm:$0xff]  }
 0x33a   : > { %7470 = vmatpush1.bf16.msra.mxu0 %v10356_v55  ;;  %6856 = vmatprep.subr.bf16.mxu1 %v10361_v56  ;;  %v10452_v55 = vld [vmem:[%s10720_s27 + $0x1c84] ss:$8 sps:$4 sm:$0xff]   ;;  %v10447_v56 = vld [vmem:[%s10720_s27 + $0xd80] ss:$8 sps:$4 sm:$0xff]  }
 0x33b   : > { %7471 = vmatprep.subr.bf16.mxu0 %v10364_v57  ;;  %v10450_v57 = vld [vmem:[%s10720_s27 + $0x1c80] ss:$8 sps:$4 sm:$0xff]  }
 0x33d   : > { %6857 = vmatpush1.bf16.msra.mxu1 %v10359_v58  ;;  %v10455_v58 = vld [vmem:[%s10720_s27 + $0xd94] ss:$8 sps:$4 sm:$0xff]  }
 0x33e   : > { %7472 = vmatpush1.bf16.msra.mxu0 %v10362_v46  ;;  %6858 = vmatprep.subr.bf16.mxu1 %v10367_v60  ;;  %v10458_v46 = vld [vmem:[%s10720_s27 + $0x1c94] ss:$8 sps:$4 sm:$0xff]   ;;  %v10453_v60 = vld [vmem:[%s10720_s27 + $0xd90] ss:$8 sps:$4 sm:$0xff]  }
 0x33f   : > { %7473 = vmatprep.subr.bf16.mxu0 %v10370_v52  ;;  %v10456_v52 = vld [vmem:[%s10720_s27 + $0x1c90] ss:$8 sps:$4 sm:$0xff]  }
 0x341   : > { %6859 = vmatpush1.bf16.msra.mxu1 %v10365_v40  ;;  %v10461_v40 = vld [vmem:[%s10720_s27 + $0xda4] ss:$8 sps:$4 sm:$0xff]  }
 0x342   : > { %7474 = vmatpush1.bf16.msra.mxu0 %v10368_v61  ;;  %6860 = vmatprep.subr.bf16.mxu1 %v10373_v62  ;;  %v10464_v61 = vld [vmem:[%s10720_s27 + $0x1ca4] ss:$8 sps:$4 sm:$0xff]   ;;  %v10459_v62 = vld [vmem:[%s10720_s27 + $0xda0] ss:$8 sps:$4 sm:$0xff]  }
 0x343   : > { %7475 = vmatprep.subr.bf16.mxu0 %v10376_v63  ;;  %v10462_v63 = vld [vmem:[%s10720_s27 + $0x1ca0] ss:$8 sps:$4 sm:$0xff]  }
 0x345   : > { %6861 = vmatpush1.bf16.msra.mxu1 %v10371_v4  ;;  %v10467_v4 = vld [vmem:[%s10720_s27 + $0xdb4] ss:$8 sps:$4 sm:$0xff]  }
 0x346   : > { %7476 = vmatpush1.bf16.msra.mxu0 %v10374_v23  ;;  %6862 = vmatprep.subr.bf16.mxu1 %v10379_v59  ;;  %v10470_v23 = vld [vmem:[%s10720_s27 + $0x1cb4] ss:$8 sps:$4 sm:$0xff]   ;;  %v10465_v59 = vld [vmem:[%s10720_s27 + $0xdb0] ss:$8 sps:$4 sm:$0xff]  }
 0x347   : > { %7477 = vmatprep.subr.bf16.mxu0 %v10382_v5  ;;  %v10468_v5 = vld [vmem:[%s10720_s27 + $0x1cb0] ss:$8 sps:$4 sm:$0xff]  }
 0x349   : > { %6863 = vmatpush1.bf16.msra.mxu1 %v10377_v6  ;;  %v10473_v6 = vld [vmem:[%s10720_s27 + $0xdc4] ss:$8 sps:$4 sm:$0xff]  }
 0x34a   : > { %7478 = vmatpush1.bf16.msra.mxu0 %v10380_v7  ;;  %6864 = vmatprep.subr.bf16.mxu1 %v10385_v10  ;;  %v10476_v7 = vld [vmem:[%s10720_s27 + $0x1cc4] ss:$8 sps:$4 sm:$0xff]   ;;  %v10471_v10 = vld [vmem:[%s10720_s27 + $0xdc0] ss:$8 sps:$4 sm:$0xff]  }
 0x34b   : > { %7479 = vmatprep.subr.bf16.mxu0 %v10388_v2  ;;  %v10474_v2 = vld [vmem:[%s10720_s27 + $0x1cc0] ss:$8 sps:$4 sm:$0xff]  }
 0x34d   : > { %6865 = vmatpush1.bf16.msra.mxu1 %v10383_v3  ;;  %v10479_v3 = vld [vmem:[%s10720_s27 + $0xdd4] ss:$8 sps:$4 sm:$0xff]  }
 0x34e   : > { %7480 = vmatpush1.bf16.msra.mxu0 %v10386_v11  ;;  %6866 = vmatprep.subr.bf16.mxu1 %v10391_v12  ;;  %v10482_v11 = vld [vmem:[%s10720_s27 + $0x1cd4] ss:$8 sps:$4 sm:$0xff]   ;;  %v10477_v12 = vld [vmem:[%s10720_s27 + $0xdd0] ss:$8 sps:$4 sm:$0xff]  }
 0x34f   : > { %7481 = vmatprep.subr.bf16.mxu0 %v10394_v13  ;;  %v10480_v13 = vld [vmem:[%s10720_s27 + $0x1cd0] ss:$8 sps:$4 sm:$0xff]  }
 0x351   : > { %6867 = vmatpush1.bf16.msra.mxu1 %v10389_v1  ;;  %v10485_v1 = vld [vmem:[%s10720_s27 + $0xde4] ss:$8 sps:$4 sm:$0xff]  }
 0x352   : > { %7482 = vmatpush1.bf16.msra.mxu0 %v10392_v8  ;;  %6877 = vmatprep.subr.bf16.mxu1 %v10399_v9  ;;  %v10488_v8 = vld [vmem:[%s10720_s27 + $0x1ce4] ss:$8 sps:$4 sm:$0xff]   ;;  %v10483_v9 = vld [vmem:[%s10720_s27 + $0xde0] ss:$8 sps:$4 sm:$0xff]  }
 0x353   : > { %7492 = vmatprep.subr.bf16.mxu0 %v10404_v15  ;;  %v10486_v15 = vld [vmem:[%s10720_s27 + $0x1ce0] ss:$8 sps:$4 sm:$0xff]  }
 0x354   : > { %6869 = vmatmul.mubr.bf16.vlgmr.msra.gmra.mrb[0].mxu1 %v7906_v16  ;;  %v10491_v16 = vld [vmem:[%s10720_s27 + $0xdf4] ss:$8 sps:$4 sm:$0xff]  }
 0x355   : > { %7484 = vmatmul.mubr.bf16.vlgmr.msra.gmra.mrb[0].mxu0 %v7936_v18  ;;  %6878 = vmatpush1.bf16.msra.mxu1 %v10397_v24  ;;  %v10494_v18 = vld [vmem:[%s10720_s27 + $0x1cf4] ss:$8 sps:$4 sm:$0xff]   ;;  %v10489_v24 = vld [vmem:[%s10720_s27 + $0xdf0] ss:$8 sps:$4 sm:$0xff]  }
 0x356   : > { %7493 = vmatpush1.bf16.msra.mxu0 %v10402_v0  ;;  %6879 = vmatprep.subr.bf16.mxu1 %v10407_v14  ;;  %v10492_v0 = vld [vmem:[%s10720_s27 + $0x1cf0] ss:$8 sps:$4 sm:$0xff]   ;;  %v10499_v14 = vld [vmem:[%s10720_s27 + $0xe04] ss:$8 sps:$4 sm:$0xff]  }
 0x357   : > { %7494 = vmatprep.subr.bf16.mxu0 %v10410_v25  ;;  %6909 = vmatprep.mubr.bf16.mxu1 %v7909_v26  ;;  %v10504_v25 = vld [vmem:[%s10720_s27 + $0x1d04] ss:$8 sps:$4 sm:$0xff]   ;;  %v7908_v26 = vcombine.low %v11779_v21, %v11779_v21  ;;  %v10502_v21 = vld [vmem:[%s10720_s27 + $0x1d00] ss:$8 sps:$4 sm:$0xff]  }
 0x358   : > { %7524 = vmatprep.mubr.bf16.mxu0 %v7939_v17  ;;  %v7938_v17 = vcombine.low %v11784_v22, %v11784_v22  ;;  %v10507_v22 = vld [vmem:[%s10720_s27 + $0xe14] ss:$8 sps:$4 sm:$0xff]  }
 0x359   : > { %6880 = vmatpush1.bf16.msra.mxu1 %v10405_v20  ;;  %v11867_v20 = vld [vmem:[%s11988_s0 + $0x70] sm:$0xff] }
 0x35a   : > { %7495 = vmatpush1.bf16.msra.mxu0 %v10408_v27  ;;  %6881 = vmatprep.subr.bf16.mxu1 %v10413_v28  ;;  %v11872_v27 = vld [vmem:[%s11988_s0 + $0xe8] sm:$0xff] }
 0x35b   : > { %7496 = vmatprep.subr.bf16.mxu0 %v10416_v29  ;;  %v10497_v28 = vld [vmem:[%s10720_s27 + $0xe00] ss:$8 sps:$4 sm:$0xff]   ;;  %v10510_v29 = vld [vmem:[%s10720_s27 + $0x1d14] ss:$8 sps:$4 sm:$0xff]  }
 0x35d   : > { %6882 = vmatpush1.bf16.msra.mxu1 %v10411_v19  ;;  %v7911_v19 = vcombine.high %v11867_v20, %v11867_v20 }
 0x35e   : > { %7497 = vmatpush1.bf16.msra.mxu0 %v10414_v32  ;;  %6883 = vmatprep.subr.bf16.mxu1 %v10419_v34  ;;  %v7941_v32 = vcombine.high %v11872_v27, %v11872_v27  ;;  %v10505_v34 = vld [vmem:[%s10720_s27 + $0xe10] ss:$8 sps:$4 sm:$0xff]  }
 0x35f   : > { %7498 = vmatprep.subr.bf16.mxu0 %v10422_v35  ;;  %v10508_v35 = vld [vmem:[%s10720_s27 + $0x1d10] ss:$8 sps:$4 sm:$0xff]  }
 0x361   : > { %6884 = vmatpush1.bf16.msra.mxu1 %v10417_v36  ;;  %v10513_v36 = vld [vmem:[%s10720_s27 + $0xe24] ss:$8 sps:$4 sm:$0xff]  }
 0x362   : > { %7499 = vmatpush1.bf16.msra.mxu0 %v10420_v37  ;;  %6885 = vmatprep.subr.bf16.mxu1 %v10425_v38  ;;  %v10516_v37 = vld [vmem:[%s10720_s27 + $0x1d24] ss:$8 sps:$4 sm:$0xff]   ;;  %v10511_v38 = vld [vmem:[%s10720_s27 + $0xe20] ss:$8 sps:$4 sm:$0xff]  }
 0x363   : > { %7500 = vmatprep.subr.bf16.mxu0 %v10428_v39  ;;  %v10514_v39 = vld [vmem:[%s10720_s27 + $0x1d20] ss:$8 sps:$4 sm:$0xff]  }
 0x365   : > { %6886 = vmatpush1.bf16.msra.mxu1 %v10423_v31  ;;  %v10519_v31 = vld [vmem:[%s10720_s27 + $0xe34] ss:$8 sps:$4 sm:$0xff]  }
 0x366   : > { %7501 = vmatpush1.bf16.msra.mxu0 %v10426_v41  ;;  %6887 = vmatprep.subr.bf16.mxu1 %v10431_v42  ;;  %v10522_v41 = vld [vmem:[%s10720_s27 + $0x1d34] ss:$8 sps:$4 sm:$0xff]   ;;  %v10517_v42 = vld [vmem:[%s10720_s27 + $0xe30] ss:$8 sps:$4 sm:$0xff]  }
 0x367   : > { %7502 = vmatprep.subr.bf16.mxu0 %v10434_v43  ;;  %v10520_v43 = vld [vmem:[%s10720_s27 + $0x1d30] ss:$8 sps:$4 sm:$0xff]  }
 0x369   : > { %6888 = vmatpush1.bf16.msra.mxu1 %v10429_v44  ;;  %v10525_v44 = vld [vmem:[%s10720_s27 + $0xe44] ss:$8 sps:$4 sm:$0xff]  }
 0x36a   : > { %7503 = vmatpush1.bf16.msra.mxu0 %v10432_v45  ;;  %6889 = vmatprep.subr.bf16.mxu1 %v10437_v33  ;;  %v10528_v45 = vld [vmem:[%s10720_s27 + $0x1d44] ss:$8 sps:$4 sm:$0xff]   ;;  %v10523_v33 = vld [vmem:[%s10720_s27 + $0xe40] ss:$8 sps:$4 sm:$0xff]  }
 0x36b   : > { %7504 = vmatprep.subr.bf16.mxu0 %v10440_v47  ;;  %v10526_v47 = vld [vmem:[%s10720_s27 + $0x1d40] ss:$8 sps:$4 sm:$0xff]  }
 0x36d   : > { %6890 = vmatpush1.bf16.msra.mxu1 %v10435_v48  ;;  %v10531_v48 = vld [vmem:[%s10720_s27 + $0xe54] ss:$8 sps:$4 sm:$0xff]  }
 0x36e   : > { %7505 = vmatpush1.bf16.msra.mxu0 %v10438_v49  ;;  %6891 = vmatprep.subr.bf16.mxu1 %v10443_v50  ;;  %v10534_v49 = vld [vmem:[%s10720_s27 + $0x1d54] ss:$8 sps:$4 sm:$0xff]   ;;  %v10529_v50 = vld [vmem:[%s10720_s27 + $0xe50] ss:$8 sps:$4 sm:$0xff]  }
 0x36f   : > { %7506 = vmatprep.subr.bf16.mxu0 %v10446_v51  ;;  %v10532_v51 = vld [vmem:[%s10720_s27 + $0x1d50] ss:$8 sps:$4 sm:$0xff]  }
 0x371   : > { %6892 = vmatpush1.bf16.msra.mxu1 %v10441_v30  ;;  %v10537_v30 = vld [vmem:[%s10720_s27 + $0xe64] ss:$8 sps:$4 sm:$0xff]  }
 0x372   : > { %7507 = vmatpush1.bf16.msra.mxu0 %v10444_v53  ;;  %6893 = vmatprep.subr.bf16.mxu1 %v10449_v54  ;;  %v10540_v53 = vld [vmem:[%s10720_s27 + $0x1d64] ss:$8 sps:$4 sm:$0xff]   ;;  %v10535_v54 = vld [vmem:[%s10720_s27 + $0xe60] ss:$8 sps:$4 sm:$0xff]  }
 0x373   : > { %7508 = vmatprep.subr.bf16.mxu0 %v10452_v55  ;;  %v10538_v55 = vld [vmem:[%s10720_s27 + $0x1d60] ss:$8 sps:$4 sm:$0xff]  }
 0x375   : > { %6894 = vmatpush1.bf16.msra.mxu1 %v10447_v56  ;;  %v10543_v56 = vld [vmem:[%s10720_s27 + $0xe74] ss:$8 sps:$4 sm:$0xff]  }
 0x376   : > { %7509 = vmatpush1.bf16.msra.mxu0 %v10450_v57  ;;  %6895 = vmatprep.subr.bf16.mxu1 %v10455_v58  ;;  %v10546_v57 = vld [vmem:[%s10720_s27 + $0x1d74] ss:$8 sps:$4 sm:$0xff]   ;;  %v10541_v58 = vld [vmem:[%s10720_s27 + $0xe70] ss:$8 sps:$4 sm:$0xff]  }
 0x377   : > { %7510 = vmatprep.subr.bf16.mxu0 %v10458_v46  ;;  %v10544_v46 = vld [vmem:[%s10720_s27 + $0x1d70] ss:$8 sps:$4 sm:$0xff]  }
 0x379   : > { %6896 = vmatpush1.bf16.msra.mxu1 %v10453_v60  ;;  %v10549_v60 = vld [vmem:[%s10720_s27 + $0xe84] ss:$8 sps:$4 sm:$0xff]  }
 0x37a   : > { %7511 = vmatpush1.bf16.msra.mxu0 %v10456_v52  ;;  %6897 = vmatprep.subr.bf16.mxu1 %v10461_v40  ;;  %v10552_v52 = vld [vmem:[%s10720_s27 + $0x1d84] ss:$8 sps:$4 sm:$0xff]   ;;  %v10547_v40 = vld [vmem:[%s10720_s27 + $0xe80] ss:$8 sps:$4 sm:$0xff]  }
 0x37b   : > { %7512 = vmatprep.subr.bf16.mxu0 %v10464_v61  ;;  %v10550_v61 = vld [vmem:[%s10720_s27 + $0x1d80] ss:$8 sps:$4 sm:$0xff]  }
 0x37d   : > { %6898 = vmatpush1.bf16.msra.mxu1 %v10459_v62  ;;  %v10555_v62 = vld [vmem:[%s10720_s27 + $0xe94] ss:$8 sps:$4 sm:$0xff]  }
 0x37e   : > { %7513 = vmatpush1.bf16.msra.mxu0 %v10462_v63  ;;  %6899 = vmatprep.subr.bf16.mxu1 %v10467_v4  ;;  %v10558_v63 = vld [vmem:[%s10720_s27 + $0x1d94] ss:$8 sps:$4 sm:$0xff]   ;;  %v10553_v4 = vld [vmem:[%s10720_s27 + $0xe90] ss:$8 sps:$4 sm:$0xff]  }
 0x37f   : > { %7514 = vmatprep.subr.bf16.mxu0 %v10470_v23  ;;  %v10556_v23 = vld [vmem:[%s10720_s27 + $0x1d90] ss:$8 sps:$4 sm:$0xff]  }
 0x381   : > { %6900 = vmatpush1.bf16.msra.mxu1 %v10465_v59  ;;  %v10561_v59 = vld [vmem:[%s10720_s27 + $0xea4] ss:$8 sps:$4 sm:$0xff]  }
 0x382   : > { %7515 = vmatpush1.bf16.msra.mxu0 %v10468_v5  ;;  %6901 = vmatprep.subr.bf16.mxu1 %v10473_v6  ;;  %v10564_v5 = vld [vmem:[%s10720_s27 + $0x1da4] ss:$8 sps:$4 sm:$0xff]   ;;  %v10559_v6 = vld [vmem:[%s10720_s27 + $0xea0] ss:$8 sps:$4 sm:$0xff]  }
 0x383   : > { %7516 = vmatprep.subr.bf16.mxu0 %v10476_v7  ;;  %v10562_v7 = vld [vmem:[%s10720_s27 + $0x1da0] ss:$8 sps:$4 sm:$0xff]  }
 0x385   : > { %6902 = vmatpush1.bf16.msra.mxu1 %v10471_v10  ;;  %v10567_v10 = vld [vmem:[%s10720_s27 + $0xeb4] ss:$8 sps:$4 sm:$0xff]  }
 0x386   : > { %7517 = vmatpush1.bf16.msra.mxu0 %v10474_v2  ;;  %6903 = vmatprep.subr.bf16.mxu1 %v10479_v3  ;;  %v10570_v2 = vld [vmem:[%s10720_s27 + $0x1db4] ss:$8 sps:$4 sm:$0xff]   ;;  %v10565_v3 = vld [vmem:[%s10720_s27 + $0xeb0] ss:$8 sps:$4 sm:$0xff]  }
 0x387   : > { %7518 = vmatprep.subr.bf16.mxu0 %v10482_v11  ;;  %v10568_v11 = vld [vmem:[%s10720_s27 + $0x1db0] ss:$8 sps:$4 sm:$0xff]  }
 0x389   : > { %6904 = vmatpush1.bf16.msra.mxu1 %v10477_v12  ;;  %v10573_v12 = vld [vmem:[%s10720_s27 + $0xec4] ss:$8 sps:$4 sm:$0xff]  }
 0x38a   : > { %7519 = vmatpush1.bf16.msra.mxu0 %v10480_v13  ;;  %6905 = vmatprep.subr.bf16.mxu1 %v10485_v1  ;;  %v10576_v13 = vld [vmem:[%s10720_s27 + $0x1dc4] ss:$8 sps:$4 sm:$0xff]   ;;  %v10571_v1 = vld [vmem:[%s10720_s27 + $0xec0] ss:$8 sps:$4 sm:$0xff]  }
 0x38b   : > { %7520 = vmatprep.subr.bf16.mxu0 %v10488_v8  ;;  %v10574_v8 = vld [vmem:[%s10720_s27 + $0x1dc0] ss:$8 sps:$4 sm:$0xff]  }
 0x38d   : > { %6906 = vmatpush1.bf16.msra.mxu1 %v10483_v9  ;;  %v10579_v9 = vld [vmem:[%s10720_s27 + $0xed4] ss:$8 sps:$4 sm:$0xff]  }
 0x38e   : > { %7521 = vmatpush1.bf16.msra.mxu0 %v10486_v15  ;;  %6907 = vmatprep.subr.bf16.mxu1 %v10491_v16  ;;  %v10582_v15 = vld [vmem:[%s10720_s27 + $0x1dd4] ss:$8 sps:$4 sm:$0xff]   ;;  %v10577_v16 = vld [vmem:[%s10720_s27 + $0xed0] ss:$8 sps:$4 sm:$0xff]  }
 0x38f   : > { %7522 = vmatprep.subr.bf16.mxu0 %v10494_v18  ;;  %v10580_v18 = vld [vmem:[%s10720_s27 + $0x1dd0] ss:$8 sps:$4 sm:$0xff]  }
 0x391   : > { %6908 = vmatpush1.bf16.msra.mxu1 %v10489_v24  ;;  %v10585_v24 = vld [vmem:[%s10720_s27 + $0xee4] ss:$8 sps:$4 sm:$0xff]  }
 0x392   : > { %7523 = vmatpush1.bf16.msra.mxu0 %v10492_v0  ;;  %6918 = vmatprep.subr.bf16.mxu1 %v10499_v14  ;;  %v10588_v0 = vld [vmem:[%s10720_s27 + $0x1de4] ss:$8 sps:$4 sm:$0xff]   ;;  %v10583_v14 = vld [vmem:[%s10720_s27 + $0xee0] ss:$8 sps:$4 sm:$0xff]  }
 0x393   : > { %7533 = vmatprep.subr.bf16.mxu0 %v10504_v25  ;;  %v10586_v25 = vld [vmem:[%s10720_s27 + $0x1de0] ss:$8 sps:$4 sm:$0xff]  }
 0x394   : > { %6910 = vmatmul.mubr.bf16.vlgmr.msra.gmra.mrb[0].mxu1 %v7908_v26  ;;  %v10591_v26 = vld [vmem:[%s10720_s27 + $0xef4] ss:$8 sps:$4 sm:$0xff]  }
 0x395   : > { %7525 = vmatmul.mubr.bf16.vlgmr.msra.gmra.mrb[0].mxu0 %v7938_v17  ;;  %6919 = vmatpush1.bf16.msra.mxu1 %v10497_v28  ;;  %v10594_v17 = vld [vmem:[%s10720_s27 + $0x1df4] ss:$8 sps:$4 sm:$0xff]   ;;  %v10589_v28 = vld [vmem:[%s10720_s27 + $0xef0] ss:$8 sps:$4 sm:$0xff]  }
 0x396   : > { %7534 = vmatpush1.bf16.msra.mxu0 %v10502_v21  ;;  %6920 = vmatprep.subr.bf16.mxu1 %v10507_v22  ;;  %v10592_v21 = vld [vmem:[%s10720_s27 + $0x1df0] ss:$8 sps:$4 sm:$0xff]   ;;  %v10601_v22 = vld [vmem:[%s10720_s27 + $0x1e04] ss:$8 sps:$4 sm:$0xff]  }
 0x397   : > { %7535 = vmatprep.subr.bf16.mxu0 %v10510_v29  ;;  %6950 = vmatprep.mubr.bf16.mxu1 %v7911_v19  ;;  %v10612_v29 = vld [vmem:[%s11822_s22 + $0x40] sm:$0xff]   ;;  %v7910_v19 = vcombine.low %v11867_v20, %v11867_v20  ;;  %v10602_v20 = vld [vmem:[%s10720_s27 + $0x1e10] ss:$8 sps:$4 sm:$0xff]  }
 0x398   : > { %7565 = vmatprep.mubr.bf16.mxu0 %v7941_v32  ;;  %v7940_v32 = vcombine.low %v11872_v27, %v11872_v27  ;;  %v10607_v27 = vld [vmem:[%s10720_s27 + $0x1e24] ss:$8 sps:$4 sm:$0xff]  }
 0x399   : > { %6921 = vmatpush1.bf16.msra.mxu1 %v10505_v34  ;;  %v10599_v34 = vld [vmem:[%s10720_s27 + $0x1e00] ss:$8 sps:$4 sm:$0xff]  }
 0x39a   : > { %7536 = vmatpush1.bf16.msra.mxu0 %v10508_v35  ;;  %6922 = vmatprep.subr.bf16.mxu1 %v10513_v36  ;;  %v10604_v35 = vld [vmem:[%s10720_s27 + $0x1e14] ss:$8 sps:$4 sm:$0xff]   ;;  %v10613_v36 = vld [vmem:[%s11822_s22] sm:$0xff]  }
 0x39b   : > { %7537 = vmatprep.subr.bf16.mxu0 %v10516_v37  ;;  %v10614_v37 = vld [vmem:[%s11822_s22 + $0x48] sm:$0xff]  }
 0x39d   : > { %6923 = vmatpush1.bf16.msra.mxu1 %v10511_v38  ;;  %v10652_v38 = vmov 0  }
 0x39e   : > { %7538 = vmatpush1.bf16.msra.mxu0 %v10514_v39  ;;  %6924 = vmatprep.subr.bf16.mxu1 %v10519_v31  ;;  %v10615_v39 = vld [vmem:[%s11822_s22 + $0x8] sm:$0xff]  }
 0x39f   : > { %7539 = vmatprep.subr.bf16.mxu0 %v10522_v41  ;;  %v10605_v31 = vld [vmem:[%s10720_s27 + $0x1e20] ss:$8 sps:$4 sm:$0xff]   ;;  %v10610_v41 = vld [vmem:[%s10720_s27 + $0x1e34] ss:$8 sps:$4 sm:$0xff]  }
 0x3a1   : > { %6925 = vmatpush1.bf16.msra.mxu1 %v10517_v42  ;;  %v10608_v42 = vld [vmem:[%s10720_s27 + $0x1e30] ss:$8 sps:$4 sm:$0xff]   ;;  %s7878_s27 = sshll.u32 %s10642_s15, 1  ;;  %s7881_s15 = sshll.u32 %s10714_s23, 3 }
 0x3a2   : > { %7540 = vmatpush1.bf16.msra.mxu0 %v10520_v43  ;;  %6926 = vmatprep.subr.bf16.mxu1 %v10525_v44  ;;  %v10611_v43 = vld [vmem:[%s11988_s0 + $0xf0] ss:$0 sps:$4 sm:$0xff]   ;;  %p253_p6 = scmp.lt.s32.totalorder %s7878_s27, 3  ;;  %s269_s10 = scalar_lea.vmem %s11992_s4, %s7881_s15 }
 0x3a3   : > { %7541 = vmatprep.subr.bf16.mxu0 %v10528_v45  ;;  %v10616_v44 = vld [vmem:[%s11822_s22 + $0x50] sm:$0xff]  }
 0x3a4   : > { %v10617_v45 = vld [vmem:[%s11822_s22 + $0x10] sm:$0xff]   ;;  %s12000_s27 = smov (!%p253_p6, %s7878_s27), 3 }
 0x3a5   : > { %6927 = vmatpush1.bf16.msra.mxu1 %v10523_v33  ;;  %v10618_v33 = vld [vmem:[%s11822_s22 + $0x58] sm:$0xff]   ;;  %s255_s7 = scalar_lea.vmem %s11990_s2, %s12000_s27 }
 0x3a6   : > { %7542 = vmatpush1.bf16.msra.mxu0 %v10526_v47  ;;  %6928 = vmatprep.subr.bf16.mxu1 %v10531_v48  ;;  %v10619_v47 = vld [vmem:[%s11822_s22 + $0x18] sm:$0xff]   ;;  %v10620_v48 = vld [vmem:[%s11822_s22 + $0x60] sm:$0xff]  }
 0x3a7   : > { %7543 = vmatprep.subr.bf16.mxu0 %v10534_v49  ;;  %v10621_v49 = vld [vmem:[%s11822_s22 + $0x20] sm:$0xff]  }
 0x3a9   : > { %6929 = vmatpush1.bf16.msra.mxu1 %v10529_v50  ;;  %v10622_v50 = vld [vmem:[%s11822_s22 + $0x68] sm:$0xff]  }
 0x3aa   : > { %7544 = vmatpush1.bf16.msra.mxu0 %v10532_v51  ;;  %6930 = vmatprep.subr.bf16.mxu1 %v10537_v30  ;;  %v10623_v51 = vld [vmem:[%s11822_s22 + $0x28] sm:$0xff]   ;;  %v10624_v30 = vld [vmem:[%s11822_s22 + $0x70] sm:$0xff]  }
 0x3ab   : > { %7545 = vmatprep.subr.bf16.mxu0 %v10540_v53  ;;  %v10625_v53 = vld [vmem:[%s11822_s22 + $0x30] sm:$0xff]  }
 0x3ad   : > { %6931 = vmatpush1.bf16.msra.mxu1 %v10535_v54  ;;  %v10626_v54 = vld [vmem:[%s11822_s22 + $0x78] sm:$0xff]  }
 0x3ae   : > { %7546 = vmatpush1.bf16.msra.mxu0 %v10538_v55  ;;  %6932 = vmatprep.subr.bf16.mxu1 %v10543_v56  ;;  %v10627_v55 = vld [vmem:[%s11822_s22 + $0x38] sm:$0xff]   ;;  %v1277_v56 = vlaneseq }
 0x3af   : > { %7547 = vmatprep.subr.bf16.mxu0 %v10546_v57 }
 0x3b1   : > { %6933 = vmatpush1.bf16.msra.mxu1 %v10541_v58 }
 0x3b2   : > { %7548 = vmatpush1.bf16.msra.mxu0 %v10544_v46  ;;  %6934 = vmatprep.subr.bf16.mxu1 %v10549_v60  ;;  %v1278_v60 = vshrl.u32 %v1277_v56, 7 }
 0x3b3   : > { %7549 = vmatprep.subr.bf16.mxu0 %v10552_v52 }
 0x3b5   : > { %6935 = vmatpush1.bf16.msra.mxu1 %v10547_v40  ;;  %v1279_v40 = vsub.s32 0, %v1278_v60 }
 0x3b6   : > { %7550 = vmatpush1.bf16.msra.mxu0 %v10550_v61  ;;  %6936 = vmatprep.subr.bf16.mxu1 %v10555_v62  ;;  %v1275_v61 = vld [vmem:[%s255_s7] sm:$0x3]  ;;  %v1283_v62 = vsub.s32 1, %v1278_v60 }
 0x3b7   : > { %7551 = vmatprep.subr.bf16.mxu0 %v10558_v63  ;;  %v1280_v63 = vrot.slane %v1275_v61, %v1279_v40 }
 0x3b9   : > { %6937 = vmatpush1.bf16.msra.mxu1 %v10553_v4  ;;  %v1284_v4 = vrot.slane %v1275_v61, %v1283_v62 }
 0x3ba   : > { %7552 = vmatpush1.bf16.msra.mxu0 %v10556_v23  ;;  %6938 = vmatprep.subr.bf16.mxu1 %v10561_v59 }
 0x3bb   : > { %7553 = vmatprep.subr.bf16.mxu0 %v10564_v5 }
 0x3bd   : > { %6939 = vmatpush1.bf16.msra.mxu1 %v10559_v6 }
 0x3be   : > { %7554 = vmatpush1.bf16.msra.mxu0 %v10562_v7  ;;  %6940 = vmatprep.subr.bf16.mxu1 %v10567_v10 }
 0x3bf   : > { %7555 = vmatprep.subr.bf16.mxu0 %v10570_v2 }
 0x3c1   : > { %6941 = vmatpush1.bf16.msra.mxu1 %v10565_v3 }
 0x3c2   : > { %7556 = vmatpush1.bf16.msra.mxu0 %v10568_v11  ;;  %6942 = vmatprep.subr.bf16.mxu1 %v10573_v12 }
 0x3c3   : > { %7557 = vmatprep.subr.bf16.mxu0 %v10576_v13 }
 0x3c5   : > { %6943 = vmatpush1.bf16.msra.mxu1 %v10571_v1 }
 0x3c6   : > { %7558 = vmatpush1.bf16.msra.mxu0 %v10574_v8  ;;  %6944 = vmatprep.subr.bf16.mxu1 %v10579_v9 }
 0x3c7   : > { %7559 = vmatprep.subr.bf16.mxu0 %v10582_v15 }
 0x3c9   : > { %6945 = vmatpush1.bf16.msra.mxu1 %v10577_v16 }
 0x3ca   : > { %7560 = vmatpush1.bf16.msra.mxu0 %v10580_v18  ;;  %6946 = vmatprep.subr.bf16.mxu1 %v10585_v24 }
 0x3cb   : > { %7561 = vmatprep.subr.bf16.mxu0 %v10588_v0 }
 0x3cd   : > { %6947 = vmatpush1.bf16.msra.mxu1 %v10583_v14 }
 0x3ce   : > { %7562 = vmatpush1.bf16.msra.mxu0 %v10586_v25  ;;  %6948 = vmatprep.subr.bf16.mxu1 %v10591_v26 }
 0x3cf   : > { %7563 = vmatprep.subr.bf16.mxu0 %v10594_v17 }
 0x3d1   : > { %6949 = vmatpush1.bf16.msra.mxu1 %v10589_v28 }
 0x3d2   : > { %7564 = vmatpush1.bf16.msra.mxu0 %v10592_v21  ;;  %8930 = vmatprep.subr.bf16.mxu1 %v10612_v29 }
 0x3d3   : > { %7574 = vmatprep.subr.bf16.mxu0 %v10601_v22 }
 0x3d4   : > { %6951 = vmatmul.mubr.bf16.vlgmr.msra.gmra.mrb[0].mxu1 %v7910_v19 }
 0x3d5   : > { %7566 = vmatmul.mubr.bf16.vlgmr.msra.gmra.mrb[0].mxu0 %v7940_v32  ;;  %8931 = vmatpush3.bf16.msra.mxu1 %v10613_v36 }
 0x3d6   : > { %7575 = vmatpush1.bf16.msra.mxu0 %v10599_v34  ;;  %7606 = vmatprep.mubr.bf16.mxu0 %v10652_v38 }
 0x3d7   : > { %7576 = vmatprep.subr.bf16.mxu0 %v10604_v35  ;;  %8932 = vmatprep.subr.bf16.mxu1 %v10614_v37 }
 0x3d9   : > { %8933 = vmatpush3.bf16.msra.mxu1 %v10615_v39 }
 0x3da   : > { %7577 = vmatpush1.bf16.msra.mxu0 %v10602_v20  ;;  %8934 = vmatprep.subr.bf16.mxu1 %v10616_v44 }
 0x3db   : > { %7578 = vmatprep.subr.bf16.mxu0 %v10607_v27 }
 0x3dd   : > { %8935 = vmatpush3.bf16.msra.mxu1 %v10617_v45 }
 0x3de   : > { %7579 = vmatpush1.bf16.msra.mxu0 %v10605_v31  ;;  %8936 = vmatprep.subr.bf16.mxu1 %v10618_v33 }
 0x3df   : > { %7580 = vmatprep.subr.bf16.mxu0 %v10610_v41 }
 0x3e1   : > { %8937 = vmatpush3.bf16.msra.mxu1 %v10619_v47 }
 0x3e2   : > { %7581 = vmatpush1.bf16.msra.mxu0 %v10608_v42  ;;  %8938 = vmatprep.subr.bf16.mxu1 %v10620_v48 }
 0x3e5   : > { %8911 = vmatmul.mubr.msk.bf16.vlgmr.msra.gmra.mrb[0].mxu0 %vm6340_vm0, %v10611_v43  ;;  %8939 = vmatpush3.bf16.msra.mxu1 %v10621_v49 }
 0x3e6   : > { %8940 = vmatprep.subr.bf16.mxu1 %v10622_v50 }
 0x3e9   : > { %8941 = vmatpush3.bf16.msra.mxu1 %v10623_v51 }
 0x3ea   : > { %8942 = vmatprep.subr.bf16.mxu1 %v10624_v30 }
 0x3ed   : > { %8943 = vmatpush3.bf16.msra.mxu1 %v10625_v53 }
 0x3ee   : > { %8944 = vmatprep.subr.bf16.mxu1 %v10626_v54 }
 0x3f1   : > { %8945 = vmatpush3.bf16.msra.mxu1 %v10627_v55 }
 0x4a7   : > { %v6952_v57 = vpop.f32.mrb[0].mxu1 }
 0x4a8   : > { %v6954_v58 = vpop.f32.mrb[1].mxu1  ;;  %v8952_v23 = vadd.f32 %v6952_v57, %v1280_v63 }
 0x4a9   : > { %v6956_v46 = vpop.f32.mrb[2].mxu1  ;;  %v8954_v59 = vadd.f32 %v6954_v58, %v1284_v4 }
 0x4aa   : > { %v6957_v52 = vpop.f32.mrb[3].mxu1 }
 0x4b8   : > { %v7608_v5 = vpop.f32.mrb[0].mxu0 }
 0x4b9   : > { %v8953_v6 = vadd.f32 %v8952_v23, %v7608_v5  ;;  %v7610_v7 = vpop.f32.mrb[1].mxu0 }
 0x4ba   : > { %v8955_v10 = vadd.f32 %v8954_v59, %v7610_v7  ;;  %v7612_v2 = vpop.f32.mrb[2].mxu0 }
 0x4bb   : > { %v7615_v3 = vmax.f32 %v8953_v6, 0.0  ;;  %v7613_v11 = vpop.f32.mrb[3].mxu0 }
 0x4bc   : > { %v7616_v12 = vmax.f32 %v8955_v10, 0.0 }
 0x4bd   : > { %v7617_v1 = vpack.c.bf16 %v7615_v3, %v7615_v3 }
 0x4be   : > { %v7618_v13 = vpack.c.bf16 %v7616_v12, %v7616_v12 }
 0x4c0   : > { %7779 = vmatprep.mubr.bf16.mxu1 %v7618_v13 }
 0x4c1   : > { %7780 = vmatmul.mubr.bf16.vlgmr.msra.gmra.mrb[4].mxu1 %v7617_v1 }
 0x594   : > { %v8946_v8 = vpop.f32.mrb[4].mxu1 }
 0x595   : > { %v8947_v9 = vpop.f32.mrb[5].mxu1 }
 0x596   : > { %v8948_v15 = vadd.f32 %v8947_v9, %v8946_v8  ;;  %v8949_v16 = vpop.f32.mrb[6].mxu1 }
 0x597   : > { %v8950_v18 = vpop.f32.mrb[7].mxu1 }
 0x598   : > { %7789 = vst [vmem:[%s269_s10] sm:$0xff] %v8948_v15 }
 0x599 PF: > { %s14_s17 = sadd.s32 1, %s10650_s17   ;;  %s11993_s15 = smov %s10646_s16 }
 0x59a   : > { %p11_p7 = scmp.ge.s32.totalorder %s14_s17, 4   ;;  %s11994_s16 = smov %s11996_s18 }
 0x59c   :  { %13 = sbr.rel (!%p11_p7) target bundleno = 2 (0x2), region = 76 }

</bundles_post_ra>
